<compile_context>
chip_gen: v7x
topology: tpu7x:2x2x1
jax: 0.10.0
libtpu: 0.0.40
codegen_flags: <defaults>
</compile_context>

<pallas_src>
import jax
import jax.numpy as jnp
from jax.experimental import pallas as pl
from jax.experimental.pallas import tpu as pltpu

BN_EPS = 1e-5


# ----------------------------- fused kernel ----------------------------------


def _fused_pinn_kernel(
    # VMEM auto-copied inputs (small / needed immediately)
    x_comp_ref, x_tar_ref,
    w1c_ref, bn1c_ref, bn2c_ref, bn3c_ref,
    w1t_ref, bn1t_ref, bn2t_ref, bn3t_ref,
    bfc1_ref, bfc2_ref, wout_ref, bout_ref,
    # HBM-resident (pl.ANY) inputs, manually DMA'd so they overlap compute
    w2c_hbm, w3c_hbm, w2t_hbm, w3t_hbm, wfc1c_hbm, wfc1t_hbm, wfc2_hbm,
    # output
    o_ref,
    # scratch: VMEM landing buffers + DMA semaphores
    w2c_v, w3c_v, w2t_v, w3t_v, wfc1c_v, wfc1t_v, wfc2_v, sems,
):
    srcs = (w2c_hbm, w3c_hbm, w2t_hbm, w3t_hbm, wfc1c_hbm, wfc1t_hbm, wfc2_hbm)
    dsts = (w2c_v, w3c_v, w2t_v, w3t_v, wfc1c_v, wfc1t_v, wfc2_v)

    # Kick off every later-layer weight DMA up front (issue order == consume
    # order); they stream from HBM while layer-1 compute runs.
    for i in range(7):
        pltpu.make_async_copy(srcs[i], dsts[i], sems.at[i]).start()

    def ready(i):
        # Block until weight i has landed, then up-cast to f32 (activations and
        # accumulation stay f32 -- only the HBM storage/stream is bf16).
        pltpu.make_async_copy(srcs[i], dsts[i], sems.at[i]).wait()
        return dsts[i][...].astype(jnp.float32)

    def linear_bn_relu(x, w, bn_ref):
        # Linear (bias omitted: exactly cancelled by the batch-mean subtraction
        # of training-mode BatchNorm) -> BatchNorm1d -> ReLU.  Dropout == id.
        y = jnp.dot(x, w, preferred_element_type=jnp.float32)
        m = jnp.mean(y, axis=0, keepdims=True)
        m2 = jnp.mean(y * y, axis=0, keepdims=True)   # single-pass statistics
        var = m2 - m * m                               # biased variance
        xhat = (y - m) * jax.lax.rsqrt(var + BN_EPS)
        return jnp.maximum(bn_ref[0:1, :] * xhat + bn_ref[1:2, :], 0.0)

    # comp branch (activations live in vregs/VMEM only)
    c = linear_bn_relu(x_comp_ref[...], w1c_ref[...].astype(jnp.float32), bn1c_ref)
    c = linear_bn_relu(c, ready(0), bn2c_ref)
    c = linear_bn_relu(c, ready(1), bn3c_ref)

    # tar branch
    t = linear_bn_relu(x_tar_ref[...], w1t_ref[...].astype(jnp.float32), bn1t_ref)
    t = linear_bn_relu(t, ready(2), bn2t_ref)
    t = linear_bn_relu(t, ready(3), bn3t_ref)

    # head: fc1(concat([c, t])) == c @ W1[:256] + t @ W1[256:]   (no concat op)
    h = (jnp.dot(c, ready(4), preferred_element_type=jnp.float32)
         + jnp.dot(t, ready(5), preferred_element_type=jnp.float32)
         + bfc1_ref[...])
    h = jnp.dot(h, ready(6), preferred_element_type=jnp.float32) + bfc2_ref[...]

    # output layer [256 -> 1] as a lane reduction against the [1, 256] weight row
    o_ref[...] = jnp.sum(h * wout_ref[...], axis=1, keepdims=True) + bout_ref[...]


# ----------------------------- wrapper ----------------------------------------


@jax.jit
def fc_pinn_forward(packed, x_comp, x_tar):
    B = x_comp.shape[0]
    vmem = pl.BlockSpec(memory_space=pltpu.MemorySpace.VMEM)
    hbm = pl.BlockSpec(memory_space=pl.ANY)

    return pl.pallas_call(
        _fused_pinn_kernel,
        out_shape=jax.ShapeDtypeStruct((B, 1), jnp.float32),
        in_specs=[vmem] * 14 + [hbm] * 7,
        out_specs=vmem,
        scratch_shapes=[
            pltpu.VMEM((1024, 1024), jnp.bfloat16),   # w2_comp landing buffer
            pltpu.VMEM((1024, 256), jnp.bfloat16),    # w3_comp
            pltpu.VMEM((1024, 1024), jnp.bfloat16),   # w2_tar
            pltpu.VMEM((1024, 256), jnp.bfloat16),    # w3_tar
            pltpu.VMEM((256, 512), jnp.bfloat16),     # w_fc1_comp
            pltpu.VMEM((256, 512), jnp.bfloat16),     # w_fc1_tar
            pltpu.VMEM((512, 256), jnp.bfloat16),     # w_fc2
            pltpu.SemaphoreType.DMA((7,)),
        ],
        # ~6.3 MB of bf16 weights + <1 MB small params streamed, ~50 MFLOP,
        # one rsqrt per BN feature per layer -> DMA-bound custom call.
        cost_estimate=pl.CostEstimate(
            flops=50_000_000, transcendentals=4_608, bytes_accessed=6_500_000),
        # bf16 weights + scratch + f32 casts peak well under 24 MiB; keeps
        # headroom on v7x (64 MiB physical) while raising v5e's 16 MiB default.
        compiler_params=pltpu.CompilerParams(vmem_limit_bytes=24 * 1024 * 1024),
    )(
        x_comp, x_tar,
        packed["w1_comp"], packed["bn1_comp"], packed["bn2_comp"], packed["bn3_comp"],
        packed["w1_tar"], packed["bn1_tar"], packed["bn2_tar"], packed["bn3_tar"],
        packed["b_fc1"], packed["b_fc2"], packed["w_out_row"], packed["b_out"],
        packed["w2_comp"], packed["w3_comp"], packed["w2_tar"], packed["w3_tar"],
        packed["w_fc1_comp"], packed["w_fc1_tar"], packed["w_fc2"],
    )


# ----------------------------- parameters -------------------------------------


def init_params(key, n_comp_feat, n_tar_feat):
    """Deterministic synthetic parameters (shapes match the PyTorch module).

    Linear weights are stored pre-transposed as [in, out] so matmuls are
    lane-dense on the output-feature axis.
    """

    def lin(k, fan_in, fan_out):
        kw, kb = jax.random.split(k)
        w_t = jax.random.normal(kw, (fan_in, fan_out), jnp.float32) * 0.02
        b = jax.random.normal(kb, (fan_out,), jnp.float32) * 0.01
        return w_t, b

    def bn(k, n):
        kg, kb = jax.random.split(k)
        gamma = 1.0 + 0.1 * jax.random.normal(kg, (n,), jnp.float32)
        beta = 0.1 * jax.random.normal(kb, (n,), jnp.float32)
        return gamma, beta

    keys = jax.random.split(key, 16)
    p = {}
    p["l1_comp"] = lin(keys[0], n_comp_feat, 1024)
    p["bn1_comp"] = bn(keys[1], 1024)
    p["l2_comp"] = lin(keys[2], 1024, 1024)
    p["bn2_comp"] = bn(keys[3], 1024)
    p["l3_comp"] = lin(keys[4], 1024, 256)
    p["bn3_comp"] = bn(keys[5], 256)
    p["l1_tar"] = lin(keys[6], n_tar_feat, 1024)
    p["bn1_tar"] = bn(keys[7], 1024)
    p["l2_tar"] = lin(keys[8], 1024, 1024)
    p["bn2_tar"] = bn(keys[9], 1024)
    p["l3_tar"] = lin(keys[10], 1024, 256)
    p["bn3_tar"] = bn(keys[11], 256)
    p["fc1"] = lin(keys[12], 512, 512)
    p["fc2"] = lin(keys[13], 512, 256)
    p["output"] = lin(keys[14], 256, 1)
    return p


def pack_params(p):
    """Repack PyTorch-style parameters into the fused-kernel layout.

    All matmul weights except the final [256,1] projection are stored bf16
    (halves HBM traffic); BN affine params / biases / output row stay f32.
    """
    bf = lambda w: w.astype(jnp.bfloat16)
    packed = {}
    for name in ("1_comp", "2_comp", "3_comp", "1_tar", "2_tar", "3_tar"):
        w_t, _b = p["l" + name]      # linear bias cancels under training-mode BN
        gamma, beta = p["bn" + name]
        packed["w" + name] = bf(w_t)
        packed["bn" + name] = jnp.stack([gamma, beta], axis=0)   # [2, N]
    w_fc1, b_fc1 = p["fc1"]
    packed["w_fc1_comp"] = bf(w_fc1[:256])   # rows fed by comp branch
    packed["w_fc1_tar"] = bf(w_fc1[256:])    # rows fed by tar branch
    packed["b_fc1"] = b_fc1.reshape(1, -1)
    w_fc2, b_fc2 = p["fc2"]
    packed["w_fc2"] = bf(w_fc2)
    packed["b_fc2"] = b_fc2.reshape(1, -1)
    w_out, b_out = p["output"]
    packed["w_out_row"] = w_out.reshape(1, -1)   # [1, 256]
    packed["b_out"] = b_out.reshape(1, 1)        # [1, 1]
    return packed


# ----------------------------- reference check --------------------------------


def _ref_forward(params, x_comp, x_tar):
    """Pure-JAX reference with full PyTorch semantics (incl. linear biases).

    Weights are rounded through bf16 exactly as the kernel stores them, so the
    check isolates kernel correctness from quantization error.
    """
    q = lambda w: w.astype(jnp.bfloat16).astype(jnp.float32)

    def lbr(x, lin, bnp):
        w_t, b = lin
        g, be = bnp
        y = x @ q(w_t) + b
        mu = y.mean(0, keepdims=True)
        var = ((y - mu) ** 2).mean(0, keepdims=True)
        return jnp.maximum(g * (y - mu) / jnp.sqrt(var + BN_EPS) + be, 0.0)

    c = lbr(x_comp, params["l1_comp"], params["bn1_comp"])
    c = lbr(c, params["l2_comp"], params["bn2_comp"])
    c = lbr(c, params["l3_comp"], params["bn3_comp"])
    t = lbr(x_tar, params["l1_tar"], params["bn1_tar"])
    t = lbr(t, params["l2_tar"], params["bn2_tar"])
    t = lbr(t, params["l3_tar"], params["bn3_tar"])
    z = jnp.concatenate([c, t], axis=1)
    z = z @ q(params["fc1"][0]) + params["fc1"][1]
    z = z @ q(params["fc2"][0]) + params["fc2"][1]
    return z @ params["output"][0] + params["output"][1]


if __name__ == "__main__":
    B = 8
    N_COMP_FEAT = 64
    N_TAR_FEAT = 32

    key = jax.random.PRNGKey(0)
    k_params, k_xc, k_xt = jax.random.split(key, 3)
    params = init_params(k_params, N_COMP_FEAT, N_TAR_FEAT)
    packed = pack_params(params)
    x_comp = jax.random.normal(k_xc, (B, N_COMP_FEAT), jnp.float32)
    x_tar = jax.random.normal(k_xt, (B, N_TAR_FEAT), jnp.float32)

    y = fc_pinn_forward(packed, x_comp, x_tar)
    jax.block_until_ready(y)

    y_ref = _ref_forward(params, x_comp, x_tar)
    assert y.shape == (B, 1)
    assert jnp.allclose(y, y_ref, atol=1e-3, rtol=1e-3), (
        "mismatch vs reference: max abs diff = %e" % float(jnp.max(jnp.abs(y - y_ref))))

    print("KERNEL_OK")
</pallas_src>

<mosaic_0001>
module attributes {stable_mosaic.version = 11 : i64} {
  func.func @_fused_pinn_kernel(%arg0: memref<8x64xf32, #tpu.memory_space<vmem>>, %arg1: memref<8x32xf32, #tpu.memory_space<vmem>>, %arg2: memref<64x1024xbf16, #tpu.memory_space<vmem>>, %arg3: memref<2x1024xf32, #tpu.memory_space<vmem>>, %arg4: memref<2x1024xf32, #tpu.memory_space<vmem>>, %arg5: memref<2x256xf32, #tpu.memory_space<vmem>>, %arg6: memref<32x1024xbf16, #tpu.memory_space<vmem>>, %arg7: memref<2x1024xf32, #tpu.memory_space<vmem>>, %arg8: memref<2x1024xf32, #tpu.memory_space<vmem>>, %arg9: memref<2x256xf32, #tpu.memory_space<vmem>>, %arg10: memref<1x512xf32, #tpu.memory_space<vmem>>, %arg11: memref<1x256xf32, #tpu.memory_space<vmem>>, %arg12: memref<1x256xf32, #tpu.memory_space<vmem>>, %arg13: memref<1x1xf32, #tpu.memory_space<vmem>>, %arg14: memref<1024x1024xbf16, #tpu.memory_space<any>>, %arg15: memref<1024x256xbf16, #tpu.memory_space<any>>, %arg16: memref<1024x1024xbf16, #tpu.memory_space<any>>, %arg17: memref<1024x256xbf16, #tpu.memory_space<any>>, %arg18: memref<256x512xbf16, #tpu.memory_space<any>>, %arg19: memref<256x512xbf16, #tpu.memory_space<any>>, %arg20: memref<512x256xbf16, #tpu.memory_space<any>>, %arg21: memref<8x1xf32, #tpu.memory_space<vmem>>, %arg22: memref<1024x1024xbf16, #tpu.memory_space<vmem>>, %arg23: memref<1024x256xbf16, #tpu.memory_space<vmem>>, %arg24: memref<1024x1024xbf16, #tpu.memory_space<vmem>>, %arg25: memref<1024x256xbf16, #tpu.memory_space<vmem>>, %arg26: memref<256x512xbf16, #tpu.memory_space<vmem>>, %arg27: memref<256x512xbf16, #tpu.memory_space<vmem>>, %arg28: memref<512x256xbf16, #tpu.memory_space<vmem>>, %arg29: memref<7x!tpu.dma_semaphore, #tpu.memory_space<semaphore_mem>>) attributes {dimension_semantics = [], scalar_prefetch = 0 : i64, scratch_operands = 8 : i64, tpu.core_type = #tpu.core_type<tc>} {
    %c0_i32 = arith.constant 0 : i32
    %0 = tpu.memref_slice %arg29[%c0_i32] : memref<7x!tpu.dma_semaphore, #tpu.memory_space<semaphore_mem>> -> memref<1x!tpu.dma_semaphore, #tpu.memory_space<semaphore_mem>>
    %1 = tpu.memref_squeeze %0 : memref<1x!tpu.dma_semaphore, #tpu.memory_space<semaphore_mem>> -> memref<!tpu.dma_semaphore, #tpu.memory_space<semaphore_mem>>
    tpu.enqueue_dma source(%arg14 : memref<1024x1024xbf16, #tpu.memory_space<any>>) target(%arg22 : memref<1024x1024xbf16, #tpu.memory_space<vmem>>) target_semaphore(%1 : memref<!tpu.dma_semaphore, #tpu.memory_space<semaphore_mem>>)
    %c1_i32 = arith.constant 1 : i32
    %2 = tpu.memref_slice %arg29[%c1_i32] : memref<7x!tpu.dma_semaphore, #tpu.memory_space<semaphore_mem>> -> memref<1x!tpu.dma_semaphore, #tpu.memory_space<semaphore_mem>>
    %3 = tpu.memref_squeeze %2 : memref<1x!tpu.dma_semaphore, #tpu.memory_space<semaphore_mem>> -> memref<!tpu.dma_semaphore, #tpu.memory_space<semaphore_mem>>
    tpu.enqueue_dma source(%arg15 : memref<1024x256xbf16, #tpu.memory_space<any>>) target(%arg23 : memref<1024x256xbf16, #tpu.memory_space<vmem>>) target_semaphore(%3 : memref<!tpu.dma_semaphore, #tpu.memory_space<semaphore_mem>>)
    %c2_i32 = arith.constant 2 : i32
    %4 = tpu.memref_slice %arg29[%c2_i32] : memref<7x!tpu.dma_semaphore, #tpu.memory_space<semaphore_mem>> -> memref<1x!tpu.dma_semaphore, #tpu.memory_space<semaphore_mem>>
    %5 = tpu.memref_squeeze %4 : memref<1x!tpu.dma_semaphore, #tpu.memory_space<semaphore_mem>> -> memref<!tpu.dma_semaphore, #tpu.memory_space<semaphore_mem>>
    tpu.enqueue_dma source(%arg16 : memref<1024x1024xbf16, #tpu.memory_space<any>>) target(%arg24 : memref<1024x1024xbf16, #tpu.memory_space<vmem>>) target_semaphore(%5 : memref<!tpu.dma_semaphore, #tpu.memory_space<semaphore_mem>>)
    %c3_i32 = arith.constant 3 : i32
    %6 = tpu.memref_slice %arg29[%c3_i32] : memref<7x!tpu.dma_semaphore, #tpu.memory_space<semaphore_mem>> -> memref<1x!tpu.dma_semaphore, #tpu.memory_space<semaphore_mem>>
    %7 = tpu.memref_squeeze %6 : memref<1x!tpu.dma_semaphore, #tpu.memory_space<semaphore_mem>> -> memref<!tpu.dma_semaphore, #tpu.memory_space<semaphore_mem>>
    tpu.enqueue_dma source(%arg17 : memref<1024x256xbf16, #tpu.memory_space<any>>) target(%arg25 : memref<1024x256xbf16, #tpu.memory_space<vmem>>) target_semaphore(%7 : memref<!tpu.dma_semaphore, #tpu.memory_space<semaphore_mem>>)
    %c4_i32 = arith.constant 4 : i32
    %8 = tpu.memref_slice %arg29[%c4_i32] : memref<7x!tpu.dma_semaphore, #tpu.memory_space<semaphore_mem>> -> memref<1x!tpu.dma_semaphore, #tpu.memory_space<semaphore_mem>>
    %9 = tpu.memref_squeeze %8 : memref<1x!tpu.dma_semaphore, #tpu.memory_space<semaphore_mem>> -> memref<!tpu.dma_semaphore, #tpu.memory_space<semaphore_mem>>
    tpu.enqueue_dma source(%arg18 : memref<256x512xbf16, #tpu.memory_space<any>>) target(%arg26 : memref<256x512xbf16, #tpu.memory_space<vmem>>) target_semaphore(%9 : memref<!tpu.dma_semaphore, #tpu.memory_space<semaphore_mem>>)
    %c5_i32 = arith.constant 5 : i32
    %10 = tpu.memref_slice %arg29[%c5_i32] : memref<7x!tpu.dma_semaphore, #tpu.memory_space<semaphore_mem>> -> memref<1x!tpu.dma_semaphore, #tpu.memory_space<semaphore_mem>>
    %11 = tpu.memref_squeeze %10 : memref<1x!tpu.dma_semaphore, #tpu.memory_space<semaphore_mem>> -> memref<!tpu.dma_semaphore, #tpu.memory_space<semaphore_mem>>
    tpu.enqueue_dma source(%arg19 : memref<256x512xbf16, #tpu.memory_space<any>>) target(%arg27 : memref<256x512xbf16, #tpu.memory_space<vmem>>) target_semaphore(%11 : memref<!tpu.dma_semaphore, #tpu.memory_space<semaphore_mem>>)
    %c6_i32 = arith.constant 6 : i32
    %12 = tpu.memref_slice %arg29[%c6_i32] : memref<7x!tpu.dma_semaphore, #tpu.memory_space<semaphore_mem>> -> memref<1x!tpu.dma_semaphore, #tpu.memory_space<semaphore_mem>>
    %13 = tpu.memref_squeeze %12 : memref<1x!tpu.dma_semaphore, #tpu.memory_space<semaphore_mem>> -> memref<!tpu.dma_semaphore, #tpu.memory_space<semaphore_mem>>
    tpu.enqueue_dma source(%arg20 : memref<512x256xbf16, #tpu.memory_space<any>>) target(%arg28 : memref<512x256xbf16, #tpu.memory_space<vmem>>) target_semaphore(%13 : memref<!tpu.dma_semaphore, #tpu.memory_space<semaphore_mem>>)
    %c0 = arith.constant 0 : index
    %c0_0 = arith.constant 0 : index
    %14 = vector.load %arg0[%c0, %c0_0] : memref<8x64xf32, #tpu.memory_space<vmem>>, vector<8x64xf32>
    %c0_1 = arith.constant 0 : index
    %c0_2 = arith.constant 0 : index
    %15 = vector.load %arg2[%c0_1, %c0_2] : memref<64x1024xbf16, #tpu.memory_space<vmem>>, vector<64x1024xbf16>
    %16 = arith.extf %15 : vector<64x1024xbf16> to vector<64x1024xf32>
    %cst = arith.constant dense<0.000000e+00> : vector<8x1024xf32>
    %17 = tpu.matmul %14, %16, %cst {dimension_numbers = #tpu.dot_dimension_numbers<[1], [0], [0], [1], [0, 0, 1, 1], [], []>} : vector<8x64xf32>, vector<64x1024xf32>, vector<8x1024xf32> -> vector<8x1024xf32>
    %cst_3 = arith.constant dense<0.000000e+00> : vector<1024xf32>
    %18 = vector.multi_reduction <add>, %17, %cst_3 [0] : vector<8x1024xf32> to vector<1024xf32>
    %19 = vector.shape_cast %18 : vector<1024xf32> to vector<1x1024xf32>
    %cst_4 = arith.constant 8.000000e+00 : f32
    %20 = vector.broadcast %cst_4 : f32 to vector<1x1024xf32>
    %21 = arith.divf %19, %20 : vector<1x1024xf32>
    %22 = arith.mulf %17, %17 : vector<8x1024xf32>
    %cst_5 = arith.constant dense<0.000000e+00> : vector<1024xf32>
    %23 = vector.multi_reduction <add>, %22, %cst_5 [0] : vector<8x1024xf32> to vector<1024xf32>
    %24 = vector.shape_cast %23 : vector<1024xf32> to vector<1x1024xf32>
    %cst_6 = arith.constant 8.000000e+00 : f32
    %25 = vector.broadcast %cst_6 : f32 to vector<1x1024xf32>
    %26 = arith.divf %24, %25 : vector<1x1024xf32>
    %27 = arith.mulf %21, %21 : vector<1x1024xf32>
    %28 = arith.subf %26, %27 : vector<1x1024xf32>
    %29 = vector.broadcast %21 : vector<1x1024xf32> to vector<8x1024xf32>
    %30 = arith.subf %17, %29 : vector<8x1024xf32>
    %cst_7 = arith.constant 9.99999974E-6 : f32
    %31 = vector.broadcast %cst_7 : f32 to vector<1x1024xf32>
    %32 = arith.addf %28, %31 : vector<1x1024xf32>
    %33 = math.rsqrt %32 : vector<1x1024xf32>
    %34 = vector.broadcast %33 : vector<1x1024xf32> to vector<8x1024xf32>
    %35 = arith.mulf %30, %34 : vector<8x1024xf32>
    %c0_8 = arith.constant 0 : index
    %c0_9 = arith.constant 0 : index
    %36 = vector.load %arg3[%c0_8, %c0_9] : memref<2x1024xf32, #tpu.memory_space<vmem>>, vector<1x1024xf32>
    %37 = vector.broadcast %36 : vector<1x1024xf32> to vector<8x1024xf32>
    %38 = arith.mulf %37, %35 : vector<8x1024xf32>
    %c1 = arith.constant 1 : index
    %c0_10 = arith.constant 0 : index
    %39 = vector.load %arg3[%c1, %c0_10] : memref<2x1024xf32, #tpu.memory_space<vmem>>, vector<1x1024xf32>
    %40 = vector.broadcast %39 : vector<1x1024xf32> to vector<8x1024xf32>
    %41 = arith.addf %38, %40 : vector<8x1024xf32>
    %cst_11 = arith.constant 0.000000e+00 : f32
    %42 = vector.broadcast %cst_11 : f32 to vector<8x1024xf32>
    %43 = arith.maximumf %41, %42 : vector<8x1024xf32>
    %c0_i32_12 = arith.constant 0 : i32
    %44 = tpu.memref_slice %arg29[%c0_i32_12] : memref<7x!tpu.dma_semaphore, #tpu.memory_space<semaphore_mem>> -> memref<1x!tpu.dma_semaphore, #tpu.memory_space<semaphore_mem>>
    %45 = tpu.memref_squeeze %44 : memref<1x!tpu.dma_semaphore, #tpu.memory_space<semaphore_mem>> -> memref<!tpu.dma_semaphore, #tpu.memory_space<semaphore_mem>>
    tpu.wait_dma2 semaphore(%45 : memref<!tpu.dma_semaphore, #tpu.memory_space<semaphore_mem>>) src(%arg14 : memref<1024x1024xbf16, #tpu.memory_space<any>>) dst(%arg22 : memref<1024x1024xbf16, #tpu.memory_space<vmem>>)
    %c0_13 = arith.constant 0 : index
    %c0_14 = arith.constant 0 : index
    %46 = vector.load %arg22[%c0_13, %c0_14] : memref<1024x1024xbf16, #tpu.memory_space<vmem>>, vector<1024x1024xbf16>
    %47 = arith.extf %46 : vector<1024x1024xbf16> to vector<1024x1024xf32>
    %cst_15 = arith.constant dense<0.000000e+00> : vector<8x1024xf32>
    %48 = tpu.matmul %43, %47, %cst_15 {dimension_numbers = #tpu.dot_dimension_numbers<[1], [0], [0], [1], [0, 0, 1, 1], [], []>} : vector<8x1024xf32>, vector<1024x1024xf32>, vector<8x1024xf32> -> vector<8x1024xf32>
    %cst_16 = arith.constant dense<0.000000e+00> : vector<1024xf32>
    %49 = vector.multi_reduction <add>, %48, %cst_16 [0] : vector<8x1024xf32> to vector<1024xf32>
    %50 = vector.shape_cast %49 : vector<1024xf32> to vector<1x1024xf32>
    %cst_17 = arith.constant 8.000000e+00 : f32
    %51 = vector.broadcast %cst_17 : f32 to vector<1x1024xf32>
    %52 = arith.divf %50, %51 : vector<1x1024xf32>
    %53 = arith.mulf %48, %48 : vector<8x1024xf32>
    %cst_18 = arith.constant dense<0.000000e+00> : vector<1024xf32>
    %54 = vector.multi_reduction <add>, %53, %cst_18 [0] : vector<8x1024xf32> to vector<1024xf32>
    %55 = vector.shape_cast %54 : vector<1024xf32> to vector<1x1024xf32>
    %cst_19 = arith.constant 8.000000e+00 : f32
    %56 = vector.broadcast %cst_19 : f32 to vector<1x1024xf32>
    %57 = arith.divf %55, %56 : vector<1x1024xf32>
    %58 = arith.mulf %52, %52 : vector<1x1024xf32>
    %59 = arith.subf %57, %58 : vector<1x1024xf32>
    %60 = vector.broadcast %52 : vector<1x1024xf32> to vector<8x1024xf32>
    %61 = arith.subf %48, %60 : vector<8x1024xf32>
    %cst_20 = arith.constant 9.99999974E-6 : f32
    %62 = vector.broadcast %cst_20 : f32 to vector<1x1024xf32>
    %63 = arith.addf %59, %62 : vector<1x1024xf32>
    %64 = math.rsqrt %63 : vector<1x1024xf32>
    %65 = vector.broadcast %64 : vector<1x1024xf32> to vector<8x1024xf32>
    %66 = arith.mulf %61, %65 : vector<8x1024xf32>
    %c0_21 = arith.constant 0 : index
    %c0_22 = arith.constant 0 : index
    %67 = vector.load %arg4[%c0_21, %c0_22] : memref<2x1024xf32, #tpu.memory_space<vmem>>, vector<1x1024xf32>
    %68 = vector.broadcast %67 : vector<1x1024xf32> to vector<8x1024xf32>
    %69 = arith.mulf %68, %66 : vector<8x1024xf32>
    %c1_23 = arith.constant 1 : index
    %c0_24 = arith.constant 0 : index
    %70 = vector.load %arg4[%c1_23, %c0_24] : memref<2x1024xf32, #tpu.memory_space<vmem>>, vector<1x1024xf32>
    %71 = vector.broadcast %70 : vector<1x1024xf32> to vector<8x1024xf32>
    %72 = arith.addf %69, %71 : vector<8x1024xf32>
    %cst_25 = arith.constant 0.000000e+00 : f32
    %73 = vector.broadcast %cst_25 : f32 to vector<8x1024xf32>
    %74 = arith.maximumf %72, %73 : vector<8x1024xf32>
    %c1_i32_26 = arith.constant 1 : i32
    %75 = tpu.memref_slice %arg29[%c1_i32_26] : memref<7x!tpu.dma_semaphore, #tpu.memory_space<semaphore_mem>> -> memref<1x!tpu.dma_semaphore, #tpu.memory_space<semaphore_mem>>
    %76 = tpu.memref_squeeze %75 : memref<1x!tpu.dma_semaphore, #tpu.memory_space<semaphore_mem>> -> memref<!tpu.dma_semaphore, #tpu.memory_space<semaphore_mem>>
    tpu.wait_dma2 semaphore(%76 : memref<!tpu.dma_semaphore, #tpu.memory_space<semaphore_mem>>) src(%arg15 : memref<1024x256xbf16, #tpu.memory_space<any>>) dst(%arg23 : memref<1024x256xbf16, #tpu.memory_space<vmem>>)
    %c0_27 = arith.constant 0 : index
    %c0_28 = arith.constant 0 : index
    %77 = vector.load %arg23[%c0_27, %c0_28] : memref<1024x256xbf16, #tpu.memory_space<vmem>>, vector<1024x256xbf16>
    %78 = arith.extf %77 : vector<1024x256xbf16> to vector<1024x256xf32>
    %cst_29 = arith.constant dense<0.000000e+00> : vector<8x256xf32>
    %79 = tpu.matmul %74, %78, %cst_29 {dimension_numbers = #tpu.dot_dimension_numbers<[1], [0], [0], [1], [0, 0, 1, 1], [], []>} : vector<8x1024xf32>, vector<1024x256xf32>, vector<8x256xf32> -> vector<8x256xf32>
    %cst_30 = arith.constant dense<0.000000e+00> : vector<256xf32>
    %80 = vector.multi_reduction <add>, %79, %cst_30 [0] : vector<8x256xf32> to vector<256xf32>
    %81 = vector.shape_cast %80 : vector<256xf32> to vector<1x256xf32>
    %cst_31 = arith.constant 8.000000e+00 : f32
    %82 = vector.broadcast %cst_31 : f32 to vector<1x256xf32>
    %83 = arith.divf %81, %82 : vector<1x256xf32>
    %84 = arith.mulf %79, %79 : vector<8x256xf32>
    %cst_32 = arith.constant dense<0.000000e+00> : vector<256xf32>
    %85 = vector.multi_reduction <add>, %84, %cst_32 [0] : vector<8x256xf32> to vector<256xf32>
    %86 = vector.shape_cast %85 : vector<256xf32> to vector<1x256xf32>
    %cst_33 = arith.constant 8.000000e+00 : f32
    %87 = vector.broadcast %cst_33 : f32 to vector<1x256xf32>
    %88 = arith.divf %86, %87 : vector<1x256xf32>
    %89 = arith.mulf %83, %83 : vector<1x256xf32>
    %90 = arith.subf %88, %89 : vector<1x256xf32>
    %91 = vector.broadcast %83 : vector<1x256xf32> to vector<8x256xf32>
    %92 = arith.subf %79, %91 : vector<8x256xf32>
    %cst_34 = arith.constant 9.99999974E-6 : f32
    %93 = vector.broadcast %cst_34 : f32 to vector<1x256xf32>
    %94 = arith.addf %90, %93 : vector<1x256xf32>
    %95 = math.rsqrt %94 : vector<1x256xf32>
    %96 = vector.broadcast %95 : vector<1x256xf32> to vector<8x256xf32>
    %97 = arith.mulf %92, %96 : vector<8x256xf32>
    %c0_35 = arith.constant 0 : index
    %c0_36 = arith.constant 0 : index
    %98 = vector.load %arg5[%c0_35, %c0_36] : memref<2x256xf32, #tpu.memory_space<vmem>>, vector<1x256xf32>
    %99 = vector.broadcast %98 : vector<1x256xf32> to vector<8x256xf32>
    %100 = arith.mulf %99, %97 : vector<8x256xf32>
    %c1_37 = arith.constant 1 : index
    %c0_38 = arith.constant 0 : index
    %101 = vector.load %arg5[%c1_37, %c0_38] : memref<2x256xf32, #tpu.memory_space<vmem>>, vector<1x256xf32>
    %102 = vector.broadcast %101 : vector<1x256xf32> to vector<8x256xf32>
    %103 = arith.addf %100, %102 : vector<8x256xf32>
    %cst_39 = arith.constant 0.000000e+00 : f32
    %104 = vector.broadcast %cst_39 : f32 to vector<8x256xf32>
    %105 = arith.maximumf %103, %104 : vector<8x256xf32>
    %c0_40 = arith.constant 0 : index
    %c0_41 = arith.constant 0 : index
    %106 = vector.load %arg1[%c0_40, %c0_41] : memref<8x32xf32, #tpu.memory_space<vmem>>, vector<8x32xf32>
    %c0_42 = arith.constant 0 : index
    %c0_43 = arith.constant 0 : index
    %107 = vector.load %arg6[%c0_42, %c0_43] : memref<32x1024xbf16, #tpu.memory_space<vmem>>, vector<32x1024xbf16>
    %108 = arith.extf %107 : vector<32x1024xbf16> to vector<32x1024xf32>
    %cst_44 = arith.constant dense<0.000000e+00> : vector<8x1024xf32>
    %109 = tpu.matmul %106, %108, %cst_44 {dimension_numbers = #tpu.dot_dimension_numbers<[1], [0], [0], [1], [0, 0, 1, 1], [], []>} : vector<8x32xf32>, vector<32x1024xf32>, vector<8x1024xf32> -> vector<8x1024xf32>
    %cst_45 = arith.constant dense<0.000000e+00> : vector<1024xf32>
    %110 = vector.multi_reduction <add>, %109, %cst_45 [0] : vector<8x1024xf32> to vector<1024xf32>
    %111 = vector.shape_cast %110 : vector<1024xf32> to vector<1x1024xf32>
    %cst_46 = arith.constant 8.000000e+00 : f32
    %112 = vector.broadcast %cst_46 : f32 to vector<1x1024xf32>
    %113 = arith.divf %111, %112 : vector<1x1024xf32>
    %114 = arith.mulf %109, %109 : vector<8x1024xf32>
    %cst_47 = arith.constant dense<0.000000e+00> : vector<1024xf32>
    %115 = vector.multi_reduction <add>, %114, %cst_47 [0] : vector<8x1024xf32> to vector<1024xf32>
    %116 = vector.shape_cast %115 : vector<1024xf32> to vector<1x1024xf32>
    %cst_48 = arith.constant 8.000000e+00 : f32
    %117 = vector.broadcast %cst_48 : f32 to vector<1x1024xf32>
    %118 = arith.divf %116, %117 : vector<1x1024xf32>
    %119 = arith.mulf %113, %113 : vector<1x1024xf32>
    %120 = arith.subf %118, %119 : vector<1x1024xf32>
    %121 = vector.broadcast %113 : vector<1x1024xf32> to vector<8x1024xf32>
    %122 = arith.subf %109, %121 : vector<8x1024xf32>
    %cst_49 = arith.constant 9.99999974E-6 : f32
    %123 = vector.broadcast %cst_49 : f32 to vector<1x1024xf32>
    %124 = arith.addf %120, %123 : vector<1x1024xf32>
    %125 = math.rsqrt %124 : vector<1x1024xf32>
    %126 = vector.broadcast %125 : vector<1x1024xf32> to vector<8x1024xf32>
    %127 = arith.mulf %122, %126 : vector<8x1024xf32>
    %c0_50 = arith.constant 0 : index
    %c0_51 = arith.constant 0 : index
    %128 = vector.load %arg7[%c0_50, %c0_51] : memref<2x1024xf32, #tpu.memory_space<vmem>>, vector<1x1024xf32>
    %129 = vector.broadcast %128 : vector<1x1024xf32> to vector<8x1024xf32>
    %130 = arith.mulf %129, %127 : vector<8x1024xf32>
    %c1_52 = arith.constant 1 : index
    %c0_53 = arith.constant 0 : index
    %131 = vector.load %arg7[%c1_52, %c0_53] : memref<2x1024xf32, #tpu.memory_space<vmem>>, vector<1x1024xf32>
    %132 = vector.broadcast %131 : vector<1x1024xf32> to vector<8x1024xf32>
    %133 = arith.addf %130, %132 : vector<8x1024xf32>
    %cst_54 = arith.constant 0.000000e+00 : f32
    %134 = vector.broadcast %cst_54 : f32 to vector<8x1024xf32>
    %135 = arith.maximumf %133, %134 : vector<8x1024xf32>
    %c2_i32_55 = arith.constant 2 : i32
    %136 = tpu.memref_slice %arg29[%c2_i32_55] : memref<7x!tpu.dma_semaphore, #tpu.memory_space<semaphore_mem>> -> memref<1x!tpu.dma_semaphore, #tpu.memory_space<semaphore_mem>>
    %137 = tpu.memref_squeeze %136 : memref<1x!tpu.dma_semaphore, #tpu.memory_space<semaphore_mem>> -> memref<!tpu.dma_semaphore, #tpu.memory_space<semaphore_mem>>
    tpu.wait_dma2 semaphore(%137 : memref<!tpu.dma_semaphore, #tpu.memory_space<semaphore_mem>>) src(%arg16 : memref<1024x1024xbf16, #tpu.memory_space<any>>) dst(%arg24 : memref<1024x1024xbf16, #tpu.memory_space<vmem>>)
    %c0_56 = arith.constant 0 : index
    %c0_57 = arith.constant 0 : index
    %138 = vector.load %arg24[%c0_56, %c0_57] : memref<1024x1024xbf16, #tpu.memory_space<vmem>>, vector<1024x1024xbf16>
    %139 = arith.extf %138 : vector<1024x1024xbf16> to vector<1024x1024xf32>
    %cst_58 = arith.constant dense<0.000000e+00> : vector<8x1024xf32>
    %140 = tpu.matmul %135, %139, %cst_58 {dimension_numbers = #tpu.dot_dimension_numbers<[1], [0], [0], [1], [0, 0, 1, 1], [], []>} : vector<8x1024xf32>, vector<1024x1024xf32>, vector<8x1024xf32> -> vector<8x1024xf32>
    %cst_59 = arith.constant dense<0.000000e+00> : vector<1024xf32>
    %141 = vector.multi_reduction <add>, %140, %cst_59 [0] : vector<8x1024xf32> to vector<1024xf32>
    %142 = vector.shape_cast %141 : vector<1024xf32> to vector<1x1024xf32>
    %cst_60 = arith.constant 8.000000e+00 : f32
    %143 = vector.broadcast %cst_60 : f32 to vector<1x1024xf32>
    %144 = arith.divf %142, %143 : vector<1x1024xf32>
    %145 = arith.mulf %140, %140 : vector<8x1024xf32>
    %cst_61 = arith.constant dense<0.000000e+00> : vector<1024xf32>
    %146 = vector.multi_reduction <add>, %145, %cst_61 [0] : vector<8x1024xf32> to vector<1024xf32>
    %147 = vector.shape_cast %146 : vector<1024xf32> to vector<1x1024xf32>
    %cst_62 = arith.constant 8.000000e+00 : f32
    %148 = vector.broadcast %cst_62 : f32 to vector<1x1024xf32>
    %149 = arith.divf %147, %148 : vector<1x1024xf32>
    %150 = arith.mulf %144, %144 : vector<1x1024xf32>
    %151 = arith.subf %149, %150 : vector<1x1024xf32>
    %152 = vector.broadcast %144 : vector<1x1024xf32> to vector<8x1024xf32>
    %153 = arith.subf %140, %152 : vector<8x1024xf32>
    %cst_63 = arith.constant 9.99999974E-6 : f32
    %154 = vector.broadcast %cst_63 : f32 to vector<1x1024xf32>
    %155 = arith.addf %151, %154 : vector<1x1024xf32>
    %156 = math.rsqrt %155 : vector<1x1024xf32>
    %157 = vector.broadcast %156 : vector<1x1024xf32> to vector<8x1024xf32>
    %158 = arith.mulf %153, %157 : vector<8x1024xf32>
    %c0_64 = arith.constant 0 : index
    %c0_65 = arith.constant 0 : index
    %159 = vector.load %arg8[%c0_64, %c0_65] : memref<2x1024xf32, #tpu.memory_space<vmem>>, vector<1x1024xf32>
    %160 = vector.broadcast %159 : vector<1x1024xf32> to vector<8x1024xf32>
    %161 = arith.mulf %160, %158 : vector<8x1024xf32>
    %c1_66 = arith.constant 1 : index
    %c0_67 = arith.constant 0 : index
    %162 = vector.load %arg8[%c1_66, %c0_67] : memref<2x1024xf32, #tpu.memory_space<vmem>>, vector<1x1024xf32>
    %163 = vector.broadcast %162 : vector<1x1024xf32> to vector<8x1024xf32>
    %164 = arith.addf %161, %163 : vector<8x1024xf32>
    %cst_68 = arith.constant 0.000000e+00 : f32
    %165 = vector.broadcast %cst_68 : f32 to vector<8x1024xf32>
    %166 = arith.maximumf %164, %165 : vector<8x1024xf32>
    %c3_i32_69 = arith.constant 3 : i32
    %167 = tpu.memref_slice %arg29[%c3_i32_69] : memref<7x!tpu.dma_semaphore, #tpu.memory_space<semaphore_mem>> -> memref<1x!tpu.dma_semaphore, #tpu.memory_space<semaphore_mem>>
    %168 = tpu.memref_squeeze %167 : memref<1x!tpu.dma_semaphore, #tpu.memory_space<semaphore_mem>> -> memref<!tpu.dma_semaphore, #tpu.memory_space<semaphore_mem>>
    tpu.wait_dma2 semaphore(%168 : memref<!tpu.dma_semaphore, #tpu.memory_space<semaphore_mem>>) src(%arg17 : memref<1024x256xbf16, #tpu.memory_space<any>>) dst(%arg25 : memref<1024x256xbf16, #tpu.memory_space<vmem>>)
    %c0_70 = arith.constant 0 : index
    %c0_71 = arith.constant 0 : index
    %169 = vector.load %arg25[%c0_70, %c0_71] : memref<1024x256xbf16, #tpu.memory_space<vmem>>, vector<1024x256xbf16>
    %170 = arith.extf %169 : vector<1024x256xbf16> to vector<1024x256xf32>
    %cst_72 = arith.constant dense<0.000000e+00> : vector<8x256xf32>
    %171 = tpu.matmul %166, %170, %cst_72 {dimension_numbers = #tpu.dot_dimension_numbers<[1], [0], [0], [1], [0, 0, 1, 1], [], []>} : vector<8x1024xf32>, vector<1024x256xf32>, vector<8x256xf32> -> vector<8x256xf32>
    %cst_73 = arith.constant dense<0.000000e+00> : vector<256xf32>
    %172 = vector.multi_reduction <add>, %171, %cst_73 [0] : vector<8x256xf32> to vector<256xf32>
    %173 = vector.shape_cast %172 : vector<256xf32> to vector<1x256xf32>
    %cst_74 = arith.constant 8.000000e+00 : f32
    %174 = vector.broadcast %cst_74 : f32 to vector<1x256xf32>
    %175 = arith.divf %173, %174 : vector<1x256xf32>
    %176 = arith.mulf %171, %171 : vector<8x256xf32>
    %cst_75 = arith.constant dense<0.000000e+00> : vector<256xf32>
    %177 = vector.multi_reduction <add>, %176, %cst_75 [0] : vector<8x256xf32> to vector<256xf32>
    %178 = vector.shape_cast %177 : vector<256xf32> to vector<1x256xf32>
    %cst_76 = arith.constant 8.000000e+00 : f32
    %179 = vector.broadcast %cst_76 : f32 to vector<1x256xf32>
    %180 = arith.divf %178, %179 : vector<1x256xf32>
    %181 = arith.mulf %175, %175 : vector<1x256xf32>
    %182 = arith.subf %180, %181 : vector<1x256xf32>
    %183 = vector.broadcast %175 : vector<1x256xf32> to vector<8x256xf32>
    %184 = arith.subf %171, %183 : vector<8x256xf32>
    %cst_77 = arith.constant 9.99999974E-6 : f32
    %185 = vector.broadcast %cst_77 : f32 to vector<1x256xf32>
    %186 = arith.addf %182, %185 : vector<1x256xf32>
    %187 = math.rsqrt %186 : vector<1x256xf32>
    %188 = vector.broadcast %187 : vector<1x256xf32> to vector<8x256xf32>
    %189 = arith.mulf %184, %188 : vector<8x256xf32>
    %c0_78 = arith.constant 0 : index
    %c0_79 = arith.constant 0 : index
    %190 = vector.load %arg9[%c0_78, %c0_79] : memref<2x256xf32, #tpu.memory_space<vmem>>, vector<1x256xf32>
    %191 = vector.broadcast %190 : vector<1x256xf32> to vector<8x256xf32>
    %192 = arith.mulf %191, %189 : vector<8x256xf32>
    %c1_80 = arith.constant 1 : index
    %c0_81 = arith.constant 0 : index
    %193 = vector.load %arg9[%c1_80, %c0_81] : memref<2x256xf32, #tpu.memory_space<vmem>>, vector<1x256xf32>
    %194 = vector.broadcast %193 : vector<1x256xf32> to vector<8x256xf32>
    %195 = arith.addf %192, %194 : vector<8x256xf32>
    %cst_82 = arith.constant 0.000000e+00 : f32
    %196 = vector.broadcast %cst_82 : f32 to vector<8x256xf32>
    %197 = arith.maximumf %195, %196 : vector<8x256xf32>
    %c4_i32_83 = arith.constant 4 : i32
    %198 = tpu.memref_slice %arg29[%c4_i32_83] : memref<7x!tpu.dma_semaphore, #tpu.memory_space<semaphore_mem>> -> memref<1x!tpu.dma_semaphore, #tpu.memory_space<semaphore_mem>>
    %199 = tpu.memref_squeeze %198 : memref<1x!tpu.dma_semaphore, #tpu.memory_space<semaphore_mem>> -> memref<!tpu.dma_semaphore, #tpu.memory_space<semaphore_mem>>
    tpu.wait_dma2 semaphore(%199 : memref<!tpu.dma_semaphore, #tpu.memory_space<semaphore_mem>>) src(%arg18 : memref<256x512xbf16, #tpu.memory_space<any>>) dst(%arg26 : memref<256x512xbf16, #tpu.memory_space<vmem>>)
    %c0_84 = arith.constant 0 : index
    %c0_85 = arith.constant 0 : index
    %200 = vector.load %arg26[%c0_84, %c0_85] : memref<256x512xbf16, #tpu.memory_space<vmem>>, vector<256x512xbf16>
    %201 = arith.extf %200 : vector<256x512xbf16> to vector<256x512xf32>
    %cst_86 = arith.constant dense<0.000000e+00> : vector<8x512xf32>
    %202 = tpu.matmul %105, %201, %cst_86 {dimension_numbers = #tpu.dot_dimension_numbers<[1], [0], [0], [1], [0, 0, 1, 1], [], []>} : vector<8x256xf32>, vector<256x512xf32>, vector<8x512xf32> -> vector<8x512xf32>
    %c5_i32_87 = arith.constant 5 : i32
    %203 = tpu.memref_slice %arg29[%c5_i32_87] : memref<7x!tpu.dma_semaphore, #tpu.memory_space<semaphore_mem>> -> memref<1x!tpu.dma_semaphore, #tpu.memory_space<semaphore_mem>>
    %204 = tpu.memref_squeeze %203 : memref<1x!tpu.dma_semaphore, #tpu.memory_space<semaphore_mem>> -> memref<!tpu.dma_semaphore, #tpu.memory_space<semaphore_mem>>
    tpu.wait_dma2 semaphore(%204 : memref<!tpu.dma_semaphore, #tpu.memory_space<semaphore_mem>>) src(%arg19 : memref<256x512xbf16, #tpu.memory_space<any>>) dst(%arg27 : memref<256x512xbf16, #tpu.memory_space<vmem>>)
    %c0_88 = arith.constant 0 : index
    %c0_89 = arith.constant 0 : index
    %205 = vector.load %arg27[%c0_88, %c0_89] : memref<256x512xbf16, #tpu.memory_space<vmem>>, vector<256x512xbf16>
    %206 = arith.extf %205 : vector<256x512xbf16> to vector<256x512xf32>
    %cst_90 = arith.constant dense<0.000000e+00> : vector<8x512xf32>
    %207 = tpu.matmul %197, %206, %cst_90 {dimension_numbers = #tpu.dot_dimension_numbers<[1], [0], [0], [1], [0, 0, 1, 1], [], []>} : vector<8x256xf32>, vector<256x512xf32>, vector<8x512xf32> -> vector<8x512xf32>
    %208 = arith.addf %202, %207 : vector<8x512xf32>
    %c0_91 = arith.constant 0 : index
    %c0_92 = arith.constant 0 : index
    %209 = vector.load %arg10[%c0_91, %c0_92] : memref<1x512xf32, #tpu.memory_space<vmem>>, vector<1x512xf32>
    %210 = vector.broadcast %209 : vector<1x512xf32> to vector<8x512xf32>
    %211 = arith.addf %208, %210 : vector<8x512xf32>
    %c6_i32_93 = arith.constant 6 : i32
    %212 = tpu.memref_slice %arg29[%c6_i32_93] : memref<7x!tpu.dma_semaphore, #tpu.memory_space<semaphore_mem>> -> memref<1x!tpu.dma_semaphore, #tpu.memory_space<semaphore_mem>>
    %213 = tpu.memref_squeeze %212 : memref<1x!tpu.dma_semaphore, #tpu.memory_space<semaphore_mem>> -> memref<!tpu.dma_semaphore, #tpu.memory_space<semaphore_mem>>
    tpu.wait_dma2 semaphore(%213 : memref<!tpu.dma_semaphore, #tpu.memory_space<semaphore_mem>>) src(%arg20 : memref<512x256xbf16, #tpu.memory_space<any>>) dst(%arg28 : memref<512x256xbf16, #tpu.memory_space<vmem>>)
    %c0_94 = arith.constant 0 : index
    %c0_95 = arith.constant 0 : index
    %214 = vector.load %arg28[%c0_94, %c0_95] : memref<512x256xbf16, #tpu.memory_space<vmem>>, vector<512x256xbf16>
    %215 = arith.extf %214 : vector<512x256xbf16> to vector<512x256xf32>
    %cst_96 = arith.constant dense<0.000000e+00> : vector<8x256xf32>
    %216 = tpu.matmul %211, %215, %cst_96 {dimension_numbers = #tpu.dot_dimension_numbers<[1], [0], [0], [1], [0, 0, 1, 1], [], []>} : vector<8x512xf32>, vector<512x256xf32>, vector<8x256xf32> -> vector<8x256xf32>
    %c0_97 = arith.constant 0 : index
    %c0_98 = arith.constant 0 : index
    %217 = vector.load %arg11[%c0_97, %c0_98] : memref<1x256xf32, #tpu.memory_space<vmem>>, vector<1x256xf32>
    %218 = vector.broadcast %217 : vector<1x256xf32> to vector<8x256xf32>
    %219 = arith.addf %216, %218 : vector<8x256xf32>
    %c0_99 = arith.constant 0 : index
    %c0_100 = arith.constant 0 : index
    %220 = vector.load %arg12[%c0_99, %c0_100] : memref<1x256xf32, #tpu.memory_space<vmem>>, vector<1x256xf32>
    %221 = vector.broadcast %220 : vector<1x256xf32> to vector<8x256xf32>
    %222 = arith.mulf %219, %221 : vector<8x256xf32>
    %cst_101 = arith.constant dense<0.000000e+00> : vector<8xf32>
    %223 = vector.multi_reduction <add>, %222, %cst_101 [1] : vector<8x256xf32> to vector<8xf32>
    %224 = vector.shape_cast %223 : vector<8xf32> to vector<8x1xf32>
    %c0_102 = arith.constant 0 : index
    %c0_103 = arith.constant 0 : index
    %225 = vector.load %arg13[%c0_102, %c0_103] : memref<1x1xf32, #tpu.memory_space<vmem>>, vector<1x1xf32>
    %226 = vector.broadcast %225 : vector<1x1xf32> to vector<8x1xf32>
    %227 = arith.addf %224, %226 : vector<8x1xf32>
    %c0_104 = arith.constant 0 : index
    %c0_105 = arith.constant 0 : index
    %228 = vector.load %arg21[%c0_104, %c0_105] : memref<8x1xf32, #tpu.memory_space<vmem>>, vector<8x1xf32>
    tpu.vector_store %arg21[%c0_104, %c0_105], %227 {strides = array<i32>} : memref<8x1xf32, #tpu.memory_space<vmem>>, vector<8x1xf32>,
    return
  }
}

</mosaic_0001>

<bundles_post_ra>
// kernel: fc_pinn_forward.1
= control target key start
LH: loop header
LB: loop body
LE: loop exit
PB: predicated region body
PF: predicated region fallthrough
CT: control target
= control target key end

     0   :  { %s15215_s0 = inlined_call_operand.hbm [shape: f32[8,64], index: 0, kind: input, shape index: {}]   ;;  %s15216_s1 = inlined_call_operand.hbm [shape: f32[8,32], index: 1, kind: input, shape index: {}]   ;;  %s15217_s2 = inlined_call_operand.hbm [shape: bf16[64,1024], index: 2, kind: input, shape index: {}]   ;;  %s15218_s3 = inlined_call_operand.hbm [shape: f32[2,1024], index: 3, kind: input, shape index: {}]   ;;  %s15219_s4 = inlined_call_operand.hbm [shape: f32[2,1024], index: 4, kind: input, shape index: {}]   ;;  %s15220_s5 = inlined_call_operand.hbm [shape: f32[2,256], index: 5, kind: input, shape index: {}]   ;;  %s15221_s6 = inlined_call_operand.hbm [shape: bf16[32,1024], index: 6, kind: input, shape index: {}]   ;;  %s15222_s7 = inlined_call_operand.hbm [shape: f32[2,1024], index: 7, kind: input, shape index: {}]   ;;  %s15223_s8 = inlined_call_operand.hbm [shape: f32[2,1024], index: 8, kind: input, shape index: {}]   ;;  %s15224_s9 = inlined_call_operand.hbm [shape: f32[2,256], index: 9, kind: input, shape index: {}]   ;;  %s15225_s10 = inlined_call_operand.hbm [shape: f32[1,512], index: 10, kind: input, shape index: {}]   ;;  %s15226_s11 = inlined_call_operand.hbm [shape: f32[1,256], index: 11, kind: input, shape index: {}]   ;;  %s15227_s12 = inlined_call_operand.hbm [shape: f32[1,256], index: 12, kind: input, shape index: {}]   ;;  %s15228_s13 = inlined_call_operand.<no memory space> [shape: f32[1,1], index: 13, kind: input, shape index: {}]   ;;  %s15229_s14 = inlined_call_operand.hbm [shape: bf16[1024,1024], index: 14, kind: input, shape index: {}]   ;;  %s15230_s15 = inlined_call_operand.hbm [shape: bf16[1024,256], index: 15, kind: input, shape index: {}]   ;;  %s15231_s16 = inlined_call_operand.hbm [shape: bf16[1024,1024], index: 16, kind: input, shape index: {}]   ;;  %s15232_s17 = inlined_call_operand.hbm [shape: bf16[1024,256], index: 17, kind: input, shape index: {}]   ;;  %s15233_s18 = inlined_call_operand.hbm [shape: bf16[256,512], index: 18, kind: input, shape index: {}]   ;;  %s15234_s19 = inlined_call_operand.hbm [shape: bf16[256,512], index: 19, kind: input, shape index: {}]   ;;  %s15235_s20 = inlined_call_operand.hbm [shape: bf16[512,256], index: 20, kind: input, shape index: {}]   ;;  %s15236_s21 = inlined_call_operand.vmem [shape: f32[8,1], index: 21, kind: output, shape index: {}]  }
   0x1   :  { %15251 = sst [smem:[#allocation79_spill]] %s15215_s0  ;;  %v26_v0 = vstv %s15228_s13 }
   0x2   :  { %15252 = sst [smem:[#allocation80_spill]] %s15216_s1  ;;  %27 = vst [vmem:[#allocation10] sm:$0x1] %v26_v0 }
   0x3   :  { %15253 = sst [smem:[#allocation81_spill]] %s15217_s2 }
   0x4   :  { %15254 = sst [smem:[#allocation82_spill]] %s15218_s3 }
   0x5   :  { %15255 = sst [smem:[#allocation83_spill]] %s15219_s4 }
   0x6   :  { %15256 = sst [smem:[#allocation84_spill]] %s15220_s5 }
   0x7   :  { %28 = vsyncpa [#allocation12], 0 }
   0x8   :  { %29 = vsyncpa [#allocation14], 0 }
   0x9   :  { %30 = vsyncpa [#allocation17], 0 }
   0xa   :  { %31 = vsyncpa [#allocation20], 0 }
   0xb   :  { %32 = vsyncpa [#allocation23], 0 }
   0xc   :  { %33 = vsyncpa [#allocation26], 0 }
   0xd   :  { %34 = vsyncpa [#allocation29], 0  ;;  %s13875_s26 = smov [#allocation13]   ;;  %s13876_s3 = smov [#allocation16]  }
   0xe   :  { %s51_s27 = sshll.u32 %s13875_s26, 4  ;;  %s73_s28 = sshll.u32 %s13876_s3, 4  ;;  %s52_s27 = int_to_ptr.vmem [resolvable:$true] %s51_s27  ;;  %s74_s28 = int_to_ptr.vmem [resolvable:$true] %s73_s28 }
   0xf   :  { %s15257_s4 = sld [smem:[#allocation80_spill]] }
  0x15   :  { %s13561_s30 = scalar_lea.hbm %s15257_s4, 128 }
  0x16   :  { %p13562_p0 = scmp.ne.s32.totalorder %s15257_s4, %s13561_s30  ;;  %p13565_p1 = scmp.lt.u32.totalorder %s13561_s30, %s15257_s4 }
  0x18   :  { %p13567_p2 = pnand %p13565_p1, %p13562_p0 }
  0x1a   :  { %13570 = shalt.err (!%p13567_p2)
}
  0x1b   :  { %s13571_s1 = scalar_lea.vmem %s52_s27, 128  ;;  %p13576_p4 = scmp.lt.s32.totalorder %s52_s27, %s52_s27 }
  0x1c   :  { %p13572_p3 = scmp.ne.s32.totalorder %s52_s27, %s13571_s1  ;;  %p13577_p5 = scmp.lt.s32.totalorder %s13571_s1, %s13571_s1 }
  0x1e   :  { %p13578_p6 = por %p13577_p5, %p13576_p4 }
  0x20   :  { %p13579_p7 = pnand %p13578_p6, %p13572_p3 }
  0x22   :  { %13582 = shalt.err (!%p13579_p7)
}
  0x23   :  { %54 = dma.hbm_to_vmem [thread:$0]  %s15257_s4, 128, %s52_s27, [#allocation14]  }
  0x24   :  { %s15258_s3 = sld [smem:[#allocation82_spill]] }
  0x2a   :  { %s13583_s29 = scalar_lea.hbm %s15258_s3, 256 }
  0x2b   :  { %p13584_p8 = scmp.ne.s32.totalorder %s15258_s3, %s13583_s29  ;;  %p13587_p9 = scmp.lt.u32.totalorder %s13583_s29, %s15258_s3 }
  0x2d   :  { %p13589_p10 = pnand %p13587_p9, %p13584_p8 }
  0x2f   :  { %13592 = shalt.err (!%p13589_p10)
}
  0x30   :  { %s13593_s22 = scalar_lea.vmem %s74_s28, 256  ;;  %p13598_p12 = scmp.lt.s32.totalorder %s74_s28, %s74_s28 }
  0x31   :  { %p13594_p11 = scmp.ne.s32.totalorder %s74_s28, %s13593_s22  ;;  %p13599_p13 = scmp.lt.s32.totalorder %s13593_s22, %s13593_s22 }
  0x33   :  { %p13600_p0 = por %p13599_p13, %p13598_p12 }
  0x35   :  { %p13601_p1 = pnand %p13600_p0, %p13594_p11 }
  0x37   :  { %13604 = shalt.err (!%p13601_p1)
}
  0x38   :  { %76 = dma.hbm_to_vmem [thread:$0]  %s15258_s3, 256, %s74_s28, [#allocation17]  }
  0x39   :  { %s13877_s23 = smov [#allocation19]   ;;  %s13878_s24 = smov [#allocation22]  }
  0x3a   :  { %s93_s1 = sshll.u32 %s13877_s23, 4  ;;  %s115_s2 = sshll.u32 %s13878_s24, 4  ;;  %s94_s1 = int_to_ptr.vmem [resolvable:$true] %s93_s1  ;;  %s116_s2 = int_to_ptr.vmem [resolvable:$true] %s115_s2 }
  0x3b   :  { %s15259_s29 = sld [smem:[#allocation84_spill]] }
  0x41   :  { %s13605_s0 = scalar_lea.hbm %s15259_s29, 64 }
  0x42   :  { %p13606_p2 = scmp.ne.s32.totalorder %s15259_s29, %s13605_s0  ;;  %p13609_p3 = scmp.lt.u32.totalorder %s13605_s0, %s15259_s29 }
  0x44   :  { %p13611_p4 = pnand %p13609_p3, %p13606_p2 }
  0x46   :  { %13614 = shalt.err (!%p13611_p4)
}
  0x47   :  { %s13615_s28 = scalar_lea.vmem %s94_s1, 64  ;;  %p13620_p6 = scmp.lt.s32.totalorder %s94_s1, %s94_s1 }
  0x48   :  { %p13616_p5 = scmp.ne.s32.totalorder %s94_s1, %s13615_s28  ;;  %p13621_p7 = scmp.lt.s32.totalorder %s13615_s28, %s13615_s28 }
  0x4a   :  { %p13622_p8 = por %p13621_p7, %p13620_p6 }
  0x4c   :  { %p13623_p9 = pnand %p13622_p8, %p13616_p5 }
  0x4e   :  { %13626 = shalt.err (!%p13623_p9)
}
  0x4f   :  { %96 = dma.hbm_to_vmem [thread:$0]  %s15259_s29, 64, %s94_s1, [#allocation20]  }
  0x50   :  { %s13627_s24 = scalar_lea.hbm %s15222_s7, 256 }
  0x51   :  { %p13628_p10 = scmp.ne.s32.totalorder %s15222_s7, %s13627_s24  ;;  %p13631_p11 = scmp.lt.u32.totalorder %s13627_s24, %s15222_s7 }
  0x53   :  { %p13633_p12 = pnand %p13631_p11, %p13628_p10 }
  0x55   :  { %13636 = shalt.err (!%p13633_p12)
}
  0x56   :  { %s13637_s30 = scalar_lea.vmem %s116_s2, 256  ;;  %p13642_p0 = scmp.lt.s32.totalorder %s116_s2, %s116_s2 }
  0x57   :  { %p13638_p13 = scmp.ne.s32.totalorder %s116_s2, %s13637_s30  ;;  %p13643_p1 = scmp.lt.s32.totalorder %s13637_s30, %s13637_s30 }
  0x59   :  { %p13644_p2 = por %p13643_p1, %p13642_p0 }
  0x5b   :  { %p13645_p3 = pnand %p13644_p2, %p13638_p13 }
  0x5d   :  { %13648 = shalt.err (!%p13645_p3)
}
  0x5e   :  { %118 = dma.hbm_to_vmem [thread:$0]  %s15222_s7, 256, %s116_s2, [#allocation23]  }
  0x5f   :  { %s13879_s13 = smov [#allocation25]   ;;  %s13880_s28 = smov [#allocation28]  }
  0x60   :  { %s135_s22 = sshll.u32 %s13879_s13, 4  ;;  %s155_s3 = sshll.u32 %s13880_s28, 4  ;;  %s136_s22 = int_to_ptr.vmem [resolvable:$true] %s135_s22  ;;  %s156_s3 = int_to_ptr.vmem [resolvable:$true] %s155_s3 }
  0x61   :  { %s13649_s23 = scalar_lea.hbm %s15224_s9, 64 }
  0x62   :  { %p13650_p4 = scmp.ne.s32.totalorder %s15224_s9, %s13649_s23  ;;  %p13653_p5 = scmp.lt.u32.totalorder %s13649_s23, %s15224_s9 }
  0x64   :  { %p13655_p6 = pnand %p13653_p5, %p13650_p4 }
  0x66   :  { %13658 = shalt.err (!%p13655_p6)
}
  0x67   :  { %s13659_s7 = scalar_lea.vmem %s136_s22, 64  ;;  %p13664_p8 = scmp.lt.s32.totalorder %s136_s22, %s136_s22 }
  0x68   :  { %p13660_p7 = scmp.ne.s32.totalorder %s136_s22, %s13659_s7  ;;  %p13665_p9 = scmp.lt.s32.totalorder %s13659_s7, %s13659_s7 }
  0x6a   :  { %p13666_p10 = por %p13665_p9, %p13664_p8 }
  0x6c   :  { %p13667_p11 = pnand %p13666_p10, %p13660_p7 }
  0x6e   :  { %13670 = shalt.err (!%p13667_p11)
}
  0x6f   :  { %138 = dma.hbm_to_vmem [thread:$0]  %s15224_s9, 64, %s136_s22, [#allocation26]  }
  0x70   :  { %s13671_s29 = scalar_lea.hbm %s15226_s11, 32 }
  0x71   :  { %p13672_p12 = scmp.ne.s32.totalorder %s15226_s11, %s13671_s29  ;;  %p13675_p13 = scmp.lt.u32.totalorder %s13671_s29, %s15226_s11 }
  0x73   :  { %p13677_p0 = pnand %p13675_p13, %p13672_p12 }
  0x75   :  { %13680 = shalt.err (!%p13677_p0)
}
  0x76   :  { %s13681_s23 = scalar_lea.vmem %s156_s3, 32  ;;  %p13686_p2 = scmp.lt.s32.totalorder %s156_s3, %s156_s3 }
  0x77   :  { %p13682_p1 = scmp.ne.s32.totalorder %s156_s3, %s13681_s23  ;;  %p13687_p3 = scmp.lt.s32.totalorder %s13681_s23, %s13681_s23 }
  0x79   :  { %p13688_p4 = por %p13687_p3, %p13686_p2 }
  0x7b   :  { %p13689_p5 = pnand %p13688_p4, %p13682_p1 }
  0x7d   :  { %13692 = shalt.err (!%p13689_p5)
}
  0x7e   :  { %158 = dma.hbm_to_vmem [thread:$0]  %s15226_s11, 32, %s156_s3, [#allocation29]  }
  0x7f   :  { %s13881_s24 = smov [#allocation11]   ;;  %s13882_s26 = smov [#allocation15]  }
  0x80   :  { %s41_s25 = sshll.u32 %s13881_s24, 4  ;;  %s60_s0 = sshll.u32 %s13882_s26, 4  ;;  %s42_s25 = int_to_ptr.vmem [resolvable:$true] %s41_s25  ;;  %s14104_s0 = int_to_ptr.vmem [resolvable:$true] %s60_s0 }
  0x81   :  { %s15260_s5 = sld [smem:[#allocation79_spill]] }
  0x87   :  { %s13693_s30 = scalar_lea.hbm %s15260_s5, 128 }
  0x88   :  { %p13694_p6 = scmp.ne.s32.totalorder %s15260_s5, %s13693_s30  ;;  %p13697_p7 = scmp.lt.u32.totalorder %s13693_s30, %s15260_s5 }
  0x8a   :  { %p13699_p8 = pnand %p13697_p7, %p13694_p6 }
  0x8c   :  { %13702 = shalt.err (!%p13699_p8)
}
  0x8d   :  { %s13703_s11 = scalar_lea.vmem %s42_s25, 128  ;;  %p13708_p10 = scmp.lt.s32.totalorder %s42_s25, %s42_s25 }
  0x8e   :  { %p13704_p9 = scmp.ne.s32.totalorder %s42_s25, %s13703_s11  ;;  %p13709_p11 = scmp.lt.s32.totalorder %s13703_s11, %s13703_s11 }
  0x90   :  { %p13710_p12 = por %p13709_p11, %p13708_p10 }
  0x92   :  { %p13711_p13 = pnand %p13710_p12, %p13704_p9 }
  0x94   :  { %13714 = shalt.err (!%p13711_p13)
}
  0x95   :  { %44 = dma.hbm_to_vmem [thread:$0]  %s15260_s5, 128, %s42_s25, [#allocation12]  }
  0x96   :  { %s15261_s9 = sld [smem:[#allocation81_spill]] }
  0x9c   :  { %s13715_s22 = scalar_lea.hbm %s15261_s9, 4096 }
  0x9d   :  { %p13716_p0 = scmp.ne.s32.totalorder %s15261_s9, %s13715_s22  ;;  %p13719_p1 = scmp.lt.u32.totalorder %s13715_s22, %s15261_s9 }
  0x9f   :  { %p13721_p2 = pnand %p13719_p1, %p13716_p0 }
  0xa1   :  { %13724 = shalt.err (!%p13721_p2)
}
  0xa2   :  { %s13725_s30 = scalar_lea.vmem %s14104_s0, 4096  ;;  %p13730_p4 = scmp.lt.s32.totalorder %s14104_s0, %s14104_s0 }
  0xa3   :  { %p13726_p3 = scmp.ne.s32.totalorder %s14104_s0, %s13725_s30  ;;  %p13731_p5 = scmp.lt.s32.totalorder %s13725_s30, %s13725_s30 }
  0xa5   :  { %p13732_p6 = por %p13731_p5, %p13730_p4 }
  0xa7   :  { %p13733_p7 = pnand %p13732_p6, %p13726_p3 }
  0xa9   :  { %13736 = shalt.err (!%p13733_p7)
}
  0xaa   :  { %s13883_s25 = smov 512   ;;  %s13884_s5 = smov 32  }
  0xab   :  { %66 = dma.hbm_to_vmem [thread:$0]  %s15261_s9, 4096, %s14104_s0, [#allocation14], %s13883_s25, %s13883_s25, %s13884_s5  }
  0xac   :  { %s13885_s13 = smov [#allocation18]   ;;  %s13886_s11 = smov [#allocation21]  }
  0xad   :  { %s83_s28 = sshll.u32 %s13885_s13, 4  ;;  %s102_s3 = sshll.u32 %s13886_s11, 4  ;;  %s84_s28 = int_to_ptr.vmem [resolvable:$true] %s83_s28  ;;  %s14138_s3 = int_to_ptr.vmem [resolvable:$true] %s102_s3 }
  0xae   :  { %s15262_s23 = sld [smem:[#allocation83_spill]] }
  0xb4   :  { %s13737_s22 = scalar_lea.hbm %s15262_s23, 256 }
  0xb5   :  { %p13738_p8 = scmp.ne.s32.totalorder %s15262_s23, %s13737_s22  ;;  %p13741_p9 = scmp.lt.u32.totalorder %s13737_s22, %s15262_s23 }
  0xb7   :  { %p13743_p10 = pnand %p13741_p9, %p13738_p8 }
  0xb9   :  { %13746 = shalt.err (!%p13743_p10)
}
  0xba   :  { %s13747_s0 = scalar_lea.vmem %s84_s28, 256  ;;  %p13752_p12 = scmp.lt.s32.totalorder %s84_s28, %s84_s28 }
  0xbb   :  { %p13748_p11 = scmp.ne.s32.totalorder %s84_s28, %s13747_s0  ;;  %p13753_p13 = scmp.lt.s32.totalorder %s13747_s0, %s13747_s0 }
  0xbd   :  { %p13754_p0 = por %p13753_p13, %p13752_p12 }
  0xbf   :  { %p13755_p1 = pnand %p13754_p0, %p13748_p11 }
  0xc1   :  { %13758 = shalt.err (!%p13755_p1)
}
  0xc2   :  { %86 = dma.hbm_to_vmem [thread:$0]  %s15262_s23, 256, %s84_s28, [#allocation17]  }
  0xc3   :  { %s13759_s13 = scalar_lea.hbm %s15221_s6, 2048 }
  0xc4   :  { %p13760_p2 = scmp.ne.s32.totalorder %s15221_s6, %s13759_s13  ;;  %p13763_p3 = scmp.lt.u32.totalorder %s13759_s13, %s15221_s6 }
  0xc6   :  { %p13765_p4 = pnand %p13763_p3, %p13760_p2 }
  0xc8   :  { %13768 = shalt.err (!%p13765_p4)
}
  0xc9   :  { %s13769_s24 = scalar_lea.vmem %s14138_s3, 2048  ;;  %p13774_p6 = scmp.lt.s32.totalorder %s14138_s3, %s14138_s3 }
  0xca   :  { %p13770_p5 = scmp.ne.s32.totalorder %s14138_s3, %s13769_s24  ;;  %p13775_p7 = scmp.lt.s32.totalorder %s13769_s24, %s13769_s24 }
  0xcc   :  { %p13776_p8 = por %p13775_p7, %p13774_p6 }
  0xce   :  { %p13777_p9 = pnand %p13776_p8, %p13770_p5 }
  0xd0   :  { %13780 = shalt.err (!%p13777_p9)
}
  0xd1   :  { %108 = dma.hbm_to_vmem [thread:$0]  %s15221_s6, 2048, %s14138_s3, [#allocation20], %s13883_s25, %s13883_s25, %s13884_s5  }
  0xd2   :  { %s13887_s26 = smov [#allocation24]   ;;  %s13888_s2 = smov [#allocation27]  }
  0xd3   :  { %s125_s7 = sshll.u32 %s13887_s26, 4  ;;  %s145_s0 = sshll.u32 %s13888_s2, 4  ;;  %s126_s7 = int_to_ptr.vmem [resolvable:$true] %s125_s7  ;;  %s146_s0 = int_to_ptr.vmem [resolvable:$true] %s145_s0 }
  0xd4   :  { %s13781_s1 = scalar_lea.hbm %s15223_s8, 256 }
  0xd5   :  { %p13782_p10 = scmp.ne.s32.totalorder %s15223_s8, %s13781_s1  ;;  %p13785_p11 = scmp.lt.u32.totalorder %s13781_s1, %s15223_s8 }
  0xd7   :  { %p13787_p12 = pnand %p13785_p11, %p13782_p10 }
  0xd9   :  { %13790 = shalt.err (!%p13787_p12)
}
  0xda   :  { %s13791_s6 = scalar_lea.vmem %s126_s7, 256  ;;  %p13796_p0 = scmp.lt.s32.totalorder %s126_s7, %s126_s7 }
  0xdb   :  { %p13792_p13 = scmp.ne.s32.totalorder %s126_s7, %s13791_s6  ;;  %p13797_p1 = scmp.lt.s32.totalorder %s13791_s6, %s13791_s6 }
  0xdd   :  { %p13798_p2 = por %p13797_p1, %p13796_p0 }
  0xdf   :  { %p13799_p3 = pnand %p13798_p2, %p13792_p13 }
  0xe1   :  { %13802 = shalt.err (!%p13799_p3)
}
  0xe2   :  { %128 = dma.hbm_to_vmem [thread:$0]  %s15223_s8, 256, %s126_s7, [#allocation23]  }
  0xe3   :  { %s13803_s24 = scalar_lea.hbm %s15225_s10, 64 }
  0xe4   :  { %p13804_p4 = scmp.ne.s32.totalorder %s15225_s10, %s13803_s24  ;;  %p13807_p5 = scmp.lt.u32.totalorder %s13803_s24, %s15225_s10 }
  0xe6   :  { %p13809_p6 = pnand %p13807_p5, %p13804_p4 }
  0xe8   :  { %13812 = shalt.err (!%p13809_p6)
}
  0xe9   :  { %s13813_s9 = scalar_lea.vmem %s146_s0, 64  ;;  %p13818_p8 = scmp.lt.s32.totalorder %s146_s0, %s146_s0 }
  0xea   :  { %p13814_p7 = scmp.ne.s32.totalorder %s146_s0, %s13813_s9  ;;  %p13819_p9 = scmp.lt.s32.totalorder %s13813_s9, %s13813_s9 }
  0xec   :  { %p13820_p10 = por %p13819_p9, %p13818_p8 }
  0xee   :  { %p13821_p11 = pnand %p13820_p10, %p13814_p7 }
  0xf0   :  { %13824 = shalt.err (!%p13821_p11)
}
  0xf1   :  { %148 = dma.hbm_to_vmem [thread:$0]  %s15225_s10, 64, %s146_s0, [#allocation26]  }
  0xf2   :  { %s13889_s30 = smov [#allocation30]   ;;  %s13825_s11 = scalar_lea.hbm %s15227_s12, 32 }
  0xf3   :  { %s165_s1 = sshll.u32 %s13889_s30, 4  ;;  %p13826_p12 = scmp.ne.s32.totalorder %s15227_s12, %s13825_s11  ;;  %s166_s1 = int_to_ptr.vmem [resolvable:$true] %s165_s1 }
  0xf4   :  { %p13829_p13 = scmp.lt.u32.totalorder %s13825_s11, %s15227_s12 }
  0xf6   :  { %p13831_p0 = pnand %p13829_p13, %p13826_p12 }
  0xf8   :  { %13834 = shalt.err (!%p13831_p0)
}
  0xf9   :  { %s13835_s4 = scalar_lea.vmem %s166_s1, 32  ;;  %p13840_p2 = scmp.lt.s32.totalorder %s166_s1, %s166_s1 }
  0xfa   :  { %p13836_p1 = scmp.ne.s32.totalorder %s166_s1, %s13835_s4  ;;  %p13841_p3 = scmp.lt.s32.totalorder %s13835_s4, %s13835_s4 }
  0xfc   :  { %p13842_p4 = por %p13841_p3, %p13840_p2 }
  0xfe   :  { %p13843_p5 = pnand %p13842_p4, %p13836_p1 }
 0x100   :  { %13846 = shalt.err (!%p13843_p5)
}
 0x101   :  { %168 = dma.hbm_to_vmem [thread:$0]  %s15227_s12, 32, %s166_s1, [#allocation29]  }
 0x102   :  { %13847 = dma.done.wait [#allocation12], 128  }
 0x103   :  { %13848 = vsyncadd [#allocation12], 4294967168 }
 0x104   :  { %13849 = dma.done.wait [#allocation14], 4224  }
 0x105   :  { %13850 = vsyncadd [#allocation14], 4294963072 }
 0x106   :  { %13851 = dma.done.wait [#allocation17], 512  }
 0x107   :  { %13852 = vsyncadd [#allocation17], 4294966784 }
 0x108   :  { %13853 = dma.done.wait [#allocation20], 2112  }
 0x109   :  { %13854 = vsyncadd [#allocation20], 4294965184 }
 0x10a   :  { %13855 = dma.done.wait [#allocation23], 512  }
 0x10b   :  { %13856 = vsyncadd [#allocation23], 4294966784 }
 0x10c   :  { %13857 = dma.done.wait [#allocation26], 128  }
 0x10d   :  { %13858 = vsyncadd [#allocation26], 4294967168 }
 0x10e   :  { %13859 = dma.done.wait [#allocation29], 64  }
 0x10f   :  { %13860 = vsyncadd [#allocation29], 4294967232  ;;  %s214_s22 = sld [smem:[#allocation0]]   ;;  %s13890_s24 = smov 1024   ;;  %v13891_v1 = vmov 0.0   ;;  %vm552_vm0 = vcmask 523264  }
 0x110   :  { %226 = sst [smem:[#allocation32]] %s13890_s24  ;;  %620 = vmatprep.mubr.f32.mxu0 %v13891_v1  ;;  %833 = vmatprep.mubr.f32.mxu1 %v13891_v1  ;;  %s13892_s12 = smov 8  }
 0x111   :  { %228 = sst [smem:[#allocation32 + $0x1]] %s13890_s24  ;;  %s13893_s28 = smov 64  }
 0x112   :  { %230 = sst [smem:[#allocation32 + $0x2]] %s13892_s12  ;;  %s13894_s23 = smov 128  }
 0x113   :  { %232 = sst [smem:[#allocation32 + $0x3]] %s13893_s28  ;;  %s13895_s26 = smov 2  }
 0x114   :  { %234 = sst [smem:[#allocation32 + $0x4]] %s13894_s23  ;;  %s13896_s8 = smov 4  }
 0x115   :  { %236 = sst [smem:[#allocation32 + $0x5]] %s13895_s26  ;;  %s10259_s2 = sshll.u32 %s214_s22, 26 }
 0x116   :  { %238 = sst [smem:[#allocation32 + $0x6]] %s13883_s25  ;;  %s14217_s9 = sadd.s32 134217728, %s10259_s2 }
 0x117   :  { %240 = sst [smem:[#allocation32 + $0x7]] %s13893_s28  ;;  %s13897_s7 = smov [#allocation2]  }
 0x118   :  { %242 = sst [smem:[#allocation32 + $0x8]] %s13896_s8  ;;  %s222_s30 = sshll.u32 %s13897_s7, 4  ;;  %s223_s30 = int_to_ptr.vmem [resolvable:$true] %s222_s30 }
 0x119   :  { %s13898_s1 = smov [#allocation9]   ;;  %s13899_s29 = smov [#allocation31]  }
 0x11a   :  { %244 = dma.general %s15229_s14, 65536, %s223_s30, %s13898_s1, %s13899_s29, [#allocation32], %s14217_s9, 0  }
 0x11b   :  { %s13900_s27 = smov 256   ;;  %s13901_s6 = smov [#allocation3]  }
 0x11c   :  { %261 = sst [smem:[#allocation34]] %s13900_s27  ;;  %s257_s5 = sshll.u32 %s13901_s6, 4  ;;  %s258_s5 = int_to_ptr.vmem [resolvable:$true] %s257_s5 }
 0x11d   :  { %263 = sst [smem:[#allocation34 + $0x1]] %s13900_s27  ;;  %s13902_s14 = smov [#allocation9 + $0x1]  }
 0x11e   :  { %265 = sst [smem:[#allocation34 + $0x2]] %s13895_s26  ;;  %s13903_s3 = smov [#allocation33]  }
 0x11f   :  { %267 = sst [smem:[#allocation34 + $0x3]] %s13893_s28  ;;  %s13904_s0 = smov [#allocation4]  }
 0x120   :  { %269 = sst [smem:[#allocation34 + $0x4]] %s13894_s23  ;;  %s292_s22 = sshll.u32 %s13904_s0, 4  ;;  %s293_s22 = int_to_ptr.vmem [resolvable:$true] %s292_s22 }
 0x121   :  { %271 = sst [smem:[#allocation34 + $0x5]] %s13895_s26  ;;  %s13906_s2 = smov [#allocation35]  }
 0x122   :  { %273 = sst [smem:[#allocation34 + $0x6]] %s13894_s23  ;;  %s13909_s1 = smov [#allocation37]  }
 0x123   :  { %275 = sst [smem:[#allocation34 + $0x7]] %s13893_s28  ;;  %s13910_s11 = smov [#allocation6]  }
 0x124   :  { %277 = sst [smem:[#allocation34 + $0x8]] %s13896_s8  ;;  %s362_s6 = sshll.u32 %s13910_s11, 4  ;;  %s363_s6 = int_to_ptr.vmem [resolvable:$true] %s362_s6 }
 0x125   :  { %279 = dma.general %s15230_s15, 16384, %s258_s5, %s13902_s14, %s13903_s3, [#allocation34], %s14217_s9, 0  }
 0x126   :  { %296 = sst [smem:[#allocation36]] %s13890_s24  ;;  %s13905_s15 = smov [#allocation9 + $0x2]  }
 0x127   :  { %298 = sst [smem:[#allocation36 + $0x1]] %s13890_s24  ;;  %s13912_s5 = smov [#allocation39]  }
 0x128   :  { %300 = sst [smem:[#allocation36 + $0x2]] %s13892_s12  ;;  %s13907_s12 = smov [#allocation5]  }
 0x129   :  { %302 = sst [smem:[#allocation36 + $0x3]] %s13893_s28  ;;  %s327_s30 = sshll.u32 %s13907_s12, 4  ;;  %s328_s30 = int_to_ptr.vmem [resolvable:$true] %s327_s30 }
 0x12a   :  { %304 = sst [smem:[#allocation36 + $0x4]] %s13894_s23  ;;  %s13913_s4 = smov [#allocation7]  }
 0x12b   :  { %306 = sst [smem:[#allocation36 + $0x5]] %s13895_s26  ;;  %s397_s10 = sshll.u32 %s13913_s4, 4  ;;  %s398_s10 = int_to_ptr.vmem [resolvable:$true] %s397_s10 }
 0x12c   :  { %308 = sst [smem:[#allocation36 + $0x6]] %s13883_s25  ;;  %s13915_s0 = smov [#allocation41]  }
 0x12d   :  { %310 = sst [smem:[#allocation36 + $0x7]] %s13893_s28  ;;  %s13918_s24 = smov [#allocation43]  }
 0x12e   :  { %312 = sst [smem:[#allocation36 + $0x8]] %s13896_s8 }
 0x12f   :  { %314 = dma.general %s15231_s16, 65536, %s293_s22, %s13905_s15, %s13906_s2, [#allocation36], %s14217_s9, 0  }
 0x130   :  { %331 = sst [smem:[#allocation38]] %s13900_s27  ;;  %s13908_s16 = smov [#allocation9 + $0x3]  }
 0x131   :  { %333 = sst [smem:[#allocation38 + $0x1]] %s13900_s27  ;;  %s13916_s15 = smov [#allocation8]  }
 0x132   :  { %335 = sst [smem:[#allocation38 + $0x2]] %s13895_s26  ;;  %s432_s2 = sshll.u32 %s13916_s15, 4  ;;  %s433_s2 = int_to_ptr.vmem [resolvable:$true] %s432_s2 }
 0x133   :  { %337 = sst [smem:[#allocation38 + $0x3]] %s13893_s28 }
 0x134   :  { %339 = sst [smem:[#allocation38 + $0x4]] %s13894_s23 }
 0x135   :  { %341 = sst [smem:[#allocation38 + $0x5]] %s13895_s26 }
 0x136   :  { %343 = sst [smem:[#allocation38 + $0x6]] %s13894_s23 }
 0x137   :  { %345 = sst [smem:[#allocation38 + $0x7]] %s13893_s28 }
 0x138   :  { %347 = sst [smem:[#allocation38 + $0x8]] %s13896_s8 }
 0x139   :  { %349 = dma.general %s15232_s17, 16384, %s328_s30, %s13908_s16, %s13909_s1, [#allocation38], %s14217_s9, 0  }
 0x13a   :  { %366 = sst [smem:[#allocation40]] %s13883_s25  ;;  %s13911_s17 = smov [#allocation9 + $0x4]  }
 0x13b   :  { %368 = sst [smem:[#allocation40 + $0x1]] %s13883_s25 }
 0x13c   :  { %370 = sst [smem:[#allocation40 + $0x2]] %s13896_s8 }
 0x13d   :  { %372 = sst [smem:[#allocation40 + $0x3]] %s13893_s28 }
 0x13e   :  { %374 = sst [smem:[#allocation40 + $0x4]] %s13894_s23 }
 0x13f   :  { %376 = sst [smem:[#allocation40 + $0x5]] %s13895_s26 }
 0x140   :  { %378 = sst [smem:[#allocation40 + $0x6]] %s13900_s27 }
 0x141   :  { %380 = sst [smem:[#allocation40 + $0x7]] %s13893_s28 }
 0x142   :  { %382 = sst [smem:[#allocation40 + $0x8]] %s13896_s8 }
 0x143   :  { %384 = dma.general %s15233_s18, 8192, %s363_s6, %s13911_s17, %s13912_s5, [#allocation40], %s14217_s9, 0  }
 0x144   :  { %401 = sst [smem:[#allocation42]] %s13883_s25  ;;  %s13914_s18 = smov [#allocation9 + $0x5]  }
 0x145   :  { %403 = sst [smem:[#allocation42 + $0x1]] %s13883_s25 }
 0x146   :  { %405 = sst [smem:[#allocation42 + $0x2]] %s13896_s8 }
 0x147   :  { %407 = sst [smem:[#allocation42 + $0x3]] %s13893_s28 }
 0x148   :  { %409 = sst [smem:[#allocation42 + $0x4]] %s13894_s23 }
 0x149   :  { %411 = sst [smem:[#allocation42 + $0x5]] %s13895_s26 }
 0x14a   :  { %413 = sst [smem:[#allocation42 + $0x6]] %s13900_s27 }
 0x14b   :  { %415 = sst [smem:[#allocation42 + $0x7]] %s13893_s28 }
 0x14c   :  { %417 = sst [smem:[#allocation42 + $0x8]] %s13896_s8 }
 0x14d   :  { %419 = dma.general %s15234_s19, 8192, %s398_s10, %s13914_s18, %s13915_s0, [#allocation42], %s14217_s9, 0  }
 0x14e   :  { %436 = sst [smem:[#allocation44]] %s13900_s27  ;;  %s13917_s19 = smov [#allocation9 + $0x6]  }
 0x14f   :  { %438 = sst [smem:[#allocation44 + $0x1]] %s13900_s27 }
 0x150   :  { %440 = sst [smem:[#allocation44 + $0x2]] %s13895_s26 }
 0x151   :  { %442 = sst [smem:[#allocation44 + $0x3]] %s13893_s28 }
 0x152   :  { %444 = sst [smem:[#allocation44 + $0x4]] %s13894_s23 }
 0x153   :  { %446 = sst [smem:[#allocation44 + $0x5]] %s13895_s26 }
 0x154   :  { %448 = sst [smem:[#allocation44 + $0x6]] %s13894_s23 }
 0x155   :  { %450 = sst [smem:[#allocation44 + $0x7]] %s13893_s28 }
 0x156   :  { %452 = sst [smem:[#allocation44 + $0x8]] %s13896_s8 }
 0x157   :  { %454 = dma.general %s15235_s20, 8192, %s433_s2, %s13917_s19, %s13918_s24, [#allocation44], %s14217_s9, 0  }
 0x158   :  { %v456_v2 = vld [vmem:[#allocation15] sm:$0xff]  ;;  %v459_v4 = vld [vmem:[#allocation15 + $0x18] sm:$0xff]  ;;  %v457_v32 = vld [vmem:[#allocation15 + $0x8] sm:$0xff] }
 0x159   :  { %v460_v3 = vld [vmem:[#allocation15 + $0x20] sm:$0xff]  ;;  %v463_v7 = vld [vmem:[#allocation15 + $0x38] sm:$0xff]  ;;  %v461_v33 = vld [vmem:[#allocation15 + $0x28] sm:$0xff] }
 0x15a   :  { %v13397_v5 = vcombine.high %v456_v2, %v460_v3  ;;  %v13398_v6 = vcombine.low %v456_v2, %v460_v3  ;;  %v464_v8 = vld [vmem:[#allocation15 + $0x40] sm:$0xff]  ;;  %v13421_v10 = vcombine.high %v459_v4, %v463_v7  ;;  %v13422_v11 = vcombine.low %v459_v4, %v463_v7  ;;  %v467_v13 = vld [vmem:[#allocation15 + $0x58] sm:$0xff]  ;;  %v465_v37 = vld [vmem:[#allocation15 + $0x48] sm:$0xff] }
 0x15b   :  { %v468_v9 = vld [vmem:[#allocation15 + $0x60] sm:$0xff]  ;;  %v471_v14 = vld [vmem:[#allocation15 + $0x78] sm:$0xff]  ;;  %v13405_v36 = vcombine.high %v457_v32, %v461_v33  ;;  %v469_v38 = vld [vmem:[#allocation15 + $0x68] sm:$0xff]  ;;  %v13406_v40 = vcombine.low %v457_v32, %v461_v33  ;;  %v1011_v4 = vlaneseq }
 0x15c   :  { %v13399_v12 = vcombine.high %v464_v8, %v468_v9  ;;  %v472_v15 = vld [vmem:[#allocation15 + $0x80] sm:$0xff]  ;;  %10290 = vmatprep.subr.bf16.mxu0 %v13397_v5  ;;  %v13423_v16 = vcombine.high %v467_v13, %v471_v14  ;;  %v475_v18 = vld [vmem:[#allocation15 + $0x98] sm:$0xff]  ;;  %10338 = vmatprep.subr.bf16.mxu1 %v13421_v10  ;;  %v13400_v20 = vcombine.low %v464_v8, %v468_v9  ;;  %v455_v39 = vld [vmem:[#allocation11] sm:$0xff] }
 0x15d   :  { %v476_v17 = vld [vmem:[#allocation15 + $0xa0] sm:$0xff]  ;;  %v479_v19 = vld [vmem:[#allocation15 + $0xb8] sm:$0xff]  ;;  %10292 = vmatpush1.bf16.msra.mxu0 %v13398_v6  ;;  %10340 = vmatpush1.bf16.msra.mxu1 %v13422_v11  ;;  %v13424_v21 = vcombine.low %v467_v13, %v471_v14  ;;  %v13407_v41 = vcombine.high %v465_v37, %v469_v38  ;;  %v473_v42 = vld [vmem:[#allocation15 + $0x88] sm:$0xff]  ;;  %v13408_v44 = vcombine.low %v465_v37, %v469_v38  ;;  %v14314_v8 = vshrl.u32 %v1011_v4, 7 }
 0x15e   :  { %10294 = vmatprep.subr.bf16.mxu0 %v13399_v12  ;;  %v13401_v22 = vcombine.high %v472_v15, %v476_v17  ;;  %10342 = vmatprep.subr.bf16.mxu1 %v13423_v16  ;;  %v13425_v23 = vcombine.high %v475_v18, %v479_v19  ;;  %v480_v24 = vld [vmem:[#allocation15 + $0xc0] sm:$0xff]  ;;  %v483_v26 = vld [vmem:[#allocation15 + $0xd8] sm:$0xff]  ;;  %v13402_v28 = vcombine.low %v472_v15, %v476_v17  ;;  %v477_v43 = vld [vmem:[#allocation15 + $0xa8] sm:$0xff] }
 0x15f   :  { %v484_v25 = vld [vmem:[#allocation15 + $0xe0] sm:$0xff]  ;;  %v487_v27 = vld [vmem:[#allocation15 + $0xf8] sm:$0xff]  ;;  %v13426_v29 = vcombine.low %v475_v18, %v479_v19  ;;  %v13409_v45 = vcombine.high %v473_v42, %v477_v43  ;;  %v481_v46 = vld [vmem:[#allocation15 + $0xc8] sm:$0xff]  ;;  %v13410_v48 = vcombine.low %v473_v42, %v477_v43 }
 0x160   :  { %v13403_v30 = vcombine.high %v480_v24, %v484_v25  ;;  %v13427_v31 = vcombine.high %v483_v26, %v487_v27  ;;  %v13404_v34 = vcombine.low %v480_v24, %v484_v25  ;;  %v13428_v35 = vcombine.low %v483_v26, %v487_v27  ;;  %v485_v47 = vld [vmem:[#allocation15 + $0xe8] sm:$0xff]  ;;  %v458_v50 = vld [vmem:[#allocation15 + $0x10] sm:$0xff] }
 0x161   :  { %10296 = vmatpush1.bf16.msra.mxu0 %v13400_v20  ;;  %10344 = vmatpush1.bf16.msra.mxu1 %v13424_v21  ;;  %v13411_v49 = vcombine.high %v481_v46, %v485_v47  ;;  %v462_v51 = vld [vmem:[#allocation15 + $0x30] sm:$0xff]  ;;  %v13412_v52 = vcombine.low %v481_v46, %v485_v47 }
 0x162   :  { %10298 = vmatprep.subr.bf16.mxu0 %v13401_v22  ;;  %10346 = vmatprep.subr.bf16.mxu1 %v13425_v23  ;;  %v13413_v53 = vcombine.high %v458_v50, %v462_v51  ;;  %v466_v54 = vld [vmem:[#allocation15 + $0x50] sm:$0xff]  ;;  %v13414_v56 = vcombine.low %v458_v50, %v462_v51 }
 0x163   :  { %v470_v55 = vld [vmem:[#allocation15 + $0x70] sm:$0xff] }
 0x164   :  { %v13415_v57 = vcombine.high %v466_v54, %v470_v55  ;;  %v474_v58 = vld [vmem:[#allocation15 + $0x90] sm:$0xff]  ;;  %v13416_v60 = vcombine.low %v466_v54, %v470_v55 }
 0x165   :  { %10300 = vmatpush1.bf16.msra.mxu0 %v13402_v28  ;;  %10348 = vmatpush1.bf16.msra.mxu1 %v13426_v29  ;;  %v478_v59 = vld [vmem:[#allocation15 + $0xb0] sm:$0xff] }
 0x166   :  { %10302 = vmatprep.subr.bf16.mxu0 %v13403_v30  ;;  %10350 = vmatprep.subr.bf16.mxu1 %v13427_v31  ;;  %v13417_v61 = vcombine.high %v474_v58, %v478_v59  ;;  %v482_v62 = vld [vmem:[#allocation15 + $0xd0] sm:$0xff]  ;;  %v13418_v0 = vcombine.low %v474_v58, %v478_v59 }
 0x167   :  { %v486_v63 = vld [vmem:[#allocation15 + $0xf0] sm:$0xff] }
 0x168   :  { %v13419_v2 = vcombine.high %v482_v62, %v486_v63  ;;  %v13420_v3 = vcombine.low %v482_v62, %v486_v63 }
 0x169   :  { %10304 = vmatpush1.bf16.msra.mxu0 %v13404_v34  ;;  %10352 = vmatpush1.bf16.msra.mxu1 %v13428_v35 }
 0x16a   :  { %10306 = vmatprep.subr.bf16.mxu0 %v13405_v36 }
 0x16c   :  { %10273 = vmatmul.mubr.msk.f32.vlgmr.msra.gmra.mrb[0].mxu0 %vm552_vm0, %v455_v39  ;;  %10276 = vmatmul.mubr.msk.f32.vlgmr.msra.gmra.mrb[0].mxu1 %vm552_vm0, %v455_v39 }
 0x16d   :  { %10308 = vmatpush1.bf16.msra.mxu0 %v13406_v40  ;;  %691 = vmatprep.mubr.f32.mxu0 %v13891_v1 }
 0x16e   :  { %10310 = vmatprep.subr.bf16.mxu0 %v13407_v41 }
 0x171   :  { %10312 = vmatpush1.bf16.msra.mxu0 %v13408_v44 }
 0x172   :  { %10314 = vmatprep.subr.bf16.mxu0 %v13409_v45 }
 0x175   :  { %10316 = vmatpush1.bf16.msra.mxu0 %v13410_v48 }
 0x176   :  { %10318 = vmatprep.subr.bf16.mxu0 %v13411_v49 }
 0x179   :  { %10320 = vmatpush1.bf16.msra.mxu0 %v13412_v52 }
 0x17a   :  { %10322 = vmatprep.subr.bf16.mxu0 %v13413_v53 }
 0x17c   :  { %10274 = vmatmul.mubr.msk.f32.vlgmr.msra.gmra.mrb[2].mxu0 %vm552_vm0, %v455_v39 }
 0x17d   :  { %10324 = vmatpush1.bf16.msra.mxu0 %v13414_v56  ;;  %762 = vmatprep.mubr.f32.mxu0 %v13891_v1 }
 0x17e   :  { %10326 = vmatprep.subr.bf16.mxu0 %v13415_v57 }
 0x181   :  { %10328 = vmatpush1.bf16.msra.mxu0 %v13416_v60 }
 0x182   :  { %10330 = vmatprep.subr.bf16.mxu0 %v13417_v61 }
 0x185   :  { %10332 = vmatpush1.bf16.msra.mxu0 %v13418_v0 }
 0x186   :  { %10334 = vmatprep.subr.bf16.mxu0 %v13419_v2 }
 0x189   :  { %10336 = vmatpush1.bf16.msra.mxu0 %v13420_v3 }
 0x18c   :  { %10275 = vmatmul.mubr.msk.f32.vlgmr.msra.gmra.mrb[4].mxu0 %vm552_vm0, %v455_v39 }
 0x23f   :  { %v14309_v5 = vpop.f32.mrb[0].mxu0  ;;  %v14318_v10 = vpop.f32.mrb[0].mxu1 }
 0x240   :  { %v840_v6 = vrot.slane %v14309_v5, 4  ;;  %v897_v7 = vmul.f32 %v14309_v5, %v14309_v5  ;;  %v14316_v9 = vpop.f32.mrb[1].mxu0  ;;  %v876_v13 = vrot.slane %v14318_v10, 4  ;;  %v903_v14 = vmul.f32 %v14318_v10, %v14318_v10  ;;  %v14326_v15 = vpop.f32.mrb[1].mxu1 }
 0x241   :  { %v846_v11 = vrot.slane %v14316_v9, 4  ;;  %v898_v12 = vmul.f32 %v14316_v9, %v14316_v9  ;;  %v882_v18 = vrot.slane %v14326_v15, 4  ;;  %v904_v19 = vmul.f32 %v14326_v15, %v14326_v15 }
 0x242   :  { %v841_v16 = vadd.f32 %v840_v6, %v14309_v5  ;;  %v905_v17 = vrot.slane %v897_v7, 4  ;;  %v877_v22 = vadd.f32 %v876_v13, %v14318_v10  ;;  %v941_v23 = vrot.slane %v903_v14, 4 }
 0x243   :  { %v847_v20 = vadd.f32 %v846_v11, %v14316_v9  ;;  %v911_v21 = vrot.slane %v898_v12, 4  ;;  %v883_v26 = vadd.f32 %v882_v18, %v14326_v15  ;;  %v947_v27 = vrot.slane %v904_v19, 4 }
 0x244   :  { %v842_v24 = vrot.slane %v841_v16, 2  ;;  %v906_v25 = vadd.f32 %v905_v17, %v897_v7  ;;  %v878_v30 = vrot.slane %v877_v22, 2  ;;  %v942_v31 = vadd.f32 %v941_v23, %v903_v14 }
 0x245   :  { %v848_v28 = vrot.slane %v847_v20, 2  ;;  %v912_v29 = vadd.f32 %v911_v21, %v898_v12  ;;  %v884_v34 = vrot.slane %v883_v26, 2  ;;  %v948_v35 = vadd.f32 %v947_v27, %v904_v19 }
 0x246   :  { %v843_v32 = vadd.f32 %v842_v24, %v841_v16  ;;  %v907_v33 = vrot.slane %v906_v25, 2  ;;  %v879_v38 = vadd.f32 %v878_v30, %v877_v22  ;;  %v943_v39 = vrot.slane %v942_v31, 2 }
 0x247   :  { %v849_v36 = vadd.f32 %v848_v28, %v847_v20  ;;  %v913_v37 = vrot.slane %v912_v29, 2  ;;  %v885_v42 = vadd.f32 %v884_v34, %v883_v26  ;;  %v949_v43 = vrot.slane %v948_v35, 2 }
 0x248   :  { %v844_v40 = vrot.slane %v843_v32, 1  ;;  %v908_v41 = vadd.f32 %v907_v33, %v906_v25  ;;  %v880_v46 = vrot.slane %v879_v38, 1  ;;  %v944_v47 = vadd.f32 %v943_v39, %v942_v31 }
 0x249   :  { %v850_v44 = vrot.slane %v849_v36, 1  ;;  %v914_v45 = vadd.f32 %v913_v37, %v912_v29  ;;  %v886_v50 = vrot.slane %v885_v42, 1  ;;  %v950_v51 = vadd.f32 %v949_v43, %v948_v35 }
 0x24a   :  { %v845_v48 = vadd.f32 %v844_v40, %v843_v32  ;;  %v909_v49 = vrot.slane %v908_v41, 1  ;;  %v881_v54 = vadd.f32 %v880_v46, %v879_v38  ;;  %v945_v55 = vrot.slane %v944_v47, 1  ;;  %v14369_v38 = vld [vmem:[#allocation16] ss:$2 sm:$0xff] }
 0x24b   :  { %v851_v52 = vadd.f32 %v850_v44, %v849_v36  ;;  %v915_v53 = vrot.slane %v914_v45, 1  ;;  %v887_v58 = vadd.f32 %v886_v50, %v885_v42  ;;  %v951_v59 = vrot.slane %v950_v51, 1  ;;  %v14371_v42 = vld [vmem:[#allocation16 + $0x1] ss:$2 sm:$0xff] }
 0x24c   :  { %v14335_v56 = vmul.f32 0.125, %v845_v48  ;;  %v910_v57 = vadd.f32 %v909_v49, %v908_v41  ;;  %v14339_v62 = vmul.f32 0.125, %v881_v54  ;;  %v946_v63 = vadd.f32 %v945_v55, %v944_v47 }
 0x24d   :  { %v14337_v60 = vmul.f32 0.125, %v851_v52  ;;  %v916_v61 = vadd.f32 %v915_v53, %v914_v45  ;;  %v14343_v3 = vmul.f32 0.125, %v887_v58  ;;  %v952_v14 = vadd.f32 %v951_v59, %v950_v51 }
 0x24e   :  { %v953_v0 = vmul.f32 0.125, %v910_v57  ;;  %v961_v2 = vmul.f32 %v14335_v56, %v14335_v56  ;;  %v959_v7 = vmul.f32 0.125, %v946_v63  ;;  %v967_v13 = vmul.f32 %v14339_v62, %v14339_v62 }
 0x24f   :  { %v954_v4 = vmul.f32 0.125, %v916_v61  ;;  %v962_v6 = vmul.f32 %v14337_v60, %v14337_v60  ;;  %v14347_v11 = vpop.f32.mrb[2].mxu0  ;;  %v14354_v17 = vsub.s32 0, %v14314_v8  ;;  %v968_v19 = vmul.f32 %v14343_v3, %v14343_v3 }
 0x250   :  { %v969_v12 = vsub.f32 %v953_v0, %v961_v2  ;;  %v14351_v16 = vpop.f32.mrb[3].mxu0  ;;  %v852_v20 = vrot.slane %v14347_v11, 4  ;;  %v975_v22 = vsub.f32 %v959_v7, %v967_v13  ;;  %v960_v23 = vmul.f32 0.125, %v952_v14 }
 0x251   :  { %15263 = vst [vmem:[#allocation59_spill] sm:$0xff] %v14354_v17  ;;  %v970_v18 = vsub.f32 %v954_v4, %v962_v6  ;;  %v899_v24 = vmul.f32 %v14347_v11, %v14347_v11  ;;  %v858_v27 = vrot.slane %v14351_v16, 4  ;;  %v900_v28 = vmul.f32 %v14351_v16, %v14351_v16 }
 0x252   :  { %v985_v21 = vadd.f32 1e-05, %v969_v12  ;;  %v853_v26 = vadd.f32 %v852_v20, %v14347_v11  ;;  %v991_v29 = vadd.f32 1e-05, %v975_v22  ;;  %v976_v30 = vsub.f32 %v960_v23, %v968_v19 }
 0x253   :  { %v986_v25 = vadd.f32 1e-05, %v970_v18  ;;  %v917_v31 = vrot.slane %v899_v24, 4  ;;  %v859_v33 = vadd.f32 %v858_v27, %v14351_v16  ;;  %v923_v34 = vrot.slane %v900_v28, 4 }
 0x254   :  { %13489 = vrsqrt.f32 %v985_v21  ;;  %v854_v32 = vrot.slane %v853_v26, 2  ;;  %v14367_v35 = vsub.s32 1, %v14314_v8  ;;  %v992_v36 = vadd.f32 1e-05, %v976_v30 }
 0x255   :  { %13491 = vrsqrt.f32 %v986_v25  ;;  %v918_v37 = vadd.f32 %v917_v31, %v899_v24  ;;  %v860_v40 = vrot.slane %v859_v33, 2  ;;  %v924_v41 = vadd.f32 %v923_v34, %v900_v28 }
 0x256   :  { %15264 = vst [vmem:[#allocation60_spill] sm:$0xff] %v14367_v35  ;;  %13493 = vrsqrt.f32 %v991_v29  ;;  %v855_v39 = vadd.f32 %v854_v32, %v853_v26  ;;  %v14374_v43 = vsub.s32 6, %v14314_v8  ;;  %v1014_v48 = vrot.slane %v14369_v38, %v14354_v17 }
 0x257   :  { %13495 = vrsqrt.f32 %v992_v36  ;;  %v919_v44 = vrot.slane %v918_v37, 2  ;;  %v861_v46 = vadd.f32 %v860_v40, %v859_v33  ;;  %v925_v47 = vrot.slane %v924_v41, 2 }
 0x258   :  { %v856_v45 = vrot.slane %v855_v39, 1  ;;  %v1018_v49 = vrot.slane %v14369_v38, %v14367_v35  ;;  %v14381_v50 = vsub.s32 7, %v14314_v8  ;;  %v1065_v52 = vrot.slane %v14371_v42, %v14354_v17 }
 0x259   :  { %v920_v51 = vadd.f32 %v919_v44, %v918_v37  ;;  %v862_v54 = vrot.slane %v861_v46, 1  ;;  %v926_v55 = vadd.f32 %v925_v47, %v924_v41  ;;  %v977_v57 = vsub.f32 %v14309_v5, %v14335_v56 }
 0x25a   :  { %v857_v53 = vadd.f32 %v856_v45, %v855_v39  ;;  %v1069_v58 = vrot.slane %v14371_v42, %v14367_v35  ;;  %v1038_v59 = vrot.slane %v14369_v38, %v14374_v43  ;;  %v983_v63 = vsub.f32 %v14318_v10, %v14339_v62 }
 0x25b   :  { %v921_v61 = vrot.slane %v920_v51, 1  ;;  %v863_v2 = vadd.f32 %v862_v54, %v861_v46  ;;  %v927_v4 = vrot.slane %v926_v55, 1  ;;  %v978_v7 = vsub.f32 %v14316_v9, %v14337_v60 }
 0x25c   :  { %v14393_v0 = vmul.f32 0.125, %v857_v53  ;;  %v1089_v5 = vrot.slane %v14371_v42, %v14374_v43  ;;  %v1042_v56 = vrot.slane %v14369_v38, %v14381_v50  ;;  %v984_v10 = vsub.f32 %v14326_v15, %v14343_v3 }
 0x25d   :  { %v922_v12 = vadd.f32 %v921_v61, %v920_v51  ;;  %v14405_v18 = vmul.f32 0.125, %v863_v2  ;;  %v928_v21 = vadd.f32 %v927_v4, %v926_v55  ;;  %v1093_v15 = vrot.slane %v14371_v42, %v14381_v50 }
 0x25e   :  { %v13490_v6 = vpop.eup %13489  ;;  %v963_v62 = vmul.f32 %v14393_v0, %v14393_v0 }
 0x25f   :  { %v13492_v13 = vpop.eup %13491  ;;  %v1001_v14 = vmul.f32 %v13490_v6, %v977_v57  ;;  %v14407_v19 = vpop.f32.mrb[4].mxu0  ;;  %v955_v20 = vmul.f32 0.125, %v922_v12  ;;  %v964_v3 = vmul.f32 %v14405_v18, %v14405_v18  ;;  %v956_v29 = vmul.f32 0.125, %v928_v21 }
 0x260   :  { %v13494_v9 = vpop.eup %13493  ;;  %v1002_v60 = vmul.f32 %v13492_v13, %v978_v7  ;;  %v864_v22 = vrot.slane %v14407_v19, 4  ;;  %v14410_v23 = vpop.f32.mrb[5].mxu0  ;;  %v901_v34 = vmul.f32 %v14407_v19, %v14407_v19 }
 0x261   :  { %v1051_v24 = vmul.f32 %v1014_v48, %v1001_v14  ;;  %v1007_v25 = vmul.f32 %v13494_v9, %v983_v63  ;;  %v13496_v26 = vpop.eup %13495  ;;  %v971_v28 = vsub.f32 %v955_v20, %v963_v62  ;;  %v972_v39 = vsub.f32 %v956_v29, %v964_v3 }
 0x262   :  { %v1052_v27 = vmul.f32 %v1018_v49, %v1002_v60  ;;  %v865_v30 = vadd.f32 %v864_v22, %v14407_v19  ;;  %v1008_v33 = vmul.f32 %v13496_v26, %v984_v10  ;;  %v929_v46 = vrot.slane %v901_v34, 4 }
 0x263   :  { %v1102_v31 = vadd.f32 %v1065_v52, %v1051_v24  ;;  %v1057_v32 = vmul.f32 %v1038_v59, %v1007_v25  ;;  %v987_v37 = vadd.f32 1e-05, %v971_v28  ;;  %v988_v48 = vadd.f32 1e-05, %v972_v39 }
 0x264   :  { %v1103_v36 = vadd.f32 %v1069_v58, %v1052_v27  ;;  %v866_v40 = vrot.slane %v865_v30, 2  ;;  %v1058_v45 = vmul.f32 %v1042_v56, %v1008_v33  ;;  %v930_v53 = vadd.f32 %v929_v46, %v901_v34 }
 0x265   :  { %v14419_v41 = vmax.f32 %v1102_v31, 0.0  ;;  %v1108_v44 = vadd.f32 %v1089_v5, %v1057_v32  ;;  %13497 = vrsqrt.f32 %v987_v37  ;;  %v870_v54 = vrot.slane %v14410_v23, 4 }
 0x266   :  { %v14421_v47 = vmax.f32 %v1103_v36, 0.0  ;;  %v867_v49 = vadd.f32 %v866_v40, %v865_v30  ;;  %v1109_v52 = vadd.f32 %v1093_v15, %v1058_v45  ;;  %13499 = vrsqrt.f32 %v988_v48 }
 0x267   :  { %v14423_v51 = vmax.f32 %v1108_v44, 0.0  ;;  %v902_v57 = vmul.f32 %v14410_v23, %v14410_v23  ;;  %v931_v59 = vrot.slane %v930_v53, 2  ;;  %v871_v61 = vadd.f32 %v870_v54, %v14410_v23 }
 0x268   :  { %v868_v55 = vrot.slane %v867_v49, 1  ;;  %v14428_v58 = vmax.f32 %v1109_v52, 0.0  ;;  %v14432_v63 = vsub.s32 2, %v14314_v8  ;;  %v14435_v5 = vsub.s32 3, %v14314_v8 }
 0x269   :  { %v935_v4 = vrot.slane %v902_v57, 4  ;;  %v932_v6 = vadd.f32 %v931_v59, %v930_v53  ;;  %v872_v7 = vrot.slane %v871_v61, 2  ;;  %v979_v9 = vsub.f32 %v14347_v11, %v14393_v0 }
 0x26a   :  { %15265 = vst [vmem:[#allocation61_spill] sm:$0xff] %v14432_v63  ;;  %v869_v2 = vadd.f32 %v868_v55, %v867_v49  ;;  %15266 = vst [vmem:[#allocation62_spill] sm:$0xff] %v14435_v5  ;;  %v1022_v10 = vrot.slane %v14369_v38, %v14432_v63  ;;  %v1073_v24 = vrot.slane %v14371_v42, %v14432_v63  ;;  %v14454_v49 = vsub.s32 4, %v14314_v8 }
 0x26b   :  { %v936_v12 = vadd.f32 %v935_v4, %v902_v57  ;;  %v933_v13 = vrot.slane %v932_v6, 1  ;;  %v873_v14 = vadd.f32 %v872_v7, %v871_v61  ;;  %v1026_v25 = vrot.slane %v14369_v38, %v14435_v5 }
 0x26c   :  { %v893_v56 = vmul.f32 0.125, %v869_v2  ;;  %v980_v26 = vsub.f32 %v14351_v16, %v14405_v18  ;;  %v1077_v11 = vrot.slane %v14371_v42, %v14435_v5  ;;  %v1030_v53 = vrot.slane %v14369_v38, %v14454_v49 }
 0x26d   :  { %v937_v62 = vrot.slane %v936_v12, 2  ;;  %v934_v60 = vadd.f32 %v933_v13, %v932_v6  ;;  %v874_v21 = vrot.slane %v873_v14, 1  ;;  %v14460_v55 = vsub.s32 5, %v14314_v8 }
 0x26e   :  { %v965_v20 = vmul.f32 %v893_v56, %v893_v56  ;;  %v981_v52 = vsub.f32 %v14407_v19, %v893_v56  ;;  %v1081_v59 = vrot.slane %v14371_v42, %v14454_v49 }
 0x26f   :  { %v13498_v22 = vpop.eup %13497  ;;  %v938_v15 = vadd.f32 %v937_v62, %v936_v12  ;;  %v957_v27 = vmul.f32 0.125, %v934_v60  ;;  %v875_v28 = vadd.f32 %v874_v21, %v873_v14  ;;  %v1034_v4 = vrot.slane %v14369_v38, %v14460_v55 }
 0x270   :  { %v1003_v3 = vmul.f32 %v13498_v22, %v979_v9  ;;  %v13500_v29 = vpop.eup %13499  ;;  %v1085_v56 = vrot.slane %v14371_v42, %v14460_v55 }
 0x271   :  { %v939_v0 = vrot.slane %v938_v15, 1  ;;  %v1004_v31 = vmul.f32 %v13500_v29, %v980_v26  ;;  %v973_v32 = vsub.f32 %v957_v27, %v965_v20  ;;  %v894_v33 = vmul.f32 0.125, %v875_v28 }
 0x272   :  { %v1053_v30 = vmul.f32 %v1022_v10, %v1003_v3 }
 0x273   :  { %v940_v34 = vadd.f32 %v939_v0, %v938_v15  ;;  %v1054_v37 = vmul.f32 %v1026_v25, %v1004_v31  ;;  %v989_v39 = vadd.f32 1e-05, %v973_v32  ;;  %v966_v40 = vmul.f32 %v894_v33, %v894_v33 }
 0x274   :  { %v1104_v36 = vadd.f32 %v1073_v24, %v1053_v30  ;;  %v982_v2 = vsub.f32 %v14410_v23, %v894_v33 }
 0x275   :  { %v958_v44 = vmul.f32 0.125, %v940_v34  ;;  %v1105_v16 = vadd.f32 %v1077_v11, %v1054_v37  ;;  %13501 = vrsqrt.f32 %v989_v39 }
 0x276   :  { %v14449_v45 = vmax.f32 %v1104_v36, 0.0 }
 0x277   :  { %v974_v18 = vsub.f32 %v958_v44, %v966_v40  ;;  %v14451_v46 = vmax.f32 %v1105_v16, 0.0 }
 0x279   :  { %v990_v48 = vadd.f32 1e-05, %v974_v18 }
 0x27b   :  { %13503 = vrsqrt.f32 %v990_v48 }
 0x27f   :  { %v13502_v54 = vpop.eup %13501 }
 0x280   :  { %v1005_v57 = vmul.f32 %v13502_v54, %v981_v52 }
 0x282   :  { %v1055_v61 = vmul.f32 %v1030_v53, %v1005_v57 }
 0x284   :  { %v1106_v7 = vadd.f32 %v1081_v59, %v1055_v61 }
 0x285   :  { %v13504_v6 = vpop.eup %13503 }
 0x286   :  { %v1006_v19 = vmul.f32 %v13504_v6, %v982_v2  ;;  %v14469_v12 = vmax.f32 %v1106_v7, 0.0 }
 0x288   :  { %v1056_v8 = vmul.f32 %v1034_v4, %v1006_v19 }
 0x28a   :  { %v1107_v13 = vadd.f32 %v1085_v56, %v1056_v8 }
 0x28c   :  { %v14471_v14 = vmax.f32 %v1107_v13, 0.0 }
 0x28d   :  { %13861 = dma.done.wait [#allocation9], 65536 }
 0x28e   :  { %13862 = vsyncadd [#allocation9], 4294901760  ;;  %2722 = vmatprep.mubr.f32.mxu1 %v14421_v47  ;;  %2793 = vmatprep.mubr.f32.mxu0 %v14451_v46  ;;  %v1123_v23 = vld [vmem:[#allocation2 + $0x8] sm:$0xff]  ;;  %v1122_v10 = vld [vmem:[#allocation2] sm:$0xff] }
 0x28f   :  { %v1251_v38 = vld [vmem:[#allocation2 + $0x408] sm:$0xff]  ;;  %10354 = vmatprep.subr.bf16.mxu1 %v1123_v23  ;;  %v1250_v62 = vld [vmem:[#allocation2 + $0x400] sm:$0xff] }
 0x290   :  { %10418 = vmatprep.subr.bf16.mxu0 %v1251_v38  ;;  %v1131_v9 = vld [vmem:[#allocation2 + $0x48] sm:$0xff]  ;;  %10356 = vmatpush1.bf16.msra.mxu1 %v1122_v10  ;;  %v1130_v60 = vld [vmem:[#allocation2 + $0x40] sm:$0xff] }
 0x291   :  { %v1259_v42 = vld [vmem:[#allocation2 + $0x448] sm:$0xff]  ;;  %10420 = vmatpush1.bf16.msra.mxu0 %v1250_v62  ;;  %10358 = vmatprep.subr.bf16.mxu1 %v1131_v9  ;;  %v1258_v20 = vld [vmem:[#allocation2 + $0x440] sm:$0xff] }
 0x292   :  { %10422 = vmatprep.subr.bf16.mxu0 %v1259_v42  ;;  %v1139_v21 = vld [vmem:[#allocation2 + $0x88] sm:$0xff]  ;;  %v1138_v24 = vld [vmem:[#allocation2 + $0x80] sm:$0xff] }
 0x293   :  { %v1267_v22 = vld [vmem:[#allocation2 + $0x488] sm:$0xff]  ;;  %v1266_v25 = vld [vmem:[#allocation2 + $0x480] sm:$0xff] }
 0x294   :  { %10360 = vmatpush1.bf16.msra.mxu1 %v1130_v60  ;;  %v1147_v15 = vld [vmem:[#allocation2 + $0xc8] sm:$0xff]  ;;  %v1146_v26 = vld [vmem:[#allocation2 + $0xc0] sm:$0xff] }
 0x295   :  { %10424 = vmatpush1.bf16.msra.mxu0 %v1258_v20  ;;  %10362 = vmatprep.subr.bf16.mxu1 %v1139_v21  ;;  %v1275_v3 = vld [vmem:[#allocation2 + $0x4c8] sm:$0xff]  ;;  %v1274_v27 = vld [vmem:[#allocation2 + $0x4c0] sm:$0xff] }
 0x296   :  { %10426 = vmatprep.subr.bf16.mxu0 %v1267_v22  ;;  %v1155_v28 = vld [vmem:[#allocation2 + $0x108] sm:$0xff]  ;;  %v1154_v11 = vld [vmem:[#allocation2 + $0x100] sm:$0xff] }
 0x297   :  { %v1283_v29 = vld [vmem:[#allocation2 + $0x508] sm:$0xff]  ;;  %v1282_v0 = vld [vmem:[#allocation2 + $0x500] sm:$0xff] }
 0x298   :  { %10364 = vmatpush1.bf16.msra.mxu1 %v1138_v24  ;;  %v1163_v30 = vld [vmem:[#allocation2 + $0x148] sm:$0xff]  ;;  %v1162_v32 = vld [vmem:[#allocation2 + $0x140] sm:$0xff] }
 0x299   :  { %10428 = vmatpush1.bf16.msra.mxu0 %v1266_v25  ;;  %10366 = vmatprep.subr.bf16.mxu1 %v1147_v15  ;;  %v1291_v31 = vld [vmem:[#allocation2 + $0x548] sm:$0xff]  ;;  %v1290_v33 = vld [vmem:[#allocation2 + $0x540] sm:$0xff] }
 0x29a   :  { %10430 = vmatprep.subr.bf16.mxu0 %v1275_v3  ;;  %v1171_v34 = vld [vmem:[#allocation2 + $0x188] sm:$0xff]  ;;  %v1170_v37 = vld [vmem:[#allocation2 + $0x180] sm:$0xff] }
 0x29b   :  { %v1299_v36 = vld [vmem:[#allocation2 + $0x588] sm:$0xff]  ;;  %v1298_v39 = vld [vmem:[#allocation2 + $0x580] sm:$0xff] }
 0x29c   :  { %10368 = vmatpush1.bf16.msra.mxu1 %v1146_v26  ;;  %v1179_v40 = vld [vmem:[#allocation2 + $0x1c8] sm:$0xff]  ;;  %v1178_v16 = vld [vmem:[#allocation2 + $0x1c0] sm:$0xff] }
 0x29d   :  { %10432 = vmatpush1.bf16.msra.mxu0 %v1274_v27  ;;  %10370 = vmatprep.subr.bf16.mxu1 %v1155_v28  ;;  %v1307_v44 = vld [vmem:[#allocation2 + $0x5c8] sm:$0xff]  ;;  %v1306_v18 = vld [vmem:[#allocation2 + $0x5c0] sm:$0xff] }
 0x29e   :  { %10434 = vmatprep.subr.bf16.mxu0 %v1283_v29  ;;  %v1187_v48 = vld [vmem:[#allocation2 + $0x208] sm:$0xff]  ;;  %v1186_v53 = vld [vmem:[#allocation2 + $0x200] sm:$0xff] }
 0x29f   :  { %v1315_v52 = vld [vmem:[#allocation2 + $0x608] sm:$0xff]  ;;  %v1314_v54 = vld [vmem:[#allocation2 + $0x600] sm:$0xff] }
 0x2a0   :  { %10372 = vmatpush1.bf16.msra.mxu1 %v1154_v11  ;;  %v1195_v57 = vld [vmem:[#allocation2 + $0x248] sm:$0xff]  ;;  %v1194_v61 = vld [vmem:[#allocation2 + $0x240] sm:$0xff]  ;;  %v1125_v11 = vld [vmem:[#allocation2 + $0x18] sm:$0xff] }
 0x2a1   :  { %10436 = vmatpush1.bf16.msra.mxu0 %v1282_v0  ;;  %10374 = vmatprep.subr.bf16.mxu1 %v1163_v30  ;;  %v1323_v59 = vld [vmem:[#allocation2 + $0x648] sm:$0xff]  ;;  %v1322_v2 = vld [vmem:[#allocation2 + $0x640] sm:$0xff]  ;;  %v1124_v30 = vld [vmem:[#allocation2 + $0x10] sm:$0xff] }
 0x2a2   :  { %10438 = vmatprep.subr.bf16.mxu0 %v1291_v31  ;;  %v1203_v4 = vld [vmem:[#allocation2 + $0x288] sm:$0xff]  ;;  %v1202_v7 = vld [vmem:[#allocation2 + $0x280] sm:$0xff] }
 0x2a3   :  { %v1331_v6 = vld [vmem:[#allocation2 + $0x688] sm:$0xff]  ;;  %v1330_v19 = vld [vmem:[#allocation2 + $0x680] sm:$0xff] }
 0x2a4   :  { %10376 = vmatpush1.bf16.msra.mxu1 %v1162_v32  ;;  %v1211_v56 = vld [vmem:[#allocation2 + $0x2c8] sm:$0xff]  ;;  %v1210_v13 = vld [vmem:[#allocation2 + $0x2c0] sm:$0xff]  ;;  %v1133_v32 = vld [vmem:[#allocation2 + $0x58] sm:$0xff] }
 0x2a5   :  { %10440 = vmatpush1.bf16.msra.mxu0 %v1290_v33  ;;  %10378 = vmatprep.subr.bf16.mxu1 %v1171_v34  ;;  %v1339_v8 = vld [vmem:[#allocation2 + $0x6c8] sm:$0xff]  ;;  %v1338_v23 = vld [vmem:[#allocation2 + $0x6c0] sm:$0xff]  ;;  %v1132_v34 = vld [vmem:[#allocation2 + $0x50] sm:$0xff] }
 0x2a6   :  { %10442 = vmatprep.subr.bf16.mxu0 %v1299_v36  ;;  %v1219_v38 = vld [vmem:[#allocation2 + $0x308] sm:$0xff]  ;;  %v1218_v62 = vld [vmem:[#allocation2 + $0x300] sm:$0xff] }
 0x2a7   :  { %v1347_v10 = vld [vmem:[#allocation2 + $0x708] sm:$0xff]  ;;  %v1346_v9 = vld [vmem:[#allocation2 + $0x700] sm:$0xff] }
 0x2a8   :  { %10380 = vmatpush1.bf16.msra.mxu1 %v1170_v37  ;;  %v1227_v42 = vld [vmem:[#allocation2 + $0x348] sm:$0xff]  ;;  %v1226_v20 = vld [vmem:[#allocation2 + $0x340] sm:$0xff]  ;;  %v1141_v37 = vld [vmem:[#allocation2 + $0x98] sm:$0xff] }
 0x2a9   :  { %10444 = vmatpush1.bf16.msra.mxu0 %v1298_v39  ;;  %10382 = vmatprep.subr.bf16.mxu1 %v1179_v40  ;;  %v1355_v60 = vld [vmem:[#allocation2 + $0x748] sm:$0xff]  ;;  %v1354_v21 = vld [vmem:[#allocation2 + $0x740] sm:$0xff]  ;;  %v1140_v40 = vld [vmem:[#allocation2 + $0x90] sm:$0xff] }
 0x2aa   :  { %10446 = vmatprep.subr.bf16.mxu0 %v1307_v44  ;;  %v1235_v22 = vld [vmem:[#allocation2 + $0x388] sm:$0xff]  ;;  %v1234_v25 = vld [vmem:[#allocation2 + $0x380] sm:$0xff] }
 0x2ab   :  { %v1363_v24 = vld [vmem:[#allocation2 + $0x788] sm:$0xff]  ;;  %v1362_v15 = vld [vmem:[#allocation2 + $0x780] sm:$0xff] }
 0x2ac   :  { %10384 = vmatpush1.bf16.msra.mxu1 %v1178_v16  ;;  %v1243_v3 = vld [vmem:[#allocation2 + $0x3c8] sm:$0xff]  ;;  %v1242_v27 = vld [vmem:[#allocation2 + $0x3c0] sm:$0xff]  ;;  %v1149_v16 = vld [vmem:[#allocation2 + $0xd8] sm:$0xff] }
 0x2ad   :  { %10448 = vmatpush1.bf16.msra.mxu0 %v1306_v18  ;;  %10386 = vmatprep.subr.bf16.mxu1 %v1187_v48  ;;  %v1371_v26 = vld [vmem:[#allocation2 + $0x7c8] sm:$0xff]  ;;  %v1370_v28 = vld [vmem:[#allocation2 + $0x7c0] sm:$0xff]  ;;  %v1148_v48 = vld [vmem:[#allocation2 + $0xd0] sm:$0xff] }
 0x2ae   :  { %10450 = vmatprep.subr.bf16.mxu0 %v1315_v52  ;;  %v1379_v29 = vld [vmem:[#allocation2 + $0x808] sm:$0xff]  ;;  %v1378_v0 = vld [vmem:[#allocation2 + $0x800] sm:$0xff] }
 0x2af   :  { %v1387_v31 = vld [vmem:[#allocation2 + $0x848] sm:$0xff]  ;;  %v1386_v33 = vld [vmem:[#allocation2 + $0x840] sm:$0xff] }
 0x2b0   :  { %10388 = vmatpush1.bf16.msra.mxu1 %v1186_v53  ;;  %v1395_v36 = vld [vmem:[#allocation2 + $0x888] sm:$0xff]  ;;  %v1394_v39 = vld [vmem:[#allocation2 + $0x880] sm:$0xff]  ;;  %v1157_v53 = vld [vmem:[#allocation2 + $0x118] sm:$0xff] }
 0x2b1   :  { %10452 = vmatpush1.bf16.msra.mxu0 %v1314_v54  ;;  %10390 = vmatprep.subr.bf16.mxu1 %v1195_v57  ;;  %v1403_v44 = vld [vmem:[#allocation2 + $0x8c8] sm:$0xff]  ;;  %v1402_v18 = vld [vmem:[#allocation2 + $0x8c0] sm:$0xff]  ;;  %v1156_v57 = vld [vmem:[#allocation2 + $0x110] sm:$0xff] }
 0x2b2   :  { %10454 = vmatprep.subr.bf16.mxu0 %v1323_v59  ;;  %v1411_v52 = vld [vmem:[#allocation2 + $0x908] sm:$0xff]  ;;  %v1410_v54 = vld [vmem:[#allocation2 + $0x900] sm:$0xff] }
 0x2b3   :  { %v1419_v59 = vld [vmem:[#allocation2 + $0x948] sm:$0xff] }
 0x2b4   :  { %10392 = vmatpush1.bf16.msra.mxu1 %v1194_v61  ;;  %v1165_v61 = vld [vmem:[#allocation2 + $0x158] sm:$0xff] }
 0x2b5   :  { %10456 = vmatpush1.bf16.msra.mxu0 %v1322_v2  ;;  %10394 = vmatprep.subr.bf16.mxu1 %v1203_v4  ;;  %v1418_v2 = vld [vmem:[#allocation2 + $0x940] sm:$0xff]  ;;  %v1164_v4 = vld [vmem:[#allocation2 + $0x150] sm:$0xff] }
 0x2b6   :  { %10458 = vmatprep.subr.bf16.mxu0 %v1331_v6  ;;  %v1427_v6 = vld [vmem:[#allocation2 + $0x988] sm:$0xff] }
 0x2b8   :  { %10396 = vmatpush1.bf16.msra.mxu1 %v1202_v7  ;;  %v1173_v7 = vld [vmem:[#allocation2 + $0x198] sm:$0xff] }
 0x2b9   :  { %10460 = vmatpush1.bf16.msra.mxu0 %v1330_v19  ;;  %10398 = vmatprep.subr.bf16.mxu1 %v1211_v56  ;;  %v1426_v19 = vld [vmem:[#allocation2 + $0x980] sm:$0xff]  ;;  %v1172_v56 = vld [vmem:[#allocation2 + $0x190] sm:$0xff] }
 0x2ba   :  { %10462 = vmatprep.subr.bf16.mxu0 %v1339_v8  ;;  %v1435_v8 = vld [vmem:[#allocation2 + $0x9c8] sm:$0xff] }
 0x2bc   :  { %10400 = vmatpush1.bf16.msra.mxu1 %v1210_v13  ;;  %v1181_v13 = vld [vmem:[#allocation2 + $0x1d8] sm:$0xff] }
 0x2bd   :  { %10464 = vmatpush1.bf16.msra.mxu0 %v1338_v23  ;;  %10402 = vmatprep.subr.bf16.mxu1 %v1219_v38  ;;  %v1434_v23 = vld [vmem:[#allocation2 + $0x9c0] sm:$0xff]  ;;  %v1180_v38 = vld [vmem:[#allocation2 + $0x1d0] sm:$0xff] }
 0x2be   :  { %10466 = vmatprep.subr.bf16.mxu0 %v1347_v10  ;;  %v1443_v10 = vld [vmem:[#allocation2 + $0xa08] sm:$0xff] }
 0x2c0   :  { %10404 = vmatpush1.bf16.msra.mxu1 %v1218_v62  ;;  %v1189_v62 = vld [vmem:[#allocation2 + $0x218] sm:$0xff] }
 0x2c1   :  { %10468 = vmatpush1.bf16.msra.mxu0 %v1346_v9  ;;  %10406 = vmatprep.subr.bf16.mxu1 %v1227_v42  ;;  %v1442_v9 = vld [vmem:[#allocation2 + $0xa00] sm:$0xff]  ;;  %v1188_v42 = vld [vmem:[#allocation2 + $0x210] sm:$0xff] }
 0x2c2   :  { %10470 = vmatprep.subr.bf16.mxu0 %v1355_v60  ;;  %v1451_v60 = vld [vmem:[#allocation2 + $0xa48] sm:$0xff] }
 0x2c4   :  { %10408 = vmatpush1.bf16.msra.mxu1 %v1226_v20  ;;  %v1197_v20 = vld [vmem:[#allocation2 + $0x258] sm:$0xff] }
 0x2c5   :  { %10472 = vmatpush1.bf16.msra.mxu0 %v1354_v21  ;;  %10410 = vmatprep.subr.bf16.mxu1 %v1235_v22  ;;  %v1450_v21 = vld [vmem:[#allocation2 + $0xa40] sm:$0xff]  ;;  %v1196_v22 = vld [vmem:[#allocation2 + $0x250] sm:$0xff] }
 0x2c6   :  { %10474 = vmatprep.subr.bf16.mxu0 %v1363_v24  ;;  %v1459_v24 = vld [vmem:[#allocation2 + $0xa88] sm:$0xff] }
 0x2c8   :  { %10412 = vmatpush1.bf16.msra.mxu1 %v1234_v25  ;;  %v1205_v25 = vld [vmem:[#allocation2 + $0x298] sm:$0xff] }
 0x2c9   :  { %10476 = vmatpush1.bf16.msra.mxu0 %v1362_v15  ;;  %10414 = vmatprep.subr.bf16.mxu1 %v1243_v3  ;;  %v1458_v15 = vld [vmem:[#allocation2 + $0xa80] sm:$0xff]  ;;  %v1204_v3 = vld [vmem:[#allocation2 + $0x290] sm:$0xff] }
 0x2ca   :  { %10478 = vmatprep.subr.bf16.mxu0 %v1371_v26  ;;  %v1467_v26 = vld [vmem:[#allocation2 + $0xac8] sm:$0xff] }
 0x2cc   :  { %10416 = vmatpush1.bf16.msra.mxu1 %v1242_v27  ;;  %v1213_v27 = vld [vmem:[#allocation2 + $0x2d8] sm:$0xff] }
 0x2cd   :  { %10480 = vmatpush1.bf16.msra.mxu0 %v1370_v28  ;;  %10610 = vmatprep.subr.bf16.mxu1 %v1125_v11  ;;  %v1466_v28 = vld [vmem:[#allocation2 + $0xac0] sm:$0xff]  ;;  %v1475_v11 = vld [vmem:[#allocation2 + $0xb08] sm:$0xff] }
 0x2ce   :  { %10482 = vmatprep.subr.bf16.mxu0 %v1379_v29  ;;  %v1212_v29 = vld [vmem:[#allocation2 + $0x2d0] sm:$0xff] }
 0x2cf   :  { %2723 = vmatmul.mubr.f32.vlgmr.msra.gmra.mrb[2].mxu1 %v14419_v41 }
 0x2d0   :  { %2794 = vmatmul.mubr.f32.vlgmr.msra.gmra.mrb[6].mxu0 %v14449_v45  ;;  %10612 = vmatpush1.bf16.msra.mxu1 %v1124_v30  ;;  %v1474_v30 = vld [vmem:[#allocation2 + $0xb00] sm:$0xff] }
 0x2d1   :  { %10484 = vmatpush1.bf16.msra.mxu0 %v1378_v0  ;;  %10614 = vmatprep.subr.bf16.mxu1 %v1133_v32  ;;  %v1221_v0 = vld [vmem:[#allocation2 + $0x318] sm:$0xff]  ;;  %v1483_v32 = vld [vmem:[#allocation2 + $0xb48] sm:$0xff] }
 0x2d2   :  { %10486 = vmatprep.subr.bf16.mxu0 %v1387_v31  ;;  %2864 = vmatprep.mubr.f32.mxu0 %v14471_v14  ;;  %v1220_v31 = vld [vmem:[#allocation2 + $0x310] sm:$0xff] }
 0x2d3   :  { %3006 = vmatprep.mubr.f32.mxu1 %v14421_v47 }
 0x2d4   :  { %10616 = vmatpush1.bf16.msra.mxu1 %v1132_v34  ;;  %v1482_v34 = vld [vmem:[#allocation2 + $0xb40] sm:$0xff] }
 0x2d5   :  { %10488 = vmatpush1.bf16.msra.mxu0 %v1386_v33  ;;  %10618 = vmatprep.subr.bf16.mxu1 %v1141_v37  ;;  %v1229_v33 = vld [vmem:[#allocation2 + $0x358] sm:$0xff]  ;;  %v1491_v37 = vld [vmem:[#allocation2 + $0xb88] sm:$0xff] }
 0x2d6   :  { %10490 = vmatprep.subr.bf16.mxu0 %v1395_v36  ;;  %v1228_v36 = vld [vmem:[#allocation2 + $0x350] sm:$0xff] }
 0x2d8   :  { %10620 = vmatpush1.bf16.msra.mxu1 %v1140_v40  ;;  %v1490_v40 = vld [vmem:[#allocation2 + $0xb80] sm:$0xff] }
 0x2d9   :  { %10492 = vmatpush1.bf16.msra.mxu0 %v1394_v39  ;;  %10622 = vmatprep.subr.bf16.mxu1 %v1149_v16  ;;  %v1237_v39 = vld [vmem:[#allocation2 + $0x398] sm:$0xff]  ;;  %v1499_v16 = vld [vmem:[#allocation2 + $0xbc8] sm:$0xff] }
 0x2da   :  { %10494 = vmatprep.subr.bf16.mxu0 %v1403_v44  ;;  %v1236_v44 = vld [vmem:[#allocation2 + $0x390] sm:$0xff] }
 0x2dc   :  { %10624 = vmatpush1.bf16.msra.mxu1 %v1148_v48  ;;  %v1498_v48 = vld [vmem:[#allocation2 + $0xbc0] sm:$0xff] }
 0x2dd   :  { %10496 = vmatpush1.bf16.msra.mxu0 %v1402_v18  ;;  %10626 = vmatprep.subr.bf16.mxu1 %v1157_v53  ;;  %v1245_v18 = vld [vmem:[#allocation2 + $0x3d8] sm:$0xff]  ;;  %v1507_v53 = vld [vmem:[#allocation2 + $0xc08] sm:$0xff] }
 0x2de   :  { %10498 = vmatprep.subr.bf16.mxu0 %v1411_v52  ;;  %v1244_v52 = vld [vmem:[#allocation2 + $0x3d0] sm:$0xff] }
 0x2e0   :  { %10628 = vmatpush1.bf16.msra.mxu1 %v1156_v57  ;;  %v1506_v57 = vld [vmem:[#allocation2 + $0xc00] sm:$0xff] }
 0x2e1   :  { %10500 = vmatpush1.bf16.msra.mxu0 %v1410_v54  ;;  %10630 = vmatprep.subr.bf16.mxu1 %v1165_v61  ;;  %v1253_v54 = vld [vmem:[#allocation2 + $0x418] sm:$0xff]  ;;  %v1515_v61 = vld [vmem:[#allocation2 + $0xc48] sm:$0xff] }
 0x2e2   :  { %10502 = vmatprep.subr.bf16.mxu0 %v1419_v59  ;;  %v1252_v59 = vld [vmem:[#allocation2 + $0x410] sm:$0xff] }
 0x2e4   :  { %10632 = vmatpush1.bf16.msra.mxu1 %v1164_v4  ;;  %v1514_v4 = vld [vmem:[#allocation2 + $0xc40] sm:$0xff] }
 0x2e5   :  { %10504 = vmatpush1.bf16.msra.mxu0 %v1418_v2  ;;  %10634 = vmatprep.subr.bf16.mxu1 %v1173_v7  ;;  %v1261_v2 = vld [vmem:[#allocation2 + $0x458] sm:$0xff]  ;;  %v1523_v7 = vld [vmem:[#allocation2 + $0xc88] sm:$0xff] }
 0x2e6   :  { %10506 = vmatprep.subr.bf16.mxu0 %v1427_v6  ;;  %v1260_v6 = vld [vmem:[#allocation2 + $0x450] sm:$0xff] }
 0x2e8   :  { %10636 = vmatpush1.bf16.msra.mxu1 %v1172_v56  ;;  %v1522_v56 = vld [vmem:[#allocation2 + $0xc80] sm:$0xff] }
 0x2e9   :  { %10508 = vmatpush1.bf16.msra.mxu0 %v1426_v19  ;;  %10638 = vmatprep.subr.bf16.mxu1 %v1181_v13  ;;  %v1269_v19 = vld [vmem:[#allocation2 + $0x498] sm:$0xff]  ;;  %v1531_v13 = vld [vmem:[#allocation2 + $0xcc8] sm:$0xff] }
 0x2ea   :  { %10510 = vmatprep.subr.bf16.mxu0 %v1435_v8  ;;  %v1268_v8 = vld [vmem:[#allocation2 + $0x490] sm:$0xff] }
 0x2ec   :  { %10640 = vmatpush1.bf16.msra.mxu1 %v1180_v38  ;;  %v1530_v38 = vld [vmem:[#allocation2 + $0xcc0] sm:$0xff] }
 0x2ed   :  { %10512 = vmatpush1.bf16.msra.mxu0 %v1434_v23  ;;  %10642 = vmatprep.subr.bf16.mxu1 %v1189_v62  ;;  %v1277_v23 = vld [vmem:[#allocation2 + $0x4d8] sm:$0xff]  ;;  %v1539_v62 = vld [vmem:[#allocation2 + $0xd08] sm:$0xff] }
 0x2ee   :  { %10514 = vmatprep.subr.bf16.mxu0 %v1443_v10  ;;  %v1276_v10 = vld [vmem:[#allocation2 + $0x4d0] sm:$0xff] }
 0x2f0   :  { %10644 = vmatpush1.bf16.msra.mxu1 %v1188_v42  ;;  %v1538_v42 = vld [vmem:[#allocation2 + $0xd00] sm:$0xff] }
 0x2f1   :  { %10516 = vmatpush1.bf16.msra.mxu0 %v1442_v9  ;;  %10646 = vmatprep.subr.bf16.mxu1 %v1197_v20  ;;  %v1285_v9 = vld [vmem:[#allocation2 + $0x518] sm:$0xff]  ;;  %v1547_v20 = vld [vmem:[#allocation2 + $0xd48] sm:$0xff] }
 0x2f2   :  { %10518 = vmatprep.subr.bf16.mxu0 %v1451_v60  ;;  %v1284_v60 = vld [vmem:[#allocation2 + $0x510] sm:$0xff] }
 0x2f4   :  { %10648 = vmatpush1.bf16.msra.mxu1 %v1196_v22  ;;  %v1546_v22 = vld [vmem:[#allocation2 + $0xd40] sm:$0xff] }
 0x2f5   :  { %10520 = vmatpush1.bf16.msra.mxu0 %v1450_v21  ;;  %10650 = vmatprep.subr.bf16.mxu1 %v1205_v25  ;;  %v1293_v21 = vld [vmem:[#allocation2 + $0x558] sm:$0xff]  ;;  %v1555_v25 = vld [vmem:[#allocation2 + $0xd88] sm:$0xff] }
 0x2f6   :  { %10522 = vmatprep.subr.bf16.mxu0 %v1459_v24  ;;  %v1292_v24 = vld [vmem:[#allocation2 + $0x550] sm:$0xff] }
 0x2f8   :  { %10652 = vmatpush1.bf16.msra.mxu1 %v1204_v3  ;;  %v1554_v3 = vld [vmem:[#allocation2 + $0xd80] sm:$0xff] }
 0x2f9   :  { %10524 = vmatpush1.bf16.msra.mxu0 %v1458_v15  ;;  %10654 = vmatprep.subr.bf16.mxu1 %v1213_v27  ;;  %v1301_v15 = vld [vmem:[#allocation2 + $0x598] sm:$0xff]  ;;  %v1563_v27 = vld [vmem:[#allocation2 + $0xdc8] sm:$0xff] }
 0x2fa   :  { %10526 = vmatprep.subr.bf16.mxu0 %v1467_v26  ;;  %v1300_v26 = vld [vmem:[#allocation2 + $0x590] sm:$0xff] }
 0x2fc   :  { %10656 = vmatpush1.bf16.msra.mxu1 %v1212_v29  ;;  %v1562_v29 = vld [vmem:[#allocation2 + $0xdc0] sm:$0xff] }
 0x2fd   :  { %10528 = vmatpush1.bf16.msra.mxu0 %v1466_v28  ;;  %10658 = vmatprep.subr.bf16.mxu1 %v1221_v0  ;;  %v1309_v28 = vld [vmem:[#allocation2 + $0x5d8] sm:$0xff]  ;;  %v1571_v0 = vld [vmem:[#allocation2 + $0xe08] sm:$0xff] }
 0x2fe   :  { %10530 = vmatprep.subr.bf16.mxu0 %v1475_v11  ;;  %v1308_v11 = vld [vmem:[#allocation2 + $0x5d0] sm:$0xff] }
 0x300   :  { %10660 = vmatpush1.bf16.msra.mxu1 %v1220_v31  ;;  %v1570_v31 = vld [vmem:[#allocation2 + $0xe00] sm:$0xff] }
 0x301   :  { %10532 = vmatpush1.bf16.msra.mxu0 %v1474_v30  ;;  %10662 = vmatprep.subr.bf16.mxu1 %v1229_v33  ;;  %v1317_v30 = vld [vmem:[#allocation2 + $0x618] sm:$0xff]  ;;  %v1579_v33 = vld [vmem:[#allocation2 + $0xe48] sm:$0xff] }
 0x302   :  { %10534 = vmatprep.subr.bf16.mxu0 %v1483_v32  ;;  %v1316_v32 = vld [vmem:[#allocation2 + $0x610] sm:$0xff] }
 0x304   :  { %10664 = vmatpush1.bf16.msra.mxu1 %v1228_v36  ;;  %v1578_v36 = vld [vmem:[#allocation2 + $0xe40] sm:$0xff] }
 0x305   :  { %10536 = vmatpush1.bf16.msra.mxu0 %v1482_v34  ;;  %10666 = vmatprep.subr.bf16.mxu1 %v1237_v39  ;;  %v1325_v34 = vld [vmem:[#allocation2 + $0x658] sm:$0xff]  ;;  %v1587_v39 = vld [vmem:[#allocation2 + $0xe88] sm:$0xff] }
 0x306   :  { %10538 = vmatprep.subr.bf16.mxu0 %v1491_v37  ;;  %v1324_v37 = vld [vmem:[#allocation2 + $0x650] sm:$0xff] }
 0x308   :  { %10668 = vmatpush1.bf16.msra.mxu1 %v1236_v44  ;;  %v1586_v44 = vld [vmem:[#allocation2 + $0xe80] sm:$0xff] }
 0x309   :  { %10540 = vmatpush1.bf16.msra.mxu0 %v1490_v40  ;;  %10670 = vmatprep.subr.bf16.mxu1 %v1245_v18  ;;  %v1333_v40 = vld [vmem:[#allocation2 + $0x698] sm:$0xff]  ;;  %v1595_v18 = vld [vmem:[#allocation2 + $0xec8] sm:$0xff] }
 0x30a   :  { %10542 = vmatprep.subr.bf16.mxu0 %v1499_v16  ;;  %v1332_v16 = vld [vmem:[#allocation2 + $0x690] sm:$0xff] }
 0x30c   :  { %10672 = vmatpush1.bf16.msra.mxu1 %v1244_v52  ;;  %v1594_v52 = vld [vmem:[#allocation2 + $0xec0] sm:$0xff] }
 0x30d   :  { %10544 = vmatpush1.bf16.msra.mxu0 %v1498_v48  ;;  %10674 = vmatprep.subr.bf16.mxu1 %v1253_v54  ;;  %v1341_v48 = vld [vmem:[#allocation2 + $0x6d8] sm:$0xff]  ;;  %v1603_v54 = vld [vmem:[#allocation2 + $0xf08] sm:$0xff] }
 0x30e   :  { %10546 = vmatprep.subr.bf16.mxu0 %v1507_v53  ;;  %v1340_v53 = vld [vmem:[#allocation2 + $0x6d0] sm:$0xff] }
 0x30f   :  { %3007 = vmatmul.mubr.f32.vlgmr.msra.gmra.mrb[4].mxu1 %v14419_v41 }
 0x310   :  { %2865 = vmatmul.mubr.f32.vlgmr.msra.gmra.mrb[6].mxu0 %v14469_v12  ;;  %10676 = vmatpush1.bf16.msra.mxu1 %v1252_v59  ;;  %v1602_v59 = vld [vmem:[#allocation2 + $0xf00] sm:$0xff] }
 0x311   :  { %10548 = vmatpush1.bf16.msra.mxu0 %v1506_v57  ;;  %10678 = vmatprep.subr.bf16.mxu1 %v1261_v2  ;;  %v1349_v57 = vld [vmem:[#allocation2 + $0x718] sm:$0xff]  ;;  %v1611_v2 = vld [vmem:[#allocation2 + $0xf48] sm:$0xff] }
 0x312   :  { %10550 = vmatprep.subr.bf16.mxu0 %v1515_v61  ;;  %2935 = vmatprep.mubr.f32.mxu0 %v14428_v58  ;;  %v1348_v61 = vld [vmem:[#allocation2 + $0x710] sm:$0xff] }
 0x313   :  { %3077 = vmatprep.mubr.f32.mxu1 %v14451_v46 }
 0x314   :  { %10680 = vmatpush1.bf16.msra.mxu1 %v1260_v6  ;;  %v1610_v6 = vld [vmem:[#allocation2 + $0xf40] sm:$0xff] }
 0x315   :  { %10552 = vmatpush1.bf16.msra.mxu0 %v1514_v4  ;;  %10682 = vmatprep.subr.bf16.mxu1 %v1269_v19  ;;  %v1357_v4 = vld [vmem:[#allocation2 + $0x758] sm:$0xff]  ;;  %v1619_v19 = vld [vmem:[#allocation2 + $0xf88] sm:$0xff] }
 0x316   :  { %10554 = vmatprep.subr.bf16.mxu0 %v1523_v7  ;;  %v1356_v7 = vld [vmem:[#allocation2 + $0x750] sm:$0xff] }
 0x318   :  { %10684 = vmatpush1.bf16.msra.mxu1 %v1268_v8  ;;  %v1618_v8 = vld [vmem:[#allocation2 + $0xf80] sm:$0xff] }
 0x319   :  { %10556 = vmatpush1.bf16.msra.mxu0 %v1522_v56  ;;  %10686 = vmatprep.subr.bf16.mxu1 %v1277_v23  ;;  %v1365_v56 = vld [vmem:[#allocation2 + $0x798] sm:$0xff]  ;;  %v1627_v23 = vld [vmem:[#allocation2 + $0xfc8] sm:$0xff] }
 0x31a   :  { %10558 = vmatprep.subr.bf16.mxu0 %v1531_v13  ;;  %v1364_v13 = vld [vmem:[#allocation2 + $0x790] sm:$0xff] }
 0x31c   :  { %10688 = vmatpush1.bf16.msra.mxu1 %v1276_v10  ;;  %v1626_v10 = vld [vmem:[#allocation2 + $0xfc0] sm:$0xff] }
 0x31d   :  { %10560 = vmatpush1.bf16.msra.mxu0 %v1530_v38  ;;  %10690 = vmatprep.subr.bf16.mxu1 %v1285_v9  ;;  %v1373_v38 = vld [vmem:[#allocation2 + $0x7d8] sm:$0xff] }
 0x31e   :  { %10562 = vmatprep.subr.bf16.mxu0 %v1539_v62  ;;  %v1372_v62 = vld [vmem:[#allocation2 + $0x7d0] sm:$0xff]  ;;  %v1381_v9 = vld [vmem:[#allocation2 + $0x818] sm:$0xff] }
 0x320   :  { %10692 = vmatpush1.bf16.msra.mxu1 %v1284_v60  ;;  %v1380_v60 = vld [vmem:[#allocation2 + $0x810] sm:$0xff] }
 0x321   :  { %10564 = vmatpush1.bf16.msra.mxu0 %v1538_v42  ;;  %10694 = vmatprep.subr.bf16.mxu1 %v1293_v21  ;;  %v1127_v42 = vld [vmem:[#allocation2 + $0x28] sm:$0xff]  ;;  %v1389_v21 = vld [vmem:[#allocation2 + $0x858] sm:$0xff] }
 0x322   :  { %10566 = vmatprep.subr.bf16.mxu0 %v1547_v20  ;;  %v1126_v20 = vld [vmem:[#allocation2 + $0x20] sm:$0xff] }
 0x324   :  { %10696 = vmatpush1.bf16.msra.mxu1 %v1292_v24  ;;  %v1388_v24 = vld [vmem:[#allocation2 + $0x850] sm:$0xff] }
 0x325   :  { %10568 = vmatpush1.bf16.msra.mxu0 %v1546_v22  ;;  %10698 = vmatprep.subr.bf16.mxu1 %v1301_v15  ;;  %v1135_v22 = vld [vmem:[#allocation2 + $0x68] sm:$0xff]  ;;  %v1397_v15 = vld [vmem:[#allocation2 + $0x898] sm:$0xff] }
 0x326   :  { %10570 = vmatprep.subr.bf16.mxu0 %v1555_v25  ;;  %v1134_v25 = vld [vmem:[#allocation2 + $0x60] sm:$0xff] }
 0x328   :  { %10700 = vmatpush1.bf16.msra.mxu1 %v1300_v26  ;;  %v1396_v26 = vld [vmem:[#allocation2 + $0x890] sm:$0xff] }
 0x329   :  { %10572 = vmatpush1.bf16.msra.mxu0 %v1554_v3  ;;  %10702 = vmatprep.subr.bf16.mxu1 %v1309_v28  ;;  %v1143_v3 = vld [vmem:[#allocation2 + $0xa8] sm:$0xff]  ;;  %v1405_v28 = vld [vmem:[#allocation2 + $0x8d8] sm:$0xff] }
 0x32a   :  { %10574 = vmatprep.subr.bf16.mxu0 %v1563_v27  ;;  %v1142_v27 = vld [vmem:[#allocation2 + $0xa0] sm:$0xff] }
 0x32c   :  { %10704 = vmatpush1.bf16.msra.mxu1 %v1308_v11  ;;  %v1404_v11 = vld [vmem:[#allocation2 + $0x8d0] sm:$0xff] }
 0x32d   :  { %10576 = vmatpush1.bf16.msra.mxu0 %v1562_v29  ;;  %10706 = vmatprep.subr.bf16.mxu1 %v1317_v30  ;;  %v1151_v29 = vld [vmem:[#allocation2 + $0xe8] sm:$0xff]  ;;  %v1413_v30 = vld [vmem:[#allocation2 + $0x918] sm:$0xff] }
 0x32e   :  { %10578 = vmatprep.subr.bf16.mxu0 %v1571_v0  ;;  %v1150_v0 = vld [vmem:[#allocation2 + $0xe0] sm:$0xff] }
 0x330   :  { %10708 = vmatpush1.bf16.msra.mxu1 %v1316_v32  ;;  %v1412_v32 = vld [vmem:[#allocation2 + $0x910] sm:$0xff] }
 0x331   :  { %10580 = vmatpush1.bf16.msra.mxu0 %v1570_v31  ;;  %10710 = vmatprep.subr.bf16.mxu1 %v1325_v34  ;;  %v1159_v31 = vld [vmem:[#allocation2 + $0x128] sm:$0xff]  ;;  %v1421_v34 = vld [vmem:[#allocation2 + $0x958] sm:$0xff] }
 0x332   :  { %10582 = vmatprep.subr.bf16.mxu0 %v1579_v33  ;;  %v1158_v33 = vld [vmem:[#allocation2 + $0x120] sm:$0xff] }
 0x334   :  { %10712 = vmatpush1.bf16.msra.mxu1 %v1324_v37  ;;  %v1420_v37 = vld [vmem:[#allocation2 + $0x950] sm:$0xff] }
 0x335   :  { %10584 = vmatpush1.bf16.msra.mxu0 %v1578_v36  ;;  %10714 = vmatprep.subr.bf16.mxu1 %v1333_v40  ;;  %v1167_v36 = vld [vmem:[#allocation2 + $0x168] sm:$0xff]  ;;  %v1429_v40 = vld [vmem:[#allocation2 + $0x998] sm:$0xff] }
 0x336   :  { %10586 = vmatprep.subr.bf16.mxu0 %v1587_v39  ;;  %v1166_v39 = vld [vmem:[#allocation2 + $0x160] sm:$0xff] }
 0x338   :  { %10716 = vmatpush1.bf16.msra.mxu1 %v1332_v16  ;;  %v1428_v16 = vld [vmem:[#allocation2 + $0x990] sm:$0xff] }
 0x339   :  { %10588 = vmatpush1.bf16.msra.mxu0 %v1586_v44  ;;  %10718 = vmatprep.subr.bf16.mxu1 %v1341_v48  ;;  %v1175_v44 = vld [vmem:[#allocation2 + $0x1a8] sm:$0xff]  ;;  %v1437_v48 = vld [vmem:[#allocation2 + $0x9d8] sm:$0xff] }
 0x33a   :  { %10590 = vmatprep.subr.bf16.mxu0 %v1595_v18  ;;  %v1174_v18 = vld [vmem:[#allocation2 + $0x1a0] sm:$0xff] }
 0x33c   :  { %10720 = vmatpush1.bf16.msra.mxu1 %v1340_v53  ;;  %v1436_v53 = vld [vmem:[#allocation2 + $0x9d0] sm:$0xff] }
 0x33d   :  { %10592 = vmatpush1.bf16.msra.mxu0 %v1594_v52  ;;  %10722 = vmatprep.subr.bf16.mxu1 %v1349_v57  ;;  %v1183_v52 = vld [vmem:[#allocation2 + $0x1e8] sm:$0xff]  ;;  %v1445_v57 = vld [vmem:[#allocation2 + $0xa18] sm:$0xff] }
 0x33e   :  { %10594 = vmatprep.subr.bf16.mxu0 %v1603_v54  ;;  %v1182_v54 = vld [vmem:[#allocation2 + $0x1e0] sm:$0xff] }
 0x340   :  { %10724 = vmatpush1.bf16.msra.mxu1 %v1348_v61  ;;  %v1444_v61 = vld [vmem:[#allocation2 + $0xa10] sm:$0xff] }
 0x341   :  { %10596 = vmatpush1.bf16.msra.mxu0 %v1602_v59  ;;  %10726 = vmatprep.subr.bf16.mxu1 %v1357_v4  ;;  %v1191_v59 = vld [vmem:[#allocation2 + $0x228] sm:$0xff]  ;;  %v1453_v4 = vld [vmem:[#allocation2 + $0xa58] sm:$0xff] }
 0x342   :  { %10598 = vmatprep.subr.bf16.mxu0 %v1611_v2  ;;  %v1190_v2 = vld [vmem:[#allocation2 + $0x220] sm:$0xff] }
 0x344   :  { %10728 = vmatpush1.bf16.msra.mxu1 %v1356_v7  ;;  %v1452_v7 = vld [vmem:[#allocation2 + $0xa50] sm:$0xff] }
 0x345   :  { %10600 = vmatpush1.bf16.msra.mxu0 %v1610_v6  ;;  %10730 = vmatprep.subr.bf16.mxu1 %v1365_v56  ;;  %v1199_v6 = vld [vmem:[#allocation2 + $0x268] sm:$0xff]  ;;  %v1461_v56 = vld [vmem:[#allocation2 + $0xa98] sm:$0xff] }
 0x346   :  { %10602 = vmatprep.subr.bf16.mxu0 %v1619_v19  ;;  %v1198_v19 = vld [vmem:[#allocation2 + $0x260] sm:$0xff] }
 0x348   :  { %10732 = vmatpush1.bf16.msra.mxu1 %v1364_v13  ;;  %v1460_v13 = vld [vmem:[#allocation2 + $0xa90] sm:$0xff] }
 0x349   :  { %10604 = vmatpush1.bf16.msra.mxu0 %v1618_v8  ;;  %10734 = vmatprep.subr.bf16.mxu1 %v1373_v38  ;;  %v1207_v8 = vld [vmem:[#allocation2 + $0x2a8] sm:$0xff]  ;;  %v1469_v38 = vld [vmem:[#allocation2 + $0xad8] sm:$0xff] }
 0x34a   :  { %10606 = vmatprep.subr.bf16.mxu0 %v1627_v23  ;;  %v1206_v23 = vld [vmem:[#allocation2 + $0x2a0] sm:$0xff] }
 0x34c   :  { %10736 = vmatpush1.bf16.msra.mxu1 %v1372_v62  ;;  %v1468_v62 = vld [vmem:[#allocation2 + $0xad0] sm:$0xff] }
 0x34d   :  { %10608 = vmatpush1.bf16.msra.mxu0 %v1626_v10  ;;  %10738 = vmatprep.subr.bf16.mxu1 %v1381_v9  ;;  %v1215_v10 = vld [vmem:[#allocation2 + $0x2e8] sm:$0xff]  ;;  %v1214_v9 = vld [vmem:[#allocation2 + $0x2e0] sm:$0xff] }
 0x34e   :  { %10866 = vmatprep.subr.bf16.mxu0 %v1127_v42  ;;  %v1477_v42 = vld [vmem:[#allocation2 + $0xb18] sm:$0xff] }
 0x34f   :  { %3078 = vmatmul.mubr.f32.vlgmr.msra.gmra.mrb[4].mxu1 %v14449_v45 }
 0x350   :  { %2936 = vmatmul.mubr.f32.vlgmr.msra.gmra.mrb[6].mxu0 %v14423_v51  ;;  %10740 = vmatpush1.bf16.msra.mxu1 %v1380_v60  ;;  %v1223_v60 = vld [vmem:[#allocation2 + $0x328] sm:$0xff] }
 0x351   :  { %10868 = vmatpush1.bf16.msra.mxu0 %v1126_v20  ;;  %10742 = vmatprep.subr.bf16.mxu1 %v1389_v21  ;;  %v1476_v20 = vld [vmem:[#allocation2 + $0xb10] sm:$0xff]  ;;  %v1222_v21 = vld [vmem:[#allocation2 + $0x320] sm:$0xff] }
 0x352   :  { %10870 = vmatprep.subr.bf16.mxu0 %v1135_v22  ;;  %3148 = vmatprep.mubr.f32.mxu1 %v14471_v14  ;;  %v1485_v22 = vld [vmem:[#allocation2 + $0xb58] sm:$0xff] }
 0x353   :  { %3290 = vmatprep.mubr.f32.mxu0 %v14421_v47 }
 0x354   :  { %10744 = vmatpush1.bf16.msra.mxu1 %v1388_v24  ;;  %v1231_v24 = vld [vmem:[#allocation2 + $0x368] sm:$0xff] }
 0x355   :  { %10872 = vmatpush1.bf16.msra.mxu0 %v1134_v25  ;;  %10746 = vmatprep.subr.bf16.mxu1 %v1397_v15  ;;  %v1484_v25 = vld [vmem:[#allocation2 + $0xb50] sm:$0xff]  ;;  %v1230_v15 = vld [vmem:[#allocation2 + $0x360] sm:$0xff] }
 0x356   :  { %10874 = vmatprep.subr.bf16.mxu0 %v1143_v3  ;;  %v1493_v3 = vld [vmem:[#allocation2 + $0xb98] sm:$0xff] }
 0x358   :  { %10748 = vmatpush1.bf16.msra.mxu1 %v1396_v26  ;;  %v1239_v26 = vld [vmem:[#allocation2 + $0x3a8] sm:$0xff] }
 0x359   :  { %10876 = vmatpush1.bf16.msra.mxu0 %v1142_v27  ;;  %10750 = vmatprep.subr.bf16.mxu1 %v1405_v28  ;;  %v1492_v27 = vld [vmem:[#allocation2 + $0xb90] sm:$0xff]  ;;  %v1238_v28 = vld [vmem:[#allocation2 + $0x3a0] sm:$0xff] }
 0x35a   :  { %10878 = vmatprep.subr.bf16.mxu0 %v1151_v29  ;;  %v1501_v29 = vld [vmem:[#allocation2 + $0xbd8] sm:$0xff] }
 0x35c   :  { %10752 = vmatpush1.bf16.msra.mxu1 %v1404_v11  ;;  %v1247_v11 = vld [vmem:[#allocation2 + $0x3e8] sm:$0xff] }
 0x35d   :  { %10880 = vmatpush1.bf16.msra.mxu0 %v1150_v0  ;;  %10754 = vmatprep.subr.bf16.mxu1 %v1413_v30  ;;  %v1500_v0 = vld [vmem:[#allocation2 + $0xbd0] sm:$0xff]  ;;  %v1246_v30 = vld [vmem:[#allocation2 + $0x3e0] sm:$0xff] }
 0x35e   :  { %10882 = vmatprep.subr.bf16.mxu0 %v1159_v31  ;;  %v1509_v31 = vld [vmem:[#allocation2 + $0xc18] sm:$0xff] }
 0x360   :  { %10756 = vmatpush1.bf16.msra.mxu1 %v1412_v32  ;;  %v1255_v32 = vld [vmem:[#allocation2 + $0x428] sm:$0xff] }
 0x361   :  { %10884 = vmatpush1.bf16.msra.mxu0 %v1158_v33  ;;  %10758 = vmatprep.subr.bf16.mxu1 %v1421_v34  ;;  %v1508_v33 = vld [vmem:[#allocation2 + $0xc10] sm:$0xff]  ;;  %v1254_v34 = vld [vmem:[#allocation2 + $0x420] sm:$0xff] }
 0x362   :  { %10886 = vmatprep.subr.bf16.mxu0 %v1167_v36  ;;  %v1517_v36 = vld [vmem:[#allocation2 + $0xc58] sm:$0xff] }
 0x364   :  { %10760 = vmatpush1.bf16.msra.mxu1 %v1420_v37  ;;  %v1263_v37 = vld [vmem:[#allocation2 + $0x468] sm:$0xff] }
 0x365   :  { %10888 = vmatpush1.bf16.msra.mxu0 %v1166_v39  ;;  %10762 = vmatprep.subr.bf16.mxu1 %v1429_v40  ;;  %v1516_v39 = vld [vmem:[#allocation2 + $0xc50] sm:$0xff]  ;;  %v1262_v40 = vld [vmem:[#allocation2 + $0x460] sm:$0xff] }
 0x366   :  { %10890 = vmatprep.subr.bf16.mxu0 %v1175_v44  ;;  %v1525_v44 = vld [vmem:[#allocation2 + $0xc98] sm:$0xff] }
 0x368   :  { %10764 = vmatpush1.bf16.msra.mxu1 %v1428_v16  ;;  %v1271_v16 = vld [vmem:[#allocation2 + $0x4a8] sm:$0xff] }
 0x369   :  { %10892 = vmatpush1.bf16.msra.mxu0 %v1174_v18  ;;  %10766 = vmatprep.subr.bf16.mxu1 %v1437_v48  ;;  %v1524_v18 = vld [vmem:[#allocation2 + $0xc90] sm:$0xff]  ;;  %v1270_v48 = vld [vmem:[#allocation2 + $0x4a0] sm:$0xff] }
 0x36a   :  { %10894 = vmatprep.subr.bf16.mxu0 %v1183_v52  ;;  %v1533_v52 = vld [vmem:[#allocation2 + $0xcd8] sm:$0xff] }
 0x36c   :  { %10768 = vmatpush1.bf16.msra.mxu1 %v1436_v53  ;;  %v1279_v53 = vld [vmem:[#allocation2 + $0x4e8] sm:$0xff] }
 0x36d   :  { %10896 = vmatpush1.bf16.msra.mxu0 %v1182_v54  ;;  %10770 = vmatprep.subr.bf16.mxu1 %v1445_v57  ;;  %v1532_v54 = vld [vmem:[#allocation2 + $0xcd0] sm:$0xff]  ;;  %v1278_v57 = vld [vmem:[#allocation2 + $0x4e0] sm:$0xff] }
 0x36e   :  { %10898 = vmatprep.subr.bf16.mxu0 %v1191_v59  ;;  %v1541_v59 = vld [vmem:[#allocation2 + $0xd18] sm:$0xff] }
 0x370   :  { %10772 = vmatpush1.bf16.msra.mxu1 %v1444_v61  ;;  %v1287_v61 = vld [vmem:[#allocation2 + $0x528] sm:$0xff] }
 0x371   :  { %10900 = vmatpush1.bf16.msra.mxu0 %v1190_v2  ;;  %10774 = vmatprep.subr.bf16.mxu1 %v1453_v4  ;;  %v1540_v2 = vld [vmem:[#allocation2 + $0xd10] sm:$0xff]  ;;  %v1286_v4 = vld [vmem:[#allocation2 + $0x520] sm:$0xff] }
 0x372   :  { %10902 = vmatprep.subr.bf16.mxu0 %v1199_v6  ;;  %v1549_v6 = vld [vmem:[#allocation2 + $0xd58] sm:$0xff] }
 0x374   :  { %10776 = vmatpush1.bf16.msra.mxu1 %v1452_v7  ;;  %v1295_v7 = vld [vmem:[#allocation2 + $0x568] sm:$0xff] }
 0x375   :  { %10904 = vmatpush1.bf16.msra.mxu0 %v1198_v19  ;;  %10778 = vmatprep.subr.bf16.mxu1 %v1461_v56  ;;  %v1548_v19 = vld [vmem:[#allocation2 + $0xd50] sm:$0xff]  ;;  %v1294_v56 = vld [vmem:[#allocation2 + $0x560] sm:$0xff] }
 0x376   :  { %10906 = vmatprep.subr.bf16.mxu0 %v1207_v8 }
 0x378   :  { %10780 = vmatpush1.bf16.msra.mxu1 %v1460_v13  ;;  %v1557_v13 = vld [vmem:[#allocation2 + $0xd98] sm:$0xff] }
 0x379   :  { %10908 = vmatpush1.bf16.msra.mxu0 %v1206_v23  ;;  %10782 = vmatprep.subr.bf16.mxu1 %v1469_v38  ;;  %v1303_v23 = vld [vmem:[#allocation2 + $0x5a8] sm:$0xff] }
 0x37a   :  { %10910 = vmatprep.subr.bf16.mxu0 %v1215_v10  ;;  %v1556_v10 = vld [vmem:[#allocation2 + $0xd90] sm:$0xff] }
 0x37c   :  { %10784 = vmatpush1.bf16.msra.mxu1 %v1468_v62  ;;  %v1302_v62 = vld [vmem:[#allocation2 + $0x5a0] sm:$0xff] }
 0x37d   :  { %10912 = vmatpush1.bf16.msra.mxu0 %v1214_v9  ;;  %10786 = vmatprep.subr.bf16.mxu1 %v1477_v42  ;;  %v1565_v9 = vld [vmem:[#allocation2 + $0xdd8] sm:$0xff]  ;;  %v1311_v42 = vld [vmem:[#allocation2 + $0x5e8] sm:$0xff] }
 0x37e   :  { %10914 = vmatprep.subr.bf16.mxu0 %v1223_v60  ;;  %v1564_v60 = vld [vmem:[#allocation2 + $0xdd0] sm:$0xff] }
 0x380   :  { %10788 = vmatpush1.bf16.msra.mxu1 %v1476_v20  ;;  %v1310_v20 = vld [vmem:[#allocation2 + $0x5e0] sm:$0xff] }
 0x381   :  { %10916 = vmatpush1.bf16.msra.mxu0 %v1222_v21  ;;  %10790 = vmatprep.subr.bf16.mxu1 %v1485_v22  ;;  %v1573_v21 = vld [vmem:[#allocation2 + $0xe18] sm:$0xff]  ;;  %v1319_v22 = vld [vmem:[#allocation2 + $0x628] sm:$0xff] }
 0x382   :  { %10918 = vmatprep.subr.bf16.mxu0 %v1231_v24  ;;  %v1572_v24 = vld [vmem:[#allocation2 + $0xe10] sm:$0xff] }
 0x384   :  { %10792 = vmatpush1.bf16.msra.mxu1 %v1484_v25  ;;  %v1318_v25 = vld [vmem:[#allocation2 + $0x620] sm:$0xff] }
 0x385   :  { %10920 = vmatpush1.bf16.msra.mxu0 %v1230_v15  ;;  %10794 = vmatprep.subr.bf16.mxu1 %v1493_v3  ;;  %v1581_v15 = vld [vmem:[#allocation2 + $0xe58] sm:$0xff]  ;;  %v1327_v3 = vld [vmem:[#allocation2 + $0x668] sm:$0xff] }
 0x386   :  { %10922 = vmatprep.subr.bf16.mxu0 %v1239_v26  ;;  %v1580_v26 = vld [vmem:[#allocation2 + $0xe50] sm:$0xff] }
 0x388   :  { %10796 = vmatpush1.bf16.msra.mxu1 %v1492_v27  ;;  %v1326_v27 = vld [vmem:[#allocation2 + $0x660] sm:$0xff] }
 0x389   :  { %10924 = vmatpush1.bf16.msra.mxu0 %v1238_v28  ;;  %10798 = vmatprep.subr.bf16.mxu1 %v1501_v29  ;;  %v1589_v28 = vld [vmem:[#allocation2 + $0xe98] sm:$0xff]  ;;  %v1335_v29 = vld [vmem:[#allocation2 + $0x6a8] sm:$0xff] }
 0x38a   :  { %10926 = vmatprep.subr.bf16.mxu0 %v1247_v11  ;;  %v1588_v11 = vld [vmem:[#allocation2 + $0xe90] sm:$0xff] }
 0x38c   :  { %10800 = vmatpush1.bf16.msra.mxu1 %v1500_v0  ;;  %v1334_v0 = vld [vmem:[#allocation2 + $0x6a0] sm:$0xff] }
 0x38d   :  { %10928 = vmatpush1.bf16.msra.mxu0 %v1246_v30  ;;  %10802 = vmatprep.subr.bf16.mxu1 %v1509_v31  ;;  %v1597_v30 = vld [vmem:[#allocation2 + $0xed8] sm:$0xff]  ;;  %v1343_v31 = vld [vmem:[#allocation2 + $0x6e8] sm:$0xff] }
 0x38e   :  { %10930 = vmatprep.subr.bf16.mxu0 %v1255_v32  ;;  %v1596_v32 = vld [vmem:[#allocation2 + $0xed0] sm:$0xff] }
 0x38f   :  { %3149 = vmatmul.mubr.f32.vlgmr.msra.gmra.mrb[4].mxu1 %v14469_v12 }
 0x390   :  { %3291 = vmatmul.mubr.f32.vlgmr.msra.gmra.mrb[8].mxu0 %v14419_v41  ;;  %10804 = vmatpush1.bf16.msra.mxu1 %v1508_v33  ;;  %v1342_v33 = vld [vmem:[#allocation2 + $0x6e0] sm:$0xff] }
 0x391   :  { %10932 = vmatpush1.bf16.msra.mxu0 %v1254_v34  ;;  %10806 = vmatprep.subr.bf16.mxu1 %v1517_v36  ;;  %v1605_v34 = vld [vmem:[#allocation2 + $0xf18] sm:$0xff]  ;;  %v1351_v36 = vld [vmem:[#allocation2 + $0x728] sm:$0xff] }
 0x392   :  { %10934 = vmatprep.subr.bf16.mxu0 %v1263_v37  ;;  %3219 = vmatprep.mubr.f32.mxu1 %v14428_v58  ;;  %v1604_v37 = vld [vmem:[#allocation2 + $0xf10] sm:$0xff] }
 0x393   :  { %3361 = vmatprep.mubr.f32.mxu0 %v14451_v46 }
 0x394   :  { %10808 = vmatpush1.bf16.msra.mxu1 %v1516_v39  ;;  %v1350_v39 = vld [vmem:[#allocation2 + $0x720] sm:$0xff] }
 0x395   :  { %10936 = vmatpush1.bf16.msra.mxu0 %v1262_v40  ;;  %10810 = vmatprep.subr.bf16.mxu1 %v1525_v44  ;;  %v1613_v40 = vld [vmem:[#allocation2 + $0xf58] sm:$0xff]  ;;  %v1359_v44 = vld [vmem:[#allocation2 + $0x768] sm:$0xff] }
 0x396   :  { %10938 = vmatprep.subr.bf16.mxu0 %v1271_v16  ;;  %v1612_v16 = vld [vmem:[#allocation2 + $0xf50] sm:$0xff] }
 0x398   :  { %10812 = vmatpush1.bf16.msra.mxu1 %v1524_v18  ;;  %v1358_v18 = vld [vmem:[#allocation2 + $0x760] sm:$0xff] }
 0x399   :  { %10940 = vmatpush1.bf16.msra.mxu0 %v1270_v48  ;;  %10814 = vmatprep.subr.bf16.mxu1 %v1533_v52  ;;  %v1621_v48 = vld [vmem:[#allocation2 + $0xf98] sm:$0xff]  ;;  %v1367_v52 = vld [vmem:[#allocation2 + $0x7a8] sm:$0xff] }
 0x39a   :  { %10942 = vmatprep.subr.bf16.mxu0 %v1279_v53  ;;  %v1620_v53 = vld [vmem:[#allocation2 + $0xf90] sm:$0xff] }
 0x39c   :  { %10816 = vmatpush1.bf16.msra.mxu1 %v1532_v54  ;;  %v1366_v54 = vld [vmem:[#allocation2 + $0x7a0] sm:$0xff] }
 0x39d   :  { %10944 = vmatpush1.bf16.msra.mxu0 %v1278_v57  ;;  %10818 = vmatprep.subr.bf16.mxu1 %v1541_v59  ;;  %v1629_v57 = vld [vmem:[#allocation2 + $0xfd8] sm:$0xff]  ;;  %v1375_v59 = vld [vmem:[#allocation2 + $0x7e8] sm:$0xff] }
 0x39e   :  { %10946 = vmatprep.subr.bf16.mxu0 %v1287_v61  ;;  %v1628_v61 = vld [vmem:[#allocation2 + $0xfd0] sm:$0xff] }
 0x3a0   :  { %10820 = vmatpush1.bf16.msra.mxu1 %v1540_v2  ;;  %v1374_v2 = vld [vmem:[#allocation2 + $0x7e0] sm:$0xff] }
 0x3a1   :  { %10948 = vmatpush1.bf16.msra.mxu0 %v1286_v4  ;;  %10822 = vmatprep.subr.bf16.mxu1 %v1549_v6  ;;  %v1383_v4 = vld [vmem:[#allocation2 + $0x828] sm:$0xff]  ;;  %v1129_v6 = vld [vmem:[#allocation2 + $0x38] sm:$0xff] }
 0x3a2   :  { %10950 = vmatprep.subr.bf16.mxu0 %v1295_v7  ;;  %v14491_v8 = vpop.f32.mrb[2].mxu1  ;;  %v1382_v7 = vld [vmem:[#allocation2 + $0x820] sm:$0xff] }
 0x3a3   :  { %v14493_v38 = vpop.f32.mrb[3].mxu1 }
 0x3a4   :  { %10824 = vmatpush1.bf16.msra.mxu1 %v1548_v19  ;;  %v1128_v19 = vld [vmem:[#allocation2 + $0x30] sm:$0xff] }
 0x3a5   :  { %10952 = vmatpush1.bf16.msra.mxu0 %v1294_v56  ;;  %10826 = vmatprep.subr.bf16.mxu1 %v1557_v13  ;;  %v1391_v56 = vld [vmem:[#allocation2 + $0x868] sm:$0xff]  ;;  %v1137_v13 = vld [vmem:[#allocation2 + $0x78] sm:$0xff] }
 0x3a6   :  { %10954 = vmatprep.subr.bf16.mxu0 %v1303_v23  ;;  %v1390_v23 = vld [vmem:[#allocation2 + $0x860] sm:$0xff] }
 0x3a8   :  { %10828 = vmatpush1.bf16.msra.mxu1 %v1556_v10  ;;  %v1136_v10 = vld [vmem:[#allocation2 + $0x70] sm:$0xff] }
 0x3a9   :  { %10956 = vmatpush1.bf16.msra.mxu0 %v1302_v62  ;;  %10830 = vmatprep.subr.bf16.mxu1 %v1565_v9  ;;  %v1399_v62 = vld [vmem:[#allocation2 + $0x8a8] sm:$0xff]  ;;  %v1145_v9 = vld [vmem:[#allocation2 + $0xb8] sm:$0xff] }
 0x3aa   :  { %10958 = vmatprep.subr.bf16.mxu0 %v1311_v42  ;;  %v1398_v42 = vld [vmem:[#allocation2 + $0x8a0] sm:$0xff] }
 0x3ac   :  { %10832 = vmatpush1.bf16.msra.mxu1 %v1564_v60  ;;  %v1144_v60 = vld [vmem:[#allocation2 + $0xb0] sm:$0xff] }
 0x3ad   :  { %10960 = vmatpush1.bf16.msra.mxu0 %v1310_v20  ;;  %10834 = vmatprep.subr.bf16.mxu1 %v1573_v21  ;;  %v1407_v20 = vld [vmem:[#allocation2 + $0x8e8] sm:$0xff]  ;;  %v1153_v21 = vld [vmem:[#allocation2 + $0xf8] sm:$0xff] }
 0x3ae   :  { %10962 = vmatprep.subr.bf16.mxu0 %v1319_v22  ;;  %v1406_v22 = vld [vmem:[#allocation2 + $0x8e0] sm:$0xff] }
 0x3b0   :  { %10836 = vmatpush1.bf16.msra.mxu1 %v1572_v24  ;;  %v1152_v24 = vld [vmem:[#allocation2 + $0xf0] sm:$0xff] }
 0x3b1   :  { %10964 = vmatpush1.bf16.msra.mxu0 %v1318_v25  ;;  %10838 = vmatprep.subr.bf16.mxu1 %v1581_v15  ;;  %v1415_v25 = vld [vmem:[#allocation2 + $0x928] sm:$0xff]  ;;  %v1161_v15 = vld [vmem:[#allocation2 + $0x138] sm:$0xff] }
 0x3b2   :  { %10966 = vmatprep.subr.bf16.mxu0 %v1327_v3  ;;  %v1160_v3 = vld [vmem:[#allocation2 + $0x130] sm:$0xff] }
 0x3b4   :  { %10840 = vmatpush1.bf16.msra.mxu1 %v1580_v26  ;;  %v1423_v26 = vld [vmem:[#allocation2 + $0x968] sm:$0xff] }
 0x3b5   :  { %10968 = vmatpush1.bf16.msra.mxu0 %v1326_v27  ;;  %10842 = vmatprep.subr.bf16.mxu1 %v1589_v28  ;;  %v1169_v27 = vld [vmem:[#allocation2 + $0x178] sm:$0xff]  ;;  %v1422_v28 = vld [vmem:[#allocation2 + $0x960] sm:$0xff] }
 0x3b6   :  { %10970 = vmatprep.subr.bf16.mxu0 %v1335_v29  ;;  %v1168_v29 = vld [vmem:[#allocation2 + $0x170] sm:$0xff] }
 0x3b8   :  { %10844 = vmatpush1.bf16.msra.mxu1 %v1588_v11  ;;  %v1431_v11 = vld [vmem:[#allocation2 + $0x9a8] sm:$0xff] }
 0x3b9   :  { %10972 = vmatpush1.bf16.msra.mxu0 %v1334_v0  ;;  %10846 = vmatprep.subr.bf16.mxu1 %v1597_v30  ;;  %v1177_v0 = vld [vmem:[#allocation2 + $0x1b8] sm:$0xff]  ;;  %v1430_v30 = vld [vmem:[#allocation2 + $0x9a0] sm:$0xff] }
 0x3ba   :  { %10974 = vmatprep.subr.bf16.mxu0 %v1343_v31  ;;  %v1176_v31 = vld [vmem:[#allocation2 + $0x1b0] sm:$0xff] }
 0x3bc   :  { %10848 = vmatpush1.bf16.msra.mxu1 %v1596_v32  ;;  %v1439_v32 = vld [vmem:[#allocation2 + $0x9e8] sm:$0xff] }
 0x3bd   :  { %10976 = vmatpush1.bf16.msra.mxu0 %v1342_v33  ;;  %10850 = vmatprep.subr.bf16.mxu1 %v1605_v34  ;;  %v1185_v33 = vld [vmem:[#allocation2 + $0x1f8] sm:$0xff]  ;;  %v1438_v34 = vld [vmem:[#allocation2 + $0x9e0] sm:$0xff] }
 0x3be   :  { %10978 = vmatprep.subr.bf16.mxu0 %v1351_v36  ;;  %v1184_v36 = vld [vmem:[#allocation2 + $0x1f0] sm:$0xff] }
 0x3c0   :  { %10852 = vmatpush1.bf16.msra.mxu1 %v1604_v37  ;;  %v1447_v37 = vld [vmem:[#allocation2 + $0xa28] sm:$0xff] }
 0x3c1   :  { %10980 = vmatpush1.bf16.msra.mxu0 %v1350_v39  ;;  %10854 = vmatprep.subr.bf16.mxu1 %v1613_v40  ;;  %v1193_v39 = vld [vmem:[#allocation2 + $0x238] sm:$0xff]  ;;  %v1446_v40 = vld [vmem:[#allocation2 + $0xa20] sm:$0xff] }
 0x3c2   :  { %10982 = vmatprep.subr.bf16.mxu0 %v1359_v44  ;;  %v1192_v44 = vld [vmem:[#allocation2 + $0x230] sm:$0xff] }
 0x3c4   :  { %10856 = vmatpush1.bf16.msra.mxu1 %v1612_v16  ;;  %v1455_v16 = vld [vmem:[#allocation2 + $0xa68] sm:$0xff] }
 0x3c5   :  { %10984 = vmatpush1.bf16.msra.mxu0 %v1358_v18  ;;  %10858 = vmatprep.subr.bf16.mxu1 %v1621_v48  ;;  %v1201_v18 = vld [vmem:[#allocation2 + $0x278] sm:$0xff]  ;;  %v1454_v48 = vld [vmem:[#allocation2 + $0xa60] sm:$0xff] }
 0x3c6   :  { %10986 = vmatprep.subr.bf16.mxu0 %v1367_v52  ;;  %v1200_v52 = vld [vmem:[#allocation2 + $0x270] sm:$0xff] }
 0x3c8   :  { %10860 = vmatpush1.bf16.msra.mxu1 %v1620_v53  ;;  %v1463_v53 = vld [vmem:[#allocation2 + $0xaa8] sm:$0xff] }
 0x3c9   :  { %10988 = vmatpush1.bf16.msra.mxu0 %v1366_v54  ;;  %10862 = vmatprep.subr.bf16.mxu1 %v1629_v57  ;;  %v1209_v54 = vld [vmem:[#allocation2 + $0x2b8] sm:$0xff]  ;;  %v1462_v57 = vld [vmem:[#allocation2 + $0xaa0] sm:$0xff] }
 0x3ca   :  { %10990 = vmatprep.subr.bf16.mxu0 %v1375_v59  ;;  %v1208_v59 = vld [vmem:[#allocation2 + $0x2b0] sm:$0xff] }
 0x3cc   :  { %10864 = vmatpush1.bf16.msra.mxu1 %v1628_v61  ;;  %v1471_v61 = vld [vmem:[#allocation2 + $0xae8] sm:$0xff] }
 0x3cd   :  { %10992 = vmatpush1.bf16.msra.mxu0 %v1374_v2  ;;  %11122 = vmatprep.subr.bf16.mxu1 %v1129_v6  ;;  %v1217_v2 = vld [vmem:[#allocation2 + $0x2f8] sm:$0xff]  ;;  %v1216_v6 = vld [vmem:[#allocation2 + $0x2f0] sm:$0xff] }
 0x3ce   :  { %10994 = vmatprep.subr.bf16.mxu0 %v1383_v4  ;;  %v1470_v4 = vld [vmem:[#allocation2 + $0xae0] sm:$0xff] }
 0x3cf   :  { %3220 = vmatmul.mubr.f32.vlgmr.msra.gmra.mrb[4].mxu1 %v14423_v51 }
 0x3d0   :  { %3362 = vmatmul.mubr.f32.vlgmr.msra.gmra.mrb[8].mxu0 %v14449_v45  ;;  %11124 = vmatpush1.bf16.msra.mxu1 %v1128_v19  ;;  %v1225_v19 = vld [vmem:[#allocation2 + $0x338] sm:$0xff] }
 0x3d1   :  { %10996 = vmatpush1.bf16.msra.mxu0 %v1382_v7  ;;  %11126 = vmatprep.subr.bf16.mxu1 %v1137_v13  ;;  %v1479_v7 = vld [vmem:[#allocation2 + $0xb28] sm:$0xff]  ;;  %v1224_v13 = vld [vmem:[#allocation2 + $0x330] sm:$0xff] }
 0x3d2   :  { %10998 = vmatprep.subr.bf16.mxu0 %v1391_v56  ;;  %3432 = vmatprep.mubr.f32.mxu0 %v14471_v14  ;;  %v1478_v56 = vld [vmem:[#allocation2 + $0xb20] sm:$0xff] }
 0x3d3   :  { %3574 = vmatprep.mubr.f32.mxu1 %v14421_v47  ;;  %v1414_v47 = vld [vmem:[#allocation2 + $0x920] sm:$0xff] }
 0x3d4   :  { %11128 = vmatpush1.bf16.msra.mxu1 %v1136_v10  ;;  %v1233_v10 = vld [vmem:[#allocation2 + $0x378] sm:$0xff] }
 0x3d5   :  { %11000 = vmatpush1.bf16.msra.mxu0 %v1390_v23  ;;  %11130 = vmatprep.subr.bf16.mxu1 %v1145_v9  ;;  %v1487_v23 = vld [vmem:[#allocation2 + $0xb68] sm:$0xff]  ;;  %v1232_v9 = vld [vmem:[#allocation2 + $0x370] sm:$0xff] }
 0x3d6   :  { %11002 = vmatprep.subr.bf16.mxu0 %v1399_v62  ;;  %v1486_v62 = vld [vmem:[#allocation2 + $0xb60] sm:$0xff] }
 0x3d8   :  { %11132 = vmatpush1.bf16.msra.mxu1 %v1144_v60  ;;  %v1241_v60 = vld [vmem:[#allocation2 + $0x3b8] sm:$0xff] }
 0x3d9   :  { %11004 = vmatpush1.bf16.msra.mxu0 %v1398_v42  ;;  %11134 = vmatprep.subr.bf16.mxu1 %v1153_v21  ;;  %v1495_v42 = vld [vmem:[#allocation2 + $0xba8] sm:$0xff]  ;;  %v1240_v21 = vld [vmem:[#allocation2 + $0x3b0] sm:$0xff] }
 0x3da   :  { %11006 = vmatprep.subr.bf16.mxu0 %v1407_v20  ;;  %v1494_v20 = vld [vmem:[#allocation2 + $0xba0] sm:$0xff] }
 0x3dc   :  { %11136 = vmatpush1.bf16.msra.mxu1 %v1152_v24  ;;  %v1249_v24 = vld [vmem:[#allocation2 + $0x3f8] sm:$0xff] }
 0x3dd   :  { %11008 = vmatpush1.bf16.msra.mxu0 %v1406_v22  ;;  %11138 = vmatprep.subr.bf16.mxu1 %v1161_v15  ;;  %v1503_v22 = vld [vmem:[#allocation2 + $0xbe8] sm:$0xff]  ;;  %v1248_v15 = vld [vmem:[#allocation2 + $0x3f0] sm:$0xff] }
 0x3de   :  { %11010 = vmatprep.subr.bf16.mxu0 %v1415_v25  ;;  %v1502_v25 = vld [vmem:[#allocation2 + $0xbe0] sm:$0xff] }
 0x3e0   :  { %11140 = vmatpush1.bf16.msra.mxu1 %v1160_v3  ;;  %v1257_v3 = vld [vmem:[#allocation2 + $0x438] sm:$0xff] }
 0x3e1   :  { %11012 = vmatpush1.bf16.msra.mxu0 %v1414_v47  ;;  %11142 = vmatprep.subr.bf16.mxu1 %v1169_v27  ;;  %v1511_v47 = vld [vmem:[#allocation2 + $0xc28] sm:$0xff]  ;;  %v1256_v27 = vld [vmem:[#allocation2 + $0x430] sm:$0xff] }
 0x3e2   :  { %11014 = vmatprep.subr.bf16.mxu0 %v1423_v26  ;;  %v1510_v26 = vld [vmem:[#allocation2 + $0xc20] sm:$0xff] }
 0x3e4   :  { %11144 = vmatpush1.bf16.msra.mxu1 %v1168_v29  ;;  %v1265_v29 = vld [vmem:[#allocation2 + $0x478] sm:$0xff] }
 0x3e5   :  { %11016 = vmatpush1.bf16.msra.mxu0 %v1422_v28  ;;  %11146 = vmatprep.subr.bf16.mxu1 %v1177_v0  ;;  %v1519_v28 = vld [vmem:[#allocation2 + $0xc68] sm:$0xff]  ;;  %v1264_v0 = vld [vmem:[#allocation2 + $0x470] sm:$0xff] }
 0x3e6   :  { %11018 = vmatprep.subr.bf16.mxu0 %v1431_v11  ;;  %v1518_v11 = vld [vmem:[#allocation2 + $0xc60] sm:$0xff] }
 0x3e8   :  { %11148 = vmatpush1.bf16.msra.mxu1 %v1176_v31  ;;  %v1273_v31 = vld [vmem:[#allocation2 + $0x4b8] sm:$0xff] }
 0x3e9   :  { %11020 = vmatpush1.bf16.msra.mxu0 %v1430_v30  ;;  %11150 = vmatprep.subr.bf16.mxu1 %v1185_v33  ;;  %v1527_v30 = vld [vmem:[#allocation2 + $0xca8] sm:$0xff]  ;;  %v1272_v33 = vld [vmem:[#allocation2 + $0x4b0] sm:$0xff] }
 0x3ea   :  { %11022 = vmatprep.subr.bf16.mxu0 %v1439_v32  ;;  %v1526_v32 = vld [vmem:[#allocation2 + $0xca0] sm:$0xff] }
 0x3ec   :  { %11152 = vmatpush1.bf16.msra.mxu1 %v1184_v36  ;;  %v1534_v36 = vld [vmem:[#allocation2 + $0xce0] sm:$0xff] }
 0x3ed   :  { %11024 = vmatpush1.bf16.msra.mxu0 %v1438_v34  ;;  %11154 = vmatprep.subr.bf16.mxu1 %v1193_v39  ;;  %v1535_v34 = vld [vmem:[#allocation2 + $0xce8] sm:$0xff] }
 0x3ee   :  { %11026 = vmatprep.subr.bf16.mxu0 %v1447_v37  ;;  %v1280_v37 = vld [vmem:[#allocation2 + $0x4f0] sm:$0xff]  ;;  %v1543_v39 = vld [vmem:[#allocation2 + $0xd28] sm:$0xff] }
 0x3f0   :  { %11156 = vmatpush1.bf16.msra.mxu1 %v1192_v44  ;;  %v1288_v44 = vld [vmem:[#allocation2 + $0x530] sm:$0xff] }
 0x3f1   :  { %11028 = vmatpush1.bf16.msra.mxu0 %v1446_v40  ;;  %11158 = vmatprep.subr.bf16.mxu1 %v1201_v18  ;;  %v1289_v40 = vld [vmem:[#allocation2 + $0x538] sm:$0xff] }
 0x3f2   :  { %11030 = vmatprep.subr.bf16.mxu0 %v1455_v16  ;;  %v1551_v16 = vld [vmem:[#allocation2 + $0xd68] sm:$0xff]  ;;  %v1297_v18 = vld [vmem:[#allocation2 + $0x578] sm:$0xff] }
 0x3f4   :  { %11160 = vmatpush1.bf16.msra.mxu1 %v1200_v52  ;;  %v1296_v52 = vld [vmem:[#allocation2 + $0x570] sm:$0xff] }
 0x3f5   :  { %11032 = vmatpush1.bf16.msra.mxu0 %v1454_v48  ;;  %11162 = vmatprep.subr.bf16.mxu1 %v1209_v54  ;;  %v1550_v48 = vld [vmem:[#allocation2 + $0xd60] sm:$0xff]  ;;  %v1559_v54 = vld [vmem:[#allocation2 + $0xda8] sm:$0xff] }
 0x3f6   :  { %11034 = vmatprep.subr.bf16.mxu0 %v1463_v53 }
 0x3f8   :  { %11164 = vmatpush1.bf16.msra.mxu1 %v1208_v59 }
 0x3f9   :  { %11036 = vmatpush1.bf16.msra.mxu0 %v1462_v57  ;;  %11166 = vmatprep.subr.bf16.mxu1 %v1217_v2  ;;  %v1305_v57 = vld [vmem:[#allocation2 + $0x5b8] sm:$0xff] }
 0x3fa   :  { %11038 = vmatprep.subr.bf16.mxu0 %v1471_v61 }
 0x3fc   :  { %11168 = vmatpush1.bf16.msra.mxu1 %v1216_v6 }
 0x3fd   :  { %11040 = vmatpush1.bf16.msra.mxu0 %v1470_v4  ;;  %11170 = vmatprep.subr.bf16.mxu1 %v1225_v19  ;;  %v1304_v19 = vld [vmem:[#allocation2 + $0x5b0] sm:$0xff] }
 0x3fe   :  { %11042 = vmatprep.subr.bf16.mxu0 %v1479_v7  ;;  %v1558_v7 = vld [vmem:[#allocation2 + $0xda0] sm:$0xff] }
 0x400   :  { %11172 = vmatpush1.bf16.msra.mxu1 %v1224_v13  ;;  %v1567_v13 = vld [vmem:[#allocation2 + $0xde8] sm:$0xff] }
 0x401   :  { %11044 = vmatpush1.bf16.msra.mxu0 %v1478_v56  ;;  %11174 = vmatprep.subr.bf16.mxu1 %v1233_v10 }
 0x402   :  { %11046 = vmatprep.subr.bf16.mxu0 %v1487_v23  ;;  %v1313_v23 = vld [vmem:[#allocation2 + $0x5f8] sm:$0xff] }
 0x404   :  { %11176 = vmatpush1.bf16.msra.mxu1 %v1232_v9 }
 0x405   :  { %11048 = vmatpush1.bf16.msra.mxu0 %v1486_v62  ;;  %11178 = vmatprep.subr.bf16.mxu1 %v1241_v60 }
 0x406   :  { %11050 = vmatprep.subr.bf16.mxu0 %v1495_v42 }
 0x408   :  { %11180 = vmatpush1.bf16.msra.mxu1 %v1240_v21  ;;  %v1312_v21 = vld [vmem:[#allocation2 + $0x5f0] sm:$0xff] }
 0x409   :  { %11052 = vmatpush1.bf16.msra.mxu0 %v1494_v20  ;;  %11182 = vmatprep.subr.bf16.mxu1 %v1249_v24  ;;  %v1566_v20 = vld [vmem:[#allocation2 + $0xde0] sm:$0xff] }
 0x40a   :  { %11054 = vmatprep.subr.bf16.mxu0 %v1503_v22 }
 0x40c   :  { %11184 = vmatpush1.bf16.msra.mxu1 %v1248_v15  ;;  %v1321_v15 = vld [vmem:[#allocation2 + $0x638] sm:$0xff] }
 0x40d   :  { %11056 = vmatpush1.bf16.msra.mxu0 %v1502_v25  ;;  %11186 = vmatprep.subr.bf16.mxu1 %v1257_v3  ;;  %v1575_v25 = vld [vmem:[#allocation2 + $0xe28] sm:$0xff] }
 0x40e   :  { %11058 = vmatprep.subr.bf16.mxu0 %v1511_v47 }
 0x40f   :  { %3575 = vmatmul.mubr.f32.vlgmr.msra.gmra.mrb[6].mxu1 %v14419_v41  ;;  %v1281_v41 = vld [vmem:[#allocation2 + $0x4f8] sm:$0xff] }
 0x410   :  { %3433 = vmatmul.mubr.f32.vlgmr.msra.gmra.mrb[8].mxu0 %v14469_v12  ;;  %11188 = vmatpush1.bf16.msra.mxu1 %v1256_v27 }
 0x411   :  { %11060 = vmatpush1.bf16.msra.mxu0 %v1510_v26  ;;  %11190 = vmatprep.subr.bf16.mxu1 %v1265_v29 }
 0x412   :  { %11062 = vmatprep.subr.bf16.mxu0 %v1519_v28  ;;  %3503 = vmatprep.mubr.f32.mxu0 %v14428_v58 }
 0x413   :  { %3645 = vmatprep.mubr.f32.mxu1 %v14451_v46  ;;  %v1542_v46 = vld [vmem:[#allocation2 + $0xd20] sm:$0xff] }
 0x414   :  { %11192 = vmatpush1.bf16.msra.mxu1 %v1264_v0  ;;  %v1320_v0 = vld [vmem:[#allocation2 + $0x630] sm:$0xff] }
 0x415   :  { %11064 = vmatpush1.bf16.msra.mxu0 %v1518_v11  ;;  %11194 = vmatprep.subr.bf16.mxu1 %v1273_v31  ;;  %v1574_v11 = vld [vmem:[#allocation2 + $0xe20] sm:$0xff] }
 0x416   :  { %11066 = vmatprep.subr.bf16.mxu0 %v1527_v30 }
 0x418   :  { %11196 = vmatpush1.bf16.msra.mxu1 %v1272_v33  ;;  %v1329_v33 = vld [vmem:[#allocation2 + $0x678] sm:$0xff] }
 0x419   :  { %11068 = vmatpush1.bf16.msra.mxu0 %v1526_v32  ;;  %11198 = vmatprep.subr.bf16.mxu1 %v1281_v41  ;;  %v1583_v32 = vld [vmem:[#allocation2 + $0xe68] sm:$0xff] }
 0x41a   :  { %11070 = vmatprep.subr.bf16.mxu0 %v1535_v34 }
 0x41c   :  { %11200 = vmatpush1.bf16.msra.mxu1 %v1280_v37 }
 0x41d   :  { %11072 = vmatpush1.bf16.msra.mxu0 %v1534_v36  ;;  %11202 = vmatprep.subr.bf16.mxu1 %v1289_v40 }
 0x41e   :  { %11074 = vmatprep.subr.bf16.mxu0 %v1543_v39 }
 0x420   :  { %11204 = vmatpush1.bf16.msra.mxu1 %v1288_v44  ;;  %v1328_v44 = vld [vmem:[#allocation2 + $0x670] sm:$0xff] }
 0x421   :  { %11076 = vmatpush1.bf16.msra.mxu0 %v1542_v46  ;;  %11206 = vmatprep.subr.bf16.mxu1 %v1297_v18  ;;  %v1582_v46 = vld [vmem:[#allocation2 + $0xe60] sm:$0xff] }
 0x422   :  { %11078 = vmatprep.subr.bf16.mxu0 %v1551_v16 }
 0x423   :  { %v2937_v53 = vpop.f32.mrb[6].mxu0 }
 0x424   :  { %v14504_v59 = vadd.f32 %v2937_v53, %v14491_v8  ;;  %v2939_v61 = vpop.f32.mrb[7].mxu0  ;;  %11208 = vmatpush1.bf16.msra.mxu1 %v1296_v52  ;;  %v1337_v52 = vld [vmem:[#allocation2 + $0x6b8] sm:$0xff] }
 0x425   :  { %v14507_v2 = vadd.f32 %v2939_v61, %v14493_v38  ;;  %11080 = vmatpush1.bf16.msra.mxu0 %v1550_v48  ;;  %11210 = vmatprep.subr.bf16.mxu1 %v1305_v57  ;;  %v1591_v48 = vld [vmem:[#allocation2 + $0xea8] sm:$0xff] }
 0x426   :  { %v3794_v4 = vrot.slane %v14504_v59, 4  ;;  %v3850_v6 = vmul.f32 %v14504_v59, %v14504_v59  ;;  %11082 = vmatprep.subr.bf16.mxu0 %v1559_v54 }
 0x427   :  { %v3800_v56 = vrot.slane %v14507_v2, 4  ;;  %v3851_v8 = vmul.f32 %v14507_v2, %v14507_v2 }
 0x428   :  { %v3795_v38 = vadd.f32 %v14504_v59, %v3794_v4  ;;  %v3858_v10 = vrot.slane %v3850_v6, 4  ;;  %11212 = vmatpush1.bf16.msra.mxu1 %v1304_v19 }
 0x429   :  { %v3801_v62 = vadd.f32 %v14507_v2, %v3800_v56  ;;  %v3864_v9 = vrot.slane %v3851_v8, 4  ;;  %11084 = vmatpush1.bf16.msra.mxu0 %v1558_v7  ;;  %11214 = vmatprep.subr.bf16.mxu1 %v1313_v23  ;;  %v1336_v7 = vld [vmem:[#allocation2 + $0x6b0] sm:$0xff]  ;;  %v1599_v56 = vld [vmem:[#allocation2 + $0xee8] sm:$0xff] }
 0x42a   :  { %v3796_v42 = vrot.slane %v3795_v38, 2  ;;  %v3859_v60 = vadd.f32 %v3858_v10, %v3850_v6  ;;  %11086 = vmatprep.subr.bf16.mxu0 %v1567_v13  ;;  %v1590_v6 = vld [vmem:[#allocation2 + $0xea0] sm:$0xff]  ;;  %v1344_v10 = vld [vmem:[#allocation2 + $0x6f0] sm:$0xff] }
 0x42b   :  { %v3802_v22 = vrot.slane %v3801_v62, 2  ;;  %v3865_v24 = vadd.f32 %v3864_v9, %v3851_v8  ;;  %v1345_v8 = vld [vmem:[#allocation2 + $0x6f8] sm:$0xff] }
 0x42c   :  { %v3797_v47 = vadd.f32 %v3796_v42, %v3795_v38  ;;  %v3860_v3 = vrot.slane %v3859_v60, 2  ;;  %11216 = vmatpush1.bf16.msra.mxu1 %v1312_v21  ;;  %v1598_v38 = vld [vmem:[#allocation2 + $0xee0] sm:$0xff]  ;;  %v1353_v9 = vld [vmem:[#allocation2 + $0x738] sm:$0xff] }
 0x42d   :  { %v3803_v26 = vadd.f32 %v3802_v22, %v3801_v62  ;;  %v3866_v27 = vrot.slane %v3865_v24, 2  ;;  %11088 = vmatpush1.bf16.msra.mxu0 %v1566_v20  ;;  %11218 = vmatprep.subr.bf16.mxu1 %v1321_v15  ;;  %v1607_v62 = vld [vmem:[#allocation2 + $0xf28] sm:$0xff]  ;;  %v1606_v42 = vld [vmem:[#allocation2 + $0xf20] sm:$0xff]  ;;  %v1361_v21 = vld [vmem:[#allocation2 + $0x778] sm:$0xff] }
 0x42e   :  { %v3798_v28 = vrot.slane %v3797_v47, 1  ;;  %v3861_v29 = vadd.f32 %v3860_v3, %v3859_v60  ;;  %11090 = vmatprep.subr.bf16.mxu0 %v1575_v25  ;;  %v1352_v60 = vld [vmem:[#allocation2 + $0x730] sm:$0xff]  ;;  %v1615_v20 = vld [vmem:[#allocation2 + $0xf68] sm:$0xff]  ;;  %v1614_v25 = vld [vmem:[#allocation2 + $0xf60] sm:$0xff] }
 0x42f   :  { %v3804_v30 = vrot.slane %v3803_v26, 1  ;;  %v3867_v31 = vadd.f32 %v3866_v27, %v3865_v24  ;;  %v14517_v22 = vld [vmem:[#allocation18] ss:$2 sm:$0xff]  ;;  %v14519_v24 = vld [vmem:[#allocation18 + $0x1] ss:$2 sm:$0xff]  ;;  %v1369_v27 = vld [vmem:[#allocation2 + $0x7b8] sm:$0xff] }
 0x430   :  { %v3799_v34 = vadd.f32 %v3798_v28, %v3797_v47  ;;  %v3862_v41 = vrot.slane %v3861_v29, 1  ;;  %11220 = vmatpush1.bf16.msra.mxu1 %v1320_v0  ;;  %v1360_v15 = vld [vmem:[#allocation2 + $0x770] sm:$0xff]  ;;  %v3967_v3 = vrot.slane %v14517_v22, %v14354_v17 }
 0x431   :  { %v3805_v36 = vadd.f32 %v3804_v30, %v3803_v26  ;;  %v3868_v37 = vrot.slane %v3867_v31, 1  ;;  %11092 = vmatpush1.bf16.msra.mxu0 %v1574_v11  ;;  %11222 = vmatprep.subr.bf16.mxu1 %v1329_v33  ;;  %v1623_v26 = vld [vmem:[#allocation2 + $0xfa8] sm:$0xff]  ;;  %v3971_v11 = vrot.slane %v14517_v22, %v14367_v35  ;;  %v1622_v33 = vld [vmem:[#allocation2 + $0xfa0] sm:$0xff] }
 0x432   :  { %v3842_v39 = vmul.f32 0.125, %v3799_v34  ;;  %v3863_v40 = vadd.f32 %v3862_v41, %v3861_v29  ;;  %11094 = vmatprep.subr.bf16.mxu0 %v1583_v32  ;;  %v1368_v34 = vld [vmem:[#allocation2 + $0x7b0] sm:$0xff] }
 0x433   :  { %v3843_v16 = vmul.f32 0.125, %v3805_v36  ;;  %v3869_v18 = vadd.f32 %v3868_v37, %v3867_v31  ;;  %v4018_v31 = vrot.slane %v14519_v24, %v14354_v17  ;;  %v1377_v36 = vld [vmem:[#allocation2 + $0x7f8] sm:$0xff] }
 0x434   :  { %v3906_v53 = vmul.f32 0.125, %v3863_v40  ;;  %v3914_v54 = vmul.f32 %v3842_v39, %v3842_v39  ;;  %11224 = vmatpush1.bf16.msra.mxu1 %v1328_v44  ;;  %v3930_v47 = vsub.f32 %v14504_v59, %v3842_v39  ;;  %v4022_v59 = vrot.slane %v14519_v24, %v14367_v35  ;;  %v1376_v44 = vld [vmem:[#allocation2 + $0x7f0] sm:$0xff] }
 0x435   :  { %v3907_v57 = vmul.f32 0.125, %v3869_v18  ;;  %v3915_v61 = vmul.f32 %v3843_v16, %v3843_v16  ;;  %11096 = vmatpush1.bf16.msra.mxu0 %v1582_v46  ;;  %11226 = vmatprep.subr.bf16.mxu1 %v1337_v52  ;;  %v3931_v29 = vsub.f32 %v14507_v2, %v3843_v16  ;;  %v1631_v2 = vld [vmem:[#allocation2 + $0xfe8] sm:$0xff]  ;;  %v1630_v46 = vld [vmem:[#allocation2 + $0xfe0] sm:$0xff]  ;;  %v1385_v18 = vld [vmem:[#allocation2 + $0x838] sm:$0xff] }
 0x436   :  { %v3922_v4 = vsub.f32 %v3906_v53, %v3914_v54  ;;  %11098 = vmatprep.subr.bf16.mxu0 %v1591_v48  ;;  %v1384_v52 = vld [vmem:[#allocation2 + $0x830] sm:$0xff]  ;;  %v1393_v53 = vld [vmem:[#allocation2 + $0x878] sm:$0xff] }
 0x437   :  { %v3923_v19 = vsub.f32 %v3907_v57, %v3915_v61  ;;  %v1392_v54 = vld [vmem:[#allocation2 + $0x870] sm:$0xff]  ;;  %v1401_v57 = vld [vmem:[#allocation2 + $0x8b8] sm:$0xff] }
 0x438   :  { %v3938_v13 = vadd.f32 1e-05, %v3922_v4  ;;  %11228 = vmatpush1.bf16.msra.mxu1 %v1336_v7  ;;  %v1400_v61 = vld [vmem:[#allocation2 + $0x8b0] sm:$0xff]  ;;  %v1409_v4 = vld [vmem:[#allocation2 + $0x8f8] sm:$0xff] }
 0x439   :  { %v3939_v23 = vadd.f32 1e-05, %v3923_v19  ;;  %11100 = vmatpush1.bf16.msra.mxu0 %v1590_v6  ;;  %11230 = vmatprep.subr.bf16.mxu1 %v1345_v8  ;;  %v1408_v6 = vld [vmem:[#allocation2 + $0x8f0] sm:$0xff]  ;;  %v1417_v7 = vld [vmem:[#allocation2 + $0x938] sm:$0xff] }
 0x43a   :  { %13505 = vrsqrt.f32 %v3938_v13  ;;  %11102 = vmatprep.subr.bf16.mxu0 %v1599_v56  ;;  %v1416_v19 = vld [vmem:[#allocation2 + $0x930] sm:$0xff]  ;;  %v1425_v56 = vld [vmem:[#allocation2 + $0x978] sm:$0xff] }
 0x43b   :  { %13507 = vrsqrt.f32 %v3939_v23  ;;  %v1433_v8 = vld [vmem:[#allocation2 + $0x9b8] sm:$0xff]  ;;  %v1440_v23 = vld [vmem:[#allocation2 + $0x9f0] sm:$0xff] }
 0x43c   :  { %11232 = vmatpush1.bf16.msra.mxu1 %v1344_v10  ;;  %v1441_v13 = vld [vmem:[#allocation2 + $0x9f8] sm:$0xff]  ;;  %v1448_v10 = vld [vmem:[#allocation2 + $0xa30] sm:$0xff] }
 0x43d   :  { %11104 = vmatpush1.bf16.msra.mxu0 %v1598_v38  ;;  %11234 = vmatprep.subr.bf16.mxu1 %v1353_v9  ;;  %v1449_v38 = vld [vmem:[#allocation2 + $0xa38] sm:$0xff]  ;;  %v1456_v9 = vld [vmem:[#allocation2 + $0xa70] sm:$0xff] }
 0x43e   :  { %11106 = vmatprep.subr.bf16.mxu0 %v1607_v62  ;;  %v1457_v62 = vld [vmem:[#allocation2 + $0xa78] sm:$0xff] }
 0x440   :  { %11236 = vmatpush1.bf16.msra.mxu1 %v1352_v60  ;;  %v1464_v60 = vld [vmem:[#allocation2 + $0xab0] sm:$0xff] }
 0x441   :  { %11108 = vmatpush1.bf16.msra.mxu0 %v1606_v42  ;;  %11238 = vmatprep.subr.bf16.mxu1 %v1361_v21  ;;  %v1465_v42 = vld [vmem:[#allocation2 + $0xab8] sm:$0xff]  ;;  %v1472_v21 = vld [vmem:[#allocation2 + $0xaf0] sm:$0xff] }
 0x442   :  { %11110 = vmatprep.subr.bf16.mxu0 %v1615_v20  ;;  %v1473_v20 = vld [vmem:[#allocation2 + $0xaf8] sm:$0xff] }
 0x444   :  { %v13506_v28 = vpop.eup %13505  ;;  %11240 = vmatpush1.bf16.msra.mxu1 %v1360_v15  ;;  %v1480_v15 = vld [vmem:[#allocation2 + $0xb30] sm:$0xff] }
 0x445   :  { %v13508_v0 = vpop.eup %13507  ;;  %v3954_v30 = vmul.f32 %v13506_v28, %v3930_v47  ;;  %11112 = vmatpush1.bf16.msra.mxu0 %v1614_v25  ;;  %11242 = vmatprep.subr.bf16.mxu1 %v1369_v27  ;;  %v1481_v25 = vld [vmem:[#allocation2 + $0xb38] sm:$0xff]  ;;  %v1496_v27 = vld [vmem:[#allocation2 + $0xbb0] sm:$0xff] }
 0x446   :  { %v3955_v32 = vmul.f32 %v13508_v0, %v3931_v29  ;;  %11114 = vmatprep.subr.bf16.mxu0 %v1623_v26  ;;  %v1489_v47 = vld [vmem:[#allocation2 + $0xb78] sm:$0xff]  ;;  %v1504_v29 = vld [vmem:[#allocation2 + $0xbf0] sm:$0xff] }
 0x447   :  { %v4004_v41 = vmul.f32 %v3967_v3, %v3954_v30  ;;  %v1488_v3 = vld [vmem:[#allocation2 + $0xb70] sm:$0xff]  ;;  %v1497_v26 = vld [vmem:[#allocation2 + $0xbb8] sm:$0xff] }
 0x448   :  { %v4005_v37 = vmul.f32 %v3971_v11, %v3955_v32  ;;  %11244 = vmatpush1.bf16.msra.mxu1 %v1368_v34  ;;  %v1505_v28 = vld [vmem:[#allocation2 + $0xbf8] sm:$0xff]  ;;  %v1512_v0 = vld [vmem:[#allocation2 + $0xc30] sm:$0xff] }
 0x449   :  { %v14531_v39 = vadd.f32 %v4018_v31, %v4004_v41  ;;  %11116 = vmatpush1.bf16.msra.mxu0 %v1622_v33  ;;  %11246 = vmatprep.subr.bf16.mxu1 %v1377_v36  ;;  %v1513_v11 = vld [vmem:[#allocation2 + $0xc38] sm:$0xff]  ;;  %v1520_v31 = vld [vmem:[#allocation2 + $0xc70] sm:$0xff] }
 0x44a   :  { %v14533_v40 = vadd.f32 %v4022_v59, %v4005_v37  ;;  %11118 = vmatprep.subr.bf16.mxu0 %v1631_v2  ;;  %v1521_v30 = vld [vmem:[#allocation2 + $0xc78] sm:$0xff]  ;;  %v1528_v59 = vld [vmem:[#allocation2 + $0xcb0] sm:$0xff] }
 0x44b   :  { %v4063_v16 = vmax.f32 %v14531_v39, 0.0  ;;  %v1529_v32 = vld [vmem:[#allocation2 + $0xcb8] sm:$0xff]  ;;  %v1536_v34 = vld [vmem:[#allocation2 + $0xcf0] sm:$0xff] }
 0x44c   :  { %v4064_v48 = vmax.f32 %v14533_v40, 0.0  ;;  %11248 = vmatpush1.bf16.msra.mxu1 %v1376_v44  ;;  %v1537_v33 = vld [vmem:[#allocation2 + $0xcf8] sm:$0xff]  ;;  %v1544_v2 = vld [vmem:[#allocation2 + $0xd30] sm:$0xff] }
 0x44d   :  { %11120 = vmatpush1.bf16.msra.mxu0 %v1630_v46  ;;  %11250 = vmatprep.subr.bf16.mxu1 %v1385_v18  ;;  %v1545_v41 = vld [vmem:[#allocation2 + $0xd38] sm:$0xff] }
 0x44e   :  { %v1553_v36 = vld [vmem:[#allocation2 + $0xd78] sm:$0xff] }
 0x44f   :  { %3646 = vmatmul.mubr.f32.vlgmr.msra.gmra.mrb[6].mxu1 %v14449_v45  ;;  %v1424_v45 = vld [vmem:[#allocation2 + $0x970] sm:$0xff] }
 0x450   :  { %3504 = vmatmul.mubr.f32.vlgmr.msra.gmra.mrb[8].mxu0 %v14423_v51  ;;  %11252 = vmatpush1.bf16.msra.mxu1 %v1384_v52 }
 0x451   :  { %3716 = vmatprep.mubr.f32.mxu1 %v14471_v14  ;;  %11254 = vmatprep.subr.bf16.mxu1 %v1393_v53  ;;  %v1432_v14 = vld [vmem:[#allocation2 + $0x9b0] sm:$0xff] }
 0x454   :  { %11256 = vmatpush1.bf16.msra.mxu1 %v1392_v54 }
 0x455   :  { %11258 = vmatprep.subr.bf16.mxu1 %v1401_v57 }
 0x458   :  { %11260 = vmatpush1.bf16.msra.mxu1 %v1400_v61  ;;  %v1560_v61 = vld [vmem:[#allocation2 + $0xdb0] sm:$0xff] }
 0x459   :  { %11262 = vmatprep.subr.bf16.mxu1 %v1409_v4 }
 0x45c   :  { %11264 = vmatpush1.bf16.msra.mxu1 %v1408_v6 }
 0x45d   :  { %11266 = vmatprep.subr.bf16.mxu1 %v1417_v7  ;;  %v1569_v7 = vld [vmem:[#allocation2 + $0xdf8] sm:$0xff] }
 0x460   :  { %11268 = vmatpush1.bf16.msra.mxu1 %v1416_v19 }
 0x461   :  { %11270 = vmatprep.subr.bf16.mxu1 %v1425_v56 }
 0x464   :  { %11272 = vmatpush1.bf16.msra.mxu1 %v1424_v45 }
 0x465   :  { %11274 = vmatprep.subr.bf16.mxu1 %v1433_v8 }
 0x468   :  { %11276 = vmatpush1.bf16.msra.mxu1 %v1432_v14 }
 0x469   :  { %11278 = vmatprep.subr.bf16.mxu1 %v1441_v13 }
 0x46c   :  { %11280 = vmatpush1.bf16.msra.mxu1 %v1440_v23  ;;  %v1568_v23 = vld [vmem:[#allocation2 + $0xdf0] sm:$0xff] }
 0x46d   :  { %11282 = vmatprep.subr.bf16.mxu1 %v1449_v38 }
 0x470   :  { %11284 = vmatpush1.bf16.msra.mxu1 %v1448_v10 }
 0x471   :  { %11286 = vmatprep.subr.bf16.mxu1 %v1457_v62  ;;  %v1577_v62 = vld [vmem:[#allocation2 + $0xe38] sm:$0xff] }
 0x474   :  { %11288 = vmatpush1.bf16.msra.mxu1 %v1456_v9 }
 0x475   :  { %11290 = vmatprep.subr.bf16.mxu1 %v1465_v42 }
 0x478   :  { %11292 = vmatpush1.bf16.msra.mxu1 %v1464_v60 }
 0x479   :  { %11294 = vmatprep.subr.bf16.mxu1 %v1473_v20 }
 0x47c   :  { %11296 = vmatpush1.bf16.msra.mxu1 %v1472_v21 }
 0x47d   :  { %11298 = vmatprep.subr.bf16.mxu1 %v1481_v25 }
 0x480   :  { %11300 = vmatpush1.bf16.msra.mxu1 %v1480_v15  ;;  %v1576_v15 = vld [vmem:[#allocation2 + $0xe30] sm:$0xff] }
 0x481   :  { %11302 = vmatprep.subr.bf16.mxu1 %v1489_v47 }
 0x484   :  { %11304 = vmatpush1.bf16.msra.mxu1 %v1488_v3 }
 0x485   :  { %11306 = vmatprep.subr.bf16.mxu1 %v1497_v26  ;;  %v1585_v26 = vld [vmem:[#allocation2 + $0xe78] sm:$0xff] }
 0x488   :  { %11308 = vmatpush1.bf16.msra.mxu1 %v1496_v27 }
 0x489   :  { %11310 = vmatprep.subr.bf16.mxu1 %v1505_v28 }
 0x48c   :  { %11312 = vmatpush1.bf16.msra.mxu1 %v1504_v29 }
 0x48d   :  { %11314 = vmatprep.subr.bf16.mxu1 %v1513_v11 }
 0x48f   :  { %3717 = vmatmul.mubr.f32.vlgmr.msra.gmra.mrb[6].mxu1 %v14469_v12  ;;  %v1552_v12 = vld [vmem:[#allocation2 + $0xd70] sm:$0xff] }
 0x490   :  { %11316 = vmatpush1.bf16.msra.mxu1 %v1512_v0  ;;  %3787 = vmatprep.mubr.f32.mxu1 %v14428_v58  ;;  %v1561_v58 = vld [vmem:[#allocation2 + $0xdb8] sm:$0xff] }
 0x491   :  { %11318 = vmatprep.subr.bf16.mxu1 %v1521_v30 }
 0x494   :  { %11320 = vmatpush1.bf16.msra.mxu1 %v1520_v31  ;;  %v1584_v31 = vld [vmem:[#allocation2 + $0xe70] sm:$0xff] }
 0x495   :  { %11322 = vmatprep.subr.bf16.mxu1 %v1529_v32 }
 0x498   :  { %11324 = vmatpush1.bf16.msra.mxu1 %v1528_v59 }
 0x499   :  { %11326 = vmatprep.subr.bf16.mxu1 %v1537_v33  ;;  %v1593_v33 = vld [vmem:[#allocation2 + $0xeb8] sm:$0xff] }
 0x49c   :  { %11328 = vmatpush1.bf16.msra.mxu1 %v1536_v34 }
 0x49d   :  { %11330 = vmatprep.subr.bf16.mxu1 %v1545_v41 }
 0x4a0   :  { %11332 = vmatpush1.bf16.msra.mxu1 %v1544_v2 }
 0x4a1   :  { %11334 = vmatprep.subr.bf16.mxu1 %v1553_v36  ;;  %v1592_v36 = vld [vmem:[#allocation2 + $0xeb0] sm:$0xff] }
 0x4a2   :  { %v14542_v37 = vpop.f32.mrb[4].mxu1 }
 0x4a3   :  { %v3806_v46 = vrot.slane %v14542_v37, 4  ;;  %v3852_v44 = vmul.f32 %v14542_v37, %v14542_v37  ;;  %v14547_v18 = vpop.f32.mrb[5].mxu1 }
 0x4a4   :  { %v3812_v52 = vrot.slane %v14547_v18, 4  ;;  %v3853_v53 = vmul.f32 %v14547_v18, %v14547_v18  ;;  %11336 = vmatpush1.bf16.msra.mxu1 %v1552_v12 }
 0x4a5   :  { %v3807_v54 = vadd.f32 %v3806_v46, %v14542_v37  ;;  %v3870_v57 = vrot.slane %v3852_v44, 4  ;;  %11338 = vmatprep.subr.bf16.mxu1 %v1561_v58  ;;  %v1601_v58 = vld [vmem:[#allocation2 + $0xef8] sm:$0xff]  ;;  %v1600_v46 = vld [vmem:[#allocation2 + $0xef0] sm:$0xff] }
 0x4a6   :  { %v3813_v4 = vadd.f32 %v3812_v52, %v14547_v18  ;;  %v3876_v6 = vrot.slane %v3853_v53, 4  ;;  %v1608_v52 = vld [vmem:[#allocation2 + $0xf30] sm:$0xff] }
 0x4a7   :  { %v3808_v19 = vrot.slane %v3807_v54, 2  ;;  %v3871_v56 = vadd.f32 %v3870_v57, %v3852_v44  ;;  %v1609_v44 = vld [vmem:[#allocation2 + $0xf38] sm:$0xff]  ;;  %v3975_v57 = vrot.slane %v14517_v22, %v14432_v63 }
 0x4a8   :  { %v3814_v45 = vrot.slane %v3813_v4, 2  ;;  %v3877_v8 = vadd.f32 %v3876_v6, %v3853_v53  ;;  %11340 = vmatpush1.bf16.msra.mxu1 %v1560_v61  ;;  %v1617_v53 = vld [vmem:[#allocation2 + $0xf78] sm:$0xff]  ;;  %v3979_v6 = vrot.slane %v14517_v22, %v14435_v5 }
 0x4a9   :  { %v3809_v14 = vadd.f32 %v3808_v19, %v3807_v54  ;;  %v3872_v13 = vrot.slane %v3871_v56, 2  ;;  %11342 = vmatprep.subr.bf16.mxu1 %v1569_v7  ;;  %v1616_v7 = vld [vmem:[#allocation2 + $0xf70] sm:$0xff] }
 0x4aa   :  { %v3815_v38 = vadd.f32 %v3814_v45, %v3813_v4  ;;  %v3878_v10 = vrot.slane %v3877_v8, 2  ;;  %v4026_v45 = vrot.slane %v14519_v24, %v14432_v63 }
 0x4ab   :  { %v3810_v9 = vrot.slane %v3809_v14, 1  ;;  %v3873_v42 = vadd.f32 %v3872_v13, %v3871_v56 }
 0x4ac   :  { %v3816_v60 = vrot.slane %v3815_v38, 1  ;;  %v3879_v20 = vadd.f32 %v3878_v10, %v3877_v8  ;;  %11344 = vmatpush1.bf16.msra.mxu1 %v1568_v23  ;;  %v1625_v8 = vld [vmem:[#allocation2 + $0xfb8] sm:$0xff] }
 0x4ad   :  { %v3811_v21 = vadd.f32 %v3810_v9, %v3809_v14  ;;  %v3874_v25 = vrot.slane %v3873_v42, 1  ;;  %11346 = vmatprep.subr.bf16.mxu1 %v1577_v62  ;;  %v1633_v10 = vld [vmem:[#allocation2 + $0xff8] sm:$0xff] }
 0x4ae   :  { %v3817_v47 = vadd.f32 %v3816_v60, %v3815_v38  ;;  %v3880_v3 = vrot.slane %v3879_v20, 1  ;;  %v1632_v60 = vld [vmem:[#allocation2 + $0xff0] sm:$0xff] }
 0x4af   :  { %v3844_v27 = vmul.f32 0.125, %v3811_v21  ;;  %v3875_v28 = vadd.f32 %v3874_v25, %v3873_v42 }
 0x4b0   :  { %v3845_v29 = vmul.f32 0.125, %v3817_v47  ;;  %v3881_v11 = vadd.f32 %v3880_v3, %v3879_v20  ;;  %11348 = vmatpush1.bf16.msra.mxu1 %v1576_v15 }
 0x4b1   :  { %v3908_v0 = vmul.f32 0.125, %v3875_v28  ;;  %v3916_v30 = vmul.f32 %v3844_v27, %v3844_v27  ;;  %11350 = vmatprep.subr.bf16.mxu1 %v1585_v26  ;;  %v3932_v54 = vsub.f32 %v14542_v37, %v3844_v27  ;;  %v4030_v37 = vrot.slane %v14519_v24, %v14435_v5 }
 0x4b2   :  { %v3909_v32 = vmul.f32 0.125, %v3881_v11  ;;  %v3917_v59 = vmul.f32 %v3845_v29, %v3845_v29  ;;  %v3933_v4 = vsub.f32 %v14547_v18, %v3845_v29  ;;  %v1624_v18 = vld [vmem:[#allocation2 + $0xfb0] sm:$0xff] }
 0x4b3   :  { %v3924_v34 = vsub.f32 %v3908_v0, %v3916_v30 }
 0x4b4   :  { %v3925_v41 = vsub.f32 %v3909_v32, %v3917_v59  ;;  %11352 = vmatpush1.bf16.msra.mxu1 %v1584_v31 }
 0x4b5   :  { %v3940_v2 = vadd.f32 1e-05, %v3924_v34  ;;  %11354 = vmatprep.subr.bf16.mxu1 %v1593_v33 }
 0x4b6   :  { %v3941_v12 = vadd.f32 1e-05, %v3925_v41 }
 0x4b7   :  { %13509 = vrsqrt.f32 %v3940_v2 }
 0x4b8   :  { %13511 = vrsqrt.f32 %v3941_v12  ;;  %11356 = vmatpush1.bf16.msra.mxu1 %v1592_v36 }
 0x4b9   :  { %11358 = vmatprep.subr.bf16.mxu1 %v1601_v58 }
 0x4bc   :  { %11360 = vmatpush1.bf16.msra.mxu1 %v1600_v46 }
 0x4bd   :  { %11362 = vmatprep.subr.bf16.mxu1 %v1609_v44 }
 0x4c0   :  { %11364 = vmatpush1.bf16.msra.mxu1 %v1608_v52 }
 0x4c1   :  { %v13510_v61 = vpop.eup %13509  ;;  %11366 = vmatprep.subr.bf16.mxu1 %v1617_v53 }
 0x4c2   :  { %v13512_v19 = vpop.eup %13511  ;;  %v3956_v56 = vmul.f32 %v13510_v61, %v3932_v54 }
 0x4c3   :  { %v3957_v14 = vmul.f32 %v13512_v19, %v3933_v4 }
 0x4c4   :  { %v4006_v13 = vmul.f32 %v3975_v57, %v3956_v56  ;;  %11368 = vmatpush1.bf16.msra.mxu1 %v1616_v7 }
 0x4c5   :  { %v4007_v23 = vmul.f32 %v3979_v6, %v3957_v14  ;;  %11370 = vmatprep.subr.bf16.mxu1 %v1625_v8 }
 0x4c6   :  { %v14564_v38 = vadd.f32 %v4026_v45, %v4006_v13 }
 0x4c7   :  { %v14566_v62 = vadd.f32 %v4030_v37, %v4007_v23  ;;  %v3983_v37 = vrot.slane %v14517_v22, %v14454_v49 }
 0x4c8   :  { %v4065_v9 = vmax.f32 %v14564_v38, 0.0  ;;  %11372 = vmatpush1.bf16.msra.mxu1 %v1624_v18  ;;  %v3987_v18 = vrot.slane %v14517_v22, %v14460_v55 }
 0x4c9   :  { %v4066_v42 = vmax.f32 %v14566_v62, 0.0  ;;  %11374 = vmatprep.subr.bf16.mxu1 %v1633_v10 }
 0x4cc   :  { %11376 = vmatpush1.bf16.msra.mxu1 %v1632_v60 }
 0x4cf   :  { %3788 = vmatmul.mubr.f32.vlgmr.msra.gmra.mrb[6].mxu1 %v14423_v51 }
 0x523   :  { %v3505_v20 = vpop.f32.mrb[8].mxu0 }
 0x524   :  { %v3818_v21 = vrot.slane %v3505_v20, 4  ;;  %v3854_v25 = vmul.f32 %v3505_v20, %v3505_v20  ;;  %v3507_v15 = vpop.f32.mrb[9].mxu0 }
 0x525   :  { %v3824_v47 = vrot.slane %v3507_v15, 4  ;;  %v3855_v3 = vmul.f32 %v3507_v15, %v3507_v15 }
 0x526   :  { %v3819_v26 = vadd.f32 %v3818_v21, %v3505_v20  ;;  %v3882_v27 = vrot.slane %v3854_v25, 4  ;;  %v4034_v21 = vrot.slane %v14519_v24, %v14454_v49 }
 0x527   :  { %v3825_v28 = vadd.f32 %v3824_v47, %v3507_v15  ;;  %v3888_v29 = vrot.slane %v3855_v3, 4  ;;  %v4038_v47 = vrot.slane %v14519_v24, %v14460_v55 }
 0x528   :  { %v3820_v11 = vrot.slane %v3819_v26, 2  ;;  %v3883_v0 = vadd.f32 %v3882_v27, %v3854_v25 }
 0x529   :  { %v3826_v30 = vrot.slane %v3825_v28, 2  ;;  %v3889_v31 = vadd.f32 %v3888_v29, %v3855_v3 }
 0x52a   :  { %v3821_v32 = vadd.f32 %v3820_v11, %v3819_v26  ;;  %v3884_v59 = vrot.slane %v3883_v0, 2 }
 0x52b   :  { %v3827_v33 = vadd.f32 %v3826_v30, %v3825_v28  ;;  %v3890_v34 = vrot.slane %v3889_v31, 2 }
 0x52c   :  { %v3822_v41 = vrot.slane %v3821_v32, 1  ;;  %v3885_v51 = vadd.f32 %v3884_v59, %v3883_v0 }
 0x52d   :  { %v3828_v2 = vrot.slane %v3827_v33, 1  ;;  %v3891_v36 = vadd.f32 %v3890_v34, %v3889_v31 }
 0x52e   :  { %v3823_v12 = vadd.f32 %v3822_v41, %v3821_v32  ;;  %v3886_v58 = vrot.slane %v3885_v51, 1 }
 0x52f   :  { %v3829_v46 = vadd.f32 %v3828_v2, %v3827_v33  ;;  %v3892_v44 = vrot.slane %v3891_v36, 1 }
 0x530   :  { %v3846_v52 = vmul.f32 0.125, %v3823_v12  ;;  %v3887_v53 = vadd.f32 %v3886_v58, %v3885_v51 }
 0x531   :  { %v3847_v54 = vmul.f32 0.125, %v3829_v46  ;;  %v3893_v57 = vadd.f32 %v3892_v44, %v3891_v36 }
 0x532   :  { %v3910_v61 = vmul.f32 0.125, %v3887_v53  ;;  %v3918_v4 = vmul.f32 %v3846_v52, %v3846_v52  ;;  %v3934_v14 = vsub.f32 %v3505_v20, %v3846_v52 }
 0x533   :  { %v3911_v6 = vmul.f32 0.125, %v3893_v57  ;;  %v3919_v7 = vmul.f32 %v3847_v54, %v3847_v54  ;;  %v3935_v23 = vsub.f32 %v3507_v15, %v3847_v54 }
 0x534   :  { %v3926_v19 = vsub.f32 %v3910_v61, %v3918_v4 }
 0x535   :  { %v3927_v56 = vsub.f32 %v3911_v6, %v3919_v7 }
 0x536   :  { %v3942_v45 = vadd.f32 1e-05, %v3926_v19 }
 0x537   :  { %v3943_v8 = vadd.f32 1e-05, %v3927_v56 }
 0x538   :  { %13513 = vrsqrt.f32 %v3942_v45 }
 0x539   :  { %13515 = vrsqrt.f32 %v3943_v8 }
 0x542   :  { %v13514_v13 = vpop.eup %13513 }
 0x543   :  { %v13516_v10 = vpop.eup %13515  ;;  %v3958_v60 = vmul.f32 %v13514_v13, %v3934_v14 }
 0x544   :  { %v3959_v25 = vmul.f32 %v13516_v10, %v3935_v23 }
 0x545   :  { %v4008_v3 = vmul.f32 %v3983_v37, %v3958_v60 }
 0x546   :  { %v4009_v26 = vmul.f32 %v3987_v18, %v3959_v25 }
 0x547   :  { %v14579_v20 = vadd.f32 %v4034_v21, %v4008_v3  ;;  %v3991_v3 = vrot.slane %v14517_v22, %v14374_v43 }
 0x548   :  { %v14581_v27 = vadd.f32 %v4038_v47, %v4009_v26 }
 0x549   :  { %v4067_v15 = vmax.f32 %v14579_v20, 0.0 }
 0x54a   :  { %v4068_v28 = vmax.f32 %v14581_v27, 0.0 }
 0x5a2   :  { %v3789_v29 = vpop.f32.mrb[6].mxu1 }
 0x5a3   :  { %v3830_v11 = vrot.slane %v3789_v29, 4  ;;  %v3856_v0 = vmul.f32 %v3789_v29, %v3789_v29  ;;  %v3791_v30 = vpop.f32.mrb[7].mxu1 }
 0x5a4   :  { %v3836_v31 = vrot.slane %v3791_v30, 4  ;;  %v3857_v32 = vmul.f32 %v3791_v30, %v3791_v30 }
 0x5a5   :  { %v3831_v59 = vadd.f32 %v3830_v11, %v3789_v29  ;;  %v3894_v33 = vrot.slane %v3856_v0, 4 }
 0x5a6   :  { %v3837_v34 = vadd.f32 %v3836_v31, %v3791_v30  ;;  %v3900_v41 = vrot.slane %v3857_v32, 4 }
 0x5a7   :  { %v3832_v51 = vrot.slane %v3831_v59, 2  ;;  %v3895_v2 = vadd.f32 %v3894_v33, %v3856_v0  ;;  %v3995_v0 = vrot.slane %v14517_v22, %v14381_v50 }
 0x5a8   :  { %v3838_v36 = vrot.slane %v3837_v34, 2  ;;  %v3901_v12 = vadd.f32 %v3900_v41, %v3857_v32 }
 0x5a9   :  { %v3833_v58 = vadd.f32 %v3832_v51, %v3831_v59  ;;  %v3896_v46 = vrot.slane %v3895_v2, 2  ;;  %v4042_v59 = vrot.slane %v14519_v24, %v14374_v43 }
 0x5aa   :  { %v3839_v44 = vadd.f32 %v3838_v36, %v3837_v34  ;;  %v3902_v52 = vrot.slane %v3901_v12, 2  ;;  %v4046_v34 = vrot.slane %v14519_v24, %v14381_v50 }
 0x5ab   :  { %v3834_v53 = vrot.slane %v3833_v58, 1  ;;  %v3897_v54 = vadd.f32 %v3896_v46, %v3895_v2 }
 0x5ac   :  { %v3840_v57 = vrot.slane %v3839_v44, 1  ;;  %v3903_v61 = vadd.f32 %v3902_v52, %v3901_v12 }
 0x5ad   :  { %v3835_v4 = vadd.f32 %v3834_v53, %v3833_v58  ;;  %v3898_v6 = vrot.slane %v3897_v54, 1 }
 0x5ae   :  { %v3841_v7 = vadd.f32 %v3840_v57, %v3839_v44  ;;  %v3904_v19 = vrot.slane %v3903_v61, 1 }
 0x5af   :  { %v3848_v56 = vmul.f32 0.125, %v3835_v4  ;;  %v3899_v45 = vadd.f32 %v3898_v6, %v3897_v54 }
 0x5b0   :  { %v3849_v8 = vmul.f32 0.125, %v3841_v7  ;;  %v3905_v14 = vadd.f32 %v3904_v19, %v3903_v61 }
 0x5b1   :  { %v3912_v37 = vmul.f32 0.125, %v3899_v45  ;;  %v3920_v13 = vmul.f32 %v3848_v56, %v3848_v56  ;;  %v3936_v47 = vsub.f32 %v3789_v29, %v3848_v56 }
 0x5b2   :  { %v3913_v23 = vmul.f32 0.125, %v3905_v14  ;;  %v3921_v18 = vmul.f32 %v3849_v8, %v3849_v8  ;;  %v3937_v11 = vsub.f32 %v3791_v30, %v3849_v8 }
 0x5b3   :  { %v3928_v10 = vsub.f32 %v3912_v37, %v3920_v13 }
 0x5b4   :  { %v3929_v60 = vsub.f32 %v3913_v23, %v3921_v18 }
 0x5b5   :  { %v3944_v21 = vadd.f32 1e-05, %v3928_v10 }
 0x5b6   :  { %v3945_v25 = vadd.f32 1e-05, %v3929_v60 }
 0x5b7   :  { %13517 = vrsqrt.f32 %v3944_v21 }
 0x5b8   :  { %13519 = vrsqrt.f32 %v3945_v25 }
 0x5c1   :  { %v13518_v26 = vpop.eup %13517 }
 0x5c2   :  { %v13520_v31 = vpop.eup %13519  ;;  %v3960_v32 = vmul.f32 %v13518_v26, %v3936_v47 }
 0x5c3   :  { %v3961_v33 = vmul.f32 %v13520_v31, %v3937_v11 }
 0x5c4   :  { %v4010_v41 = vmul.f32 %v3991_v3, %v3960_v32 }
 0x5c5   :  { %v4011_v51 = vmul.f32 %v3995_v0, %v3961_v33 }
 0x5c6   :  { %v14593_v29 = vadd.f32 %v4042_v59, %v4010_v41 }
 0x5c7   :  { %v14595_v2 = vadd.f32 %v4046_v34, %v4011_v51 }
 0x5c8   :  { %v4069_v30 = vmax.f32 %v14593_v29, 0.0 }
 0x5c9   :  { %v4070_v36 = vmax.f32 %v14595_v2, 0.0 }
 0x5ca   :  { %13863 = dma.done.wait [#allocation9 + $0x1], 16384 }
 0x5cb   :  { %13864 = vsyncadd [#allocation9 + $0x1], 4294950912  ;;  %4522 = vmatprep.mubr.f32.mxu0 %v4064_v48  ;;  %4932 = vmatprep.mubr.f32.mxu1 %v13891_v1  ;;  %v4075_v22 = vld [vmem:[#allocation3 + $0x8] sm:$0xff]  ;;  %v4074_v12 = vld [vmem:[#allocation3] sm:$0xff]  ;;  %vm4864_vm1 = vcmask 261120  }
 0x5cc   :  { %v4077_v24 = vld [vmem:[#allocation3 + $0x18] sm:$0xff]  ;;  %11378 = vmatprep.subr.bf16.mxu0 %v4075_v22  ;;  %v4076_v58 = vld [vmem:[#allocation3 + $0x10] sm:$0xff]  ;;  %v4079_v46 = vld [vmem:[#allocation3 + $0x28] sm:$0xff] }
 0x5cd   :  { %11380 = vmatpush1.bf16.msra.mxu0 %v4074_v12  ;;  %v4078_v44 = vld [vmem:[#allocation3 + $0x20] sm:$0xff]  ;;  %v4081_v52 = vld [vmem:[#allocation3 + $0x38] sm:$0xff]  ;;  %v4080_v53 = vld [vmem:[#allocation3 + $0x30] sm:$0xff] }
 0x5ce   :  { %11382 = vmatprep.subr.bf16.mxu0 %v4077_v24  ;;  %v4083_v54 = vld [vmem:[#allocation3 + $0x48] sm:$0xff]  ;;  %v4082_v40 = vld [vmem:[#allocation3 + $0x40] sm:$0xff]  ;;  %v4085_v48 = vld [vmem:[#allocation3 + $0x58] sm:$0xff] }
 0x5cf   :  { %v4084_v57 = vld [vmem:[#allocation3 + $0x50] sm:$0xff]  ;;  %v4087_v61 = vld [vmem:[#allocation3 + $0x68] sm:$0xff]  ;;  %v4086_v4 = vld [vmem:[#allocation3 + $0x60] sm:$0xff] }
 0x5d0   :  { %v4089_v6 = vld [vmem:[#allocation3 + $0x78] sm:$0xff]  ;;  %v4088_v7 = vld [vmem:[#allocation3 + $0x70] sm:$0xff]  ;;  %v4091_v19 = vld [vmem:[#allocation3 + $0x88] sm:$0xff] }
 0x5d1   :  { %11384 = vmatpush1.bf16.msra.mxu0 %v4076_v58  ;;  %v4090_v56 = vld [vmem:[#allocation3 + $0x80] sm:$0xff]  ;;  %v4093_v45 = vld [vmem:[#allocation3 + $0x98] sm:$0xff]  ;;  %v4092_v8 = vld [vmem:[#allocation3 + $0x90] sm:$0xff] }
 0x5d2   :  { %11386 = vmatprep.subr.bf16.mxu0 %v4079_v46  ;;  %v4095_v14 = vld [vmem:[#allocation3 + $0xa8] sm:$0xff]  ;;  %v4094_v37 = vld [vmem:[#allocation3 + $0xa0] sm:$0xff]  ;;  %v4097_v13 = vld [vmem:[#allocation3 + $0xb8] sm:$0xff] }
 0x5d3   :  { %v4096_v23 = vld [vmem:[#allocation3 + $0xb0] sm:$0xff]  ;;  %v4099_v18 = vld [vmem:[#allocation3 + $0xc8] sm:$0xff]  ;;  %v4098_v10 = vld [vmem:[#allocation3 + $0xc0] sm:$0xff] }
 0x5d4   :  { %v4101_v60 = vld [vmem:[#allocation3 + $0xd8] sm:$0xff]  ;;  %v4100_v21 = vld [vmem:[#allocation3 + $0xd0] sm:$0xff]  ;;  %v4103_v25 = vld [vmem:[#allocation3 + $0xe8] sm:$0xff] }
 0x5d5   :  { %11388 = vmatpush1.bf16.msra.mxu0 %v4078_v44  ;;  %v4102_v47 = vld [vmem:[#allocation3 + $0xe0] sm:$0xff]  ;;  %v4105_v3 = vld [vmem:[#allocation3 + $0xf8] sm:$0xff]  ;;  %v4104_v26 = vld [vmem:[#allocation3 + $0xf0] sm:$0xff] }
 0x5d6   :  { %11390 = vmatprep.subr.bf16.mxu0 %v4081_v52  ;;  %v4107_v11 = vld [vmem:[#allocation3 + $0x108] sm:$0xff]  ;;  %v4106_v0 = vld [vmem:[#allocation3 + $0x100] sm:$0xff]  ;;  %v4109_v31 = vld [vmem:[#allocation3 + $0x118] sm:$0xff] }
 0x5d7   :  { %v4816_v32 = vld [vmem:[#allocation21] sm:$0xff]  ;;  %v4111_v51 = vld [vmem:[#allocation3 + $0x128] sm:$0xff]  ;;  %v4110_v46 = vld [vmem:[#allocation3 + $0x120] sm:$0xff] }
 0x5d8   :  { %v4820_v59 = vld [vmem:[#allocation21 + $0x20] sm:$0xff]  ;;  %v4821_v44 = vld [vmem:[#allocation21 + $0x28] sm:$0xff]  ;;  %v14606_v52 = vld [vmem:[#allocation13] sm:$0xff] }
 0x5d9   :  { %11392 = vmatpush1.bf16.msra.mxu0 %v4080_v53  ;;  %v13429_v33 = vcombine.high %v4816_v32, %v4820_v59  ;;  %v13430_v34 = vcombine.low %v4816_v32, %v4820_v59  ;;  %v4108_v41 = vld [vmem:[#allocation3 + $0x110] sm:$0xff]  ;;  %v4113_v39 = vld [vmem:[#allocation3 + $0x138] sm:$0xff]  ;;  %v4151_v27 = vld [vmem:[#allocation3 + $0x268] sm:$0xff] }
 0x5da   :  { %11394 = vmatprep.subr.bf16.mxu0 %v4083_v54  ;;  %v4824_v22 = vld [vmem:[#allocation21 + $0x40] sm:$0xff]  ;;  %v4115_v54 = vld [vmem:[#allocation3 + $0x148] sm:$0xff] }
 0x5db   :  { %11634 = vmatprep.subr.bf16.mxu1 %v13429_v33  ;;  %v4828_v12 = vld [vmem:[#allocation21 + $0x60] sm:$0xff]  ;;  %v4122_v33 = vld [vmem:[#allocation3 + $0x180] sm:$0xff]  ;;  %v4183_v2 = vld [vmem:[#allocation3 + $0x368] sm:$0xff] }
 0x5dc   :  { %11636 = vmatpush1.bf16.msra.mxu1 %v13430_v34  ;;  %v13431_v24 = vcombine.high %v4824_v22, %v4828_v12  ;;  %v13432_v58 = vcombine.low %v4824_v22, %v4828_v12  ;;  %v4112_v53 = vld [vmem:[#allocation3 + $0x130] sm:$0xff]  ;;  %v4125_v34 = vld [vmem:[#allocation3 + $0x198] sm:$0xff]  ;;  %v4126_v22 = vld [vmem:[#allocation3 + $0x1a0] sm:$0xff] }
 0x5dd   :  { %11396 = vmatpush1.bf16.msra.mxu0 %v4082_v40  ;;  %v4825_v40 = vld [vmem:[#allocation21 + $0x48] sm:$0xff] }
 0x5de   :  { %11398 = vmatprep.subr.bf16.mxu0 %v4085_v48  ;;  %11638 = vmatprep.subr.bf16.mxu1 %v13431_v24  ;;  %v4829_v48 = vld [vmem:[#allocation21 + $0x68] sm:$0xff]  ;;  %v4131_v24 = vld [vmem:[#allocation3 + $0x1c8] sm:$0xff] }
 0x5df   :  { %v4129_v12 = vld [vmem:[#allocation3 + $0x1b8] sm:$0xff] }
 0x5e0   :  { %11640 = vmatpush1.bf16.msra.mxu1 %v13432_v58  ;;  %v4130_v58 = vld [vmem:[#allocation3 + $0x1c0] sm:$0xff]  ;;  %v4149_v38 = vld [vmem:[#allocation3 + $0x258] sm:$0xff] }
 0x5e1   :  { %11400 = vmatpush1.bf16.msra.mxu0 %v4084_v57  ;;  %v13435_v57 = vcombine.high %v4825_v40, %v4829_v48  ;;  %v4181_v20 = vld [vmem:[#allocation3 + $0x358] sm:$0xff] }
 0x5e2   :  { %11402 = vmatprep.subr.bf16.mxu0 %v4087_v61  ;;  %v13436_v61 = vcombine.low %v4825_v40, %v4829_v48  ;;  %v4140_v40 = vld [vmem:[#allocation3 + $0x210] sm:$0xff]  ;;  %v4143_v48 = vld [vmem:[#allocation3 + $0x228] sm:$0xff] }
 0x5e3   :  { %10277 = vmatmul.mubr.msk.f32.vlgmr.msra.gmra.mrb[8].mxu1 %vm4864_vm1, %v14606_v52  ;;  %v14642_v29 = vld [vmem:[#allocation22 + $0x1] ss:$2 sm:$0xff] }
 0x5e4   :  { %5003 = vmatprep.mubr.f32.mxu1 %v13891_v1 }
 0x5e5   :  { %11404 = vmatpush1.bf16.msra.mxu0 %v4086_v4  ;;  %v4114_v4 = vld [vmem:[#allocation3 + $0x140] sm:$0xff] }
 0x5e6   :  { %11406 = vmatprep.subr.bf16.mxu0 %v4089_v6  ;;  %v4117_v6 = vld [vmem:[#allocation3 + $0x158] sm:$0xff] }
 0x5e9   :  { %11408 = vmatpush1.bf16.msra.mxu0 %v4088_v7  ;;  %v4818_v7 = vld [vmem:[#allocation21 + $0x10] sm:$0xff] }
 0x5ea   :  { %11410 = vmatprep.subr.bf16.mxu0 %v4091_v19  ;;  %v4822_v19 = vld [vmem:[#allocation21 + $0x30] sm:$0xff] }
 0x5ed   :  { %11412 = vmatpush1.bf16.msra.mxu0 %v4090_v56  ;;  %v13437_v56 = vcombine.high %v4818_v7, %v4822_v19 }
 0x5ee   :  { %11414 = vmatprep.subr.bf16.mxu0 %v4093_v45  ;;  %v13438_v45 = vcombine.low %v4818_v7, %v4822_v19  ;;  %v4146_v7 = vld [vmem:[#allocation3 + $0x240] sm:$0xff]  ;;  %v4153_v19 = vld [vmem:[#allocation3 + $0x278] sm:$0xff] }
 0x5f1   :  { %11416 = vmatpush1.bf16.msra.mxu0 %v4092_v8  ;;  %v4116_v8 = vld [vmem:[#allocation3 + $0x150] sm:$0xff] }
 0x5f2   :  { %11418 = vmatprep.subr.bf16.mxu0 %v4095_v14  ;;  %v4119_v14 = vld [vmem:[#allocation3 + $0x168] sm:$0xff] }
 0x5f5   :  { %11420 = vmatpush1.bf16.msra.mxu0 %v4094_v37  ;;  %v4826_v37 = vld [vmem:[#allocation21 + $0x50] sm:$0xff] }
 0x5f6   :  { %11422 = vmatprep.subr.bf16.mxu0 %v4097_v13  ;;  %v4830_v13 = vld [vmem:[#allocation21 + $0x70] sm:$0xff] }
 0x5f9   :  { %11424 = vmatpush1.bf16.msra.mxu0 %v4096_v23  ;;  %v13439_v23 = vcombine.high %v4826_v37, %v4830_v13 }
 0x5fa   :  { %11426 = vmatprep.subr.bf16.mxu0 %v4099_v18  ;;  %v13440_v18 = vcombine.low %v4826_v37, %v4830_v13  ;;  %v4156_v37 = vld [vmem:[#allocation3 + $0x290] sm:$0xff]  ;;  %v4159_v13 = vld [vmem:[#allocation3 + $0x2a8] sm:$0xff] }
 0x5fd   :  { %11428 = vmatpush1.bf16.msra.mxu0 %v4098_v10  ;;  %v4118_v10 = vld [vmem:[#allocation3 + $0x160] sm:$0xff] }
 0x5fe   :  { %11430 = vmatprep.subr.bf16.mxu0 %v4101_v60  ;;  %v4121_v60 = vld [vmem:[#allocation3 + $0x178] sm:$0xff] }
 0x601   :  { %11432 = vmatpush1.bf16.msra.mxu0 %v4100_v21  ;;  %v4819_v21 = vld [vmem:[#allocation21 + $0x18] sm:$0xff] }
 0x602   :  { %11434 = vmatprep.subr.bf16.mxu0 %v4103_v25  ;;  %v4823_v25 = vld [vmem:[#allocation21 + $0x38] sm:$0xff] }
 0x605   :  { %11436 = vmatpush1.bf16.msra.mxu0 %v4102_v47  ;;  %v13441_v47 = vcombine.high %v4819_v21, %v4823_v25 }
 0x606   :  { %11438 = vmatprep.subr.bf16.mxu0 %v4105_v3  ;;  %v13442_v3 = vcombine.low %v4819_v21, %v4823_v25  ;;  %v4162_v21 = vld [vmem:[#allocation3 + $0x2c0] sm:$0xff]  ;;  %v4165_v25 = vld [vmem:[#allocation3 + $0x2d8] sm:$0xff] }
 0x609   :  { %11440 = vmatpush1.bf16.msra.mxu0 %v4104_v26  ;;  %v4120_v26 = vld [vmem:[#allocation3 + $0x170] sm:$0xff] }
 0x60a   :  { %11442 = vmatprep.subr.bf16.mxu0 %v4107_v11  ;;  %v4123_v11 = vld [vmem:[#allocation3 + $0x188] sm:$0xff] }
 0x60c   :  { %4523 = vmatmul.mubr.f32.vlgmr.msra.gmra.mrb[10].mxu0 %v4063_v16  ;;  %v4817_v16 = vld [vmem:[#allocation21 + $0x8] sm:$0xff] }
 0x60d   :  { %11444 = vmatpush1.bf16.msra.mxu0 %v4106_v0  ;;  %4593 = vmatprep.mubr.f32.mxu0 %v4066_v42  ;;  %v13433_v62 = vcombine.high %v4817_v16, %v4821_v44  ;;  %v13434_v42 = vcombine.low %v4817_v16, %v4821_v44  ;;  %v4827_v0 = vld [vmem:[#allocation21 + $0x58] sm:$0xff]  ;;  %v4134_v44 = vld [vmem:[#allocation3 + $0x1e0] sm:$0xff] }
 0x60e   :  { %11446 = vmatprep.subr.bf16.mxu0 %v4109_v31  ;;  %v4831_v31 = vld [vmem:[#allocation21 + $0x78] sm:$0xff] }
 0x60f   :  { %11642 = vmatprep.subr.bf16.mxu1 %v13433_v62  ;;  %v13443_v32 = vcombine.high %v4827_v0, %v4831_v31  ;;  %v13444_v59 = vcombine.low %v4827_v0, %v4831_v31  ;;  %v4135_v16 = vld [vmem:[#allocation3 + $0x1e8] sm:$0xff]  ;;  %v4137_v62 = vld [vmem:[#allocation3 + $0x1f8] sm:$0xff]  ;;  %v4168_v0 = vld [vmem:[#allocation3 + $0x2f0] sm:$0xff] }
 0x610   :  { %11644 = vmatpush1.bf16.msra.mxu1 %v13434_v42  ;;  %v4136_v42 = vld [vmem:[#allocation3 + $0x1f0] sm:$0xff]  ;;  %v4171_v31 = vld [vmem:[#allocation3 + $0x308] sm:$0xff] }
 0x611   :  { %11448 = vmatpush1.bf16.msra.mxu0 %v4108_v41  ;;  %11646 = vmatprep.subr.bf16.mxu1 %v13435_v57  ;;  %v4124_v41 = vld [vmem:[#allocation3 + $0x190] sm:$0xff]  ;;  %v4142_v57 = vld [vmem:[#allocation3 + $0x220] sm:$0xff] }
 0x612   :  { %11450 = vmatprep.subr.bf16.mxu0 %v4111_v51  ;;  %v4127_v51 = vld [vmem:[#allocation3 + $0x1a8] sm:$0xff] }
 0x614   :  { %11648 = vmatpush1.bf16.msra.mxu1 %v13436_v61  ;;  %v4145_v61 = vld [vmem:[#allocation3 + $0x238] sm:$0xff] }
 0x615   :  { %11452 = vmatpush1.bf16.msra.mxu0 %v4110_v46  ;;  %11650 = vmatprep.subr.bf16.mxu1 %v13437_v56  ;;  %v4133_v46 = vld [vmem:[#allocation3 + $0x1d8] sm:$0xff]  ;;  %v4152_v56 = vld [vmem:[#allocation3 + $0x270] sm:$0xff] }
 0x616   :  { %11454 = vmatprep.subr.bf16.mxu0 %v4113_v39  ;;  %v4132_v39 = vld [vmem:[#allocation3 + $0x1d0] sm:$0xff] }
 0x617   :  { %10278 = vmatmul.mubr.msk.f32.vlgmr.msra.gmra.mrb[10].mxu1 %vm4864_vm1, %v14606_v52 }
 0x618   :  { %11652 = vmatpush1.bf16.msra.mxu1 %v13438_v45  ;;  %5074 = vmatprep.mubr.f32.mxu1 %v13891_v1  ;;  %v4155_v45 = vld [vmem:[#allocation3 + $0x288] sm:$0xff] }
 0x619   :  { %11456 = vmatpush1.bf16.msra.mxu0 %v4112_v53  ;;  %11654 = vmatprep.subr.bf16.mxu1 %v13439_v23  ;;  %v4138_v53 = vld [vmem:[#allocation3 + $0x200] sm:$0xff] }
 0x61a   :  { %11458 = vmatprep.subr.bf16.mxu0 %v4115_v54  ;;  %v4141_v54 = vld [vmem:[#allocation3 + $0x218] sm:$0xff]  ;;  %v4158_v23 = vld [vmem:[#allocation3 + $0x2a0] sm:$0xff] }
 0x61c   :  { %11656 = vmatpush1.bf16.msra.mxu1 %v13440_v18  ;;  %v4161_v18 = vld [vmem:[#allocation3 + $0x2b8] sm:$0xff] }
 0x61d   :  { %11460 = vmatpush1.bf16.msra.mxu0 %v4114_v4  ;;  %11658 = vmatprep.subr.bf16.mxu1 %v13441_v47  ;;  %v4144_v4 = vld [vmem:[#allocation3 + $0x230] sm:$0xff] }
 0x61e   :  { %11462 = vmatprep.subr.bf16.mxu0 %v4117_v6  ;;  %v4147_v6 = vld [vmem:[#allocation3 + $0x248] sm:$0xff]  ;;  %v4164_v47 = vld [vmem:[#allocation3 + $0x2d0] sm:$0xff] }
 0x61f   :  { %10279 = vmatmul.mubr.msk.f32.vlgmr.msra.gmra.mrb[12].mxu1 %vm4864_vm1, %v14606_v52 }
 0x620   :  { %11660 = vmatpush1.bf16.msra.mxu1 %v13442_v3  ;;  %5145 = vmatprep.mubr.f32.mxu1 %v13891_v1  ;;  %v4128_v1 = vld [vmem:[#allocation3 + $0x1b0] sm:$0xff]  ;;  %v4167_v3 = vld [vmem:[#allocation3 + $0x2e8] sm:$0xff] }
 0x621   :  { %11464 = vmatpush1.bf16.msra.mxu0 %v4116_v8  ;;  %11662 = vmatprep.subr.bf16.mxu1 %v13443_v32  ;;  %v4154_v8 = vld [vmem:[#allocation3 + $0x280] sm:$0xff] }
 0x622   :  { %11466 = vmatprep.subr.bf16.mxu0 %v4119_v14  ;;  %v4157_v14 = vld [vmem:[#allocation3 + $0x298] sm:$0xff]  ;;  %v4170_v32 = vld [vmem:[#allocation3 + $0x300] sm:$0xff] }
 0x624   :  { %11664 = vmatpush1.bf16.msra.mxu1 %v13444_v59  ;;  %v4173_v59 = vld [vmem:[#allocation3 + $0x318] sm:$0xff] }
 0x625   :  { %11468 = vmatpush1.bf16.msra.mxu0 %v4118_v10  ;;  %v4160_v10 = vld [vmem:[#allocation3 + $0x2b0] sm:$0xff] }
 0x626   :  { %11470 = vmatprep.subr.bf16.mxu0 %v4121_v60  ;;  %v4163_v60 = vld [vmem:[#allocation3 + $0x2c8] sm:$0xff] }
 0x627   :  { %10280 = vmatmul.mubr.msk.f32.vlgmr.msra.gmra.mrb[14].mxu1 %vm4864_vm1, %v14606_v52  ;;  %v4139_v52 = vld [vmem:[#allocation3 + $0x208] sm:$0xff] }
 0x629   :  { %11472 = vmatpush1.bf16.msra.mxu0 %v4120_v26  ;;  %v4166_v26 = vld [vmem:[#allocation3 + $0x2e0] sm:$0xff] }
 0x62a   :  { %11474 = vmatprep.subr.bf16.mxu0 %v4123_v11  ;;  %v4169_v11 = vld [vmem:[#allocation3 + $0x2f8] sm:$0xff] }
 0x62d   :  { %11476 = vmatpush1.bf16.msra.mxu0 %v4122_v33  ;;  %v4172_v33 = vld [vmem:[#allocation3 + $0x310] sm:$0xff] }
 0x62e   :  { %11478 = vmatprep.subr.bf16.mxu0 %v4125_v34  ;;  %v4175_v34 = vld [vmem:[#allocation3 + $0x328] sm:$0xff] }
 0x631   :  { %11480 = vmatpush1.bf16.msra.mxu0 %v4124_v41  ;;  %v4174_v41 = vld [vmem:[#allocation3 + $0x320] sm:$0xff] }
 0x632   :  { %11482 = vmatprep.subr.bf16.mxu0 %v4127_v51  ;;  %v4177_v51 = vld [vmem:[#allocation3 + $0x338] sm:$0xff] }
 0x635   :  { %11484 = vmatpush1.bf16.msra.mxu0 %v4126_v22  ;;  %v4176_v22 = vld [vmem:[#allocation3 + $0x330] sm:$0xff] }
 0x636   :  { %11486 = vmatprep.subr.bf16.mxu0 %v4129_v12  ;;  %v4179_v12 = vld [vmem:[#allocation3 + $0x348] sm:$0xff] }
 0x639   :  { %11488 = vmatpush1.bf16.msra.mxu0 %v4128_v1  ;;  %v4178_v1 = vld [vmem:[#allocation3 + $0x340] sm:$0xff] }
 0x63a   :  { %11490 = vmatprep.subr.bf16.mxu0 %v4131_v24  ;;  %v4185_v24 = vld [vmem:[#allocation3 + $0x378] sm:$0xff] }
 0x63d   :  { %11492 = vmatpush1.bf16.msra.mxu0 %v4130_v58  ;;  %v4184_v58 = vld [vmem:[#allocation3 + $0x370] sm:$0xff] }
 0x63e   :  { %11494 = vmatprep.subr.bf16.mxu0 %v4133_v46  ;;  %v4187_v46 = vld [vmem:[#allocation3 + $0x388] sm:$0xff] }
 0x641   :  { %11496 = vmatpush1.bf16.msra.mxu0 %v4132_v39  ;;  %v4186_v39 = vld [vmem:[#allocation3 + $0x380] sm:$0xff] }
 0x642   :  { %11498 = vmatprep.subr.bf16.mxu0 %v4135_v16  ;;  %v4189_v16 = vld [vmem:[#allocation3 + $0x398] sm:$0xff] }
 0x645   :  { %11500 = vmatpush1.bf16.msra.mxu0 %v4134_v44  ;;  %v4188_v44 = vld [vmem:[#allocation3 + $0x390] sm:$0xff] }
 0x646   :  { %11502 = vmatprep.subr.bf16.mxu0 %v4137_v62  ;;  %v4191_v62 = vld [vmem:[#allocation3 + $0x3a8] sm:$0xff] }
 0x649   :  { %11504 = vmatpush1.bf16.msra.mxu0 %v4136_v42  ;;  %v4190_v42 = vld [vmem:[#allocation3 + $0x3a0] sm:$0xff] }
 0x64a   :  { %11506 = vmatprep.subr.bf16.mxu0 %v4139_v52  ;;  %v4193_v52 = vld [vmem:[#allocation3 + $0x3b8] sm:$0xff] }
 0x64c   :  { %4594 = vmatmul.mubr.f32.vlgmr.msra.gmra.mrb[10].mxu0 %v4065_v9  ;;  %v4148_v9 = vld [vmem:[#allocation3 + $0x250] sm:$0xff] }
 0x64d   :  { %11508 = vmatpush1.bf16.msra.mxu0 %v4138_v53  ;;  %4664 = vmatprep.mubr.f32.mxu0 %v4068_v28  ;;  %v4150_v28 = vld [vmem:[#allocation3 + $0x260] sm:$0xff]  ;;  %v4192_v53 = vld [vmem:[#allocation3 + $0x3b0] sm:$0xff] }
 0x64e   :  { %11510 = vmatprep.subr.bf16.mxu0 %v4141_v54  ;;  %v4195_v54 = vld [vmem:[#allocation3 + $0x3c8] sm:$0xff] }
 0x651   :  { %11512 = vmatpush1.bf16.msra.mxu0 %v4140_v40  ;;  %v4194_v40 = vld [vmem:[#allocation3 + $0x3c0] sm:$0xff] }
 0x652   :  { %11514 = vmatprep.subr.bf16.mxu0 %v4143_v48  ;;  %v4197_v48 = vld [vmem:[#allocation3 + $0x3d8] sm:$0xff] }
 0x655   :  { %11516 = vmatpush1.bf16.msra.mxu0 %v4142_v57  ;;  %v4196_v57 = vld [vmem:[#allocation3 + $0x3d0] sm:$0xff] }
 0x656   :  { %11518 = vmatprep.subr.bf16.mxu0 %v4145_v61  ;;  %v4199_v61 = vld [vmem:[#allocation3 + $0x3e8] sm:$0xff] }
 0x659   :  { %11520 = vmatpush1.bf16.msra.mxu0 %v4144_v4  ;;  %v4198_v4 = vld [vmem:[#allocation3 + $0x3e0] sm:$0xff] }
 0x65a   :  { %11522 = vmatprep.subr.bf16.mxu0 %v4147_v6  ;;  %v4201_v6 = vld [vmem:[#allocation3 + $0x3f8] sm:$0xff] }
 0x65d   :  { %11524 = vmatpush1.bf16.msra.mxu0 %v4146_v7  ;;  %v4200_v7 = vld [vmem:[#allocation3 + $0x3f0] sm:$0xff] }
 0x65e   :  { %11526 = vmatprep.subr.bf16.mxu0 %v4149_v38 }
 0x661   :  { %11528 = vmatpush1.bf16.msra.mxu0 %v4148_v9 }
 0x662   :  { %11530 = vmatprep.subr.bf16.mxu0 %v4151_v27 }
 0x665   :  { %11532 = vmatpush1.bf16.msra.mxu0 %v4150_v28 }
 0x666   :  { %11534 = vmatprep.subr.bf16.mxu0 %v4153_v19 }
 0x669   :  { %11536 = vmatpush1.bf16.msra.mxu0 %v4152_v56 }
 0x66a   :  { %11538 = vmatprep.subr.bf16.mxu0 %v4155_v45 }
 0x66d   :  { %11540 = vmatpush1.bf16.msra.mxu0 %v4154_v8 }
 0x66e   :  { %11542 = vmatprep.subr.bf16.mxu0 %v4157_v14  ;;  %v14640_v14 = vld [vmem:[#allocation22] ss:$2 sm:$0xff] }
 0x671   :  { %11544 = vmatpush1.bf16.msra.mxu0 %v4156_v37 }
 0x672   :  { %11546 = vmatprep.subr.bf16.mxu0 %v4159_v13 }
 0x675   :  { %11548 = vmatpush1.bf16.msra.mxu0 %v4158_v23 }
 0x676   :  { %11550 = vmatprep.subr.bf16.mxu0 %v4161_v18 }
 0x679   :  { %11552 = vmatpush1.bf16.msra.mxu0 %v4160_v10 }
 0x67a   :  { %11554 = vmatprep.subr.bf16.mxu0 %v4163_v60 }
 0x67d   :  { %11556 = vmatpush1.bf16.msra.mxu0 %v4162_v21 }
 0x67e   :  { %11558 = vmatprep.subr.bf16.mxu0 %v4165_v25  ;;  %v5325_v25 = vrot.slane %v14640_v14, %v14354_v17 }
 0x681   :  { %11560 = vmatpush1.bf16.msra.mxu0 %v4164_v47  ;;  %v5376_v47 = vrot.slane %v14642_v29, %v14354_v17 }
 0x682   :  { %11562 = vmatprep.subr.bf16.mxu0 %v4167_v3 }
 0x685   :  { %11564 = vmatpush1.bf16.msra.mxu0 %v4166_v26 }
 0x686   :  { %11566 = vmatprep.subr.bf16.mxu0 %v4169_v11  ;;  %v5329_v11 = vrot.slane %v14640_v14, %v14367_v35 }
 0x689   :  { %11568 = vmatpush1.bf16.msra.mxu0 %v4168_v0  ;;  %v5380_v0 = vrot.slane %v14642_v29, %v14367_v35 }
 0x68a   :  { %11570 = vmatprep.subr.bf16.mxu0 %v4171_v31 }
 0x68c   :  { %4665 = vmatmul.mubr.f32.vlgmr.msra.gmra.mrb[10].mxu0 %v4067_v15  ;;  %v4180_v15 = vld [vmem:[#allocation3 + $0x350] sm:$0xff] }
 0x68d   :  { %11572 = vmatpush1.bf16.msra.mxu0 %v4170_v32  ;;  %4735 = vmatprep.mubr.f32.mxu0 %v4070_v36  ;;  %v4182_v36 = vld [vmem:[#allocation3 + $0x360] sm:$0xff] }
 0x68e   :  { %11574 = vmatprep.subr.bf16.mxu0 %v4173_v59 }
 0x691   :  { %11576 = vmatpush1.bf16.msra.mxu0 %v4172_v33 }
 0x692   :  { %11578 = vmatprep.subr.bf16.mxu0 %v4175_v34 }
 0x695   :  { %11580 = vmatpush1.bf16.msra.mxu0 %v4174_v41 }
 0x696   :  { %11582 = vmatprep.subr.bf16.mxu0 %v4177_v51 }
 0x699   :  { %11584 = vmatpush1.bf16.msra.mxu0 %v4176_v22 }
 0x69a   :  { %11586 = vmatprep.subr.bf16.mxu0 %v4179_v12 }
 0x69d   :  { %11588 = vmatpush1.bf16.msra.mxu0 %v4178_v1 }
 0x69e   :  { %11590 = vmatprep.subr.bf16.mxu0 %v4181_v20 }
 0x6a1   :  { %11592 = vmatpush1.bf16.msra.mxu0 %v4180_v15 }
 0x6a2   :  { %11594 = vmatprep.subr.bf16.mxu0 %v4183_v2 }
 0x6a5   :  { %11596 = vmatpush1.bf16.msra.mxu0 %v4182_v36 }
 0x6a6   :  { %11598 = vmatprep.subr.bf16.mxu0 %v4185_v24 }
 0x6a9   :  { %11600 = vmatpush1.bf16.msra.mxu0 %v4184_v58 }
 0x6aa   :  { %11602 = vmatprep.subr.bf16.mxu0 %v4187_v46 }
 0x6ad   :  { %11604 = vmatpush1.bf16.msra.mxu0 %v4186_v39 }
 0x6ae   :  { %11606 = vmatprep.subr.bf16.mxu0 %v4189_v16 }
 0x6b1   :  { %11608 = vmatpush1.bf16.msra.mxu0 %v4188_v44 }
 0x6b2   :  { %11610 = vmatprep.subr.bf16.mxu0 %v4191_v62 }
 0x6b5   :  { %11612 = vmatpush1.bf16.msra.mxu0 %v4190_v42 }
 0x6b6   :  { %11614 = vmatprep.subr.bf16.mxu0 %v4193_v52  ;;  %v14629_v38 = vpop.f32.mrb[8].mxu1 }
 0x6b7   :  { %v5152_v9 = vrot.slane %v14629_v38, 4  ;;  %v5208_v27 = vmul.f32 %v14629_v38, %v14629_v38  ;;  %v14634_v28 = vpop.f32.mrb[9].mxu1 }
 0x6b8   :  { %v5158_v19 = vrot.slane %v14634_v28, 4  ;;  %v5209_v56 = vmul.f32 %v14634_v28, %v14634_v28 }
 0x6b9   :  { %11616 = vmatpush1.bf16.msra.mxu0 %v4192_v53  ;;  %v5153_v45 = vadd.f32 %v5152_v9, %v14629_v38  ;;  %v5216_v8 = vrot.slane %v5208_v27, 4 }
 0x6ba   :  { %11618 = vmatprep.subr.bf16.mxu0 %v4195_v54  ;;  %v5222_v37 = vrot.slane %v5209_v56, 4 }
 0x6bb   :  { %v5154_v13 = vrot.slane %v5153_v45, 2  ;;  %v5217_v23 = vadd.f32 %v5216_v8, %v5208_v27 }
 0x6bc   :  { %v5223_v10 = vadd.f32 %v5222_v37, %v5209_v56 }
 0x6bd   :  { %11620 = vmatpush1.bf16.msra.mxu0 %v4194_v40  ;;  %v5155_v60 = vadd.f32 %v5154_v13, %v5153_v45  ;;  %v5218_v21 = vrot.slane %v5217_v23, 2 }
 0x6be   :  { %11622 = vmatprep.subr.bf16.mxu0 %v4197_v48  ;;  %v5224_v26 = vrot.slane %v5223_v10, 2 }
 0x6bf   :  { %v5156_v32 = vrot.slane %v5155_v60, 1  ;;  %v5219_v59 = vadd.f32 %v5218_v21, %v5217_v23 }
 0x6c0   :  { %v5225_v22 = vadd.f32 %v5224_v26, %v5223_v10 }
 0x6c1   :  { %11624 = vmatpush1.bf16.msra.mxu0 %v4196_v57  ;;  %v5157_v20 = vadd.f32 %v5156_v32, %v5155_v60  ;;  %v5220_v15 = vrot.slane %v5219_v59, 1 }
 0x6c2   :  { %11626 = vmatprep.subr.bf16.mxu0 %v4199_v61  ;;  %v5226_v58 = vrot.slane %v5225_v22, 1 }
 0x6c3   :  { %v14665_v16 = vmul.f32 0.125, %v5157_v20  ;;  %v5221_v44 = vadd.f32 %v5220_v15, %v5219_v59 }
 0x6c4   :  { %v5227_v53 = vadd.f32 %v5226_v58, %v5225_v22 }
 0x6c5   :  { %11628 = vmatpush1.bf16.msra.mxu0 %v4198_v4  ;;  %v5264_v48 = vmul.f32 0.125, %v5221_v44  ;;  %v5272_v57 = vmul.f32 %v14665_v16, %v14665_v16  ;;  %v5333_v4 = vrot.slane %v14640_v14, %v14432_v63 }
 0x6c6   :  { %11630 = vmatprep.subr.bf16.mxu0 %v4201_v6  ;;  %v5288_v6 = vsub.f32 %v14629_v38, %v14665_v16 }
 0x6c7   :  { %v5280_v56 = vsub.f32 %v5264_v48, %v5272_v57 }
 0x6c9   :  { %11632 = vmatpush1.bf16.msra.mxu0 %v4200_v7  ;;  %v5265_v7 = vmul.f32 0.125, %v5227_v53  ;;  %v5296_v60 = vadd.f32 1e-05, %v5280_v56 }
 0x6cb   :  { %13521 = vrsqrt.f32 %v5296_v60 }
 0x6cc   :  { %4736 = vmatmul.mubr.f32.vlgmr.msra.gmra.mrb[10].mxu0 %v4069_v30  ;;  %v5159_v30 = vadd.f32 %v5158_v19, %v14634_v28 }
 0x6ce   :  { %v5160_v18 = vrot.slane %v5159_v30, 2 }
 0x6d0   :  { %v5161_v3 = vadd.f32 %v5160_v18, %v5159_v30 }
 0x6d2   :  { %v5162_v51 = vrot.slane %v5161_v3, 1 }
 0x6d4   :  { %v5163_v24 = vadd.f32 %v5162_v51, %v5161_v3 }
 0x6d6   :  { %v14667_v52 = vmul.f32 0.125, %v5163_v24 }
 0x6d8   :  { %v5273_v9 = vmul.f32 %v14667_v52, %v14667_v52 }
 0x6da   :  { %v5281_v13 = vsub.f32 %v5265_v7, %v5273_v9 }
 0x6dc   :  { %v5297_v32 = vadd.f32 1e-05, %v5281_v13 }
 0x6de   :  { %13523 = vrsqrt.f32 %v5297_v32 }
 0x6ea   :  { %v14653_v31 = vpop.f32.mrb[10].mxu1 }
 0x6eb   :  { %v5164_v33 = vrot.slane %v14653_v31, 4  ;;  %v5210_v34 = vmul.f32 %v14653_v31, %v14653_v31  ;;  %v14658_v41 = vpop.f32.mrb[11].mxu1 }
 0x6ec   :  { %v5170_v12 = vrot.slane %v14658_v41, 4  ;;  %v5211_v1 = vmul.f32 %v14658_v41, %v14658_v41 }
 0x6ed   :  { %v5165_v2 = vadd.f32 %v5164_v33, %v14653_v31  ;;  %v5228_v36 = vrot.slane %v5210_v34, 4 }
 0x6ee   :  { %v5171_v46 = vadd.f32 %v5170_v12, %v14658_v41  ;;  %v5234_v39 = vrot.slane %v5211_v1, 4 }
 0x6ef   :  { %v5166_v62 = vrot.slane %v5165_v2, 2  ;;  %v5229_v42 = vadd.f32 %v5228_v36, %v5210_v34 }
 0x6f0   :  { %v5172_v54 = vrot.slane %v5171_v46, 2  ;;  %v5235_v40 = vadd.f32 %v5234_v39, %v5211_v1 }
 0x6f1   :  { %v5167_v61 = vadd.f32 %v5166_v62, %v5165_v2  ;;  %v5230_v27 = vrot.slane %v5229_v42, 2  ;;  %v5289_v2 = vsub.f32 %v14634_v28, %v14667_v52 }
 0x6f2   :  { %v14677_v19 = vpop.f32.mrb[12].mxu1  ;;  %v5173_v8 = vadd.f32 %v5172_v54, %v5171_v46  ;;  %v5236_v30 = vrot.slane %v5235_v40, 2 }
 0x6f3   :  { %v5168_v45 = vrot.slane %v5167_v61, 1  ;;  %v14679_v37 = vpop.f32.mrb[13].mxu1  ;;  %v5231_v23 = vadd.f32 %v5230_v27, %v5229_v42  ;;  %v5176_v18 = vrot.slane %v14677_v19, 4  ;;  %v5212_v10 = vmul.f32 %v14677_v19, %v14677_v19 }
 0x6f4   :  { %v5174_v3 = vrot.slane %v5173_v8, 1  ;;  %v5237_v26 = vadd.f32 %v5236_v30, %v5235_v40  ;;  %v5182_v62 = vrot.slane %v14679_v37, 4  ;;  %v5213_v52 = vmul.f32 %v14679_v37, %v14679_v37 }
 0x6f5   :  { %v5169_v21 = vadd.f32 %v5168_v45, %v5167_v61  ;;  %v5232_v59 = vrot.slane %v5231_v23, 1  ;;  %v5177_v33 = vadd.f32 %v5176_v18, %v14677_v19  ;;  %v5240_v34 = vrot.slane %v5212_v10, 4 }
 0x6f6   :  { %v5175_v22 = vadd.f32 %v5174_v3, %v5173_v8  ;;  %v5238_v12 = vrot.slane %v5237_v26, 1  ;;  %v5183_v7 = vadd.f32 %v5182_v62, %v14679_v37  ;;  %v5246_v27 = vrot.slane %v5213_v52, 4 }
 0x6f7   :  { %v14685_v51 = vmul.f32 0.125, %v5169_v21  ;;  %v5233_v1 = vadd.f32 %v5232_v59, %v5231_v23  ;;  %v5178_v20 = vrot.slane %v5177_v33, 2  ;;  %v5241_v15 = vadd.f32 %v5240_v34, %v5212_v10  ;;  %v13522_v59 = vpop.eup %13521 }
 0x6f8   :  { %v14691_v24 = vmul.f32 0.125, %v5175_v22  ;;  %v5239_v58 = vadd.f32 %v5238_v12, %v5237_v26  ;;  %v5184_v23 = vrot.slane %v5183_v7, 2  ;;  %v5247_v10 = vadd.f32 %v5246_v27, %v5213_v52  ;;  %v13524_v12 = vpop.eup %13523 }
 0x6f9   :  { %v5274_v36 = vmul.f32 %v14685_v51, %v14685_v51  ;;  %v5266_v46 = vmul.f32 0.125, %v5233_v1  ;;  %v5179_v39 = vadd.f32 %v5178_v20, %v5177_v33  ;;  %v5242_v44 = vrot.slane %v5241_v15, 2 }
 0x6fa   :  { %v14694_v42 = vpop.f32.mrb[14].mxu1  ;;  %v5290_v53 = vsub.f32 %v14653_v31, %v14685_v51  ;;  %v5267_v54 = vmul.f32 0.125, %v5239_v58  ;;  %v5275_v28 = vmul.f32 %v14691_v24, %v14691_v24  ;;  %v5185_v32 = vadd.f32 %v5184_v23, %v5183_v7 }
 0x6fb   :  { %v14702_v40 = vpop.f32.mrb[15].mxu1  ;;  %v5282_v48 = vsub.f32 %v5266_v46, %v5274_v36  ;;  %v5180_v57 = vrot.slane %v5179_v39, 1  ;;  %v5243_v61 = vadd.f32 %v5242_v44, %v5241_v15  ;;  %v5188_v56 = vrot.slane %v14694_v42, 4 }
 0x6fc   :  { %v5283_v9 = vsub.f32 %v5267_v54, %v5275_v28  ;;  %v5214_v45 = vmul.f32 %v14694_v42, %v14694_v42  ;;  %v5248_v33 = vrot.slane %v5247_v10, 2  ;;  %v5312_v1 = vmul.f32 %v13522_v59, %v5288_v6 }
 0x6fd   :  { %v5298_v8 = vadd.f32 1e-05, %v5282_v48  ;;  %v5181_v30 = vadd.f32 %v5180_v57, %v5179_v39  ;;  %v5244_v13 = vrot.slane %v5243_v61, 1  ;;  %v5189_v60 = vadd.f32 %v5188_v56, %v14694_v42 }
 0x6fe   :  { %v5299_v18 = vadd.f32 1e-05, %v5283_v9  ;;  %v5252_v21 = vrot.slane %v5214_v45, 4  ;;  %v5291_v20 = vsub.f32 %v14658_v41, %v14691_v24  ;;  %v5313_v58 = vmul.f32 %v13524_v12, %v5289_v2 }
 0x6ff   :  { %13525 = vrsqrt.f32 %v5298_v8  ;;  %v14709_v3 = vmul.f32 0.125, %v5181_v30  ;;  %v5245_v26 = vadd.f32 %v5244_v13, %v5243_v61  ;;  %v5190_v34 = vrot.slane %v5189_v60, 2 }
 0x700   :  { %13527 = vrsqrt.f32 %v5299_v18  ;;  %v5253_v22 = vadd.f32 %v5252_v21, %v5214_v45  ;;  %v5186_v46 = vrot.slane %v5185_v32, 1  ;;  %v5249_v39 = vadd.f32 %v5248_v33, %v5247_v10 }
 0x701   :  { %v5268_v15 = vmul.f32 0.125, %v5245_v26  ;;  %v5276_v36 = vmul.f32 %v14709_v3, %v14709_v3  ;;  %v5191_v44 = vadd.f32 %v5190_v34, %v5189_v60  ;;  %v5362_v62 = vmul.f32 %v5325_v25, %v5312_v1 }
 0x702   :  { %v5254_v28 = vrot.slane %v5253_v22, 2  ;;  %v5194_v38 = vrot.slane %v14702_v40, 4  ;;  %v5363_v41 = vmul.f32 %v5329_v11, %v5313_v58  ;;  %v5187_v16 = vadd.f32 %v5186_v46, %v5185_v32 }
 0x703   :  { %v5284_v54 = vsub.f32 %v5268_v15, %v5276_v36  ;;  %v5250_v6 = vrot.slane %v5249_v39, 1  ;;  %v5192_v24 = vrot.slane %v5191_v44, 1  ;;  %v5413_v2 = vadd.f32 %v5376_v47, %v5362_v62 }
 0x704   :  { %v5255_v48 = vadd.f32 %v5254_v28, %v5253_v22  ;;  %v5195_v57 = vadd.f32 %v5194_v38, %v14702_v40  ;;  %v5414_v25 = vadd.f32 %v5380_v0, %v5363_v41  ;;  %v5205_v61 = vmul.f32 0.125, %v5187_v16 }
 0x705   :  { %v5300_v52 = vadd.f32 1e-05, %v5284_v54  ;;  %v5251_v7 = vadd.f32 %v5250_v6, %v5249_v39  ;;  %v5193_v9 = vadd.f32 %v5192_v24, %v5191_v44  ;;  %v14732_v27 = vmax.f32 %v5413_v2, 0.0 }
 0x706   :  { %v5256_v11 = vrot.slane %v5255_v48, 1  ;;  %v5196_v56 = vrot.slane %v5195_v57, 2  ;;  %v14734_v45 = vmax.f32 %v5414_v25, 0.0  ;;  %v5337_v47 = vrot.slane %v14640_v14, %v14435_v5 }
 0x707   :  { %13529 = vrsqrt.f32 %v5300_v52  ;;  %v5269_v8 = vmul.f32 0.125, %v5251_v7  ;;  %v5277_v30 = vmul.f32 %v5205_v61, %v5205_v61  ;;  %v5206_v23 = vmul.f32 0.125, %v5193_v9 }
 0x708   :  { %v5257_v18 = vadd.f32 %v5256_v11, %v5255_v48  ;;  %v5197_v10 = vadd.f32 %v5196_v56, %v5195_v57  ;;  %v5215_v0 = vmul.f32 %v14702_v40, %v14702_v40  ;;  %v5384_v26 = vrot.slane %v14642_v29, %v14432_v63 }
 0x709   :  { %v13526_v13 = vpop.eup %13525  ;;  %v5285_v32 = vsub.f32 %v5269_v8, %v5277_v30  ;;  %v5388_v33 = vrot.slane %v14642_v29, %v14435_v5  ;;  %v5278_v22 = vmul.f32 %v5206_v23, %v5206_v23  ;;  %v5292_v31 = vsub.f32 %v14677_v19, %v14709_v3 }
 0x70a   :  { %v13528_v60 = vpop.eup %13527  ;;  %v5314_v21 = vmul.f32 %v13526_v13, %v5290_v53  ;;  %v5270_v34 = vmul.f32 0.125, %v5257_v18  ;;  %v5198_v15 = vrot.slane %v5197_v10, 1  ;;  %v5258_v36 = vrot.slane %v5215_v0, 4 }
 0x70b   :  { %v5315_v59 = vmul.f32 %v13528_v60, %v5291_v20  ;;  %v5301_v1 = vadd.f32 1e-05, %v5285_v32  ;;  %v5341_v54 = vrot.slane %v14640_v14, %v14454_v49  ;;  %v5392_v19 = vrot.slane %v14642_v29, %v14454_v49 }
 0x70c   :  { %v5364_v12 = vmul.f32 %v5333_v4, %v5314_v21  ;;  %v5286_v51 = vsub.f32 %v5270_v34, %v5278_v22  ;;  %v5199_v20 = vadd.f32 %v5198_v15, %v5197_v10  ;;  %v5259_v46 = vadd.f32 %v5258_v36, %v5215_v0 }
 0x70d   :  { %v5365_v58 = vmul.f32 %v5337_v47, %v5315_v59  ;;  %13531 = vrsqrt.f32 %v5301_v1  ;;  %v5293_v2 = vsub.f32 %v14679_v37, %v5205_v61  ;;  %v5345_v25 = vrot.slane %v14640_v14, %v14460_v55 }
 0x70e   :  { %v5415_v53 = vadd.f32 %v5384_v26, %v5364_v12  ;;  %v5302_v44 = vadd.f32 1e-05, %v5286_v51  ;;  %v5260_v4 = vrot.slane %v5259_v46, 2  ;;  %v5207_v3 = vmul.f32 0.125, %v5199_v20 }
 0x70f   :  { %v5416_v39 = vadd.f32 %v5388_v33, %v5365_v58  ;;  %v5294_v11 = vsub.f32 %v14694_v42, %v5206_v23  ;;  %v5396_v8 = vrot.slane %v14642_v29, %v14460_v55  ;;  %v5349_v30 = vrot.slane %v14640_v14, %v14374_v43 }
 0x710   :  { %v14752_v62 = vmax.f32 %v5415_v53, 0.0  ;;  %13533 = vrsqrt.f32 %v5302_v44  ;;  %v5261_v16 = vadd.f32 %v5260_v4, %v5259_v46  ;;  %v5279_v57 = vmul.f32 %v5207_v3, %v5207_v3 }
 0x711   :  { %v13530_v28 = vpop.eup %13529  ;;  %v14756_v38 = vmax.f32 %v5416_v39, 0.0  ;;  %v5400_v10 = vrot.slane %v14642_v29, %v14374_v43  ;;  %v5295_v32 = vsub.f32 %v14702_v40, %v5207_v3  ;;  %v5353_v59 = vrot.slane %v14640_v14, %v14381_v50 }
 0x712   :  { %v5316_v41 = vmul.f32 %v13530_v28, %v5292_v31  ;;  %v5262_v24 = vrot.slane %v5261_v16, 1  ;;  %v5404_v22 = vrot.slane %v14642_v29, %v14381_v50 }
 0x714   :  { %v5366_v6 = vmul.f32 %v5341_v54, %v5316_v41  ;;  %v5263_v48 = vadd.f32 %v5262_v24, %v5261_v16 }
 0x716   :  { %v5417_v52 = vadd.f32 %v5392_v19, %v5366_v6  ;;  %v5271_v56 = vmul.f32 0.125, %v5263_v48 }
 0x717   :  { %v13532_v7 = vpop.eup %13531 }
 0x718   :  { %v14763_v9 = vmax.f32 %v5417_v52, 0.0  ;;  %v5317_v47 = vmul.f32 %v13532_v7, %v5293_v2  ;;  %v5287_v37 = vsub.f32 %v5271_v56, %v5279_v57 }
 0x71a   :  { %v13534_v61 = vpop.eup %13533  ;;  %v5367_v13 = vmul.f32 %v5345_v25, %v5317_v47  ;;  %v5303_v0 = vadd.f32 1e-05, %v5287_v37 }
 0x71b   :  { %v5318_v18 = vmul.f32 %v13534_v61, %v5294_v11 }
 0x71c   :  { %v5418_v60 = vadd.f32 %v5396_v8, %v5367_v13  ;;  %13535 = vrsqrt.f32 %v5303_v0 }
 0x71d   :  { %v5368_v21 = vmul.f32 %v5349_v30, %v5318_v18 }
 0x71e   :  { %v14772_v42 = vmax.f32 %v5418_v60, 0.0  ;;  %v4784_v60 = vld [vmem:[#allocation19] ss:$2 sm:$0x3] }
 0x71f   :  { %v5419_v23 = vadd.f32 %v5400_v10, %v5368_v21  ;;  %v4799_v21 = vld [vmem:[#allocation19 + $0x1] ss:$2 sm:$0x3] }
 0x721   :  { %v14774_v26 = vmax.f32 %v5419_v23, 0.0 }
 0x726   :  { %v13536_v33 = vpop.eup %13535 }
 0x727   :  { %v5319_v34 = vmul.f32 %v13536_v33, %v5295_v32  ;;  %v4789_v32 = vrot.slane %v4784_v60, %v14354_v17 }
 0x729   :  { %v5369_v12 = vmul.f32 %v5353_v59, %v5319_v34  ;;  %v4793_v34 = vrot.slane %v4784_v60, %v14367_v35 }
 0x72b   :  { %v5420_v1 = vadd.f32 %v5404_v22, %v5369_v12 }
 0x72d   :  { %v14781_v15 = vmax.f32 %v5420_v1, 0.0  ;;  %v4804_v1 = vrot.slane %v4799_v21, %v14354_v17 }
 0x79f   :  { %v4737_v36 = vpop.f32.mrb[10].mxu0 }
 0x7a0   :  { %v4742_v58 = vrot.slane %v4737_v36, 4  ;;  %v4756_v31 = vmul.f32 %v4737_v36, %v4737_v36  ;;  %v4739_v51 = vpop.f32.mrb[11].mxu0 }
 0x7a1   :  { %v4748_v53 = vrot.slane %v4739_v51, 4  ;;  %v4757_v20 = vmul.f32 %v4739_v51, %v4739_v51 }
 0x7a2   :  { %v4743_v46 = vadd.f32 %v4742_v58, %v4737_v36  ;;  %v4758_v40 = vrot.slane %v4756_v31, 4 }
 0x7a3   :  { %v4749_v39 = vadd.f32 %v4748_v53, %v4739_v51  ;;  %v4764_v44 = vrot.slane %v4757_v20, 4 }
 0x7a4   :  { %v4744_v14 = vrot.slane %v4743_v46, 2  ;;  %v4759_v54 = vadd.f32 %v4758_v40, %v4756_v31  ;;  %v4808_v31 = vrot.slane %v4799_v21, %v14367_v35 }
 0x7a5   :  { %v4750_v4 = vrot.slane %v4749_v39, 2  ;;  %v4765_v28 = vadd.f32 %v4764_v44, %v4757_v20 }
 0x7a6   :  { %v4745_v41 = vadd.f32 %v4744_v14, %v4743_v46  ;;  %v4760_v29 = vrot.slane %v4759_v54, 2 }
 0x7a7   :  { %v4751_v19 = vadd.f32 %v4750_v4, %v4749_v39  ;;  %v4766_v3 = vrot.slane %v4765_v28, 2 }
 0x7a8   :  { %v4746_v16 = vrot.slane %v4745_v41, 1  ;;  %v4761_v6 = vadd.f32 %v4760_v29, %v4759_v54 }
 0x7a9   :  { %v4752_v24 = vrot.slane %v4751_v19, 1  ;;  %v4767_v2 = vadd.f32 %v4766_v3, %v4765_v28 }
 0x7aa   :  { %v4747_v52 = vadd.f32 %v4746_v16, %v4745_v41  ;;  %v4762_v48 = vrot.slane %v4761_v6, 1 }
 0x7ab   :  { %v4753_v57 = vadd.f32 %v4752_v24, %v4751_v19  ;;  %v4768_v25 = vrot.slane %v4767_v2, 1 }
 0x7ac   :  { %v4754_v7 = vmul.f32 0.125, %v4747_v52  ;;  %v4763_v11 = vadd.f32 %v4762_v48, %v4761_v6 }
 0x7ad   :  { %v4755_v56 = vmul.f32 0.125, %v4753_v57  ;;  %v4769_v47 = vadd.f32 %v4768_v25, %v4767_v2 }
 0x7ae   :  { %v4770_v8 = vmul.f32 0.125, %v4763_v11  ;;  %v4772_v30 = vmul.f32 %v4754_v7, %v4754_v7  ;;  %v4776_v23 = vsub.f32 %v4737_v36, %v4754_v7 }
 0x7af   :  { %v4771_v37 = vmul.f32 0.125, %v4769_v47  ;;  %v4773_v61 = vmul.f32 %v4755_v56, %v4755_v56  ;;  %v4777_v33 = vsub.f32 %v4739_v51, %v4755_v56 }
 0x7b0   :  { %v4774_v13 = vsub.f32 %v4770_v8, %v4772_v30 }
 0x7b1   :  { %v4775_v18 = vsub.f32 %v4771_v37, %v4773_v61 }
 0x7b2   :  { %v4778_v10 = vadd.f32 1e-05, %v4774_v13 }
 0x7b3   :  { %v4779_v0 = vadd.f32 1e-05, %v4775_v18 }
 0x7b4   :  { %13537 = vrsqrt.f32 %v4778_v10 }
 0x7b5   :  { %13539 = vrsqrt.f32 %v4779_v0 }
 0x7be   :  { %v13538_v59 = vpop.eup %13537 }
 0x7bf   :  { %v13540_v22 = vpop.eup %13539  ;;  %v4782_v12 = vmul.f32 %v13538_v59, %v4776_v23 }
 0x7c0   :  { %v4783_v58 = vmul.f32 %v13540_v22, %v4777_v33 }
 0x7c1   :  { %v4796_v53 = vmul.f32 %v4789_v32, %v4782_v12 }
 0x7c2   :  { %v4797_v20 = vmul.f32 %v4793_v34, %v4783_v58 }
 0x7c3   :  { %v14787_v46 = vadd.f32 %v4804_v1, %v4796_v53 }
 0x7c4   :  { %v14789_v40 = vadd.f32 %v4808_v31, %v4797_v20 }
 0x7c5   :  { %15267 = vst [vmem:[#allocation63_spill] sm:$0xff] %v14787_v46 }
 0x7c6   :  { %13865 = dma.done.wait [#allocation9 + $0x2], 65536 }
 0x7c7   :  { %13866 = vsyncadd [#allocation9 + $0x2], 4294901760  ;;  %7031 = vmatprep.mubr.f32.mxu1 %v14734_v45  ;;  %7315 = vmatprep.mubr.f32.mxu0 %v14734_v45  ;;  %v5432_v51 = vld [vmem:[#allocation4 + $0x8] sm:$0xff]  ;;  %v5434_v44 = vld [vmem:[#allocation4 + $0x18] sm:$0xff] }
 0x7c8   :  { %v5431_v14 = vld [vmem:[#allocation4] sm:$0xff]  ;;  %11666 = vmatprep.subr.bf16.mxu1 %v5432_v51  ;;  %11922 = vmatprep.subr.bf16.mxu0 %v5434_v44  ;;  %v5433_v54 = vld [vmem:[#allocation4 + $0x10] sm:$0xff]  ;;  %v5440_v4 = vld [vmem:[#allocation4 + $0x48] sm:$0xff] }
 0x7c9   :  { %v5442_v28 = vld [vmem:[#allocation4 + $0x58] sm:$0xff]  ;;  %11668 = vmatpush1.bf16.msra.mxu1 %v5431_v14  ;;  %11924 = vmatpush1.bf16.msra.mxu0 %v5433_v54  ;;  %v5439_v41 = vld [vmem:[#allocation4 + $0x40] sm:$0xff]  ;;  %v5441_v29 = vld [vmem:[#allocation4 + $0x50] sm:$0xff] }
 0x7ca   :  { %11670 = vmatprep.subr.bf16.mxu1 %v5440_v4  ;;  %11926 = vmatprep.subr.bf16.mxu0 %v5442_v28  ;;  %v5448_v19 = vld [vmem:[#allocation4 + $0x88] sm:$0xff]  ;;  %v5450_v3 = vld [vmem:[#allocation4 + $0x98] sm:$0xff]  ;;  %v5447_v16 = vld [vmem:[#allocation4 + $0x80] sm:$0xff] }
 0x7cb   :  { %v5449_v6 = vld [vmem:[#allocation4 + $0x90] sm:$0xff]  ;;  %v5456_v24 = vld [vmem:[#allocation4 + $0xc8] sm:$0xff]  ;;  %v5458_v2 = vld [vmem:[#allocation4 + $0xd8] sm:$0xff] }
 0x7cc   :  { %v5455_v52 = vld [vmem:[#allocation4 + $0xc0] sm:$0xff]  ;;  %v5457_v48 = vld [vmem:[#allocation4 + $0xd0] sm:$0xff]  ;;  %v5464_v57 = vld [vmem:[#allocation4 + $0x108] sm:$0xff] }
 0x7cd   :  { %11672 = vmatpush1.bf16.msra.mxu1 %v5439_v41  ;;  %11928 = vmatpush1.bf16.msra.mxu0 %v5441_v29  ;;  %v5466_v25 = vld [vmem:[#allocation4 + $0x118] sm:$0xff]  ;;  %v5463_v7 = vld [vmem:[#allocation4 + $0x100] sm:$0xff]  ;;  %v5465_v11 = vld [vmem:[#allocation4 + $0x110] sm:$0xff] }
 0x7ce   :  { %11674 = vmatprep.subr.bf16.mxu1 %v5448_v19  ;;  %11930 = vmatprep.subr.bf16.mxu0 %v5450_v3  ;;  %v5472_v56 = vld [vmem:[#allocation4 + $0x148] sm:$0xff]  ;;  %v5474_v47 = vld [vmem:[#allocation4 + $0x158] sm:$0xff]  ;;  %v5471_v8 = vld [vmem:[#allocation4 + $0x140] sm:$0xff] }
 0x7cf   :  { %v5473_v30 = vld [vmem:[#allocation4 + $0x150] sm:$0xff]  ;;  %v5480_v37 = vld [vmem:[#allocation4 + $0x188] sm:$0xff]  ;;  %v5482_v61 = vld [vmem:[#allocation4 + $0x198] sm:$0xff] }
 0x7d0   :  { %v5479_v13 = vld [vmem:[#allocation4 + $0x180] sm:$0xff]  ;;  %v5481_v18 = vld [vmem:[#allocation4 + $0x190] sm:$0xff]  ;;  %v5488_v10 = vld [vmem:[#allocation4 + $0x1c8] sm:$0xff] }
 0x7d1   :  { %11676 = vmatpush1.bf16.msra.mxu1 %v5447_v16  ;;  %11932 = vmatpush1.bf16.msra.mxu0 %v5449_v6  ;;  %v5490_v0 = vld [vmem:[#allocation4 + $0x1d8] sm:$0xff]  ;;  %v5487_v60 = vld [vmem:[#allocation4 + $0x1c0] sm:$0xff]  ;;  %v5489_v21 = vld [vmem:[#allocation4 + $0x1d0] sm:$0xff] }
 0x7d2   :  { %11678 = vmatprep.subr.bf16.mxu1 %v5456_v24  ;;  %11934 = vmatprep.subr.bf16.mxu0 %v5458_v2  ;;  %v5496_v23 = vld [vmem:[#allocation4 + $0x208] sm:$0xff]  ;;  %v5498_v32 = vld [vmem:[#allocation4 + $0x218] sm:$0xff]  ;;  %v5495_v59 = vld [vmem:[#allocation4 + $0x200] sm:$0xff] }
 0x7d3   :  { %v5497_v33 = vld [vmem:[#allocation4 + $0x210] sm:$0xff]  ;;  %v5504_v34 = vld [vmem:[#allocation4 + $0x248] sm:$0xff]  ;;  %v5506_v22 = vld [vmem:[#allocation4 + $0x258] sm:$0xff] }
 0x7d4   :  { %v5503_v12 = vld [vmem:[#allocation4 + $0x240] sm:$0xff]  ;;  %v5505_v1 = vld [vmem:[#allocation4 + $0x250] sm:$0xff]  ;;  %v5512_v58 = vld [vmem:[#allocation4 + $0x288] sm:$0xff] }
 0x7d5   :  { %11680 = vmatpush1.bf16.msra.mxu1 %v5455_v52  ;;  %11936 = vmatpush1.bf16.msra.mxu0 %v5457_v48  ;;  %v5514_v31 = vld [vmem:[#allocation4 + $0x298] sm:$0xff]  ;;  %v5511_v53 = vld [vmem:[#allocation4 + $0x280] sm:$0xff]  ;;  %v5513_v20 = vld [vmem:[#allocation4 + $0x290] sm:$0xff] }
 0x7d6   :  { %11682 = vmatprep.subr.bf16.mxu1 %v5464_v57  ;;  %11938 = vmatprep.subr.bf16.mxu0 %v5466_v25  ;;  %v5520_v51 = vld [vmem:[#allocation4 + $0x2c8] sm:$0xff]  ;;  %v5522_v44 = vld [vmem:[#allocation4 + $0x2d8] sm:$0xff]  ;;  %v5519_v14 = vld [vmem:[#allocation4 + $0x2c0] sm:$0xff] }
 0x7d7   :  { %v5521_v54 = vld [vmem:[#allocation4 + $0x2d0] sm:$0xff]  ;;  %v5528_v4 = vld [vmem:[#allocation4 + $0x308] sm:$0xff]  ;;  %v5530_v28 = vld [vmem:[#allocation4 + $0x318] sm:$0xff] }
 0x7d8   :  { %v5527_v41 = vld [vmem:[#allocation4 + $0x300] sm:$0xff]  ;;  %v5529_v29 = vld [vmem:[#allocation4 + $0x310] sm:$0xff]  ;;  %v5536_v19 = vld [vmem:[#allocation4 + $0x348] sm:$0xff] }
 0x7d9   :  { %11684 = vmatpush1.bf16.msra.mxu1 %v5463_v7  ;;  %11940 = vmatpush1.bf16.msra.mxu0 %v5465_v11  ;;  %v5538_v3 = vld [vmem:[#allocation4 + $0x358] sm:$0xff]  ;;  %v5535_v16 = vld [vmem:[#allocation4 + $0x340] sm:$0xff]  ;;  %v5537_v6 = vld [vmem:[#allocation4 + $0x350] sm:$0xff] }
 0x7da   :  { %11686 = vmatprep.subr.bf16.mxu1 %v5472_v56  ;;  %11942 = vmatprep.subr.bf16.mxu0 %v5474_v47  ;;  %v5544_v24 = vld [vmem:[#allocation4 + $0x388] sm:$0xff]  ;;  %v5546_v2 = vld [vmem:[#allocation4 + $0x398] sm:$0xff]  ;;  %v5543_v52 = vld [vmem:[#allocation4 + $0x380] sm:$0xff] }
 0x7db   :  { %v5545_v48 = vld [vmem:[#allocation4 + $0x390] sm:$0xff]  ;;  %v5552_v57 = vld [vmem:[#allocation4 + $0x3c8] sm:$0xff]  ;;  %v5554_v25 = vld [vmem:[#allocation4 + $0x3d8] sm:$0xff] }
 0x7dc   :  { %v5551_v7 = vld [vmem:[#allocation4 + $0x3c0] sm:$0xff]  ;;  %v5553_v11 = vld [vmem:[#allocation4 + $0x3d0] sm:$0xff]  ;;  %v5560_v56 = vld [vmem:[#allocation4 + $0x408] sm:$0xff] }
 0x7dd   :  { %11688 = vmatpush1.bf16.msra.mxu1 %v5471_v8  ;;  %11944 = vmatpush1.bf16.msra.mxu0 %v5473_v30  ;;  %v5562_v47 = vld [vmem:[#allocation4 + $0x418] sm:$0xff]  ;;  %v5559_v8 = vld [vmem:[#allocation4 + $0x400] sm:$0xff]  ;;  %v5561_v30 = vld [vmem:[#allocation4 + $0x410] sm:$0xff] }
 0x7de   :  { %11690 = vmatprep.subr.bf16.mxu1 %v5480_v37  ;;  %11946 = vmatprep.subr.bf16.mxu0 %v5482_v61  ;;  %v5568_v37 = vld [vmem:[#allocation4 + $0x448] sm:$0xff]  ;;  %v5570_v61 = vld [vmem:[#allocation4 + $0x458] sm:$0xff] }
 0x7e1   :  { %11692 = vmatpush1.bf16.msra.mxu1 %v5479_v13  ;;  %11948 = vmatpush1.bf16.msra.mxu0 %v5481_v18  ;;  %v5567_v13 = vld [vmem:[#allocation4 + $0x440] sm:$0xff]  ;;  %v5569_v18 = vld [vmem:[#allocation4 + $0x450] sm:$0xff] }
 0x7e2   :  { %11694 = vmatprep.subr.bf16.mxu1 %v5488_v10  ;;  %11950 = vmatprep.subr.bf16.mxu0 %v5490_v0  ;;  %v5576_v10 = vld [vmem:[#allocation4 + $0x488] sm:$0xff]  ;;  %v5578_v0 = vld [vmem:[#allocation4 + $0x498] sm:$0xff] }
 0x7e5   :  { %11696 = vmatpush1.bf16.msra.mxu1 %v5487_v60  ;;  %11952 = vmatpush1.bf16.msra.mxu0 %v5489_v21  ;;  %v5575_v60 = vld [vmem:[#allocation4 + $0x480] sm:$0xff]  ;;  %v5577_v21 = vld [vmem:[#allocation4 + $0x490] sm:$0xff] }
 0x7e6   :  { %11698 = vmatprep.subr.bf16.mxu1 %v5496_v23  ;;  %11954 = vmatprep.subr.bf16.mxu0 %v5498_v32  ;;  %v5584_v23 = vld [vmem:[#allocation4 + $0x4c8] sm:$0xff]  ;;  %v5586_v32 = vld [vmem:[#allocation4 + $0x4d8] sm:$0xff] }
 0x7e9   :  { %11700 = vmatpush1.bf16.msra.mxu1 %v5495_v59  ;;  %11956 = vmatpush1.bf16.msra.mxu0 %v5497_v33  ;;  %v5583_v59 = vld [vmem:[#allocation4 + $0x4c0] sm:$0xff]  ;;  %v5585_v33 = vld [vmem:[#allocation4 + $0x4d0] sm:$0xff] }
 0x7ea   :  { %11702 = vmatprep.subr.bf16.mxu1 %v5504_v34  ;;  %11958 = vmatprep.subr.bf16.mxu0 %v5506_v22  ;;  %v5592_v34 = vld [vmem:[#allocation4 + $0x508] sm:$0xff]  ;;  %v5594_v22 = vld [vmem:[#allocation4 + $0x518] sm:$0xff] }
 0x7ed   :  { %11704 = vmatpush1.bf16.msra.mxu1 %v5503_v12  ;;  %11960 = vmatpush1.bf16.msra.mxu0 %v5505_v1  ;;  %v5591_v12 = vld [vmem:[#allocation4 + $0x500] sm:$0xff]  ;;  %v5593_v1 = vld [vmem:[#allocation4 + $0x510] sm:$0xff] }
 0x7ee   :  { %11706 = vmatprep.subr.bf16.mxu1 %v5512_v58  ;;  %11962 = vmatprep.subr.bf16.mxu0 %v5514_v31  ;;  %v5600_v58 = vld [vmem:[#allocation4 + $0x548] sm:$0xff]  ;;  %v5602_v31 = vld [vmem:[#allocation4 + $0x558] sm:$0xff] }
 0x7f1   :  { %11708 = vmatpush1.bf16.msra.mxu1 %v5511_v53  ;;  %11964 = vmatpush1.bf16.msra.mxu0 %v5513_v20  ;;  %v5599_v53 = vld [vmem:[#allocation4 + $0x540] sm:$0xff]  ;;  %v5601_v20 = vld [vmem:[#allocation4 + $0x550] sm:$0xff] }
 0x7f2   :  { %11710 = vmatprep.subr.bf16.mxu1 %v5520_v51  ;;  %11966 = vmatprep.subr.bf16.mxu0 %v5522_v44  ;;  %v5608_v51 = vld [vmem:[#allocation4 + $0x588] sm:$0xff]  ;;  %v5610_v44 = vld [vmem:[#allocation4 + $0x598] sm:$0xff] }
 0x7f5   :  { %11712 = vmatpush1.bf16.msra.mxu1 %v5519_v14  ;;  %11968 = vmatpush1.bf16.msra.mxu0 %v5521_v54  ;;  %v5607_v14 = vld [vmem:[#allocation4 + $0x580] sm:$0xff]  ;;  %v5609_v54 = vld [vmem:[#allocation4 + $0x590] sm:$0xff] }
 0x7f6   :  { %11714 = vmatprep.subr.bf16.mxu1 %v5528_v4  ;;  %11970 = vmatprep.subr.bf16.mxu0 %v5530_v28  ;;  %v5616_v4 = vld [vmem:[#allocation4 + $0x5c8] sm:$0xff]  ;;  %v5618_v28 = vld [vmem:[#allocation4 + $0x5d8] sm:$0xff] }
 0x7f9   :  { %11716 = vmatpush1.bf16.msra.mxu1 %v5527_v41  ;;  %11972 = vmatpush1.bf16.msra.mxu0 %v5529_v29  ;;  %v5615_v41 = vld [vmem:[#allocation4 + $0x5c0] sm:$0xff]  ;;  %v5617_v29 = vld [vmem:[#allocation4 + $0x5d0] sm:$0xff] }
 0x7fa   :  { %11718 = vmatprep.subr.bf16.mxu1 %v5536_v19  ;;  %11974 = vmatprep.subr.bf16.mxu0 %v5538_v3  ;;  %v5624_v19 = vld [vmem:[#allocation4 + $0x608] sm:$0xff]  ;;  %v5626_v3 = vld [vmem:[#allocation4 + $0x618] sm:$0xff] }
 0x7fd   :  { %11720 = vmatpush1.bf16.msra.mxu1 %v5535_v16  ;;  %11976 = vmatpush1.bf16.msra.mxu0 %v5537_v6  ;;  %v5623_v16 = vld [vmem:[#allocation4 + $0x600] sm:$0xff]  ;;  %v5625_v6 = vld [vmem:[#allocation4 + $0x610] sm:$0xff] }
 0x7fe   :  { %11722 = vmatprep.subr.bf16.mxu1 %v5544_v24  ;;  %11978 = vmatprep.subr.bf16.mxu0 %v5546_v2  ;;  %v5632_v24 = vld [vmem:[#allocation4 + $0x648] sm:$0xff]  ;;  %v5634_v2 = vld [vmem:[#allocation4 + $0x658] sm:$0xff] }
 0x801   :  { %11724 = vmatpush1.bf16.msra.mxu1 %v5543_v52  ;;  %11980 = vmatpush1.bf16.msra.mxu0 %v5545_v48  ;;  %v5631_v52 = vld [vmem:[#allocation4 + $0x640] sm:$0xff]  ;;  %v5633_v48 = vld [vmem:[#allocation4 + $0x650] sm:$0xff] }
 0x802   :  { %11726 = vmatprep.subr.bf16.mxu1 %v5552_v57  ;;  %11982 = vmatprep.subr.bf16.mxu0 %v5554_v25  ;;  %v5640_v57 = vld [vmem:[#allocation4 + $0x688] sm:$0xff]  ;;  %v5642_v25 = vld [vmem:[#allocation4 + $0x698] sm:$0xff] }
 0x805   :  { %11728 = vmatpush1.bf16.msra.mxu1 %v5551_v7  ;;  %11984 = vmatpush1.bf16.msra.mxu0 %v5553_v11  ;;  %v5639_v7 = vld [vmem:[#allocation4 + $0x680] sm:$0xff]  ;;  %v5641_v11 = vld [vmem:[#allocation4 + $0x690] sm:$0xff] }
 0x806   :  { %11730 = vmatprep.subr.bf16.mxu1 %v5560_v56  ;;  %11986 = vmatprep.subr.bf16.mxu0 %v5562_v47  ;;  %v5648_v56 = vld [vmem:[#allocation4 + $0x6c8] sm:$0xff]  ;;  %v5650_v47 = vld [vmem:[#allocation4 + $0x6d8] sm:$0xff] }
 0x808   :  { %7032 = vmatmul.mubr.f32.vlgmr.msra.gmra.mrb[16].mxu1 %v14732_v27  ;;  %7316 = vmatmul.mubr.f32.vlgmr.msra.gmra.mrb[12].mxu0 %v14732_v27 }
 0x809   :  { %11732 = vmatpush1.bf16.msra.mxu1 %v5559_v8  ;;  %11988 = vmatpush1.bf16.msra.mxu0 %v5561_v30  ;;  %v5647_v8 = vld [vmem:[#allocation4 + $0x6c0] sm:$0xff]  ;;  %v5649_v30 = vld [vmem:[#allocation4 + $0x6d0] sm:$0xff] }
 0x80a   :  { %11734 = vmatprep.subr.bf16.mxu1 %v5568_v37  ;;  %11990 = vmatprep.subr.bf16.mxu0 %v5570_v61  ;;  %v5656_v37 = vld [vmem:[#allocation4 + $0x708] sm:$0xff]  ;;  %v5658_v61 = vld [vmem:[#allocation4 + $0x718] sm:$0xff] }
 0x80b   :  { %7102 = vmatprep.mubr.f32.mxu1 %v14756_v38  ;;  %7386 = vmatprep.mubr.f32.mxu0 %v14756_v38 }
 0x80d   :  { %11736 = vmatpush1.bf16.msra.mxu1 %v5567_v13  ;;  %11992 = vmatpush1.bf16.msra.mxu0 %v5569_v18  ;;  %v5655_v13 = vld [vmem:[#allocation4 + $0x700] sm:$0xff]  ;;  %v5657_v18 = vld [vmem:[#allocation4 + $0x710] sm:$0xff] }
 0x80e   :  { %11738 = vmatprep.subr.bf16.mxu1 %v5576_v10  ;;  %11994 = vmatprep.subr.bf16.mxu0 %v5578_v0  ;;  %v5664_v10 = vld [vmem:[#allocation4 + $0x748] sm:$0xff]  ;;  %v5666_v0 = vld [vmem:[#allocation4 + $0x758] sm:$0xff] }
 0x811   :  { %11740 = vmatpush1.bf16.msra.mxu1 %v5575_v60  ;;  %11996 = vmatpush1.bf16.msra.mxu0 %v5577_v21  ;;  %v5663_v60 = vld [vmem:[#allocation4 + $0x740] sm:$0xff]  ;;  %v5665_v21 = vld [vmem:[#allocation4 + $0x750] sm:$0xff] }
 0x812   :  { %11742 = vmatprep.subr.bf16.mxu1 %v5584_v23  ;;  %11998 = vmatprep.subr.bf16.mxu0 %v5586_v32  ;;  %v5672_v23 = vld [vmem:[#allocation4 + $0x788] sm:$0xff]  ;;  %v5674_v32 = vld [vmem:[#allocation4 + $0x798] sm:$0xff] }
 0x815   :  { %11744 = vmatpush1.bf16.msra.mxu1 %v5583_v59  ;;  %12000 = vmatpush1.bf16.msra.mxu0 %v5585_v33  ;;  %v5671_v59 = vld [vmem:[#allocation4 + $0x780] sm:$0xff]  ;;  %v5673_v33 = vld [vmem:[#allocation4 + $0x790] sm:$0xff] }
 0x816   :  { %11746 = vmatprep.subr.bf16.mxu1 %v5592_v34  ;;  %12002 = vmatprep.subr.bf16.mxu0 %v5594_v22  ;;  %v5680_v34 = vld [vmem:[#allocation4 + $0x7c8] sm:$0xff]  ;;  %v5682_v22 = vld [vmem:[#allocation4 + $0x7d8] sm:$0xff] }
 0x819   :  { %11748 = vmatpush1.bf16.msra.mxu1 %v5591_v12  ;;  %12004 = vmatpush1.bf16.msra.mxu0 %v5593_v1  ;;  %v5679_v12 = vld [vmem:[#allocation4 + $0x7c0] sm:$0xff]  ;;  %v5681_v1 = vld [vmem:[#allocation4 + $0x7d0] sm:$0xff] }
 0x81a   :  { %11750 = vmatprep.subr.bf16.mxu1 %v5600_v58  ;;  %12006 = vmatprep.subr.bf16.mxu0 %v5602_v31  ;;  %v5688_v58 = vld [vmem:[#allocation4 + $0x808] sm:$0xff]  ;;  %v5690_v31 = vld [vmem:[#allocation4 + $0x818] sm:$0xff] }
 0x81d   :  { %11752 = vmatpush1.bf16.msra.mxu1 %v5599_v53  ;;  %12008 = vmatpush1.bf16.msra.mxu0 %v5601_v20  ;;  %v5687_v53 = vld [vmem:[#allocation4 + $0x800] sm:$0xff]  ;;  %v5689_v20 = vld [vmem:[#allocation4 + $0x810] sm:$0xff] }
 0x81e   :  { %11754 = vmatprep.subr.bf16.mxu1 %v5608_v51  ;;  %12010 = vmatprep.subr.bf16.mxu0 %v5610_v44  ;;  %v5696_v51 = vld [vmem:[#allocation4 + $0x848] sm:$0xff]  ;;  %v5698_v44 = vld [vmem:[#allocation4 + $0x858] sm:$0xff] }
 0x821   :  { %11756 = vmatpush1.bf16.msra.mxu1 %v5607_v14  ;;  %12012 = vmatpush1.bf16.msra.mxu0 %v5609_v54  ;;  %v5695_v14 = vld [vmem:[#allocation4 + $0x840] sm:$0xff]  ;;  %v5697_v54 = vld [vmem:[#allocation4 + $0x850] sm:$0xff] }
 0x822   :  { %11758 = vmatprep.subr.bf16.mxu1 %v5616_v4  ;;  %12014 = vmatprep.subr.bf16.mxu0 %v5618_v28  ;;  %v5704_v4 = vld [vmem:[#allocation4 + $0x888] sm:$0xff]  ;;  %v5706_v28 = vld [vmem:[#allocation4 + $0x898] sm:$0xff] }
 0x825   :  { %11760 = vmatpush1.bf16.msra.mxu1 %v5615_v41  ;;  %12016 = vmatpush1.bf16.msra.mxu0 %v5617_v29  ;;  %v5703_v41 = vld [vmem:[#allocation4 + $0x880] sm:$0xff]  ;;  %v5705_v29 = vld [vmem:[#allocation4 + $0x890] sm:$0xff] }
 0x826   :  { %11762 = vmatprep.subr.bf16.mxu1 %v5624_v19  ;;  %12018 = vmatprep.subr.bf16.mxu0 %v5626_v3  ;;  %v5712_v19 = vld [vmem:[#allocation4 + $0x8c8] sm:$0xff]  ;;  %v5714_v3 = vld [vmem:[#allocation4 + $0x8d8] sm:$0xff] }
 0x829   :  { %11764 = vmatpush1.bf16.msra.mxu1 %v5623_v16  ;;  %12020 = vmatpush1.bf16.msra.mxu0 %v5625_v6  ;;  %v5711_v16 = vld [vmem:[#allocation4 + $0x8c0] sm:$0xff]  ;;  %v5713_v6 = vld [vmem:[#allocation4 + $0x8d0] sm:$0xff] }
 0x82a   :  { %11766 = vmatprep.subr.bf16.mxu1 %v5632_v24  ;;  %12022 = vmatprep.subr.bf16.mxu0 %v5634_v2  ;;  %v5720_v24 = vld [vmem:[#allocation4 + $0x908] sm:$0xff]  ;;  %v5722_v2 = vld [vmem:[#allocation4 + $0x918] sm:$0xff] }
 0x82d   :  { %11768 = vmatpush1.bf16.msra.mxu1 %v5631_v52  ;;  %12024 = vmatpush1.bf16.msra.mxu0 %v5633_v48  ;;  %v5719_v52 = vld [vmem:[#allocation4 + $0x900] sm:$0xff]  ;;  %v5721_v48 = vld [vmem:[#allocation4 + $0x910] sm:$0xff] }
 0x82e   :  { %11770 = vmatprep.subr.bf16.mxu1 %v5640_v57  ;;  %12026 = vmatprep.subr.bf16.mxu0 %v5642_v25  ;;  %v5728_v57 = vld [vmem:[#allocation4 + $0x948] sm:$0xff]  ;;  %v5730_v25 = vld [vmem:[#allocation4 + $0x958] sm:$0xff] }
 0x831   :  { %11772 = vmatpush1.bf16.msra.mxu1 %v5639_v7  ;;  %12028 = vmatpush1.bf16.msra.mxu0 %v5641_v11  ;;  %v5727_v7 = vld [vmem:[#allocation4 + $0x940] sm:$0xff]  ;;  %v5729_v11 = vld [vmem:[#allocation4 + $0x950] sm:$0xff] }
 0x832   :  { %11774 = vmatprep.subr.bf16.mxu1 %v5648_v56  ;;  %12030 = vmatprep.subr.bf16.mxu0 %v5650_v47  ;;  %v5736_v56 = vld [vmem:[#allocation4 + $0x988] sm:$0xff]  ;;  %v5738_v47 = vld [vmem:[#allocation4 + $0x998] sm:$0xff] }
 0x835   :  { %11776 = vmatpush1.bf16.msra.mxu1 %v5647_v8  ;;  %12032 = vmatpush1.bf16.msra.mxu0 %v5649_v30  ;;  %v5735_v8 = vld [vmem:[#allocation4 + $0x980] sm:$0xff]  ;;  %v5737_v30 = vld [vmem:[#allocation4 + $0x990] sm:$0xff] }
 0x836   :  { %11778 = vmatprep.subr.bf16.mxu1 %v5656_v37  ;;  %12034 = vmatprep.subr.bf16.mxu0 %v5658_v61  ;;  %v5744_v37 = vld [vmem:[#allocation4 + $0x9c8] sm:$0xff]  ;;  %v5746_v61 = vld [vmem:[#allocation4 + $0x9d8] sm:$0xff] }
 0x839   :  { %11780 = vmatpush1.bf16.msra.mxu1 %v5655_v13  ;;  %12036 = vmatpush1.bf16.msra.mxu0 %v5657_v18  ;;  %v5743_v13 = vld [vmem:[#allocation4 + $0x9c0] sm:$0xff]  ;;  %v5745_v18 = vld [vmem:[#allocation4 + $0x9d0] sm:$0xff] }
 0x83a   :  { %11782 = vmatprep.subr.bf16.mxu1 %v5664_v10  ;;  %12038 = vmatprep.subr.bf16.mxu0 %v5666_v0  ;;  %v5752_v10 = vld [vmem:[#allocation4 + $0xa08] sm:$0xff]  ;;  %v5754_v0 = vld [vmem:[#allocation4 + $0xa18] sm:$0xff] }
 0x83d   :  { %11784 = vmatpush1.bf16.msra.mxu1 %v5663_v60  ;;  %12040 = vmatpush1.bf16.msra.mxu0 %v5665_v21  ;;  %v5751_v60 = vld [vmem:[#allocation4 + $0xa00] sm:$0xff]  ;;  %v5753_v21 = vld [vmem:[#allocation4 + $0xa10] sm:$0xff] }
 0x83e   :  { %11786 = vmatprep.subr.bf16.mxu1 %v5672_v23  ;;  %12042 = vmatprep.subr.bf16.mxu0 %v5674_v32  ;;  %v5760_v23 = vld [vmem:[#allocation4 + $0xa48] sm:$0xff]  ;;  %v5762_v32 = vld [vmem:[#allocation4 + $0xa58] sm:$0xff] }
 0x841   :  { %11788 = vmatpush1.bf16.msra.mxu1 %v5671_v59  ;;  %12044 = vmatpush1.bf16.msra.mxu0 %v5673_v33  ;;  %v5759_v59 = vld [vmem:[#allocation4 + $0xa40] sm:$0xff]  ;;  %v5761_v33 = vld [vmem:[#allocation4 + $0xa50] sm:$0xff] }
 0x842   :  { %11790 = vmatprep.subr.bf16.mxu1 %v5680_v34  ;;  %12046 = vmatprep.subr.bf16.mxu0 %v5682_v22  ;;  %v5768_v34 = vld [vmem:[#allocation4 + $0xa88] sm:$0xff]  ;;  %v5770_v22 = vld [vmem:[#allocation4 + $0xa98] sm:$0xff] }
 0x845   :  { %11792 = vmatpush1.bf16.msra.mxu1 %v5679_v12  ;;  %12048 = vmatpush1.bf16.msra.mxu0 %v5681_v1  ;;  %v5767_v12 = vld [vmem:[#allocation4 + $0xa80] sm:$0xff]  ;;  %v5769_v1 = vld [vmem:[#allocation4 + $0xa90] sm:$0xff] }
 0x846   :  { %11794 = vmatprep.subr.bf16.mxu1 %v5688_v58  ;;  %12050 = vmatprep.subr.bf16.mxu0 %v5690_v31  ;;  %v5776_v58 = vld [vmem:[#allocation4 + $0xac8] sm:$0xff]  ;;  %v5778_v31 = vld [vmem:[#allocation4 + $0xad8] sm:$0xff] }
 0x848   :  { %7103 = vmatmul.mubr.f32.vlgmr.msra.gmra.mrb[16].mxu1 %v14752_v62  ;;  %7387 = vmatmul.mubr.f32.vlgmr.msra.gmra.mrb[12].mxu0 %v14752_v62 }
 0x849   :  { %11796 = vmatpush1.bf16.msra.mxu1 %v5687_v53  ;;  %12052 = vmatpush1.bf16.msra.mxu0 %v5689_v20  ;;  %v5775_v53 = vld [vmem:[#allocation4 + $0xac0] sm:$0xff]  ;;  %v5777_v20 = vld [vmem:[#allocation4 + $0xad0] sm:$0xff] }
 0x84a   :  { %11798 = vmatprep.subr.bf16.mxu1 %v5696_v51  ;;  %12054 = vmatprep.subr.bf16.mxu0 %v5698_v44  ;;  %v5784_v51 = vld [vmem:[#allocation4 + $0xb08] sm:$0xff]  ;;  %v5786_v44 = vld [vmem:[#allocation4 + $0xb18] sm:$0xff] }
 0x84b   :  { %7173 = vmatprep.mubr.f32.mxu1 %v14772_v42  ;;  %7457 = vmatprep.mubr.f32.mxu0 %v14772_v42 }
 0x84d   :  { %11800 = vmatpush1.bf16.msra.mxu1 %v5695_v14  ;;  %12056 = vmatpush1.bf16.msra.mxu0 %v5697_v54  ;;  %v5783_v14 = vld [vmem:[#allocation4 + $0xb00] sm:$0xff]  ;;  %v5785_v54 = vld [vmem:[#allocation4 + $0xb10] sm:$0xff] }
 0x84e   :  { %11802 = vmatprep.subr.bf16.mxu1 %v5704_v4  ;;  %12058 = vmatprep.subr.bf16.mxu0 %v5706_v28  ;;  %v5792_v4 = vld [vmem:[#allocation4 + $0xb48] sm:$0xff]  ;;  %v5794_v28 = vld [vmem:[#allocation4 + $0xb58] sm:$0xff] }
 0x851   :  { %11804 = vmatpush1.bf16.msra.mxu1 %v5703_v41  ;;  %12060 = vmatpush1.bf16.msra.mxu0 %v5705_v29  ;;  %v5791_v41 = vld [vmem:[#allocation4 + $0xb40] sm:$0xff]  ;;  %v5793_v29 = vld [vmem:[#allocation4 + $0xb50] sm:$0xff] }
 0x852   :  { %11806 = vmatprep.subr.bf16.mxu1 %v5712_v19  ;;  %12062 = vmatprep.subr.bf16.mxu0 %v5714_v3  ;;  %v5800_v19 = vld [vmem:[#allocation4 + $0xb88] sm:$0xff]  ;;  %v5802_v3 = vld [vmem:[#allocation4 + $0xb98] sm:$0xff] }
 0x855   :  { %11808 = vmatpush1.bf16.msra.mxu1 %v5711_v16  ;;  %12064 = vmatpush1.bf16.msra.mxu0 %v5713_v6  ;;  %v5799_v16 = vld [vmem:[#allocation4 + $0xb80] sm:$0xff]  ;;  %v5801_v6 = vld [vmem:[#allocation4 + $0xb90] sm:$0xff] }
 0x856   :  { %11810 = vmatprep.subr.bf16.mxu1 %v5720_v24  ;;  %12066 = vmatprep.subr.bf16.mxu0 %v5722_v2  ;;  %v5808_v24 = vld [vmem:[#allocation4 + $0xbc8] sm:$0xff]  ;;  %v5810_v2 = vld [vmem:[#allocation4 + $0xbd8] sm:$0xff] }
 0x859   :  { %11812 = vmatpush1.bf16.msra.mxu1 %v5719_v52  ;;  %12068 = vmatpush1.bf16.msra.mxu0 %v5721_v48  ;;  %v5807_v52 = vld [vmem:[#allocation4 + $0xbc0] sm:$0xff]  ;;  %v5809_v48 = vld [vmem:[#allocation4 + $0xbd0] sm:$0xff] }
 0x85a   :  { %11814 = vmatprep.subr.bf16.mxu1 %v5728_v57  ;;  %12070 = vmatprep.subr.bf16.mxu0 %v5730_v25  ;;  %v5816_v57 = vld [vmem:[#allocation4 + $0xc08] sm:$0xff]  ;;  %v5818_v25 = vld [vmem:[#allocation4 + $0xc18] sm:$0xff] }
 0x85d   :  { %11816 = vmatpush1.bf16.msra.mxu1 %v5727_v7  ;;  %12072 = vmatpush1.bf16.msra.mxu0 %v5729_v11  ;;  %v5815_v7 = vld [vmem:[#allocation4 + $0xc00] sm:$0xff]  ;;  %v5817_v11 = vld [vmem:[#allocation4 + $0xc10] sm:$0xff] }
 0x85e   :  { %11818 = vmatprep.subr.bf16.mxu1 %v5736_v56  ;;  %12074 = vmatprep.subr.bf16.mxu0 %v5738_v47  ;;  %v5824_v56 = vld [vmem:[#allocation4 + $0xc48] sm:$0xff]  ;;  %v5826_v47 = vld [vmem:[#allocation4 + $0xc58] sm:$0xff] }
 0x861   :  { %11820 = vmatpush1.bf16.msra.mxu1 %v5735_v8  ;;  %12076 = vmatpush1.bf16.msra.mxu0 %v5737_v30  ;;  %v5823_v8 = vld [vmem:[#allocation4 + $0xc40] sm:$0xff]  ;;  %v5825_v30 = vld [vmem:[#allocation4 + $0xc50] sm:$0xff] }
 0x862   :  { %11822 = vmatprep.subr.bf16.mxu1 %v5744_v37  ;;  %12078 = vmatprep.subr.bf16.mxu0 %v5746_v61  ;;  %v5832_v37 = vld [vmem:[#allocation4 + $0xc88] sm:$0xff]  ;;  %v5834_v61 = vld [vmem:[#allocation4 + $0xc98] sm:$0xff] }
 0x865   :  { %11824 = vmatpush1.bf16.msra.mxu1 %v5743_v13  ;;  %12080 = vmatpush1.bf16.msra.mxu0 %v5745_v18  ;;  %v5831_v13 = vld [vmem:[#allocation4 + $0xc80] sm:$0xff]  ;;  %v5833_v18 = vld [vmem:[#allocation4 + $0xc90] sm:$0xff] }
 0x866   :  { %11826 = vmatprep.subr.bf16.mxu1 %v5752_v10  ;;  %12082 = vmatprep.subr.bf16.mxu0 %v5754_v0  ;;  %v5840_v10 = vld [vmem:[#allocation4 + $0xcc8] sm:$0xff]  ;;  %v5842_v0 = vld [vmem:[#allocation4 + $0xcd8] sm:$0xff] }
 0x869   :  { %11828 = vmatpush1.bf16.msra.mxu1 %v5751_v60  ;;  %12084 = vmatpush1.bf16.msra.mxu0 %v5753_v21  ;;  %v5839_v60 = vld [vmem:[#allocation4 + $0xcc0] sm:$0xff]  ;;  %v5841_v21 = vld [vmem:[#allocation4 + $0xcd0] sm:$0xff] }
 0x86a   :  { %11830 = vmatprep.subr.bf16.mxu1 %v5760_v23  ;;  %12086 = vmatprep.subr.bf16.mxu0 %v5762_v32  ;;  %v5848_v23 = vld [vmem:[#allocation4 + $0xd08] sm:$0xff]  ;;  %v5850_v32 = vld [vmem:[#allocation4 + $0xd18] sm:$0xff] }
 0x86d   :  { %11832 = vmatpush1.bf16.msra.mxu1 %v5759_v59  ;;  %12088 = vmatpush1.bf16.msra.mxu0 %v5761_v33  ;;  %v5847_v59 = vld [vmem:[#allocation4 + $0xd00] sm:$0xff]  ;;  %v5849_v33 = vld [vmem:[#allocation4 + $0xd10] sm:$0xff] }
 0x86e   :  { %11834 = vmatprep.subr.bf16.mxu1 %v5768_v34  ;;  %12090 = vmatprep.subr.bf16.mxu0 %v5770_v22  ;;  %v5856_v34 = vld [vmem:[#allocation4 + $0xd48] sm:$0xff]  ;;  %v5858_v22 = vld [vmem:[#allocation4 + $0xd58] sm:$0xff] }
 0x871   :  { %11836 = vmatpush1.bf16.msra.mxu1 %v5767_v12  ;;  %12092 = vmatpush1.bf16.msra.mxu0 %v5769_v1  ;;  %v5855_v12 = vld [vmem:[#allocation4 + $0xd40] sm:$0xff]  ;;  %v5857_v1 = vld [vmem:[#allocation4 + $0xd50] sm:$0xff] }
 0x872   :  { %11838 = vmatprep.subr.bf16.mxu1 %v5776_v58  ;;  %12094 = vmatprep.subr.bf16.mxu0 %v5778_v31  ;;  %v5864_v58 = vld [vmem:[#allocation4 + $0xd88] sm:$0xff]  ;;  %v5866_v31 = vld [vmem:[#allocation4 + $0xd98] sm:$0xff] }
 0x875   :  { %11840 = vmatpush1.bf16.msra.mxu1 %v5775_v53  ;;  %12096 = vmatpush1.bf16.msra.mxu0 %v5777_v20  ;;  %v5863_v53 = vld [vmem:[#allocation4 + $0xd80] sm:$0xff]  ;;  %v5865_v20 = vld [vmem:[#allocation4 + $0xd90] sm:$0xff] }
 0x876   :  { %11842 = vmatprep.subr.bf16.mxu1 %v5784_v51  ;;  %12098 = vmatprep.subr.bf16.mxu0 %v5786_v44  ;;  %v5872_v51 = vld [vmem:[#allocation4 + $0xdc8] sm:$0xff]  ;;  %v5874_v44 = vld [vmem:[#allocation4 + $0xdd8] sm:$0xff] }
 0x879   :  { %11844 = vmatpush1.bf16.msra.mxu1 %v5783_v14  ;;  %12100 = vmatpush1.bf16.msra.mxu0 %v5785_v54  ;;  %v5871_v14 = vld [vmem:[#allocation4 + $0xdc0] sm:$0xff]  ;;  %v5873_v54 = vld [vmem:[#allocation4 + $0xdd0] sm:$0xff] }
 0x87a   :  { %11846 = vmatprep.subr.bf16.mxu1 %v5792_v4  ;;  %12102 = vmatprep.subr.bf16.mxu0 %v5794_v28  ;;  %v5880_v4 = vld [vmem:[#allocation4 + $0xe08] sm:$0xff]  ;;  %v5882_v28 = vld [vmem:[#allocation4 + $0xe18] sm:$0xff] }
 0x87d   :  { %11848 = vmatpush1.bf16.msra.mxu1 %v5791_v41  ;;  %12104 = vmatpush1.bf16.msra.mxu0 %v5793_v29  ;;  %v5879_v41 = vld [vmem:[#allocation4 + $0xe00] sm:$0xff]  ;;  %v5881_v29 = vld [vmem:[#allocation4 + $0xe10] sm:$0xff] }
 0x87e   :  { %11850 = vmatprep.subr.bf16.mxu1 %v5800_v19  ;;  %12106 = vmatprep.subr.bf16.mxu0 %v5802_v3  ;;  %v5888_v19 = vld [vmem:[#allocation4 + $0xe48] sm:$0xff]  ;;  %v5890_v3 = vld [vmem:[#allocation4 + $0xe58] sm:$0xff] }
 0x881   :  { %11852 = vmatpush1.bf16.msra.mxu1 %v5799_v16  ;;  %12108 = vmatpush1.bf16.msra.mxu0 %v5801_v6  ;;  %v5887_v16 = vld [vmem:[#allocation4 + $0xe40] sm:$0xff]  ;;  %v5889_v6 = vld [vmem:[#allocation4 + $0xe50] sm:$0xff] }
 0x882   :  { %11854 = vmatprep.subr.bf16.mxu1 %v5808_v24  ;;  %12110 = vmatprep.subr.bf16.mxu0 %v5810_v2  ;;  %v5896_v24 = vld [vmem:[#allocation4 + $0xe88] sm:$0xff]  ;;  %v5898_v2 = vld [vmem:[#allocation4 + $0xe98] sm:$0xff] }
 0x885   :  { %11856 = vmatpush1.bf16.msra.mxu1 %v5807_v52  ;;  %12112 = vmatpush1.bf16.msra.mxu0 %v5809_v48  ;;  %v5895_v52 = vld [vmem:[#allocation4 + $0xe80] sm:$0xff]  ;;  %v5897_v48 = vld [vmem:[#allocation4 + $0xe90] sm:$0xff] }
 0x886   :  { %11858 = vmatprep.subr.bf16.mxu1 %v5816_v57  ;;  %12114 = vmatprep.subr.bf16.mxu0 %v5818_v25  ;;  %v5904_v57 = vld [vmem:[#allocation4 + $0xec8] sm:$0xff]  ;;  %v5906_v25 = vld [vmem:[#allocation4 + $0xed8] sm:$0xff] }
 0x888   :  { %7174 = vmatmul.mubr.f32.vlgmr.msra.gmra.mrb[16].mxu1 %v14763_v9  ;;  %7458 = vmatmul.mubr.f32.vlgmr.msra.gmra.mrb[12].mxu0 %v14763_v9 }
 0x889   :  { %11860 = vmatpush1.bf16.msra.mxu1 %v5815_v7  ;;  %12116 = vmatpush1.bf16.msra.mxu0 %v5817_v11  ;;  %v5903_v7 = vld [vmem:[#allocation4 + $0xec0] sm:$0xff]  ;;  %v5905_v11 = vld [vmem:[#allocation4 + $0xed0] sm:$0xff] }
 0x88a   :  { %11862 = vmatprep.subr.bf16.mxu1 %v5824_v56  ;;  %12118 = vmatprep.subr.bf16.mxu0 %v5826_v47  ;;  %v5912_v56 = vld [vmem:[#allocation4 + $0xf08] sm:$0xff]  ;;  %v5914_v47 = vld [vmem:[#allocation4 + $0xf18] sm:$0xff] }
 0x88b   :  { %7244 = vmatprep.mubr.f32.mxu1 %v14781_v15  ;;  %7528 = vmatprep.mubr.f32.mxu0 %v14781_v15 }
 0x88d   :  { %11864 = vmatpush1.bf16.msra.mxu1 %v5823_v8  ;;  %12120 = vmatpush1.bf16.msra.mxu0 %v5825_v30  ;;  %v5911_v8 = vld [vmem:[#allocation4 + $0xf00] sm:$0xff]  ;;  %v5913_v30 = vld [vmem:[#allocation4 + $0xf10] sm:$0xff] }
 0x88e   :  { %11866 = vmatprep.subr.bf16.mxu1 %v5832_v37  ;;  %12122 = vmatprep.subr.bf16.mxu0 %v5834_v61  ;;  %v5920_v37 = vld [vmem:[#allocation4 + $0xf48] sm:$0xff]  ;;  %v5922_v61 = vld [vmem:[#allocation4 + $0xf58] sm:$0xff] }
 0x891   :  { %11868 = vmatpush1.bf16.msra.mxu1 %v5831_v13  ;;  %12124 = vmatpush1.bf16.msra.mxu0 %v5833_v18  ;;  %v5919_v13 = vld [vmem:[#allocation4 + $0xf40] sm:$0xff]  ;;  %v5921_v18 = vld [vmem:[#allocation4 + $0xf50] sm:$0xff] }
 0x892   :  { %11870 = vmatprep.subr.bf16.mxu1 %v5840_v10  ;;  %12126 = vmatprep.subr.bf16.mxu0 %v5842_v0  ;;  %v5928_v10 = vld [vmem:[#allocation4 + $0xf88] sm:$0xff]  ;;  %v5930_v0 = vld [vmem:[#allocation4 + $0xf98] sm:$0xff] }
 0x895   :  { %11872 = vmatpush1.bf16.msra.mxu1 %v5839_v60  ;;  %12128 = vmatpush1.bf16.msra.mxu0 %v5841_v21  ;;  %v5927_v60 = vld [vmem:[#allocation4 + $0xf80] sm:$0xff]  ;;  %v5929_v21 = vld [vmem:[#allocation4 + $0xf90] sm:$0xff] }
 0x896   :  { %11874 = vmatprep.subr.bf16.mxu1 %v5848_v23  ;;  %12130 = vmatprep.subr.bf16.mxu0 %v5850_v32  ;;  %v5936_v23 = vld [vmem:[#allocation4 + $0xfc8] sm:$0xff]  ;;  %v5938_v32 = vld [vmem:[#allocation4 + $0xfd8] sm:$0xff] }
 0x899   :  { %11876 = vmatpush1.bf16.msra.mxu1 %v5847_v59  ;;  %12132 = vmatpush1.bf16.msra.mxu0 %v5849_v33  ;;  %v5935_v59 = vld [vmem:[#allocation4 + $0xfc0] sm:$0xff]  ;;  %v5937_v33 = vld [vmem:[#allocation4 + $0xfd0] sm:$0xff] }
 0x89a   :  { %11878 = vmatprep.subr.bf16.mxu1 %v5856_v34  ;;  %12134 = vmatprep.subr.bf16.mxu0 %v5858_v22  ;;  %v5436_v34 = vld [vmem:[#allocation4 + $0x28] sm:$0xff]  ;;  %v5438_v22 = vld [vmem:[#allocation4 + $0x38] sm:$0xff] }
 0x89d   :  { %11880 = vmatpush1.bf16.msra.mxu1 %v5855_v12  ;;  %12136 = vmatpush1.bf16.msra.mxu0 %v5857_v1  ;;  %v5435_v12 = vld [vmem:[#allocation4 + $0x20] sm:$0xff]  ;;  %v5437_v1 = vld [vmem:[#allocation4 + $0x30] sm:$0xff] }
 0x89e   :  { %11882 = vmatprep.subr.bf16.mxu1 %v5864_v58  ;;  %12138 = vmatprep.subr.bf16.mxu0 %v5866_v31  ;;  %v5444_v58 = vld [vmem:[#allocation4 + $0x68] sm:$0xff]  ;;  %v5446_v31 = vld [vmem:[#allocation4 + $0x78] sm:$0xff] }
 0x8a1   :  { %11884 = vmatpush1.bf16.msra.mxu1 %v5863_v53  ;;  %12140 = vmatpush1.bf16.msra.mxu0 %v5865_v20  ;;  %v5443_v53 = vld [vmem:[#allocation4 + $0x60] sm:$0xff]  ;;  %v5445_v20 = vld [vmem:[#allocation4 + $0x70] sm:$0xff] }
 0x8a2   :  { %11886 = vmatprep.subr.bf16.mxu1 %v5872_v51  ;;  %12142 = vmatprep.subr.bf16.mxu0 %v5874_v44  ;;  %v5452_v51 = vld [vmem:[#allocation4 + $0xa8] sm:$0xff]  ;;  %v5454_v44 = vld [vmem:[#allocation4 + $0xb8] sm:$0xff] }
 0x8a5   :  { %11888 = vmatpush1.bf16.msra.mxu1 %v5871_v14  ;;  %12144 = vmatpush1.bf16.msra.mxu0 %v5873_v54  ;;  %v5451_v14 = vld [vmem:[#allocation4 + $0xa0] sm:$0xff]  ;;  %v5453_v54 = vld [vmem:[#allocation4 + $0xb0] sm:$0xff] }
 0x8a6   :  { %11890 = vmatprep.subr.bf16.mxu1 %v5880_v4  ;;  %12146 = vmatprep.subr.bf16.mxu0 %v5882_v28  ;;  %v5460_v4 = vld [vmem:[#allocation4 + $0xe8] sm:$0xff]  ;;  %v5462_v28 = vld [vmem:[#allocation4 + $0xf8] sm:$0xff] }
 0x8a9   :  { %11892 = vmatpush1.bf16.msra.mxu1 %v5879_v41  ;;  %12148 = vmatpush1.bf16.msra.mxu0 %v5881_v29  ;;  %v5459_v41 = vld [vmem:[#allocation4 + $0xe0] sm:$0xff]  ;;  %v5461_v29 = vld [vmem:[#allocation4 + $0xf0] sm:$0xff] }
 0x8aa   :  { %11894 = vmatprep.subr.bf16.mxu1 %v5888_v19  ;;  %12150 = vmatprep.subr.bf16.mxu0 %v5890_v3  ;;  %v5468_v19 = vld [vmem:[#allocation4 + $0x128] sm:$0xff]  ;;  %v5470_v3 = vld [vmem:[#allocation4 + $0x138] sm:$0xff] }
 0x8ad   :  { %11896 = vmatpush1.bf16.msra.mxu1 %v5887_v16  ;;  %12152 = vmatpush1.bf16.msra.mxu0 %v5889_v6  ;;  %v5469_v16 = vld [vmem:[#allocation4 + $0x130] sm:$0xff]  ;;  %v5476_v6 = vld [vmem:[#allocation4 + $0x168] sm:$0xff] }
 0x8ae   :  { %11898 = vmatprep.subr.bf16.mxu1 %v5896_v24  ;;  %12154 = vmatprep.subr.bf16.mxu0 %v5898_v2  ;;  %v5478_v24 = vld [vmem:[#allocation4 + $0x178] sm:$0xff]  ;;  %v5475_v2 = vld [vmem:[#allocation4 + $0x160] sm:$0xff] }
 0x8b1   :  { %11900 = vmatpush1.bf16.msra.mxu1 %v5895_v52  ;;  %12156 = vmatpush1.bf16.msra.mxu0 %v5897_v48  ;;  %v5477_v52 = vld [vmem:[#allocation4 + $0x170] sm:$0xff]  ;;  %v5484_v48 = vld [vmem:[#allocation4 + $0x1a8] sm:$0xff] }
 0x8b2   :  { %11902 = vmatprep.subr.bf16.mxu1 %v5904_v57  ;;  %12158 = vmatprep.subr.bf16.mxu0 %v5906_v25  ;;  %v5486_v57 = vld [vmem:[#allocation4 + $0x1b8] sm:$0xff]  ;;  %v5483_v25 = vld [vmem:[#allocation4 + $0x1a0] sm:$0xff] }
 0x8b5   :  { %11904 = vmatpush1.bf16.msra.mxu1 %v5903_v7  ;;  %12160 = vmatpush1.bf16.msra.mxu0 %v5905_v11  ;;  %v5485_v7 = vld [vmem:[#allocation4 + $0x1b0] sm:$0xff]  ;;  %v5492_v11 = vld [vmem:[#allocation4 + $0x1e8] sm:$0xff] }
 0x8b6   :  { %11906 = vmatprep.subr.bf16.mxu1 %v5912_v56  ;;  %12162 = vmatprep.subr.bf16.mxu0 %v5914_v47  ;;  %v5494_v56 = vld [vmem:[#allocation4 + $0x1f8] sm:$0xff]  ;;  %v5491_v47 = vld [vmem:[#allocation4 + $0x1e0] sm:$0xff] }
 0x8b9   :  { %11908 = vmatpush1.bf16.msra.mxu1 %v5911_v8  ;;  %12164 = vmatpush1.bf16.msra.mxu0 %v5913_v30  ;;  %v5493_v8 = vld [vmem:[#allocation4 + $0x1f0] sm:$0xff]  ;;  %v5500_v30 = vld [vmem:[#allocation4 + $0x228] sm:$0xff] }
 0x8ba   :  { %11910 = vmatprep.subr.bf16.mxu1 %v5920_v37  ;;  %12166 = vmatprep.subr.bf16.mxu0 %v5922_v61  ;;  %v5502_v37 = vld [vmem:[#allocation4 + $0x238] sm:$0xff]  ;;  %v5499_v61 = vld [vmem:[#allocation4 + $0x220] sm:$0xff] }
 0x8bd   :  { %11912 = vmatpush1.bf16.msra.mxu1 %v5919_v13  ;;  %12168 = vmatpush1.bf16.msra.mxu0 %v5921_v18  ;;  %v5501_v13 = vld [vmem:[#allocation4 + $0x230] sm:$0xff]  ;;  %v5508_v18 = vld [vmem:[#allocation4 + $0x268] sm:$0xff] }
 0x8be   :  { %11914 = vmatprep.subr.bf16.mxu1 %v5928_v10  ;;  %12170 = vmatprep.subr.bf16.mxu0 %v5930_v0  ;;  %v5510_v10 = vld [vmem:[#allocation4 + $0x278] sm:$0xff]  ;;  %v5507_v0 = vld [vmem:[#allocation4 + $0x260] sm:$0xff] }
 0x8c1   :  { %11916 = vmatpush1.bf16.msra.mxu1 %v5927_v60  ;;  %12172 = vmatpush1.bf16.msra.mxu0 %v5929_v21  ;;  %v5509_v60 = vld [vmem:[#allocation4 + $0x270] sm:$0xff]  ;;  %v5516_v21 = vld [vmem:[#allocation4 + $0x2a8] sm:$0xff] }
 0x8c2   :  { %11918 = vmatprep.subr.bf16.mxu1 %v5936_v23  ;;  %12174 = vmatprep.subr.bf16.mxu0 %v5938_v32  ;;  %v5518_v23 = vld [vmem:[#allocation4 + $0x2b8] sm:$0xff]  ;;  %v5515_v32 = vld [vmem:[#allocation4 + $0x2a0] sm:$0xff] }
 0x8c5   :  { %11920 = vmatpush1.bf16.msra.mxu1 %v5935_v59  ;;  %12176 = vmatpush1.bf16.msra.mxu0 %v5937_v33  ;;  %v5517_v59 = vld [vmem:[#allocation4 + $0x2b0] sm:$0xff]  ;;  %v5524_v33 = vld [vmem:[#allocation4 + $0x2e8] sm:$0xff] }
 0x8c6   :  { %12178 = vmatprep.subr.bf16.mxu1 %v5436_v34  ;;  %12434 = vmatprep.subr.bf16.mxu0 %v5438_v22  ;;  %v5526_v34 = vld [vmem:[#allocation4 + $0x2f8] sm:$0xff]  ;;  %v5523_v22 = vld [vmem:[#allocation4 + $0x2e0] sm:$0xff] }
 0x8c8   :  { %7245 = vmatmul.mubr.f32.vlgmr.msra.gmra.mrb[16].mxu1 %v14774_v26  ;;  %7529 = vmatmul.mubr.f32.vlgmr.msra.gmra.mrb[12].mxu0 %v14774_v26 }
 0x8c9   :  { %12180 = vmatpush1.bf16.msra.mxu1 %v5435_v12  ;;  %12436 = vmatpush1.bf16.msra.mxu0 %v5437_v1  ;;  %v5525_v12 = vld [vmem:[#allocation4 + $0x2f0] sm:$0xff]  ;;  %v5532_v1 = vld [vmem:[#allocation4 + $0x328] sm:$0xff] }
 0x8ca   :  { %12182 = vmatprep.subr.bf16.mxu1 %v5444_v58  ;;  %12438 = vmatprep.subr.bf16.mxu0 %v5446_v31  ;;  %v5534_v58 = vld [vmem:[#allocation4 + $0x338] sm:$0xff]  ;;  %v5531_v31 = vld [vmem:[#allocation4 + $0x320] sm:$0xff] }
 0x8cb   :  { %7599 = vmatprep.mubr.f32.mxu1 %v14734_v45  ;;  %7883 = vmatprep.mubr.f32.mxu0 %v14734_v45  ;;  %v5467_v45 = vld [vmem:[#allocation4 + $0x120] sm:$0xff] }
 0x8cd   :  { %12184 = vmatpush1.bf16.msra.mxu1 %v5443_v53  ;;  %12440 = vmatpush1.bf16.msra.mxu0 %v5445_v20  ;;  %v5533_v53 = vld [vmem:[#allocation4 + $0x330] sm:$0xff]  ;;  %v5540_v20 = vld [vmem:[#allocation4 + $0x368] sm:$0xff] }
 0x8ce   :  { %12186 = vmatprep.subr.bf16.mxu1 %v5452_v51  ;;  %12442 = vmatprep.subr.bf16.mxu0 %v5454_v44  ;;  %v5542_v51 = vld [vmem:[#allocation4 + $0x378] sm:$0xff]  ;;  %v5539_v44 = vld [vmem:[#allocation4 + $0x360] sm:$0xff] }
 0x8d1   :  { %12188 = vmatpush1.bf16.msra.mxu1 %v5451_v14  ;;  %12444 = vmatpush1.bf16.msra.mxu0 %v5453_v54  ;;  %v5541_v14 = vld [vmem:[#allocation4 + $0x370] sm:$0xff]  ;;  %v5548_v54 = vld [vmem:[#allocation4 + $0x3a8] sm:$0xff] }
 0x8d2   :  { %12190 = vmatprep.subr.bf16.mxu1 %v5460_v4  ;;  %12446 = vmatprep.subr.bf16.mxu0 %v5462_v28  ;;  %v5550_v4 = vld [vmem:[#allocation4 + $0x3b8] sm:$0xff]  ;;  %v5547_v28 = vld [vmem:[#allocation4 + $0x3a0] sm:$0xff] }
 0x8d5   :  { %12192 = vmatpush1.bf16.msra.mxu1 %v5459_v41  ;;  %12448 = vmatpush1.bf16.msra.mxu0 %v5461_v29  ;;  %v5549_v41 = vld [vmem:[#allocation4 + $0x3b0] sm:$0xff]  ;;  %v5556_v29 = vld [vmem:[#allocation4 + $0x3e8] sm:$0xff] }
 0x8d6   :  { %12194 = vmatprep.subr.bf16.mxu1 %v5468_v19  ;;  %12450 = vmatprep.subr.bf16.mxu0 %v5470_v3  ;;  %v5558_v19 = vld [vmem:[#allocation4 + $0x3f8] sm:$0xff]  ;;  %v5555_v3 = vld [vmem:[#allocation4 + $0x3e0] sm:$0xff] }
 0x8d9   :  { %12196 = vmatpush1.bf16.msra.mxu1 %v5467_v45  ;;  %12452 = vmatpush1.bf16.msra.mxu0 %v5469_v16  ;;  %v5557_v45 = vld [vmem:[#allocation4 + $0x3f0] sm:$0xff]  ;;  %v5564_v16 = vld [vmem:[#allocation4 + $0x428] sm:$0xff] }
 0x8da   :  { %12198 = vmatprep.subr.bf16.mxu1 %v5476_v6  ;;  %12454 = vmatprep.subr.bf16.mxu0 %v5478_v24  ;;  %v5566_v6 = vld [vmem:[#allocation4 + $0x438] sm:$0xff]  ;;  %v5563_v24 = vld [vmem:[#allocation4 + $0x420] sm:$0xff] }
 0x8dd   :  { %12200 = vmatpush1.bf16.msra.mxu1 %v5475_v2  ;;  %12456 = vmatpush1.bf16.msra.mxu0 %v5477_v52  ;;  %v5565_v2 = vld [vmem:[#allocation4 + $0x430] sm:$0xff]  ;;  %v5572_v52 = vld [vmem:[#allocation4 + $0x468] sm:$0xff] }
 0x8de   :  { %12202 = vmatprep.subr.bf16.mxu1 %v5484_v48  ;;  %12458 = vmatprep.subr.bf16.mxu0 %v5486_v57  ;;  %v5574_v48 = vld [vmem:[#allocation4 + $0x478] sm:$0xff]  ;;  %v5571_v57 = vld [vmem:[#allocation4 + $0x460] sm:$0xff] }
 0x8e1   :  { %12204 = vmatpush1.bf16.msra.mxu1 %v5483_v25  ;;  %12460 = vmatpush1.bf16.msra.mxu0 %v5485_v7  ;;  %v5573_v25 = vld [vmem:[#allocation4 + $0x470] sm:$0xff]  ;;  %v5580_v7 = vld [vmem:[#allocation4 + $0x4a8] sm:$0xff] }
 0x8e2   :  { %12206 = vmatprep.subr.bf16.mxu1 %v5492_v11  ;;  %12462 = vmatprep.subr.bf16.mxu0 %v5494_v56  ;;  %v5582_v11 = vld [vmem:[#allocation4 + $0x4b8] sm:$0xff]  ;;  %v5579_v56 = vld [vmem:[#allocation4 + $0x4a0] sm:$0xff] }
 0x8e5   :  { %12208 = vmatpush1.bf16.msra.mxu1 %v5491_v47  ;;  %12464 = vmatpush1.bf16.msra.mxu0 %v5493_v8  ;;  %v5581_v47 = vld [vmem:[#allocation4 + $0x4b0] sm:$0xff]  ;;  %v5588_v8 = vld [vmem:[#allocation4 + $0x4e8] sm:$0xff] }
 0x8e6   :  { %12210 = vmatprep.subr.bf16.mxu1 %v5500_v30  ;;  %12466 = vmatprep.subr.bf16.mxu0 %v5502_v37  ;;  %v5587_v30 = vld [vmem:[#allocation4 + $0x4e0] sm:$0xff]  ;;  %v5589_v37 = vld [vmem:[#allocation4 + $0x4f0] sm:$0xff] }
 0x8e9   :  { %12212 = vmatpush1.bf16.msra.mxu1 %v5499_v61  ;;  %12468 = vmatpush1.bf16.msra.mxu0 %v5501_v13  ;;  %v5596_v61 = vld [vmem:[#allocation4 + $0x528] sm:$0xff]  ;;  %v5598_v13 = vld [vmem:[#allocation4 + $0x538] sm:$0xff] }
 0x8ea   :  { %12214 = vmatprep.subr.bf16.mxu1 %v5508_v18  ;;  %12470 = vmatprep.subr.bf16.mxu0 %v5510_v10  ;;  %v5597_v18 = vld [vmem:[#allocation4 + $0x530] sm:$0xff]  ;;  %v5604_v10 = vld [vmem:[#allocation4 + $0x568] sm:$0xff] }
 0x8ed   :  { %12216 = vmatpush1.bf16.msra.mxu1 %v5507_v0  ;;  %12472 = vmatpush1.bf16.msra.mxu0 %v5509_v60  ;;  %v5606_v0 = vld [vmem:[#allocation4 + $0x578] sm:$0xff]  ;;  %v5603_v60 = vld [vmem:[#allocation4 + $0x560] sm:$0xff] }
 0x8ee   :  { %12218 = vmatprep.subr.bf16.mxu1 %v5516_v21  ;;  %12474 = vmatprep.subr.bf16.mxu0 %v5518_v23  ;;  %v5605_v21 = vld [vmem:[#allocation4 + $0x570] sm:$0xff]  ;;  %v5612_v23 = vld [vmem:[#allocation4 + $0x5a8] sm:$0xff] }
 0x8f1   :  { %12220 = vmatpush1.bf16.msra.mxu1 %v5515_v32  ;;  %12476 = vmatpush1.bf16.msra.mxu0 %v5517_v59  ;;  %v5614_v32 = vld [vmem:[#allocation4 + $0x5b8] sm:$0xff]  ;;  %v5611_v59 = vld [vmem:[#allocation4 + $0x5a0] sm:$0xff] }
 0x8f2   :  { %12222 = vmatprep.subr.bf16.mxu1 %v5524_v33  ;;  %12478 = vmatprep.subr.bf16.mxu0 %v5526_v34  ;;  %v5613_v33 = vld [vmem:[#allocation4 + $0x5b0] sm:$0xff]  ;;  %v5620_v34 = vld [vmem:[#allocation4 + $0x5e8] sm:$0xff] }
 0x8f5   :  { %12224 = vmatpush1.bf16.msra.mxu1 %v5523_v22  ;;  %12480 = vmatpush1.bf16.msra.mxu0 %v5525_v12  ;;  %v5622_v22 = vld [vmem:[#allocation4 + $0x5f8] sm:$0xff]  ;;  %v5619_v12 = vld [vmem:[#allocation4 + $0x5e0] sm:$0xff] }
 0x8f6   :  { %12226 = vmatprep.subr.bf16.mxu1 %v5532_v1  ;;  %12482 = vmatprep.subr.bf16.mxu0 %v5534_v58  ;;  %v5621_v1 = vld [vmem:[#allocation4 + $0x5f0] sm:$0xff]  ;;  %v5628_v58 = vld [vmem:[#allocation4 + $0x628] sm:$0xff] }
 0x8f9   :  { %12228 = vmatpush1.bf16.msra.mxu1 %v5531_v31  ;;  %12484 = vmatpush1.bf16.msra.mxu0 %v5533_v53  ;;  %v5630_v31 = vld [vmem:[#allocation4 + $0x638] sm:$0xff]  ;;  %v5627_v53 = vld [vmem:[#allocation4 + $0x620] sm:$0xff] }
 0x8fa   :  { %12230 = vmatprep.subr.bf16.mxu1 %v5540_v20  ;;  %12486 = vmatprep.subr.bf16.mxu0 %v5542_v51  ;;  %v5629_v20 = vld [vmem:[#allocation4 + $0x630] sm:$0xff]  ;;  %v5636_v51 = vld [vmem:[#allocation4 + $0x668] sm:$0xff] }
 0x8fd   :  { %12232 = vmatpush1.bf16.msra.mxu1 %v5539_v44  ;;  %12488 = vmatpush1.bf16.msra.mxu0 %v5541_v14  ;;  %v5638_v44 = vld [vmem:[#allocation4 + $0x678] sm:$0xff]  ;;  %v5635_v14 = vld [vmem:[#allocation4 + $0x660] sm:$0xff] }
 0x8fe   :  { %12234 = vmatprep.subr.bf16.mxu1 %v5548_v54  ;;  %12490 = vmatprep.subr.bf16.mxu0 %v5550_v4  ;;  %v5637_v54 = vld [vmem:[#allocation4 + $0x670] sm:$0xff]  ;;  %v5644_v4 = vld [vmem:[#allocation4 + $0x6a8] sm:$0xff] }
 0x901   :  { %12236 = vmatpush1.bf16.msra.mxu1 %v5547_v28  ;;  %12492 = vmatpush1.bf16.msra.mxu0 %v5549_v41  ;;  %v5646_v28 = vld [vmem:[#allocation4 + $0x6b8] sm:$0xff]  ;;  %v5643_v41 = vld [vmem:[#allocation4 + $0x6a0] sm:$0xff] }
 0x902   :  { %12238 = vmatprep.subr.bf16.mxu1 %v5556_v29  ;;  %12494 = vmatprep.subr.bf16.mxu0 %v5558_v19  ;;  %v5645_v29 = vld [vmem:[#allocation4 + $0x6b0] sm:$0xff]  ;;  %v5652_v19 = vld [vmem:[#allocation4 + $0x6e8] sm:$0xff] }
 0x905   :  { %12240 = vmatpush1.bf16.msra.mxu1 %v5555_v3  ;;  %12496 = vmatpush1.bf16.msra.mxu0 %v5557_v45  ;;  %v5654_v3 = vld [vmem:[#allocation4 + $0x6f8] sm:$0xff]  ;;  %v5651_v45 = vld [vmem:[#allocation4 + $0x6e0] sm:$0xff] }
 0x906   :  { %12242 = vmatprep.subr.bf16.mxu1 %v5564_v16  ;;  %12498 = vmatprep.subr.bf16.mxu0 %v5566_v6  ;;  %v5653_v16 = vld [vmem:[#allocation4 + $0x6f0] sm:$0xff]  ;;  %v5660_v6 = vld [vmem:[#allocation4 + $0x728] sm:$0xff] }
 0x908   :  { %7600 = vmatmul.mubr.f32.vlgmr.msra.gmra.mrb[18].mxu1 %v14732_v27  ;;  %7884 = vmatmul.mubr.f32.vlgmr.msra.gmra.mrb[14].mxu0 %v14732_v27  ;;  %v5590_v27 = vld [vmem:[#allocation4 + $0x4f8] sm:$0xff] }
 0x909   :  { %12244 = vmatpush1.bf16.msra.mxu1 %v5563_v24  ;;  %12500 = vmatpush1.bf16.msra.mxu0 %v5565_v2  ;;  %v5662_v24 = vld [vmem:[#allocation4 + $0x738] sm:$0xff]  ;;  %v5659_v2 = vld [vmem:[#allocation4 + $0x720] sm:$0xff] }
 0x90a   :  { %12246 = vmatprep.subr.bf16.mxu1 %v5572_v52  ;;  %12502 = vmatprep.subr.bf16.mxu0 %v5574_v48  ;;  %v5661_v52 = vld [vmem:[#allocation4 + $0x730] sm:$0xff]  ;;  %v5668_v48 = vld [vmem:[#allocation4 + $0x768] sm:$0xff] }
 0x90b   :  { %7670 = vmatprep.mubr.f32.mxu1 %v14756_v38  ;;  %7954 = vmatprep.mubr.f32.mxu0 %v14756_v38  ;;  %v5595_v38 = vld [vmem:[#allocation4 + $0x520] sm:$0xff] }
 0x90d   :  { %12248 = vmatpush1.bf16.msra.mxu1 %v5571_v57  ;;  %12504 = vmatpush1.bf16.msra.mxu0 %v5573_v25  ;;  %v5670_v57 = vld [vmem:[#allocation4 + $0x778] sm:$0xff]  ;;  %v5667_v25 = vld [vmem:[#allocation4 + $0x760] sm:$0xff] }
 0x90e   :  { %12250 = vmatprep.subr.bf16.mxu1 %v5580_v7  ;;  %12506 = vmatprep.subr.bf16.mxu0 %v5582_v11  ;;  %v5669_v7 = vld [vmem:[#allocation4 + $0x770] sm:$0xff]  ;;  %v5676_v11 = vld [vmem:[#allocation4 + $0x7a8] sm:$0xff] }
 0x911   :  { %12252 = vmatpush1.bf16.msra.mxu1 %v5579_v56  ;;  %12508 = vmatpush1.bf16.msra.mxu0 %v5581_v47  ;;  %v5678_v56 = vld [vmem:[#allocation4 + $0x7b8] sm:$0xff]  ;;  %v5675_v47 = vld [vmem:[#allocation4 + $0x7a0] sm:$0xff] }
 0x912   :  { %12254 = vmatprep.subr.bf16.mxu1 %v5588_v8  ;;  %12510 = vmatprep.subr.bf16.mxu0 %v5590_v27  ;;  %v5677_v8 = vld [vmem:[#allocation4 + $0x7b0] sm:$0xff]  ;;  %v5684_v27 = vld [vmem:[#allocation4 + $0x7e8] sm:$0xff] }
 0x915   :  { %12256 = vmatpush1.bf16.msra.mxu1 %v5587_v30  ;;  %12512 = vmatpush1.bf16.msra.mxu0 %v5589_v37  ;;  %v5686_v30 = vld [vmem:[#allocation4 + $0x7f8] sm:$0xff]  ;;  %v5683_v37 = vld [vmem:[#allocation4 + $0x7e0] sm:$0xff] }
 0x916   :  { %12258 = vmatprep.subr.bf16.mxu1 %v5596_v61  ;;  %12514 = vmatprep.subr.bf16.mxu0 %v5598_v13  ;;  %v5685_v61 = vld [vmem:[#allocation4 + $0x7f0] sm:$0xff]  ;;  %v5692_v13 = vld [vmem:[#allocation4 + $0x828] sm:$0xff] }
 0x919   :  { %12260 = vmatpush1.bf16.msra.mxu1 %v5595_v38  ;;  %12516 = vmatpush1.bf16.msra.mxu0 %v5597_v18  ;;  %v5694_v38 = vld [vmem:[#allocation4 + $0x838] sm:$0xff]  ;;  %v5691_v18 = vld [vmem:[#allocation4 + $0x820] sm:$0xff] }
 0x91a   :  { %12262 = vmatprep.subr.bf16.mxu1 %v5604_v10  ;;  %12518 = vmatprep.subr.bf16.mxu0 %v5606_v0  ;;  %v5693_v10 = vld [vmem:[#allocation4 + $0x830] sm:$0xff]  ;;  %v5700_v0 = vld [vmem:[#allocation4 + $0x868] sm:$0xff] }
 0x91d   :  { %12264 = vmatpush1.bf16.msra.mxu1 %v5603_v60  ;;  %12520 = vmatpush1.bf16.msra.mxu0 %v5605_v21  ;;  %v5702_v60 = vld [vmem:[#allocation4 + $0x878] sm:$0xff]  ;;  %v5699_v21 = vld [vmem:[#allocation4 + $0x860] sm:$0xff] }
 0x91e   :  { %12266 = vmatprep.subr.bf16.mxu1 %v5612_v23  ;;  %12522 = vmatprep.subr.bf16.mxu0 %v5614_v32  ;;  %v5701_v23 = vld [vmem:[#allocation4 + $0x870] sm:$0xff]  ;;  %v5708_v32 = vld [vmem:[#allocation4 + $0x8a8] sm:$0xff] }
 0x921   :  { %12268 = vmatpush1.bf16.msra.mxu1 %v5611_v59  ;;  %12524 = vmatpush1.bf16.msra.mxu0 %v5613_v33  ;;  %v5710_v59 = vld [vmem:[#allocation4 + $0x8b8] sm:$0xff]  ;;  %v5707_v33 = vld [vmem:[#allocation4 + $0x8a0] sm:$0xff] }
 0x922   :  { %12270 = vmatprep.subr.bf16.mxu1 %v5620_v34  ;;  %12526 = vmatprep.subr.bf16.mxu0 %v5622_v22  ;;  %v5709_v34 = vld [vmem:[#allocation4 + $0x8b0] sm:$0xff]  ;;  %v5716_v22 = vld [vmem:[#allocation4 + $0x8e8] sm:$0xff] }
 0x925   :  { %12272 = vmatpush1.bf16.msra.mxu1 %v5619_v12  ;;  %12528 = vmatpush1.bf16.msra.mxu0 %v5621_v1  ;;  %v5715_v12 = vld [vmem:[#allocation4 + $0x8e0] sm:$0xff]  ;;  %v5717_v1 = vld [vmem:[#allocation4 + $0x8f0] sm:$0xff] }
 0x926   :  { %12274 = vmatprep.subr.bf16.mxu1 %v5628_v58  ;;  %12530 = vmatprep.subr.bf16.mxu0 %v5630_v31  ;;  %v5724_v58 = vld [vmem:[#allocation4 + $0x928] sm:$0xff]  ;;  %v5726_v31 = vld [vmem:[#allocation4 + $0x938] sm:$0xff] }
 0x929   :  { %12276 = vmatpush1.bf16.msra.mxu1 %v5627_v53  ;;  %12532 = vmatpush1.bf16.msra.mxu0 %v5629_v20  ;;  %v5725_v53 = vld [vmem:[#allocation4 + $0x930] sm:$0xff]  ;;  %v5732_v20 = vld [vmem:[#allocation4 + $0x968] sm:$0xff] }
 0x92a   :  { %12278 = vmatprep.subr.bf16.mxu1 %v5636_v51  ;;  %12534 = vmatprep.subr.bf16.mxu0 %v5638_v44  ;;  %v5734_v51 = vld [vmem:[#allocation4 + $0x978] sm:$0xff]  ;;  %v5731_v44 = vld [vmem:[#allocation4 + $0x960] sm:$0xff] }
 0x92d   :  { %12280 = vmatpush1.bf16.msra.mxu1 %v5635_v14  ;;  %12536 = vmatpush1.bf16.msra.mxu0 %v5637_v54  ;;  %v5733_v14 = vld [vmem:[#allocation4 + $0x970] sm:$0xff]  ;;  %v5740_v54 = vld [vmem:[#allocation4 + $0x9a8] sm:$0xff] }
 0x92e   :  { %12282 = vmatprep.subr.bf16.mxu1 %v5644_v4  ;;  %12538 = vmatprep.subr.bf16.mxu0 %v5646_v28  ;;  %v5742_v4 = vld [vmem:[#allocation4 + $0x9b8] sm:$0xff]  ;;  %v5739_v28 = vld [vmem:[#allocation4 + $0x9a0] sm:$0xff] }
 0x931   :  { %12284 = vmatpush1.bf16.msra.mxu1 %v5643_v41  ;;  %12540 = vmatpush1.bf16.msra.mxu0 %v5645_v29  ;;  %v5741_v41 = vld [vmem:[#allocation4 + $0x9b0] sm:$0xff]  ;;  %v5748_v29 = vld [vmem:[#allocation4 + $0x9e8] sm:$0xff] }
 0x932   :  { %12286 = vmatprep.subr.bf16.mxu1 %v5652_v19  ;;  %12542 = vmatprep.subr.bf16.mxu0 %v5654_v3  ;;  %v5750_v19 = vld [vmem:[#allocation4 + $0x9f8] sm:$0xff]  ;;  %v5747_v3 = vld [vmem:[#allocation4 + $0x9e0] sm:$0xff] }
 0x935   :  { %12288 = vmatpush1.bf16.msra.mxu1 %v5651_v45  ;;  %12544 = vmatpush1.bf16.msra.mxu0 %v5653_v16  ;;  %v5749_v45 = vld [vmem:[#allocation4 + $0x9f0] sm:$0xff]  ;;  %v5756_v16 = vld [vmem:[#allocation4 + $0xa28] sm:$0xff] }
 0x936   :  { %12290 = vmatprep.subr.bf16.mxu1 %v5660_v6  ;;  %12546 = vmatprep.subr.bf16.mxu0 %v5662_v24  ;;  %v5758_v6 = vld [vmem:[#allocation4 + $0xa38] sm:$0xff]  ;;  %v5755_v24 = vld [vmem:[#allocation4 + $0xa20] sm:$0xff] }
 0x939   :  { %12292 = vmatpush1.bf16.msra.mxu1 %v5659_v2  ;;  %12548 = vmatpush1.bf16.msra.mxu0 %v5661_v52  ;;  %v5757_v2 = vld [vmem:[#allocation4 + $0xa30] sm:$0xff]  ;;  %v5764_v52 = vld [vmem:[#allocation4 + $0xa68] sm:$0xff] }
 0x93a   :  { %12294 = vmatprep.subr.bf16.mxu1 %v5668_v48  ;;  %12550 = vmatprep.subr.bf16.mxu0 %v5670_v57  ;;  %v5766_v48 = vld [vmem:[#allocation4 + $0xa78] sm:$0xff]  ;;  %v5763_v57 = vld [vmem:[#allocation4 + $0xa60] sm:$0xff] }
 0x93d   :  { %12296 = vmatpush1.bf16.msra.mxu1 %v5667_v25  ;;  %12552 = vmatpush1.bf16.msra.mxu0 %v5669_v7  ;;  %v5765_v25 = vld [vmem:[#allocation4 + $0xa70] sm:$0xff]  ;;  %v5772_v7 = vld [vmem:[#allocation4 + $0xaa8] sm:$0xff] }
 0x93e   :  { %12298 = vmatprep.subr.bf16.mxu1 %v5676_v11  ;;  %12554 = vmatprep.subr.bf16.mxu0 %v5678_v56  ;;  %v5774_v11 = vld [vmem:[#allocation4 + $0xab8] sm:$0xff]  ;;  %v5771_v56 = vld [vmem:[#allocation4 + $0xaa0] sm:$0xff] }
 0x941   :  { %12300 = vmatpush1.bf16.msra.mxu1 %v5675_v47  ;;  %12556 = vmatpush1.bf16.msra.mxu0 %v5677_v8  ;;  %v5773_v47 = vld [vmem:[#allocation4 + $0xab0] sm:$0xff]  ;;  %v5780_v8 = vld [vmem:[#allocation4 + $0xae8] sm:$0xff] }
 0x942   :  { %12302 = vmatprep.subr.bf16.mxu1 %v5684_v27  ;;  %12558 = vmatprep.subr.bf16.mxu0 %v5686_v30  ;;  %v5782_v27 = vld [vmem:[#allocation4 + $0xaf8] sm:$0xff]  ;;  %v5779_v30 = vld [vmem:[#allocation4 + $0xae0] sm:$0xff] }
 0x945   :  { %12304 = vmatpush1.bf16.msra.mxu1 %v5683_v37  ;;  %12560 = vmatpush1.bf16.msra.mxu0 %v5685_v61  ;;  %v5781_v37 = vld [vmem:[#allocation4 + $0xaf0] sm:$0xff]  ;;  %v5788_v61 = vld [vmem:[#allocation4 + $0xb28] sm:$0xff] }
 0x946   :  { %12306 = vmatprep.subr.bf16.mxu1 %v5692_v13  ;;  %12562 = vmatprep.subr.bf16.mxu0 %v5694_v38  ;;  %v5790_v13 = vld [vmem:[#allocation4 + $0xb38] sm:$0xff]  ;;  %v5787_v38 = vld [vmem:[#allocation4 + $0xb20] sm:$0xff] }
 0x948   :  { %7671 = vmatmul.mubr.f32.vlgmr.msra.gmra.mrb[18].mxu1 %v14752_v62  ;;  %7955 = vmatmul.mubr.f32.vlgmr.msra.gmra.mrb[14].mxu0 %v14752_v62  ;;  %v5718_v62 = vld [vmem:[#allocation4 + $0x8f8] sm:$0xff] }
 0x949   :  { %12308 = vmatpush1.bf16.msra.mxu1 %v5691_v18  ;;  %12564 = vmatpush1.bf16.msra.mxu0 %v5693_v10  ;;  %v5789_v18 = vld [vmem:[#allocation4 + $0xb30] sm:$0xff]  ;;  %v5796_v10 = vld [vmem:[#allocation4 + $0xb68] sm:$0xff] }
 0x94a   :  { %12310 = vmatprep.subr.bf16.mxu1 %v5700_v0  ;;  %12566 = vmatprep.subr.bf16.mxu0 %v5702_v60  ;;  %v5798_v0 = vld [vmem:[#allocation4 + $0xb78] sm:$0xff]  ;;  %v5795_v60 = vld [vmem:[#allocation4 + $0xb60] sm:$0xff] }
 0x94b   :  { %7741 = vmatprep.mubr.f32.mxu1 %v14772_v42  ;;  %8025 = vmatprep.mubr.f32.mxu0 %v14772_v42  ;;  %v5723_v42 = vld [vmem:[#allocation4 + $0x920] sm:$0xff] }
 0x94d   :  { %12312 = vmatpush1.bf16.msra.mxu1 %v5699_v21  ;;  %12568 = vmatpush1.bf16.msra.mxu0 %v5701_v23  ;;  %v5797_v21 = vld [vmem:[#allocation4 + $0xb70] sm:$0xff]  ;;  %v5804_v23 = vld [vmem:[#allocation4 + $0xba8] sm:$0xff] }
 0x94e   :  { %12314 = vmatprep.subr.bf16.mxu1 %v5708_v32  ;;  %12570 = vmatprep.subr.bf16.mxu0 %v5710_v59  ;;  %v5806_v32 = vld [vmem:[#allocation4 + $0xbb8] sm:$0xff]  ;;  %v5803_v59 = vld [vmem:[#allocation4 + $0xba0] sm:$0xff] }
 0x951   :  { %12316 = vmatpush1.bf16.msra.mxu1 %v5707_v33  ;;  %12572 = vmatpush1.bf16.msra.mxu0 %v5709_v34  ;;  %v5805_v33 = vld [vmem:[#allocation4 + $0xbb0] sm:$0xff]  ;;  %v5812_v34 = vld [vmem:[#allocation4 + $0xbe8] sm:$0xff] }
 0x952   :  { %12318 = vmatprep.subr.bf16.mxu1 %v5716_v22  ;;  %12574 = vmatprep.subr.bf16.mxu0 %v5718_v62  ;;  %v5814_v22 = vld [vmem:[#allocation4 + $0xbf8] sm:$0xff]  ;;  %v5811_v62 = vld [vmem:[#allocation4 + $0xbe0] sm:$0xff] }
 0x955   :  { %12320 = vmatpush1.bf16.msra.mxu1 %v5715_v12  ;;  %12576 = vmatpush1.bf16.msra.mxu0 %v5717_v1  ;;  %v5813_v12 = vld [vmem:[#allocation4 + $0xbf0] sm:$0xff]  ;;  %v5820_v1 = vld [vmem:[#allocation4 + $0xc28] sm:$0xff] }
 0x956   :  { %12322 = vmatprep.subr.bf16.mxu1 %v5724_v58  ;;  %12578 = vmatprep.subr.bf16.mxu0 %v5726_v31  ;;  %v5822_v58 = vld [vmem:[#allocation4 + $0xc38] sm:$0xff]  ;;  %v5819_v31 = vld [vmem:[#allocation4 + $0xc20] sm:$0xff] }
 0x959   :  { %12324 = vmatpush1.bf16.msra.mxu1 %v5723_v42  ;;  %12580 = vmatpush1.bf16.msra.mxu0 %v5725_v53  ;;  %v5821_v42 = vld [vmem:[#allocation4 + $0xc30] sm:$0xff]  ;;  %v5828_v53 = vld [vmem:[#allocation4 + $0xc68] sm:$0xff] }
 0x95a   :  { %12326 = vmatprep.subr.bf16.mxu1 %v5732_v20  ;;  %12582 = vmatprep.subr.bf16.mxu0 %v5734_v51  ;;  %v5830_v20 = vld [vmem:[#allocation4 + $0xc78] sm:$0xff]  ;;  %v5827_v51 = vld [vmem:[#allocation4 + $0xc60] sm:$0xff] }
 0x95d   :  { %12328 = vmatpush1.bf16.msra.mxu1 %v5731_v44  ;;  %12584 = vmatpush1.bf16.msra.mxu0 %v5733_v14  ;;  %v5829_v44 = vld [vmem:[#allocation4 + $0xc70] sm:$0xff]  ;;  %v5836_v14 = vld [vmem:[#allocation4 + $0xca8] sm:$0xff] }
 0x95e   :  { %12330 = vmatprep.subr.bf16.mxu1 %v5740_v54  ;;  %12586 = vmatprep.subr.bf16.mxu0 %v5742_v4  ;;  %v5838_v54 = vld [vmem:[#allocation4 + $0xcb8] sm:$0xff]  ;;  %v5835_v4 = vld [vmem:[#allocation4 + $0xca0] sm:$0xff] }
 0x961   :  { %12332 = vmatpush1.bf16.msra.mxu1 %v5739_v28  ;;  %12588 = vmatpush1.bf16.msra.mxu0 %v5741_v41  ;;  %v5837_v28 = vld [vmem:[#allocation4 + $0xcb0] sm:$0xff]  ;;  %v5844_v41 = vld [vmem:[#allocation4 + $0xce8] sm:$0xff] }
 0x962   :  { %12334 = vmatprep.subr.bf16.mxu1 %v5748_v29  ;;  %12590 = vmatprep.subr.bf16.mxu0 %v5750_v19  ;;  %v5843_v29 = vld [vmem:[#allocation4 + $0xce0] sm:$0xff]  ;;  %v5845_v19 = vld [vmem:[#allocation4 + $0xcf0] sm:$0xff] }
 0x965   :  { %12336 = vmatpush1.bf16.msra.mxu1 %v5747_v3  ;;  %12592 = vmatpush1.bf16.msra.mxu0 %v5749_v45  ;;  %v5852_v3 = vld [vmem:[#allocation4 + $0xd28] sm:$0xff]  ;;  %v5854_v45 = vld [vmem:[#allocation4 + $0xd38] sm:$0xff] }
 0x966   :  { %12338 = vmatprep.subr.bf16.mxu1 %v5756_v16  ;;  %12594 = vmatprep.subr.bf16.mxu0 %v5758_v6  ;;  %v5853_v16 = vld [vmem:[#allocation4 + $0xd30] sm:$0xff]  ;;  %v5860_v6 = vld [vmem:[#allocation4 + $0xd68] sm:$0xff] }
 0x969   :  { %12340 = vmatpush1.bf16.msra.mxu1 %v5755_v24  ;;  %12596 = vmatpush1.bf16.msra.mxu0 %v5757_v2  ;;  %v5862_v24 = vld [vmem:[#allocation4 + $0xd78] sm:$0xff]  ;;  %v5859_v2 = vld [vmem:[#allocation4 + $0xd60] sm:$0xff] }
 0x96a   :  { %12342 = vmatprep.subr.bf16.mxu1 %v5764_v52  ;;  %12598 = vmatprep.subr.bf16.mxu0 %v5766_v48  ;;  %v5861_v52 = vld [vmem:[#allocation4 + $0xd70] sm:$0xff] }
 0x96d   :  { %12344 = vmatpush1.bf16.msra.mxu1 %v5763_v57  ;;  %12600 = vmatpush1.bf16.msra.mxu0 %v5765_v25  ;;  %v5868_v25 = vld [vmem:[#allocation4 + $0xda8] sm:$0xff] }
 0x96e   :  { %12346 = vmatprep.subr.bf16.mxu1 %v5772_v7  ;;  %12602 = vmatprep.subr.bf16.mxu0 %v5774_v11  ;;  %v5870_v7 = vld [vmem:[#allocation4 + $0xdb8] sm:$0xff] }
 0x971   :  { %12348 = vmatpush1.bf16.msra.mxu1 %v5771_v56  ;;  %12604 = vmatpush1.bf16.msra.mxu0 %v5773_v47 }
 0x972   :  { %12350 = vmatprep.subr.bf16.mxu1 %v5780_v8  ;;  %12606 = vmatprep.subr.bf16.mxu0 %v5782_v27 }
 0x975   :  { %12352 = vmatpush1.bf16.msra.mxu1 %v5779_v30  ;;  %12608 = vmatpush1.bf16.msra.mxu0 %v5781_v37 }
 0x976   :  { %12354 = vmatprep.subr.bf16.mxu1 %v5788_v61  ;;  %12610 = vmatprep.subr.bf16.mxu0 %v5790_v13 }
 0x979   :  { %12356 = vmatpush1.bf16.msra.mxu1 %v5787_v38  ;;  %12612 = vmatpush1.bf16.msra.mxu0 %v5789_v18 }
 0x97a   :  { %12358 = vmatprep.subr.bf16.mxu1 %v5796_v10  ;;  %12614 = vmatprep.subr.bf16.mxu0 %v5798_v0 }
 0x97d   :  { %12360 = vmatpush1.bf16.msra.mxu1 %v5795_v60  ;;  %12616 = vmatpush1.bf16.msra.mxu0 %v5797_v21  ;;  %v5867_v21 = vld [vmem:[#allocation4 + $0xda0] sm:$0xff] }
 0x97e   :  { %12362 = vmatprep.subr.bf16.mxu1 %v5804_v23  ;;  %12618 = vmatprep.subr.bf16.mxu0 %v5806_v32  ;;  %v5869_v23 = vld [vmem:[#allocation4 + $0xdb0] sm:$0xff] }
 0x981   :  { %12364 = vmatpush1.bf16.msra.mxu1 %v5803_v59  ;;  %12620 = vmatpush1.bf16.msra.mxu0 %v5805_v33 }
 0x982   :  { %12366 = vmatprep.subr.bf16.mxu1 %v5812_v34  ;;  %12622 = vmatprep.subr.bf16.mxu0 %v5814_v22  ;;  %v5876_v22 = vld [vmem:[#allocation4 + $0xde8] sm:$0xff] }
 0x985   :  { %12368 = vmatpush1.bf16.msra.mxu1 %v5811_v62  ;;  %12624 = vmatpush1.bf16.msra.mxu0 %v5813_v12  ;;  %v5878_v62 = vld [vmem:[#allocation4 + $0xdf8] sm:$0xff] }
 0x986   :  { %12370 = vmatprep.subr.bf16.mxu1 %v5820_v1  ;;  %12626 = vmatprep.subr.bf16.mxu0 %v5822_v58 }
 0x988   :  { %7742 = vmatmul.mubr.f32.vlgmr.msra.gmra.mrb[18].mxu1 %v14763_v9  ;;  %8026 = vmatmul.mubr.f32.vlgmr.msra.gmra.mrb[14].mxu0 %v14763_v9  ;;  %v5846_v9 = vld [vmem:[#allocation4 + $0xcf8] sm:$0xff] }
 0x989   :  { %12372 = vmatpush1.bf16.msra.mxu1 %v5819_v31  ;;  %12628 = vmatpush1.bf16.msra.mxu0 %v5821_v42 }
 0x98a   :  { %12374 = vmatprep.subr.bf16.mxu1 %v5828_v53  ;;  %12630 = vmatprep.subr.bf16.mxu0 %v5830_v20 }
 0x98b   :  { %7812 = vmatprep.mubr.f32.mxu1 %v14781_v15  ;;  %8096 = vmatprep.mubr.f32.mxu0 %v14781_v15  ;;  %v5851_v15 = vld [vmem:[#allocation4 + $0xd20] sm:$0xff] }
 0x98d   :  { %12376 = vmatpush1.bf16.msra.mxu1 %v5827_v51  ;;  %12632 = vmatpush1.bf16.msra.mxu0 %v5829_v44 }
 0x98e   :  { %12378 = vmatprep.subr.bf16.mxu1 %v5836_v14  ;;  %12634 = vmatprep.subr.bf16.mxu0 %v5838_v54 }
 0x991   :  { %12380 = vmatpush1.bf16.msra.mxu1 %v5835_v4  ;;  %12636 = vmatpush1.bf16.msra.mxu0 %v5837_v28  ;;  %v5875_v28 = vld [vmem:[#allocation4 + $0xde0] sm:$0xff] }
 0x992   :  { %12382 = vmatprep.subr.bf16.mxu1 %v5844_v41  ;;  %12638 = vmatprep.subr.bf16.mxu0 %v5846_v9  ;;  %v5877_v41 = vld [vmem:[#allocation4 + $0xdf0] sm:$0xff] }
 0x995   :  { %12384 = vmatpush1.bf16.msra.mxu1 %v5843_v29  ;;  %12640 = vmatpush1.bf16.msra.mxu0 %v5845_v19 }
 0x996   :  { %12386 = vmatprep.subr.bf16.mxu1 %v5852_v3  ;;  %12642 = vmatprep.subr.bf16.mxu0 %v5854_v45  ;;  %v5884_v45 = vld [vmem:[#allocation4 + $0xe28] sm:$0xff] }
 0x999   :  { %12388 = vmatpush1.bf16.msra.mxu1 %v5851_v15  ;;  %12644 = vmatpush1.bf16.msra.mxu0 %v5853_v16  ;;  %v5886_v15 = vld [vmem:[#allocation4 + $0xe38] sm:$0xff] }
 0x99a   :  { %12390 = vmatprep.subr.bf16.mxu1 %v5860_v6  ;;  %12646 = vmatprep.subr.bf16.mxu0 %v5862_v24 }
 0x99b   :  { %v14823_v48 = vpop.f32.mrb[16].mxu1  ;;  %v14825_v57 = vpop.f32.mrb[12].mxu0 }
 0x99c   :  { %v8103_v11 = vrot.slane %v14823_v48, 4  ;;  %v8159_v56 = vmul.f32 %v14823_v48, %v14823_v48  ;;  %v8115_v47 = vrot.slane %v14825_v57, 4  ;;  %v8161_v8 = vmul.f32 %v14825_v57, %v14825_v57  ;;  %v14833_v27 = vpop.f32.mrb[17].mxu1  ;;  %v14835_v30 = vpop.f32.mrb[13].mxu0 }
 0x99d   :  { %v8109_v37 = vrot.slane %v14833_v27, 4  ;;  %v8160_v61 = vmul.f32 %v14833_v27, %v14833_v27  ;;  %v8121_v13 = vrot.slane %v14835_v30, 4  ;;  %v8162_v38 = vmul.f32 %v14835_v30, %v14835_v30  ;;  %12392 = vmatpush1.bf16.msra.mxu1 %v5859_v2  ;;  %12648 = vmatpush1.bf16.msra.mxu0 %v5861_v52 }
 0x99e   :  { %v8104_v18 = vadd.f32 %v8103_v11, %v14823_v48  ;;  %v8167_v10 = vrot.slane %v8159_v56, 4  ;;  %v8116_v0 = vadd.f32 %v8115_v47, %v14825_v57  ;;  %v8179_v60 = vrot.slane %v8161_v8, 4  ;;  %12394 = vmatprep.subr.bf16.mxu1 %v5868_v25  ;;  %12650 = vmatprep.subr.bf16.mxu0 %v5870_v7 }
 0x99f   :  { %v8110_v32 = vadd.f32 %v8109_v37, %v14833_v27  ;;  %v8173_v59 = vrot.slane %v8160_v61, 4  ;;  %v8122_v33 = vadd.f32 %v8121_v13, %v14835_v30  ;;  %v8185_v34 = vrot.slane %v8162_v38, 4  ;;  %v5885_v13 = vld [vmem:[#allocation4 + $0xe30] sm:$0xff] }
 0x9a0   :  { %v8105_v12 = vrot.slane %v8104_v18, 2  ;;  %v8168_v1 = vadd.f32 %v8167_v10, %v8159_v56  ;;  %v8117_v58 = vrot.slane %v8116_v0, 2  ;;  %v8180_v31 = vadd.f32 %v8179_v60, %v8161_v8  ;;  %v5892_v60 = vld [vmem:[#allocation4 + $0xe68] sm:$0xff] }
 0x9a1   :  { %v8111_v42 = vrot.slane %v8110_v32, 2  ;;  %v8174_v53 = vadd.f32 %v8173_v59, %v8160_v61  ;;  %v8123_v20 = vrot.slane %v8122_v33, 2  ;;  %v8186_v51 = vadd.f32 %v8185_v34, %v8162_v38  ;;  %12396 = vmatpush1.bf16.msra.mxu1 %v5867_v21  ;;  %12652 = vmatpush1.bf16.msra.mxu0 %v5869_v23  ;;  %v5883_v61 = vld [vmem:[#allocation4 + $0xe20] sm:$0xff]  ;;  %v5894_v21 = vld [vmem:[#allocation4 + $0xe78] sm:$0xff] }
 0x9a2   :  { %v8106_v44 = vadd.f32 %v8105_v12, %v8104_v18  ;;  %v8169_v14 = vrot.slane %v8168_v1, 2  ;;  %v8118_v54 = vadd.f32 %v8117_v58, %v8116_v0  ;;  %v8181_v4 = vrot.slane %v8180_v31, 2  ;;  %12398 = vmatprep.subr.bf16.mxu1 %v5876_v22  ;;  %12654 = vmatprep.subr.bf16.mxu0 %v5878_v62 }
 0x9a3   :  { %v8112_v9 = vadd.f32 %v8111_v42, %v8110_v32  ;;  %v8175_v29 = vrot.slane %v8174_v53, 2  ;;  %v8124_v19 = vadd.f32 %v8123_v20, %v8122_v33  ;;  %v8187_v3 = vrot.slane %v8186_v51, 2  ;;  %v5891_v42 = vld [vmem:[#allocation4 + $0xe60] sm:$0xff] }
 0x9a4   :  { %v8107_v16 = vrot.slane %v8106_v44, 1  ;;  %v8170_v6 = vadd.f32 %v8169_v14, %v8168_v1  ;;  %v8119_v24 = vrot.slane %v8118_v54, 1  ;;  %v8182_v2 = vadd.f32 %v8181_v4, %v8180_v31  ;;  %v5900_v14 = vld [vmem:[#allocation4 + $0xea8] sm:$0xff] }
 0x9a5   :  { %v8113_v52 = vrot.slane %v8112_v9, 1  ;;  %v8176_v25 = vadd.f32 %v8175_v29, %v8174_v53  ;;  %v8125_v7 = vrot.slane %v8124_v19, 1  ;;  %v8188_v11 = vadd.f32 %v8187_v3, %v8186_v51  ;;  %12400 = vmatpush1.bf16.msra.mxu1 %v5875_v28  ;;  %12656 = vmatpush1.bf16.msra.mxu0 %v5877_v41  ;;  %v5893_v53 = vld [vmem:[#allocation4 + $0xe70] sm:$0xff] }
 0x9a6   :  { %v8108_v56 = vadd.f32 %v8107_v16, %v8106_v44  ;;  %v8171_v47 = vrot.slane %v8170_v6, 1  ;;  %v8120_v8 = vadd.f32 %v8119_v24, %v8118_v54  ;;  %v8183_v37 = vrot.slane %v8182_v2, 1  ;;  %12402 = vmatprep.subr.bf16.mxu1 %v5884_v45  ;;  %12658 = vmatprep.subr.bf16.mxu0 %v5886_v15  ;;  %v5902_v54 = vld [vmem:[#allocation4 + $0xeb8] sm:$0xff]  ;;  %v5899_v45 = vld [vmem:[#allocation4 + $0xea0] sm:$0xff]  ;;  %v5901_v15 = vld [vmem:[#allocation4 + $0xeb0] sm:$0xff] }
 0x9a7   :  { %v8114_v38 = vadd.f32 %v8113_v52, %v8112_v9  ;;  %v8177_v18 = vrot.slane %v8176_v25, 1  ;;  %v8126_v10 = vadd.f32 %v8125_v7, %v8124_v19  ;;  %v8189_v0 = vrot.slane %v8188_v11, 1  ;;  %v5908_v24 = vld [vmem:[#allocation4 + $0xee8] sm:$0xff]  ;;  %v5909_v7 = vld [vmem:[#allocation4 + $0xef0] sm:$0xff] }
 0x9a8   :  { %v14847_v23 = vmul.f32 0.125, %v8108_v56  ;;  %v8172_v32 = vadd.f32 %v8171_v47, %v8170_v6  ;;  %v14849_v59 = vmul.f32 0.125, %v8120_v8  ;;  %v8184_v33 = vadd.f32 %v8183_v37, %v8182_v2  ;;  %v5910_v2 = vld [vmem:[#allocation4 + $0xef8] sm:$0xff]  ;;  %v14863_v47 = vld [vmem:[#allocation24] ss:$2 sm:$0xff] }
 0x9a9   :  { %v14851_v34 = vmul.f32 0.125, %v8114_v38  ;;  %v8178_v22 = vadd.f32 %v8177_v18, %v8176_v25  ;;  %v14853_v62 = vmul.f32 0.125, %v8126_v10  ;;  %v8190_v12 = vadd.f32 %v8189_v0, %v8188_v11  ;;  %12404 = vmatpush1.bf16.msra.mxu1 %v5883_v61  ;;  %12660 = vmatpush1.bf16.msra.mxu0 %v5885_v13  ;;  %v5907_v25 = vld [vmem:[#allocation4 + $0xee0] sm:$0xff]  ;;  %v5916_v11 = vld [vmem:[#allocation4 + $0xf28] sm:$0xff]  ;;  %v5918_v56 = vld [vmem:[#allocation4 + $0xf38] sm:$0xff] }
 0x9aa   :  { %v8215_v1 = vmul.f32 0.125, %v8172_v32  ;;  %v8223_v58 = vmul.f32 %v14847_v23, %v14847_v23  ;;  %v8217_v31 = vmul.f32 0.125, %v8184_v33  ;;  %12406 = vmatprep.subr.bf16.mxu1 %v5892_v60  ;;  %12662 = vmatprep.subr.bf16.mxu0 %v5894_v21  ;;  %v8225_v20 = vmul.f32 %v14849_v59, %v14849_v59  ;;  %v5915_v8 = vld [vmem:[#allocation4 + $0xf20] sm:$0xff]  ;;  %v5917_v37 = vld [vmem:[#allocation4 + $0xf30] sm:$0xff]  ;;  %v5924_v61 = vld [vmem:[#allocation4 + $0xf68] sm:$0xff] }
 0x9ab   :  { %v8216_v51 = vmul.f32 0.125, %v8178_v22  ;;  %v8224_v44 = vmul.f32 %v14851_v34, %v14851_v34  ;;  %v8218_v28 = vmul.f32 0.125, %v8190_v12  ;;  %v8226_v41 = vmul.f32 %v14853_v62, %v14853_v62  ;;  %v5926_v13 = vld [vmem:[#allocation4 + $0xf78] sm:$0xff]  ;;  %v14865_v38 = vld [vmem:[#allocation24 + $0x1] ss:$2 sm:$0xff] }
 0x9ac   :  { %v8231_v4 = vsub.f32 %v8215_v1, %v8223_v58  ;;  %v8233_v9 = vsub.f32 %v8217_v31, %v8225_v20  ;;  %v8239_v18 = vsub.f32 %v14823_v48, %v14847_v23  ;;  %v8276_v10 = vrot.slane %v14863_v47, %v14354_v17  ;;  %v5923_v32 = vld [vmem:[#allocation4 + $0xf60] sm:$0xff]  ;;  %v5925_v33 = vld [vmem:[#allocation4 + $0xf70] sm:$0xff]  ;;  %v5932_v58 = vld [vmem:[#allocation4 + $0xfa8] sm:$0xff] }
 0x9ad   :  { %v8232_v29 = vsub.f32 %v8216_v51, %v8224_v44  ;;  %12408 = vmatpush1.bf16.msra.mxu1 %v5891_v42  ;;  %12664 = vmatpush1.bf16.msra.mxu0 %v5893_v53  ;;  %v8234_v3 = vsub.f32 %v8218_v28, %v8226_v41  ;;  %v8241_v60 = vsub.f32 %v14825_v57, %v14849_v59  ;;  %v5934_v57 = vld [vmem:[#allocation4 + $0xfb8] sm:$0xff]  ;;  %v5931_v28 = vld [vmem:[#allocation4 + $0xfa0] sm:$0xff] }
 0x9ae   :  { %v8247_v19 = vadd.f32 1e-05, %v8231_v4  ;;  %12410 = vmatprep.subr.bf16.mxu1 %v5900_v14  ;;  %12666 = vmatprep.subr.bf16.mxu0 %v5902_v54  ;;  %v8249_v16 = vadd.f32 1e-05, %v8233_v9  ;;  %v8284_v21 = vrot.slane %v14863_v47, %v14432_v63  ;;  %v8327_v48 = vrot.slane %v14865_v38, %v14354_v17  ;;  %v5940_v9 = vld [vmem:[#allocation4 + $0xfe8] sm:$0xff] }
 0x9af   :  { %v8248_v6 = vadd.f32 1e-05, %v8232_v29  ;;  %v8250_v52 = vadd.f32 1e-05, %v8234_v3  ;;  %v8240_v23 = vsub.f32 %v14833_v27, %v14851_v34  ;;  %v8280_v1 = vrot.slane %v14863_v47, %v14367_v35  ;;  %v5942_v29 = vld [vmem:[#allocation4 + $0xff8] sm:$0xff] }
 0x9b0   :  { %13541 = vrsqrt.f32 %v8247_v19  ;;  %v8335_v42 = vrot.slane %v14865_v38, %v14432_v63  ;;  %v8242_v53 = vsub.f32 %v14835_v30, %v14853_v62  ;;  %v8288_v20 = vrot.slane %v14863_v47, %v14435_v5  ;;  %v5933_v30 = vld [vmem:[#allocation4 + $0xfb0] sm:$0xff] }
 0x9b1   :  { %13543 = vrsqrt.f32 %v8249_v16  ;;  %12412 = vmatpush1.bf16.msra.mxu1 %v5899_v45  ;;  %12668 = vmatpush1.bf16.msra.mxu0 %v5901_v15  ;;  %v8331_v27 = vrot.slane %v14865_v38, %v14367_v35  ;;  %v8339_v4 = vrot.slane %v14865_v38, %v14435_v5 }
 0x9b2   :  { %13545 = vrsqrt.f32 %v8248_v6  ;;  %12414 = vmatprep.subr.bf16.mxu1 %v5908_v24  ;;  %12670 = vmatprep.subr.bf16.mxu0 %v5910_v2  ;;  %v5939_v24 = vld [vmem:[#allocation4 + $0xfe0] sm:$0xff]  ;;  %v5941_v2 = vld [vmem:[#allocation4 + $0xff0] sm:$0xff] }
 0x9b3   :  { %13547 = vrsqrt.f32 %v8250_v52 }
 0x9b5   :  { %12416 = vmatpush1.bf16.msra.mxu1 %v5907_v25  ;;  %12672 = vmatpush1.bf16.msra.mxu0 %v5909_v7 }
 0x9b6   :  { %12418 = vmatprep.subr.bf16.mxu1 %v5916_v11  ;;  %12674 = vmatprep.subr.bf16.mxu0 %v5918_v56 }
 0x9b9   :  { %12420 = vmatpush1.bf16.msra.mxu1 %v5915_v8  ;;  %12676 = vmatpush1.bf16.msra.mxu0 %v5917_v37 }
 0x9ba   :  { %v13542_v0 = vpop.eup %13541  ;;  %12422 = vmatprep.subr.bf16.mxu1 %v5924_v61  ;;  %12678 = vmatprep.subr.bf16.mxu0 %v5926_v13 }
 0x9bb   :  { %v13544_v22 = vpop.eup %13543  ;;  %v8263_v12 = vmul.f32 %v13542_v0, %v8239_v18 }
 0x9bc   :  { %v13546_v59 = vpop.eup %13545  ;;  %v8265_v31 = vmul.f32 %v13544_v22, %v8241_v60 }
 0x9bd   :  { %v13548_v51 = vpop.eup %13547  ;;  %v8313_v44 = vmul.f32 %v8276_v10, %v8263_v12  ;;  %v8264_v14 = vmul.f32 %v13546_v59, %v8240_v23  ;;  %12424 = vmatpush1.bf16.msra.mxu1 %v5923_v32  ;;  %12680 = vmatpush1.bf16.msra.mxu0 %v5925_v33 }
 0x9be   :  { %v8315_v34 = vmul.f32 %v8284_v21, %v8265_v31  ;;  %v8266_v54 = vmul.f32 %v13548_v51, %v8242_v53  ;;  %12426 = vmatprep.subr.bf16.mxu1 %v5932_v58  ;;  %12682 = vmatprep.subr.bf16.mxu0 %v5934_v57 }
 0x9bf   :  { %v14891_v62 = vadd.f32 %v8327_v48, %v8313_v44  ;;  %v8314_v41 = vmul.f32 %v8280_v1, %v8264_v14 }
 0x9c0   :  { %v14893_v19 = vadd.f32 %v8335_v42, %v8315_v34  ;;  %v8316_v3 = vmul.f32 %v8288_v20, %v8266_v54 }
 0x9c1   :  { %v8372_v45 = vmax.f32 %v14891_v62, 0.0  ;;  %v14896_v15 = vadd.f32 %v8331_v27, %v8314_v41  ;;  %12428 = vmatpush1.bf16.msra.mxu1 %v5931_v28  ;;  %12684 = vmatpush1.bf16.msra.mxu0 %v5933_v30 }
 0x9c2   :  { %v8374_v16 = vmax.f32 %v14893_v19, 0.0  ;;  %v14899_v6 = vadd.f32 %v8339_v4, %v8316_v3  ;;  %12430 = vmatprep.subr.bf16.mxu1 %v5940_v9  ;;  %12686 = vmatprep.subr.bf16.mxu0 %v5942_v29 }
 0x9c3   :  { %v8373_v52 = vmax.f32 %v14896_v15, 0.0 }
 0x9c4   :  { %v8375_v25 = vmax.f32 %v14899_v6, 0.0 }
 0x9c5   :  { %12432 = vmatpush1.bf16.msra.mxu1 %v5939_v24  ;;  %12688 = vmatpush1.bf16.msra.mxu0 %v5941_v2 }
 0x9c8   :  { %7813 = vmatmul.mubr.f32.vlgmr.msra.gmra.mrb[18].mxu1 %v14774_v26  ;;  %8097 = vmatmul.mubr.f32.vlgmr.msra.gmra.mrb[14].mxu0 %v14774_v26 }
 0xa9b   :  { %v14905_v7 = vpop.f32.mrb[18].mxu1  ;;  %v14907_v11 = vpop.f32.mrb[14].mxu0 }
 0xa9c   :  { %v8127_v56 = vrot.slane %v14905_v7, 4  ;;  %v8163_v8 = vmul.f32 %v14905_v7, %v14905_v7  ;;  %v8139_v37 = vrot.slane %v14907_v11, 4  ;;  %v8165_v61 = vmul.f32 %v14907_v11, %v14907_v11  ;;  %v14915_v13 = vpop.f32.mrb[19].mxu1  ;;  %v14917_v18 = vpop.f32.mrb[15].mxu0 }
 0xa9d   :  { %v8133_v26 = vrot.slane %v14915_v13, 4  ;;  %v8164_v10 = vmul.f32 %v14915_v13, %v14915_v13  ;;  %v8145_v0 = vrot.slane %v14917_v18, 4  ;;  %v8166_v60 = vmul.f32 %v14917_v18, %v14917_v18 }
 0xa9e   :  { %v8128_v21 = vadd.f32 %v8127_v56, %v14905_v7  ;;  %v8191_v32 = vrot.slane %v8163_v8, 4  ;;  %v8140_v33 = vadd.f32 %v8139_v37, %v14907_v11  ;;  %v8203_v22 = vrot.slane %v8165_v61, 4 }
 0xa9f   :  { %v8134_v12 = vadd.f32 %v8133_v26, %v14915_v13  ;;  %v8197_v48 = vrot.slane %v8164_v10, 4  ;;  %v8146_v23 = vadd.f32 %v8145_v0, %v14917_v18  ;;  %v8209_v1 = vrot.slane %v8166_v60, 4 }
 0xaa0   :  { %v8129_v58 = vrot.slane %v8128_v21, 2  ;;  %v8192_v57 = vadd.f32 %v8191_v32, %v8163_v8  ;;  %v8141_v59 = vrot.slane %v8140_v33, 2  ;;  %v8204_v31 = vadd.f32 %v8203_v22, %v8165_v61 }
 0xaa1   :  { %v8135_v42 = vrot.slane %v8134_v12, 2  ;;  %v8198_v53 = vadd.f32 %v8197_v48, %v8164_v10  ;;  %v8147_v20 = vrot.slane %v8146_v23, 2  ;;  %v8210_v51 = vadd.f32 %v8209_v1, %v8166_v60 }
 0xaa2   :  { %v8130_v44 = vadd.f32 %v8129_v58, %v8128_v21  ;;  %v8193_v14 = vrot.slane %v8192_v57, 2  ;;  %v8142_v27 = vadd.f32 %v8141_v59, %v8140_v33  ;;  %v8205_v34 = vrot.slane %v8204_v31, 2 }
 0xaa3   :  { %v8136_v54 = vadd.f32 %v8135_v42, %v8134_v12  ;;  %v8199_v4 = vrot.slane %v8198_v53, 2  ;;  %v8148_v28 = vadd.f32 %v8147_v20, %v8146_v23  ;;  %v8211_v30 = vrot.slane %v8210_v51, 2 }
 0xaa4   :  { %v8131_v41 = vrot.slane %v8130_v44, 1  ;;  %v8194_v9 = vadd.f32 %v8193_v14, %v8192_v57  ;;  %v8143_v29 = vrot.slane %v8142_v27, 1  ;;  %v8206_v3 = vadd.f32 %v8205_v34, %v8204_v31 }
 0xaa5   :  { %v8137_v24 = vrot.slane %v8136_v54, 1  ;;  %v8200_v2 = vadd.f32 %v8199_v4, %v8198_v53  ;;  %v8149_v56 = vrot.slane %v8148_v28, 1  ;;  %v8212_v8 = vadd.f32 %v8211_v30, %v8210_v51 }
 0xaa6   :  { %v8132_v37 = vadd.f32 %v8131_v41, %v8130_v44  ;;  %v8195_v61 = vrot.slane %v8194_v9, 1  ;;  %v8144_v26 = vadd.f32 %v8143_v29, %v8142_v27  ;;  %v8207_v10 = vrot.slane %v8206_v3, 1 }
 0xaa7   :  { %v8138_v0 = vadd.f32 %v8137_v24, %v8136_v54  ;;  %v8201_v60 = vrot.slane %v8200_v2, 1  ;;  %v8150_v21 = vadd.f32 %v8149_v56, %v8148_v28  ;;  %v8213_v32 = vrot.slane %v8212_v8, 1 }
 0xaa8   :  { %v8155_v33 = vmul.f32 0.125, %v8132_v37  ;;  %v8196_v22 = vadd.f32 %v8195_v61, %v8194_v9  ;;  %v8157_v12 = vmul.f32 0.125, %v8144_v26  ;;  %v8208_v48 = vadd.f32 %v8207_v10, %v8206_v3 }
 0xaa9   :  { %v8156_v23 = vmul.f32 0.125, %v8138_v0  ;;  %v8202_v1 = vadd.f32 %v8201_v60, %v8200_v2  ;;  %v8158_v58 = vmul.f32 0.125, %v8150_v21  ;;  %v8214_v57 = vadd.f32 %v8213_v32, %v8212_v8 }
 0xaaa   :  { %v8219_v59 = vmul.f32 0.125, %v8196_v22  ;;  %v8227_v31 = vmul.f32 %v8155_v33, %v8155_v33  ;;  %v8221_v42 = vmul.f32 0.125, %v8208_v48  ;;  %v8229_v53 = vmul.f32 %v8157_v12, %v8157_v12 }
 0xaab   :  { %v8220_v20 = vmul.f32 0.125, %v8202_v1  ;;  %v8228_v51 = vmul.f32 %v8156_v23, %v8156_v23  ;;  %v8222_v14 = vmul.f32 0.125, %v8214_v57  ;;  %v8230_v27 = vmul.f32 %v8158_v58, %v8158_v58 }
 0xaac   :  { %v8235_v44 = vsub.f32 %v8219_v59, %v8227_v31  ;;  %v8237_v34 = vsub.f32 %v8221_v42, %v8229_v53  ;;  %v8243_v29 = vsub.f32 %v14905_v7, %v8155_v33  ;;  %v8292_v3 = vrot.slane %v14863_v47, %v14454_v49 }
 0xaad   :  { %v8236_v54 = vsub.f32 %v8220_v20, %v8228_v51  ;;  %v8238_v28 = vsub.f32 %v8222_v14, %v8230_v27  ;;  %v8245_v2 = vsub.f32 %v14907_v11, %v8157_v12  ;;  %v8300_v56 = vrot.slane %v14863_v47, %v14374_v43 }
 0xaae   :  { %v8251_v4 = vadd.f32 1e-05, %v8235_v44  ;;  %v8253_v30 = vadd.f32 1e-05, %v8237_v34  ;;  %v8343_v61 = vrot.slane %v14865_v38, %v14454_v49  ;;  %v8244_v26 = vsub.f32 %v14915_v13, %v8156_v23 }
 0xaaf   :  { %v8252_v41 = vadd.f32 1e-05, %v8236_v54  ;;  %v8254_v9 = vadd.f32 1e-05, %v8238_v28  ;;  %v8296_v10 = vrot.slane %v14863_v47, %v14460_v55  ;;  %v8351_v60 = vrot.slane %v14865_v38, %v14374_v43 }
 0xab0   :  { %13549 = vrsqrt.f32 %v8251_v4  ;;  %v8246_v11 = vsub.f32 %v14917_v18, %v8158_v58  ;;  %v8304_v21 = vrot.slane %v14863_v47, %v14381_v50  ;;  %v8347_v49 = vrot.slane %v14865_v38, %v14460_v55 }
 0xab1   :  { %13551 = vrsqrt.f32 %v8253_v30  ;;  %v8355_v48 = vrot.slane %v14865_v38, %v14381_v50 }
 0xab2   :  { %13553 = vrsqrt.f32 %v8252_v41 }
 0xab3   :  { %13555 = vrsqrt.f32 %v8254_v9 }
 0xaba   :  { %v13550_v24 = vpop.eup %13549 }
 0xabb   :  { %v13552_v8 = vpop.eup %13551  ;;  %v8267_v37 = vmul.f32 %v13550_v24, %v8243_v29 }
 0xabc   :  { %v13554_v7 = vpop.eup %13553  ;;  %v8269_v0 = vmul.f32 %v13552_v8, %v8245_v2 }
 0xabd   :  { %v13556_v32 = vpop.eup %13555  ;;  %v8317_v33 = vmul.f32 %v8292_v3, %v8267_v37  ;;  %v8268_v22 = vmul.f32 %v13554_v7, %v8244_v26 }
 0xabe   :  { %v8319_v13 = vmul.f32 %v8300_v56, %v8269_v0  ;;  %v8270_v12 = vmul.f32 %v13556_v32, %v8246_v11 }
 0xabf   :  { %v14949_v23 = vadd.f32 %v8343_v61, %v8317_v33  ;;  %v8318_v1 = vmul.f32 %v8296_v10, %v8268_v22 }
 0xac0   :  { %v14951_v43 = vadd.f32 %v8351_v60, %v8319_v13  ;;  %v8320_v18 = vmul.f32 %v8304_v21, %v8270_v12 }
 0xac1   :  { %v8376_v58 = vmax.f32 %v14949_v23, 0.0  ;;  %v14954_v47 = vadd.f32 %v8347_v49, %v8318_v1 }
 0xac2   :  { %v8378_v57 = vmax.f32 %v14951_v43, 0.0  ;;  %v14957_v59 = vadd.f32 %v8355_v48, %v8320_v18 }
 0xac3   :  { %v8377_v55 = vmax.f32 %v14954_v47, 0.0 }
 0xac4   :  { %v8379_v31 = vmax.f32 %v14957_v59, 0.0 }
 0xac5   :  { %13867 = dma.done.wait [#allocation9 + $0x3], 16384 }
 0xac6   :  { %13868 = vsyncadd [#allocation9 + $0x3], 4294950912  ;;  %8830 = vmatprep.mubr.f32.mxu1 %v8373_v52  ;;  %v8383_v50 = vld [vmem:[#allocation5 + $0x8] sm:$0xff]  ;;  %v8382_v38 = vld [vmem:[#allocation5] sm:$0xff] }
 0xac7   :  { %v8385_v42 = vld [vmem:[#allocation5 + $0x18] sm:$0xff]  ;;  %12690 = vmatprep.subr.bf16.mxu1 %v8383_v50  ;;  %v8384_v53 = vld [vmem:[#allocation5 + $0x10] sm:$0xff]  ;;  %v8387_v20 = vld [vmem:[#allocation5 + $0x28] sm:$0xff] }
 0xac8   :  { %12692 = vmatpush1.bf16.msra.mxu1 %v8382_v38  ;;  %v8386_v51 = vld [vmem:[#allocation5 + $0x20] sm:$0xff]  ;;  %v8389_v44 = vld [vmem:[#allocation5 + $0x38] sm:$0xff]  ;;  %v8388_v14 = vld [vmem:[#allocation5 + $0x30] sm:$0xff] }
 0xac9   :  { %12694 = vmatprep.subr.bf16.mxu1 %v8385_v42  ;;  %v8391_v27 = vld [vmem:[#allocation5 + $0x48] sm:$0xff]  ;;  %v8390_v15 = vld [vmem:[#allocation5 + $0x40] sm:$0xff]  ;;  %v8393_v52 = vld [vmem:[#allocation5 + $0x58] sm:$0xff] }
 0xaca   :  { %v8392_v34 = vld [vmem:[#allocation5 + $0x50] sm:$0xff]  ;;  %v8395_v54 = vld [vmem:[#allocation5 + $0x68] sm:$0xff]  ;;  %v8394_v4 = vld [vmem:[#allocation5 + $0x60] sm:$0xff] }
 0xacb   :  { %v8397_v28 = vld [vmem:[#allocation5 + $0x78] sm:$0xff]  ;;  %v8396_v30 = vld [vmem:[#allocation5 + $0x70] sm:$0xff]  ;;  %v8399_v41 = vld [vmem:[#allocation5 + $0x88] sm:$0xff] }
 0xacc   :  { %12696 = vmatpush1.bf16.msra.mxu1 %v8384_v53  ;;  %v8398_v9 = vld [vmem:[#allocation5 + $0x80] sm:$0xff]  ;;  %v8401_v29 = vld [vmem:[#allocation5 + $0x98] sm:$0xff]  ;;  %v8400_v3 = vld [vmem:[#allocation5 + $0x90] sm:$0xff] }
 0xacd   :  { %12698 = vmatprep.subr.bf16.mxu1 %v8387_v20  ;;  %v8403_v24 = vld [vmem:[#allocation5 + $0xa8] sm:$0xff]  ;;  %v8402_v2 = vld [vmem:[#allocation5 + $0xa0] sm:$0xff]  ;;  %v8405_v56 = vld [vmem:[#allocation5 + $0xb8] sm:$0xff] }
 0xace   :  { %v8404_v8 = vld [vmem:[#allocation5 + $0xb0] sm:$0xff]  ;;  %v8407_v37 = vld [vmem:[#allocation5 + $0xc8] sm:$0xff]  ;;  %v8406_v61 = vld [vmem:[#allocation5 + $0xc0] sm:$0xff] }
 0xacf   :  { %v8409_v26 = vld [vmem:[#allocation5 + $0xd8] sm:$0xff]  ;;  %v8408_v10 = vld [vmem:[#allocation5 + $0xd0] sm:$0xff]  ;;  %v8411_v7 = vld [vmem:[#allocation5 + $0xe8] sm:$0xff] }
 0xad0   :  { %12700 = vmatpush1.bf16.msra.mxu1 %v8386_v51  ;;  %v8410_v0 = vld [vmem:[#allocation5 + $0xe0] sm:$0xff]  ;;  %v8413_v60 = vld [vmem:[#allocation5 + $0xf8] sm:$0xff]  ;;  %v8412_v11 = vld [vmem:[#allocation5 + $0xf0] sm:$0xff] }
 0xad1   :  { %12702 = vmatprep.subr.bf16.mxu1 %v8389_v44  ;;  %v8415_v21 = vld [vmem:[#allocation5 + $0x108] sm:$0xff]  ;;  %v8414_v32 = vld [vmem:[#allocation5 + $0x100] sm:$0xff]  ;;  %v8417_v33 = vld [vmem:[#allocation5 + $0x118] sm:$0xff] }
 0xad2   :  { %v8416_v22 = vld [vmem:[#allocation5 + $0x110] sm:$0xff]  ;;  %v8419_v49 = vld [vmem:[#allocation5 + $0x128] sm:$0xff]  ;;  %v8418_v13 = vld [vmem:[#allocation5 + $0x120] sm:$0xff] }
 0xad3   :  { %v8421_v12 = vld [vmem:[#allocation5 + $0x138] sm:$0xff]  ;;  %v8420_v48 = vld [vmem:[#allocation5 + $0x130] sm:$0xff]  ;;  %v8423_v1 = vld [vmem:[#allocation5 + $0x148] sm:$0xff] }
 0xad4   :  { %12704 = vmatpush1.bf16.msra.mxu1 %v8388_v14  ;;  %v8422_v18 = vld [vmem:[#allocation5 + $0x140] sm:$0xff]  ;;  %v8425_v62 = vld [vmem:[#allocation5 + $0x158] sm:$0xff]  ;;  %v8427_v6 = vld [vmem:[#allocation5 + $0x168] sm:$0xff] }
 0xad5   :  { %12706 = vmatprep.subr.bf16.mxu1 %v8391_v27  ;;  %v8429_v50 = vld [vmem:[#allocation5 + $0x178] sm:$0xff]  ;;  %v8428_v38 = vld [vmem:[#allocation5 + $0x170] sm:$0xff]  ;;  %v8431_v42 = vld [vmem:[#allocation5 + $0x188] sm:$0xff] }
 0xad6   :  { %v8430_v53 = vld [vmem:[#allocation5 + $0x180] sm:$0xff]  ;;  %v8433_v20 = vld [vmem:[#allocation5 + $0x198] sm:$0xff]  ;;  %v8432_v51 = vld [vmem:[#allocation5 + $0x190] sm:$0xff] }
 0xad7   :  { %v8435_v44 = vld [vmem:[#allocation5 + $0x1a8] sm:$0xff]  ;;  %v8434_v14 = vld [vmem:[#allocation5 + $0x1a0] sm:$0xff]  ;;  %v8437_v27 = vld [vmem:[#allocation5 + $0x1b8] sm:$0xff] }
 0xad8   :  { %12708 = vmatpush1.bf16.msra.mxu1 %v8390_v15  ;;  %v8436_v15 = vld [vmem:[#allocation5 + $0x1b0] sm:$0xff]  ;;  %v8457_v19 = vld [vmem:[#allocation5 + $0x258] sm:$0xff]  ;;  %v8459_v47 = vld [vmem:[#allocation5 + $0x268] sm:$0xff] }
 0xad9   :  { %12710 = vmatprep.subr.bf16.mxu1 %v8393_v52  ;;  %v8439_v52 = vld [vmem:[#allocation5 + $0x1c8] sm:$0xff]  ;;  %v8489_v23 = vld [vmem:[#allocation5 + $0x358] sm:$0xff] }
 0xada   :  { %v8491_v59 = vld [vmem:[#allocation5 + $0x368] sm:$0xff] }
 0xadc   :  { %12712 = vmatpush1.bf16.msra.mxu1 %v8392_v34  ;;  %v8438_v34 = vld [vmem:[#allocation5 + $0x1c0] sm:$0xff] }
 0xadd   :  { %12714 = vmatprep.subr.bf16.mxu1 %v8395_v54  ;;  %v8441_v54 = vld [vmem:[#allocation5 + $0x1d8] sm:$0xff] }
 0xae0   :  { %12716 = vmatpush1.bf16.msra.mxu1 %v8394_v4  ;;  %v8440_v4 = vld [vmem:[#allocation5 + $0x1d0] sm:$0xff] }
 0xae1   :  { %12718 = vmatprep.subr.bf16.mxu1 %v8397_v28  ;;  %v8443_v28 = vld [vmem:[#allocation5 + $0x1e8] sm:$0xff] }
 0xae4   :  { %12720 = vmatpush1.bf16.msra.mxu1 %v8396_v30  ;;  %v8442_v30 = vld [vmem:[#allocation5 + $0x1e0] sm:$0xff] }
 0xae5   :  { %12722 = vmatprep.subr.bf16.mxu1 %v8399_v41  ;;  %v8445_v41 = vld [vmem:[#allocation5 + $0x1f8] sm:$0xff] }
 0xae8   :  { %12724 = vmatpush1.bf16.msra.mxu1 %v8398_v9  ;;  %v8444_v9 = vld [vmem:[#allocation5 + $0x1f0] sm:$0xff] }
 0xae9   :  { %12726 = vmatprep.subr.bf16.mxu1 %v8401_v29  ;;  %v8447_v29 = vld [vmem:[#allocation5 + $0x208] sm:$0xff] }
 0xaec   :  { %12728 = vmatpush1.bf16.msra.mxu1 %v8400_v3  ;;  %v8446_v3 = vld [vmem:[#allocation5 + $0x200] sm:$0xff] }
 0xaed   :  { %12730 = vmatprep.subr.bf16.mxu1 %v8403_v24  ;;  %v8449_v24 = vld [vmem:[#allocation5 + $0x218] sm:$0xff] }
 0xaf0   :  { %12732 = vmatpush1.bf16.msra.mxu1 %v8402_v2  ;;  %v8448_v2 = vld [vmem:[#allocation5 + $0x210] sm:$0xff] }
 0xaf1   :  { %12734 = vmatprep.subr.bf16.mxu1 %v8405_v56  ;;  %v8451_v56 = vld [vmem:[#allocation5 + $0x228] sm:$0xff] }
 0xaf4   :  { %12736 = vmatpush1.bf16.msra.mxu1 %v8404_v8  ;;  %v8450_v8 = vld [vmem:[#allocation5 + $0x220] sm:$0xff] }
 0xaf5   :  { %12738 = vmatprep.subr.bf16.mxu1 %v8407_v37  ;;  %v8453_v37 = vld [vmem:[#allocation5 + $0x238] sm:$0xff] }
 0xaf8   :  { %12740 = vmatpush1.bf16.msra.mxu1 %v8406_v61  ;;  %v8452_v61 = vld [vmem:[#allocation5 + $0x230] sm:$0xff] }
 0xaf9   :  { %12742 = vmatprep.subr.bf16.mxu1 %v8409_v26  ;;  %v8455_v26 = vld [vmem:[#allocation5 + $0x248] sm:$0xff] }
 0xafc   :  { %12744 = vmatpush1.bf16.msra.mxu1 %v8408_v10  ;;  %v8454_v10 = vld [vmem:[#allocation5 + $0x240] sm:$0xff] }
 0xafd   :  { %12746 = vmatprep.subr.bf16.mxu1 %v8411_v7  ;;  %v8461_v7 = vld [vmem:[#allocation5 + $0x278] sm:$0xff] }
 0xb00   :  { %12748 = vmatpush1.bf16.msra.mxu1 %v8410_v0  ;;  %v8460_v0 = vld [vmem:[#allocation5 + $0x270] sm:$0xff] }
 0xb01   :  { %12750 = vmatprep.subr.bf16.mxu1 %v8413_v60  ;;  %v8463_v60 = vld [vmem:[#allocation5 + $0x288] sm:$0xff] }
 0xb04   :  { %12752 = vmatpush1.bf16.msra.mxu1 %v8412_v11  ;;  %v8462_v11 = vld [vmem:[#allocation5 + $0x280] sm:$0xff] }
 0xb05   :  { %12754 = vmatprep.subr.bf16.mxu1 %v8415_v21  ;;  %v8465_v21 = vld [vmem:[#allocation5 + $0x298] sm:$0xff] }
 0xb07   :  { %8831 = vmatmul.mubr.f32.vlgmr.msra.gmra.mrb[20].mxu1 %v8372_v45  ;;  %v8424_v45 = vld [vmem:[#allocation5 + $0x150] sm:$0xff] }
 0xb08   :  { %12756 = vmatpush1.bf16.msra.mxu1 %v8414_v32  ;;  %8901 = vmatprep.mubr.f32.mxu1 %v8375_v25  ;;  %v8426_v25 = vld [vmem:[#allocation5 + $0x160] sm:$0xff]  ;;  %v8464_v32 = vld [vmem:[#allocation5 + $0x290] sm:$0xff] }
 0xb09   :  { %12758 = vmatprep.subr.bf16.mxu1 %v8417_v33  ;;  %v8467_v33 = vld [vmem:[#allocation5 + $0x2a8] sm:$0xff] }
 0xb0c   :  { %12760 = vmatpush1.bf16.msra.mxu1 %v8416_v22  ;;  %v8466_v22 = vld [vmem:[#allocation5 + $0x2a0] sm:$0xff] }
 0xb0d   :  { %12762 = vmatprep.subr.bf16.mxu1 %v8419_v49  ;;  %v8469_v49 = vld [vmem:[#allocation5 + $0x2b8] sm:$0xff] }
 0xb10   :  { %12764 = vmatpush1.bf16.msra.mxu1 %v8418_v13  ;;  %v8468_v13 = vld [vmem:[#allocation5 + $0x2b0] sm:$0xff] }
 0xb11   :  { %12766 = vmatprep.subr.bf16.mxu1 %v8421_v12  ;;  %v8471_v12 = vld [vmem:[#allocation5 + $0x2c8] sm:$0xff] }
 0xb14   :  { %12768 = vmatpush1.bf16.msra.mxu1 %v8420_v48  ;;  %v8470_v48 = vld [vmem:[#allocation5 + $0x2c0] sm:$0xff] }
 0xb15   :  { %12770 = vmatprep.subr.bf16.mxu1 %v8423_v1  ;;  %v8473_v1 = vld [vmem:[#allocation5 + $0x2d8] sm:$0xff] }
 0xb18   :  { %12772 = vmatpush1.bf16.msra.mxu1 %v8422_v18  ;;  %v8472_v18 = vld [vmem:[#allocation5 + $0x2d0] sm:$0xff] }
 0xb19   :  { %12774 = vmatprep.subr.bf16.mxu1 %v8425_v62  ;;  %v8475_v62 = vld [vmem:[#allocation5 + $0x2e8] sm:$0xff] }
 0xb1c   :  { %12776 = vmatpush1.bf16.msra.mxu1 %v8424_v45  ;;  %v8474_v45 = vld [vmem:[#allocation5 + $0x2e0] sm:$0xff] }
 0xb1d   :  { %12778 = vmatprep.subr.bf16.mxu1 %v8427_v6  ;;  %v8477_v6 = vld [vmem:[#allocation5 + $0x2f8] sm:$0xff] }
 0xb20   :  { %12780 = vmatpush1.bf16.msra.mxu1 %v8426_v25  ;;  %v8476_v25 = vld [vmem:[#allocation5 + $0x2f0] sm:$0xff] }
 0xb21   :  { %12782 = vmatprep.subr.bf16.mxu1 %v8429_v50  ;;  %v8479_v50 = vld [vmem:[#allocation5 + $0x308] sm:$0xff] }
 0xb24   :  { %12784 = vmatpush1.bf16.msra.mxu1 %v8428_v38  ;;  %v8478_v38 = vld [vmem:[#allocation5 + $0x300] sm:$0xff] }
 0xb25   :  { %12786 = vmatprep.subr.bf16.mxu1 %v8431_v42  ;;  %v8481_v42 = vld [vmem:[#allocation5 + $0x318] sm:$0xff] }
 0xb28   :  { %12788 = vmatpush1.bf16.msra.mxu1 %v8430_v53  ;;  %v8480_v53 = vld [vmem:[#allocation5 + $0x310] sm:$0xff] }
 0xb29   :  { %12790 = vmatprep.subr.bf16.mxu1 %v8433_v20  ;;  %v8483_v20 = vld [vmem:[#allocation5 + $0x328] sm:$0xff] }
 0xb2c   :  { %12792 = vmatpush1.bf16.msra.mxu1 %v8432_v51  ;;  %v8482_v51 = vld [vmem:[#allocation5 + $0x320] sm:$0xff] }
 0xb2d   :  { %12794 = vmatprep.subr.bf16.mxu1 %v8435_v44  ;;  %v8485_v44 = vld [vmem:[#allocation5 + $0x338] sm:$0xff] }
 0xb30   :  { %12796 = vmatpush1.bf16.msra.mxu1 %v8434_v14  ;;  %v8484_v14 = vld [vmem:[#allocation5 + $0x330] sm:$0xff] }
 0xb31   :  { %12798 = vmatprep.subr.bf16.mxu1 %v8437_v27  ;;  %v8487_v27 = vld [vmem:[#allocation5 + $0x348] sm:$0xff] }
 0xb34   :  { %12800 = vmatpush1.bf16.msra.mxu1 %v8436_v15  ;;  %v8486_v15 = vld [vmem:[#allocation5 + $0x340] sm:$0xff] }
 0xb35   :  { %12802 = vmatprep.subr.bf16.mxu1 %v8439_v52  ;;  %v8493_v52 = vld [vmem:[#allocation5 + $0x378] sm:$0xff] }
 0xb38   :  { %12804 = vmatpush1.bf16.msra.mxu1 %v8438_v34  ;;  %v8492_v34 = vld [vmem:[#allocation5 + $0x370] sm:$0xff] }
 0xb39   :  { %12806 = vmatprep.subr.bf16.mxu1 %v8441_v54  ;;  %v8495_v54 = vld [vmem:[#allocation5 + $0x388] sm:$0xff] }
 0xb3c   :  { %12808 = vmatpush1.bf16.msra.mxu1 %v8440_v4  ;;  %v8494_v4 = vld [vmem:[#allocation5 + $0x380] sm:$0xff] }
 0xb3d   :  { %12810 = vmatprep.subr.bf16.mxu1 %v8443_v28  ;;  %v8497_v28 = vld [vmem:[#allocation5 + $0x398] sm:$0xff] }
 0xb40   :  { %12812 = vmatpush1.bf16.msra.mxu1 %v8442_v30  ;;  %v8496_v30 = vld [vmem:[#allocation5 + $0x390] sm:$0xff] }
 0xb41   :  { %12814 = vmatprep.subr.bf16.mxu1 %v8445_v41  ;;  %v8499_v41 = vld [vmem:[#allocation5 + $0x3a8] sm:$0xff] }
 0xb44   :  { %12816 = vmatpush1.bf16.msra.mxu1 %v8444_v9  ;;  %v8498_v9 = vld [vmem:[#allocation5 + $0x3a0] sm:$0xff] }
 0xb45   :  { %12818 = vmatprep.subr.bf16.mxu1 %v8447_v29  ;;  %v8501_v29 = vld [vmem:[#allocation5 + $0x3b8] sm:$0xff] }
 0xb47   :  { %8902 = vmatmul.mubr.f32.vlgmr.msra.gmra.mrb[20].mxu1 %v8374_v16  ;;  %v8456_v16 = vld [vmem:[#allocation5 + $0x250] sm:$0xff] }
 0xb48   :  { %12820 = vmatpush1.bf16.msra.mxu1 %v8446_v3  ;;  %8972 = vmatprep.mubr.f32.mxu1 %v8377_v55  ;;  %v8458_v55 = vld [vmem:[#allocation5 + $0x260] sm:$0xff]  ;;  %v8500_v3 = vld [vmem:[#allocation5 + $0x3b0] sm:$0xff] }
 0xb49   :  { %12822 = vmatprep.subr.bf16.mxu1 %v8449_v24  ;;  %v8503_v24 = vld [vmem:[#allocation5 + $0x3c8] sm:$0xff] }
 0xb4c   :  { %12824 = vmatpush1.bf16.msra.mxu1 %v8448_v2  ;;  %v8502_v2 = vld [vmem:[#allocation5 + $0x3c0] sm:$0xff] }
 0xb4d   :  { %12826 = vmatprep.subr.bf16.mxu1 %v8451_v56  ;;  %v8505_v56 = vld [vmem:[#allocation5 + $0x3d8] sm:$0xff] }
 0xb50   :  { %12828 = vmatpush1.bf16.msra.mxu1 %v8450_v8  ;;  %v8504_v8 = vld [vmem:[#allocation5 + $0x3d0] sm:$0xff] }
 0xb51   :  { %12830 = vmatprep.subr.bf16.mxu1 %v8453_v37  ;;  %v8507_v37 = vld [vmem:[#allocation5 + $0x3e8] sm:$0xff] }
 0xb54   :  { %12832 = vmatpush1.bf16.msra.mxu1 %v8452_v61  ;;  %v8506_v61 = vld [vmem:[#allocation5 + $0x3e0] sm:$0xff] }
 0xb55   :  { %12834 = vmatprep.subr.bf16.mxu1 %v8455_v26  ;;  %v8509_v26 = vld [vmem:[#allocation5 + $0x3f8] sm:$0xff] }
 0xb58   :  { %12836 = vmatpush1.bf16.msra.mxu1 %v8454_v10  ;;  %v8508_v10 = vld [vmem:[#allocation5 + $0x3f0] sm:$0xff] }
 0xb59   :  { %12838 = vmatprep.subr.bf16.mxu1 %v8457_v19 }
 0xb5c   :  { %12840 = vmatpush1.bf16.msra.mxu1 %v8456_v16 }
 0xb5d   :  { %12842 = vmatprep.subr.bf16.mxu1 %v8459_v47 }
 0xb60   :  { %12844 = vmatpush1.bf16.msra.mxu1 %v8458_v55 }
 0xb61   :  { %12846 = vmatprep.subr.bf16.mxu1 %v8461_v7 }
 0xb64   :  { %12848 = vmatpush1.bf16.msra.mxu1 %v8460_v0 }
 0xb65   :  { %12850 = vmatprep.subr.bf16.mxu1 %v8463_v60 }
 0xb68   :  { %12852 = vmatpush1.bf16.msra.mxu1 %v8462_v11 }
 0xb69   :  { %12854 = vmatprep.subr.bf16.mxu1 %v8465_v21 }
 0xb6c   :  { %12856 = vmatpush1.bf16.msra.mxu1 %v8464_v32 }
 0xb6d   :  { %12858 = vmatprep.subr.bf16.mxu1 %v8467_v33 }
 0xb70   :  { %12860 = vmatpush1.bf16.msra.mxu1 %v8466_v22 }
 0xb71   :  { %12862 = vmatprep.subr.bf16.mxu1 %v8469_v49 }
 0xb74   :  { %12864 = vmatpush1.bf16.msra.mxu1 %v8468_v13 }
 0xb75   :  { %12866 = vmatprep.subr.bf16.mxu1 %v8471_v12 }
 0xb78   :  { %12868 = vmatpush1.bf16.msra.mxu1 %v8470_v48 }
 0xb79   :  { %12870 = vmatprep.subr.bf16.mxu1 %v8473_v1 }
 0xb7c   :  { %12872 = vmatpush1.bf16.msra.mxu1 %v8472_v18 }
 0xb7d   :  { %12874 = vmatprep.subr.bf16.mxu1 %v8475_v62 }
 0xb80   :  { %12876 = vmatpush1.bf16.msra.mxu1 %v8474_v45 }
 0xb81   :  { %12878 = vmatprep.subr.bf16.mxu1 %v8477_v6 }
 0xb84   :  { %12880 = vmatpush1.bf16.msra.mxu1 %v8476_v25 }
 0xb85   :  { %12882 = vmatprep.subr.bf16.mxu1 %v8479_v50 }
 0xb87   :  { %8973 = vmatmul.mubr.f32.vlgmr.msra.gmra.mrb[20].mxu1 %v8376_v58  ;;  %v8488_v58 = vld [vmem:[#allocation5 + $0x350] sm:$0xff] }
 0xb88   :  { %12884 = vmatpush1.bf16.msra.mxu1 %v8478_v38  ;;  %9043 = vmatprep.mubr.f32.mxu1 %v8379_v31  ;;  %v8490_v31 = vld [vmem:[#allocation5 + $0x360] sm:$0xff] }
 0xb89   :  { %12886 = vmatprep.subr.bf16.mxu1 %v8481_v42 }
 0xb8c   :  { %12888 = vmatpush1.bf16.msra.mxu1 %v8480_v53 }
 0xb8d   :  { %12890 = vmatprep.subr.bf16.mxu1 %v8483_v20 }
 0xb90   :  { %12892 = vmatpush1.bf16.msra.mxu1 %v8482_v51 }
 0xb91   :  { %12894 = vmatprep.subr.bf16.mxu1 %v8485_v44 }
 0xb94   :  { %12896 = vmatpush1.bf16.msra.mxu1 %v8484_v14 }
 0xb95   :  { %12898 = vmatprep.subr.bf16.mxu1 %v8487_v27 }
 0xb98   :  { %12900 = vmatpush1.bf16.msra.mxu1 %v8486_v15 }
 0xb99   :  { %12902 = vmatprep.subr.bf16.mxu1 %v8489_v23 }
 0xb9c   :  { %12904 = vmatpush1.bf16.msra.mxu1 %v8488_v58 }
 0xb9d   :  { %12906 = vmatprep.subr.bf16.mxu1 %v8491_v59 }
 0xba0   :  { %12908 = vmatpush1.bf16.msra.mxu1 %v8490_v31 }
 0xba1   :  { %12910 = vmatprep.subr.bf16.mxu1 %v8493_v52  ;;  %v9092_v52 = vld [vmem:[#allocation25] ss:$2 sm:$0x3] }
 0xba4   :  { %12912 = vmatpush1.bf16.msra.mxu1 %v8492_v34  ;;  %v9107_v34 = vld [vmem:[#allocation25 + $0x1] ss:$2 sm:$0x3] }
 0xba5   :  { %12914 = vmatprep.subr.bf16.mxu1 %v8495_v54 }
 0xba8   :  { %12916 = vmatpush1.bf16.msra.mxu1 %v8494_v4  ;;  %v9097_v4 = vrot.slane %v9092_v52, %v14354_v17 }
 0xba9   :  { %12918 = vmatprep.subr.bf16.mxu1 %v8497_v28 }
 0xbac   :  { %12920 = vmatpush1.bf16.msra.mxu1 %v8496_v30 }
 0xbad   :  { %12922 = vmatprep.subr.bf16.mxu1 %v8499_v41  ;;  %v9101_v41 = vrot.slane %v9092_v52, %v14367_v35 }
 0xbb0   :  { %12924 = vmatpush1.bf16.msra.mxu1 %v8498_v9 }
 0xbb1   :  { %12926 = vmatprep.subr.bf16.mxu1 %v8501_v29 }
 0xbb4   :  { %12928 = vmatpush1.bf16.msra.mxu1 %v8500_v3  ;;  %v9112_v3 = vrot.slane %v9107_v34, %v14354_v17 }
 0xbb5   :  { %12930 = vmatprep.subr.bf16.mxu1 %v8503_v24 }
 0xbb8   :  { %12932 = vmatpush1.bf16.msra.mxu1 %v8502_v2  ;;  %v9116_v2 = vrot.slane %v9107_v34, %v14367_v35 }
 0xbb9   :  { %12934 = vmatprep.subr.bf16.mxu1 %v8505_v56 }
 0xbbc   :  { %12936 = vmatpush1.bf16.msra.mxu1 %v8504_v8 }
 0xbbd   :  { %12938 = vmatprep.subr.bf16.mxu1 %v8507_v37 }
 0xbc0   :  { %12940 = vmatpush1.bf16.msra.mxu1 %v8506_v61 }
 0xbc1   :  { %12942 = vmatprep.subr.bf16.mxu1 %v8509_v26 }
 0xbc4   :  { %12944 = vmatpush1.bf16.msra.mxu1 %v8508_v10 }
 0xbc7   :  { %9044 = vmatmul.mubr.f32.vlgmr.msra.gmra.mrb[20].mxu1 %v8378_v57 }
 0xc9a   :  { %v9045_v19 = vpop.f32.mrb[20].mxu1 }
 0xc9b   :  { %v9050_v16 = vrot.slane %v9045_v19, 4  ;;  %v9064_v47 = vmul.f32 %v9045_v19, %v9045_v19  ;;  %v9047_v55 = vpop.f32.mrb[21].mxu1 }
 0xc9c   :  { %v9056_v7 = vrot.slane %v9047_v55, 4  ;;  %v9065_v0 = vmul.f32 %v9047_v55, %v9047_v55 }
 0xc9d   :  { %v9051_v60 = vadd.f32 %v9050_v16, %v9045_v19  ;;  %v9066_v11 = vrot.slane %v9064_v47, 4 }
 0xc9e   :  { %v9057_v21 = vadd.f32 %v9056_v7, %v9047_v55  ;;  %v9072_v32 = vrot.slane %v9065_v0, 4 }
 0xc9f   :  { %v9052_v33 = vrot.slane %v9051_v60, 2  ;;  %v9067_v22 = vadd.f32 %v9066_v11, %v9064_v47 }
 0xca0   :  { %v9058_v49 = vrot.slane %v9057_v21, 2  ;;  %v9073_v13 = vadd.f32 %v9072_v32, %v9065_v0 }
 0xca1   :  { %v9053_v12 = vadd.f32 %v9052_v33, %v9051_v60  ;;  %v9068_v48 = vrot.slane %v9067_v22, 2 }
 0xca2   :  { %v9059_v1 = vadd.f32 %v9058_v49, %v9057_v21  ;;  %v9074_v18 = vrot.slane %v9073_v13, 2 }
 0xca3   :  { %v9054_v43 = vrot.slane %v9053_v12, 1  ;;  %v9069_v57 = vadd.f32 %v9068_v48, %v9067_v22 }
 0xca4   :  { %v9060_v62 = vrot.slane %v9059_v1, 1  ;;  %v9075_v45 = vadd.f32 %v9074_v18, %v9073_v13 }
 0xca5   :  { %v9055_v6 = vadd.f32 %v9054_v43, %v9053_v12  ;;  %v9070_v25 = vrot.slane %v9069_v57, 1 }
 0xca6   :  { %v9061_v50 = vadd.f32 %v9060_v62, %v9059_v1  ;;  %v9076_v38 = vrot.slane %v9075_v45, 1 }
 0xca7   :  { %v9062_v42 = vmul.f32 0.125, %v9055_v6  ;;  %v9071_v53 = vadd.f32 %v9070_v25, %v9069_v57 }
 0xca8   :  { %v9063_v20 = vmul.f32 0.125, %v9061_v50  ;;  %v9077_v51 = vadd.f32 %v9076_v38, %v9075_v45 }
 0xca9   :  { %v9078_v44 = vmul.f32 0.125, %v9071_v53  ;;  %v9080_v14 = vmul.f32 %v9062_v42, %v9062_v42  ;;  %v9084_v54 = vsub.f32 %v9045_v19, %v9062_v42 }
 0xcaa   :  { %v9079_v27 = vmul.f32 0.125, %v9077_v51  ;;  %v9081_v15 = vmul.f32 %v9063_v20, %v9063_v20  ;;  %v9085_v30 = vsub.f32 %v9047_v55, %v9063_v20 }
 0xcab   :  { %v9082_v23 = vsub.f32 %v9078_v44, %v9080_v14 }
 0xcac   :  { %v9083_v58 = vsub.f32 %v9079_v27, %v9081_v15 }
 0xcad   :  { %v9086_v59 = vadd.f32 1e-05, %v9082_v23 }
 0xcae   :  { %v9087_v31 = vadd.f32 1e-05, %v9083_v58 }
 0xcaf   :  { %13557 = vrsqrt.f32 %v9086_v59 }
 0xcb0   :  { %13559 = vrsqrt.f32 %v9087_v31 }
 0xcb9   :  { %v13558_v28 = vpop.eup %13557 }
 0xcba   :  { %v13560_v9 = vpop.eup %13559  ;;  %v9090_v29 = vmul.f32 %v13558_v28, %v9084_v54 }
 0xcbb   :  { %v9091_v24 = vmul.f32 %v13560_v9, %v9085_v30 }
 0xcbc   :  { %v9104_v56 = vmul.f32 %v9097_v4, %v9090_v29 }
 0xcbd   :  { %v9105_v8 = vmul.f32 %v9101_v41, %v9091_v24 }
 0xcbe   :  { %v14981_v37 = vadd.f32 %v9112_v3, %v9104_v56 }
 0xcbf   :  { %v14983_v61 = vadd.f32 %v9116_v2, %v9105_v8 }
 0xcc0   :  { %13869 = dma.done.wait [#allocation9 + $0x4], 8192 }
 0xcc1   :  { %13870 = vsyncadd [#allocation9 + $0x4], 4294959104  ;;  %v14987_v19 = vld [vmem:[#allocation6] sm:$0xff]  ;;  %v14989_v16 = vld [vmem:[#allocation6 + $0x8] sm:$0xff] }
 0xcc2   :  { %v14991_v47 = vld [vmem:[#allocation6 + $0x10] sm:$0xff]  ;;  %v14993_v55 = vld [vmem:[#allocation6 + $0x18] sm:$0xff]  ;;  %v14995_v7 = vld [vmem:[#allocation6 + $0x20] sm:$0xff] }
 0xcc3   :  { %v14997_v0 = vld [vmem:[#allocation6 + $0x28] sm:$0xff]  ;;  %v14999_v60 = vld [vmem:[#allocation6 + $0x30] sm:$0xff]  ;;  %v15001_v11 = vld [vmem:[#allocation6 + $0x38] sm:$0xff] }
 0xcc4   :  { %v15003_v21 = vld [vmem:[#allocation6 + $0x40] sm:$0xff]  ;;  %v15005_v32 = vld [vmem:[#allocation6 + $0x48] sm:$0xff]  ;;  %v15007_v33 = vld [vmem:[#allocation6 + $0x50] sm:$0xff] }
 0xcc5   :  { %v15009_v22 = vld [vmem:[#allocation6 + $0x58] sm:$0xff]  ;;  %v15011_v49 = vld [vmem:[#allocation6 + $0x60] sm:$0xff]  ;;  %v15013_v13 = vld [vmem:[#allocation6 + $0x68] sm:$0xff] }
 0xcc6   :  { %v15015_v12 = vld [vmem:[#allocation6 + $0x70] sm:$0xff]  ;;  %v15017_v48 = vld [vmem:[#allocation6 + $0x78] sm:$0xff]  ;;  %v15019_v1 = vld [vmem:[#allocation6 + $0x80] sm:$0xff] }
 0xcc7   :  { %v15021_v18 = vld [vmem:[#allocation6 + $0x88] sm:$0xff]  ;;  %v15023_v43 = vld [vmem:[#allocation6 + $0x90] sm:$0xff]  ;;  %v15025_v57 = vld [vmem:[#allocation6 + $0x98] sm:$0xff] }
 0xcc8   :  { %v15027_v62 = vld [vmem:[#allocation6 + $0xa0] sm:$0xff]  ;;  %v15029_v45 = vld [vmem:[#allocation6 + $0xa8] sm:$0xff]  ;;  %v15031_v6 = vld [vmem:[#allocation6 + $0xb0] sm:$0xff] }
 0xcc9   :  { %v15033_v25 = vld [vmem:[#allocation6 + $0xb8] sm:$0xff]  ;;  %v15035_v50 = vld [vmem:[#allocation6 + $0xc0] sm:$0xff]  ;;  %v15037_v38 = vld [vmem:[#allocation6 + $0xc8] sm:$0xff] }
 0xcca   :  { %v15039_v42 = vld [vmem:[#allocation6 + $0xd0] sm:$0xff]  ;;  %v15041_v53 = vld [vmem:[#allocation6 + $0xd8] sm:$0xff]  ;;  %v15043_v20 = vld [vmem:[#allocation6 + $0xe0] sm:$0xff] }
 0xccb   :  { %v15045_v51 = vld [vmem:[#allocation6 + $0xe8] sm:$0xff]  ;;  %v15047_v44 = vld [vmem:[#allocation6 + $0xf0] sm:$0xff]  ;;  %v15049_v14 = vld [vmem:[#allocation6 + $0xf8] sm:$0xff] }
 0xccc   :  { %v15051_v27 = vld [vmem:[#allocation6 + $0x100] sm:$0xff]  ;;  %v15053_v15 = vld [vmem:[#allocation6 + $0x108] sm:$0xff]  ;;  %v15055_v23 = vld [vmem:[#allocation6 + $0x110] sm:$0xff] }
 0xccd   :  { %v15057_v58 = vld [vmem:[#allocation6 + $0x118] sm:$0xff]  ;;  %v15059_v59 = vld [vmem:[#allocation6 + $0x120] sm:$0xff]  ;;  %v15061_v31 = vld [vmem:[#allocation6 + $0x128] sm:$0xff] }
 0xcce   :  { %v15063_v52 = vld [vmem:[#allocation6 + $0x130] sm:$0xff]  ;;  %v15065_v34 = vld [vmem:[#allocation6 + $0x138] sm:$0xff]  ;;  %v15067_v54 = vld [vmem:[#allocation6 + $0x140] sm:$0xff] }
 0xccf   :  { %v15069_v4 = vld [vmem:[#allocation6 + $0x148] sm:$0xff]  ;;  %v15071_v28 = vld [vmem:[#allocation6 + $0x150] sm:$0xff]  ;;  %v15073_v30 = vld [vmem:[#allocation6 + $0x158] sm:$0xff] }
 0xcd0   :  { %v15075_v41 = vld [vmem:[#allocation6 + $0x160] sm:$0xff]  ;;  %v15077_v9 = vld [vmem:[#allocation6 + $0x168] sm:$0xff]  ;;  %v15079_v29 = vld [vmem:[#allocation6 + $0x170] sm:$0xff] }
 0xcd1   :  { %v15081_v3 = vld [vmem:[#allocation6 + $0x178] sm:$0xff]  ;;  %v15083_v24 = vld [vmem:[#allocation6 + $0x180] sm:$0xff]  ;;  %v15085_v2 = vld [vmem:[#allocation6 + $0x188] sm:$0xff] }
 0xcd2   :  { %15268 = vst [vmem:[#allocation64_spill] sm:$0xff] %v15083_v24  ;;  %v15087_v56 = vld [vmem:[#allocation6 + $0x190] sm:$0xff]  ;;  %v15089_v8 = vld [vmem:[#allocation6 + $0x198] sm:$0xff]  ;;  %v15091_v36 = vld [vmem:[#allocation6 + $0x1a0] sm:$0xff] }
 0xcd3   :  { %15269 = vst [vmem:[#allocation65_spill] sm:$0xff] %v15087_v56  ;;  %15270 = vst [vmem:[#allocation66_spill] sm:$0xff] %v15089_v8  ;;  %v15093_v39 = vld [vmem:[#allocation6 + $0x1a8] sm:$0xff]  ;;  %v15095_v26 = vld [vmem:[#allocation6 + $0x1b0] sm:$0xff] }
 0xcd4   :  { %15271 = vst [vmem:[#allocation67_spill] sm:$0xff] %v15091_v36  ;;  %15272 = vst [vmem:[#allocation68_spill] sm:$0xff] %v15093_v39  ;;  %v15097_v10 = vld [vmem:[#allocation6 + $0x1b8] sm:$0xff]  ;;  %v15099_v5 = vld [vmem:[#allocation6 + $0x1c0] sm:$0xff] }
 0xcd5   :  { %15273 = vst [vmem:[#allocation69_spill] sm:$0xff] %v15095_v26  ;;  %15274 = vst [vmem:[#allocation70_spill] sm:$0xff] %v15097_v10  ;;  %v15101_v35 = vld [vmem:[#allocation6 + $0x1c8] sm:$0xff]  ;;  %v15103_v63 = vld [vmem:[#allocation6 + $0x1d0] sm:$0xff] }
 0xcd6   :  { %15275 = vst [vmem:[#allocation71_spill] sm:$0xff] %v15099_v5  ;;  %15276 = vst [vmem:[#allocation72_spill] sm:$0xff] %v15101_v35  ;;  %v15105_v17 = vld [vmem:[#allocation6 + $0x1d8] sm:$0xff]  ;;  %v15107_v46 = vld [vmem:[#allocation6 + $0x1e0] sm:$0xff] }
 0xcd7   :  { %15277 = vst [vmem:[#allocation73_spill] sm:$0xff] %v15103_v63  ;;  %15278 = vst [vmem:[#allocation74_spill] sm:$0xff] %v15105_v17  ;;  %v15109_v56 = vld [vmem:[#allocation6 + $0x1e8] sm:$0xff]  ;;  %v15111_v24 = vld [vmem:[#allocation6 + $0x1f0] sm:$0xff] }
 0xcd8   :  { %15279 = vst [vmem:[#allocation75_spill] sm:$0xff] %v15107_v46  ;;  %15280 = vst [vmem:[#allocation76_spill] sm:$0xff] %v15109_v56  ;;  %v15113_v36 = vld [vmem:[#allocation6 + $0x1f8] sm:$0xff] }
 0xcd9   :  { %15281 = vst [vmem:[#allocation77_spill] sm:$0xff] %v15111_v24  ;;  %15282 = vst [vmem:[#allocation78_spill] sm:$0xff] %v15113_v36 }
 0xcda   :  { %13871 = dma.done.wait [#allocation9 + $0x5], 8192 }
 0xcdb   :  { %13872 = vsyncadd [#allocation9 + $0x5], 4294959104  ;;  %v15283_v26 = vmax.f32 %v14983_v61, 0.0  ;;  %v9322_v35 = vld [vmem:[#allocation7 + $0x8] sm:$0xff]  ;;  %v9324_v63 = vld [vmem:[#allocation7 + $0x18] sm:$0xff] }
 0xcdc   :  { %v9321_v10 = vld [vmem:[#allocation7] sm:$0xff]  ;;  %12946 = vmatprep.subr.bf16.mxu0 %v9322_v35  ;;  %13010 = vmatprep.subr.bf16.mxu1 %v9324_v63  ;;  %v9323_v46 = vld [vmem:[#allocation7 + $0x10] sm:$0xff]  ;;  %v9326_v17 = vld [vmem:[#allocation7 + $0x28] sm:$0xff] }
 0xcdd   :  { %9577 = vmatprep.mubr.f32.mxu0 %v15283_v26  ;;  %v15284_v5 = vmov %v15283_v26  ;;  %v9328_v56 = vld [vmem:[#allocation7 + $0x38] sm:$0xff]  ;;  %12948 = vmatpush1.bf16.msra.mxu0 %v9321_v10  ;;  %v9325_v24 = vld [vmem:[#allocation7 + $0x20] sm:$0xff]  ;;  %v9327_v36 = vld [vmem:[#allocation7 + $0x30] sm:$0xff] }
 0xcde   :  { %9648 = vmatprep.mubr.f32.mxu1 %v15284_v5  ;;  %13012 = vmatpush1.bf16.msra.mxu1 %v9323_v46  ;;  %v9330_v39 = vld [vmem:[#allocation7 + $0x48] sm:$0xff]  ;;  %v9332_v8 = vld [vmem:[#allocation7 + $0x58] sm:$0xff]  ;;  %v9329_v5 = vld [vmem:[#allocation7 + $0x40] sm:$0xff] }
 0xcdf   :  { %12950 = vmatprep.subr.bf16.mxu0 %v9326_v17  ;;  %13014 = vmatprep.subr.bf16.mxu1 %v9328_v56  ;;  %v9331_v61 = vld [vmem:[#allocation7 + $0x50] sm:$0xff]  ;;  %v9334_v26 = vld [vmem:[#allocation7 + $0x68] sm:$0xff]  ;;  %v9336_v35 = vld [vmem:[#allocation7 + $0x78] sm:$0xff] }
 0xce0   :  { %v9333_v63 = vld [vmem:[#allocation7 + $0x60] sm:$0xff]  ;;  %v9335_v46 = vld [vmem:[#allocation7 + $0x70] sm:$0xff]  ;;  %v9338_v17 = vld [vmem:[#allocation7 + $0x88] sm:$0xff] }
 0xce1   :  { %12952 = vmatpush1.bf16.msra.mxu0 %v9325_v24  ;;  %v9340_v10 = vld [vmem:[#allocation7 + $0x98] sm:$0xff]  ;;  %v9337_v24 = vld [vmem:[#allocation7 + $0x80] sm:$0xff] }
 0xce2   :  { %13016 = vmatpush1.bf16.msra.mxu1 %v9327_v36  ;;  %12954 = vmatprep.subr.bf16.mxu0 %v9330_v39  ;;  %v9339_v36 = vld [vmem:[#allocation7 + $0x90] sm:$0xff]  ;;  %v9342_v39 = vld [vmem:[#allocation7 + $0xa8] sm:$0xff]  ;;  %v9344_v56 = vld [vmem:[#allocation7 + $0xb8] sm:$0xff] }
 0xce3   :  { %13018 = vmatprep.subr.bf16.mxu1 %v9332_v8  ;;  %v9341_v8 = vld [vmem:[#allocation7 + $0xa0] sm:$0xff] }
 0xce5   :  { %12956 = vmatpush1.bf16.msra.mxu0 %v9329_v5  ;;  %v9343_v5 = vld [vmem:[#allocation7 + $0xb0] sm:$0xff] }
 0xce6   :  { %13020 = vmatpush1.bf16.msra.mxu1 %v9331_v61  ;;  %12958 = vmatprep.subr.bf16.mxu0 %v9334_v26  ;;  %v9346_v61 = vld [vmem:[#allocation7 + $0xc8] sm:$0xff]  ;;  %v9348_v26 = vld [vmem:[#allocation7 + $0xd8] sm:$0xff] }
 0xce7   :  { %13022 = vmatprep.subr.bf16.mxu1 %v9336_v35  ;;  %v9345_v35 = vld [vmem:[#allocation7 + $0xc0] sm:$0xff] }
 0xce9   :  { %12960 = vmatpush1.bf16.msra.mxu0 %v9333_v63  ;;  %v9347_v63 = vld [vmem:[#allocation7 + $0xd0] sm:$0xff] }
 0xcea   :  { %13024 = vmatpush1.bf16.msra.mxu1 %v9335_v46  ;;  %12962 = vmatprep.subr.bf16.mxu0 %v9338_v17  ;;  %v9350_v46 = vld [vmem:[#allocation7 + $0xe8] sm:$0xff]  ;;  %v9352_v17 = vld [vmem:[#allocation7 + $0xf8] sm:$0xff] }
 0xceb   :  { %13026 = vmatprep.subr.bf16.mxu1 %v9340_v10  ;;  %v9349_v10 = vld [vmem:[#allocation7 + $0xe0] sm:$0xff] }
 0xced   :  { %12964 = vmatpush1.bf16.msra.mxu0 %v9337_v24  ;;  %v9351_v24 = vld [vmem:[#allocation7 + $0xf0] sm:$0xff] }
 0xcee   :  { %13028 = vmatpush1.bf16.msra.mxu1 %v9339_v36  ;;  %12966 = vmatprep.subr.bf16.mxu0 %v9342_v39  ;;  %v9354_v36 = vld [vmem:[#allocation7 + $0x108] sm:$0xff]  ;;  %v9356_v39 = vld [vmem:[#allocation7 + $0x118] sm:$0xff] }
 0xcef   :  { %13030 = vmatprep.subr.bf16.mxu1 %v9344_v56  ;;  %v9353_v56 = vld [vmem:[#allocation7 + $0x100] sm:$0xff] }
 0xcf1   :  { %12968 = vmatpush1.bf16.msra.mxu0 %v9341_v8  ;;  %v9355_v8 = vld [vmem:[#allocation7 + $0x110] sm:$0xff] }
 0xcf2   :  { %13032 = vmatpush1.bf16.msra.mxu1 %v9343_v5  ;;  %12970 = vmatprep.subr.bf16.mxu0 %v9346_v61  ;;  %v9358_v5 = vld [vmem:[#allocation7 + $0x128] sm:$0xff]  ;;  %v9360_v61 = vld [vmem:[#allocation7 + $0x138] sm:$0xff] }
 0xcf3   :  { %13034 = vmatprep.subr.bf16.mxu1 %v9348_v26  ;;  %v9357_v26 = vld [vmem:[#allocation7 + $0x120] sm:$0xff] }
 0xcf5   :  { %12972 = vmatpush1.bf16.msra.mxu0 %v9345_v35  ;;  %v9359_v35 = vld [vmem:[#allocation7 + $0x130] sm:$0xff] }
 0xcf6   :  { %13036 = vmatpush1.bf16.msra.mxu1 %v9347_v63  ;;  %12974 = vmatprep.subr.bf16.mxu0 %v9350_v46  ;;  %v9362_v63 = vld [vmem:[#allocation7 + $0x148] sm:$0xff]  ;;  %v9364_v46 = vld [vmem:[#allocation7 + $0x158] sm:$0xff] }
 0xcf7   :  { %13038 = vmatprep.subr.bf16.mxu1 %v9352_v17  ;;  %v9361_v17 = vld [vmem:[#allocation7 + $0x140] sm:$0xff] }
 0xcf9   :  { %12976 = vmatpush1.bf16.msra.mxu0 %v9349_v10  ;;  %v9363_v10 = vld [vmem:[#allocation7 + $0x150] sm:$0xff] }
 0xcfa   :  { %13040 = vmatpush1.bf16.msra.mxu1 %v9351_v24  ;;  %12978 = vmatprep.subr.bf16.mxu0 %v9354_v36  ;;  %v9366_v24 = vld [vmem:[#allocation7 + $0x168] sm:$0xff]  ;;  %v9368_v36 = vld [vmem:[#allocation7 + $0x178] sm:$0xff] }
 0xcfb   :  { %13042 = vmatprep.subr.bf16.mxu1 %v9356_v39  ;;  %v9365_v39 = vld [vmem:[#allocation7 + $0x160] sm:$0xff] }
 0xcfd   :  { %12980 = vmatpush1.bf16.msra.mxu0 %v9353_v56  ;;  %v9367_v56 = vld [vmem:[#allocation7 + $0x170] sm:$0xff] }
 0xcfe   :  { %13044 = vmatpush1.bf16.msra.mxu1 %v9355_v8  ;;  %12982 = vmatprep.subr.bf16.mxu0 %v9358_v5  ;;  %v9370_v8 = vld [vmem:[#allocation7 + $0x188] sm:$0xff]  ;;  %v9372_v5 = vld [vmem:[#allocation7 + $0x198] sm:$0xff] }
 0xcff   :  { %13046 = vmatprep.subr.bf16.mxu1 %v9360_v61  ;;  %v9369_v61 = vld [vmem:[#allocation7 + $0x180] sm:$0xff] }
 0xd01   :  { %12984 = vmatpush1.bf16.msra.mxu0 %v9357_v26  ;;  %v9371_v26 = vld [vmem:[#allocation7 + $0x190] sm:$0xff] }
 0xd02   :  { %13048 = vmatpush1.bf16.msra.mxu1 %v9359_v35  ;;  %12986 = vmatprep.subr.bf16.mxu0 %v9362_v63  ;;  %v9374_v35 = vld [vmem:[#allocation7 + $0x1a8] sm:$0xff]  ;;  %v9376_v63 = vld [vmem:[#allocation7 + $0x1b8] sm:$0xff] }
 0xd03   :  { %13050 = vmatprep.subr.bf16.mxu1 %v9364_v46  ;;  %v9373_v46 = vld [vmem:[#allocation7 + $0x1a0] sm:$0xff] }
 0xd05   :  { %12988 = vmatpush1.bf16.msra.mxu0 %v9361_v17  ;;  %v9375_v17 = vld [vmem:[#allocation7 + $0x1b0] sm:$0xff] }
 0xd06   :  { %13052 = vmatpush1.bf16.msra.mxu1 %v9363_v10  ;;  %12990 = vmatprep.subr.bf16.mxu0 %v9366_v24  ;;  %v9378_v10 = vld [vmem:[#allocation7 + $0x1c8] sm:$0xff]  ;;  %v9380_v24 = vld [vmem:[#allocation7 + $0x1d8] sm:$0xff] }
 0xd07   :  { %13054 = vmatprep.subr.bf16.mxu1 %v9368_v36  ;;  %v9377_v36 = vld [vmem:[#allocation7 + $0x1c0] sm:$0xff] }
 0xd09   :  { %12992 = vmatpush1.bf16.msra.mxu0 %v9365_v39  ;;  %v9379_v39 = vld [vmem:[#allocation7 + $0x1d0] sm:$0xff] }
 0xd0a   :  { %13056 = vmatpush1.bf16.msra.mxu1 %v9367_v56  ;;  %12994 = vmatprep.subr.bf16.mxu0 %v9370_v8  ;;  %v9382_v56 = vld [vmem:[#allocation7 + $0x1e8] sm:$0xff]  ;;  %v9384_v8 = vld [vmem:[#allocation7 + $0x1f8] sm:$0xff] }
 0xd0b   :  { %13058 = vmatprep.subr.bf16.mxu1 %v9372_v5  ;;  %v9381_v5 = vld [vmem:[#allocation7 + $0x1e0] sm:$0xff] }
 0xd0d   :  { %12996 = vmatpush1.bf16.msra.mxu0 %v9369_v61  ;;  %v9383_v61 = vld [vmem:[#allocation7 + $0x1f0] sm:$0xff] }
 0xd0e   :  { %13060 = vmatpush1.bf16.msra.mxu1 %v9371_v26  ;;  %12998 = vmatprep.subr.bf16.mxu0 %v9374_v35  ;;  %v15285_v26 = vmax.f32 %v14981_v37, 0.0  ;;  %v15290_v37 = vld [vmem:[#allocation64_spill] sm:$0xff] }
 0xd0f   :  { %13062 = vmatprep.subr.bf16.mxu1 %v9376_v63  ;;  %v15287_v63 = vmax.f32 %v14789_v40, 0.0  ;;  %v15289_v40 = vld [vmem:[#allocation66_spill] sm:$0xff] }
 0xd10   :  { %v15286_v35 = vmov %v15285_v26 }
 0xd11   :  { %13000 = vmatpush1.bf16.msra.mxu0 %v9373_v46 }
 0xd12   :  { %13064 = vmatpush1.bf16.msra.mxu1 %v9375_v17  ;;  %13002 = vmatprep.subr.bf16.mxu0 %v9378_v10 }
 0xd13   :  { %13066 = vmatprep.subr.bf16.mxu1 %v9380_v24 }
 0xd15   :  { %13004 = vmatpush1.bf16.msra.mxu0 %v9377_v36 }
 0xd16   :  { %13068 = vmatpush1.bf16.msra.mxu1 %v9379_v39  ;;  %13006 = vmatprep.subr.bf16.mxu0 %v9382_v56 }
 0xd17   :  { %13070 = vmatprep.subr.bf16.mxu1 %v9384_v8 }
 0xd19   :  { %13008 = vmatpush1.bf16.msra.mxu0 %v9381_v5 }
 0xd1a   :  { %13072 = vmatpush1.bf16.msra.mxu1 %v9383_v61  ;;  %13074 = vmatprep.subr.bf16.mxu0 %v14989_v16  ;;  %v15288_v16 = vmov %v15287_v63 }
 0xd1b   :  { %13138 = vmatprep.subr.bf16.mxu1 %v14993_v55  ;;  %v15293_v55 = vld [vmem:[#allocation70_spill] sm:$0xff] }
 0xd1c   :  { %9578 = vmatmul.mubr.f32.vlgmr.msra.gmra.mrb[16].mxu0 %v15285_v26 }
 0xd1d   :  { %9649 = vmatmul.mubr.f32.vlgmr.msra.gmra.mrb[22].mxu1 %v15286_v35  ;;  %13076 = vmatpush1.bf16.msra.mxu0 %v14987_v19  ;;  %v15291_v19 = vld [vmem:[#allocation65_spill] sm:$0xff] }
 0xd1e   :  { %13140 = vmatpush1.bf16.msra.mxu1 %v14991_v47  ;;  %13078 = vmatprep.subr.bf16.mxu0 %v14997_v0  ;;  %v15292_v47 = vld [vmem:[#allocation68_spill] sm:$0xff]  ;;  %v15295_v0 = vld [vmem:[#allocation69_spill] sm:$0xff] }
 0xd1f   :  { %13142 = vmatprep.subr.bf16.mxu1 %v15001_v11  ;;  %9719 = vmatprep.mubr.f32.mxu0 %v15287_v63  ;;  %v15297_v11 = vld [vmem:[#allocation74_spill] sm:$0xff] }
 0xd20   :  { %9790 = vmatprep.mubr.f32.mxu1 %v15288_v16 }
 0xd21   :  { %13080 = vmatpush1.bf16.msra.mxu0 %v14995_v7  ;;  %v15294_v7 = vld [vmem:[#allocation67_spill] sm:$0xff] }
 0xd22   :  { %13144 = vmatpush1.bf16.msra.mxu1 %v14999_v60  ;;  %13082 = vmatprep.subr.bf16.mxu0 %v15005_v32  ;;  %v15296_v60 = vld [vmem:[#allocation72_spill] sm:$0xff]  ;;  %v15299_v32 = vld [vmem:[#allocation73_spill] sm:$0xff] }
 0xd23   :  { %13146 = vmatprep.subr.bf16.mxu1 %v15009_v22  ;;  %v15301_v22 = vld [vmem:[#allocation78_spill] sm:$0xff] }
 0xd25   :  { %13084 = vmatpush1.bf16.msra.mxu0 %v15003_v21  ;;  %v15298_v21 = vld [vmem:[#allocation71_spill] sm:$0xff] }
 0xd26   :  { %13148 = vmatpush1.bf16.msra.mxu1 %v15007_v33  ;;  %13086 = vmatprep.subr.bf16.mxu0 %v15013_v13  ;;  %v15300_v33 = vld [vmem:[#allocation76_spill] sm:$0xff]  ;;  %v15303_v13 = vld [vmem:[#allocation77_spill] sm:$0xff] }
 0xd27   :  { %13150 = vmatprep.subr.bf16.mxu1 %v15017_v48 }
 0xd29   :  { %13088 = vmatpush1.bf16.msra.mxu0 %v15011_v49  ;;  %v15302_v49 = vld [vmem:[#allocation75_spill] sm:$0xff] }
 0xd2a   :  { %13152 = vmatpush1.bf16.msra.mxu1 %v15015_v12  ;;  %13090 = vmatprep.subr.bf16.mxu0 %v15021_v18  ;;  %v15304_v12 = vld [vmem:[#allocation63_spill] sm:$0xff]  ;;  %v9797_v18 = vld [vmem:[#allocation27] sm:$0xf] }
 0xd2b   :  { %13154 = vmatprep.subr.bf16.mxu1 %v15025_v57  ;;  %v15305_v48 = vmax.f32 %v15304_v12, 0.0 }
 0xd2d   :  { %13092 = vmatpush1.bf16.msra.mxu0 %v15019_v1  ;;  %v15306_v1 = vmov %v15305_v48 }
 0xd2e   :  { %13156 = vmatpush1.bf16.msra.mxu1 %v15023_v43  ;;  %13094 = vmatprep.subr.bf16.mxu0 %v15029_v45  ;;  %v15307_v43 = vld [vmem:[#allocation59_spill] sm:$0xff] }
 0xd2f   :  { %13158 = vmatprep.subr.bf16.mxu1 %v15033_v25  ;;  %v9802_v57 = vrot.slane %v9797_v18, %v15307_v43 }
 0xd31   :  { %13096 = vmatpush1.bf16.msra.mxu0 %v15027_v62  ;;  %v15308_v62 = vld [vmem:[#allocation61_spill] sm:$0xff] }
 0xd32   :  { %13160 = vmatpush1.bf16.msra.mxu1 %v15031_v6  ;;  %13098 = vmatprep.subr.bf16.mxu0 %v15037_v38  ;;  %v9810_v45 = vrot.slane %v9797_v18, %v15308_v62  ;;  %v15309_v6 = vld [vmem:[#allocation60_spill] sm:$0xff] }
 0xd33   :  { %13162 = vmatprep.subr.bf16.mxu1 %v15041_v53  ;;  %v9806_v25 = vrot.slane %v9797_v18, %v15309_v6 }
 0xd35   :  { %13100 = vmatpush1.bf16.msra.mxu0 %v15035_v50  ;;  %v15310_v50 = vld [vmem:[#allocation62_spill] sm:$0xff] }
 0xd36   :  { %13164 = vmatpush1.bf16.msra.mxu1 %v15039_v42  ;;  %13102 = vmatprep.subr.bf16.mxu0 %v15045_v51  ;;  %v9814_v38 = vrot.slane %v9797_v18, %v15310_v50 }
 0xd37   :  { %13166 = vmatprep.subr.bf16.mxu1 %v15049_v14 }
 0xd39   :  { %13104 = vmatpush1.bf16.msra.mxu0 %v15043_v20 }
 0xd3a   :  { %13168 = vmatpush1.bf16.msra.mxu1 %v15047_v44  ;;  %13106 = vmatprep.subr.bf16.mxu0 %v15053_v15 }
 0xd3b   :  { %13170 = vmatprep.subr.bf16.mxu1 %v15057_v58 }
 0xd3d   :  { %13108 = vmatpush1.bf16.msra.mxu0 %v15051_v27 }
 0xd3e   :  { %13172 = vmatpush1.bf16.msra.mxu1 %v15055_v23  ;;  %13110 = vmatprep.subr.bf16.mxu0 %v15061_v31 }
 0xd3f   :  { %13174 = vmatprep.subr.bf16.mxu1 %v15065_v34 }
 0xd41   :  { %13112 = vmatpush1.bf16.msra.mxu0 %v15059_v59 }
 0xd42   :  { %13176 = vmatpush1.bf16.msra.mxu1 %v15063_v52  ;;  %13114 = vmatprep.subr.bf16.mxu0 %v15069_v4 }
 0xd43   :  { %13178 = vmatprep.subr.bf16.mxu1 %v15073_v30 }
 0xd45   :  { %13116 = vmatpush1.bf16.msra.mxu0 %v15067_v54 }
 0xd46   :  { %13180 = vmatpush1.bf16.msra.mxu1 %v15071_v28  ;;  %13118 = vmatprep.subr.bf16.mxu0 %v15077_v9 }
 0xd47   :  { %13182 = vmatprep.subr.bf16.mxu1 %v15081_v3 }
 0xd49   :  { %13120 = vmatpush1.bf16.msra.mxu0 %v15075_v41 }
 0xd4a   :  { %13184 = vmatpush1.bf16.msra.mxu1 %v15079_v29  ;;  %13122 = vmatprep.subr.bf16.mxu0 %v15085_v2 }
 0xd4b   :  { %13186 = vmatprep.subr.bf16.mxu1 %v15289_v40 }
 0xd4d   :  { %13124 = vmatpush1.bf16.msra.mxu0 %v15290_v37 }
 0xd4e   :  { %13188 = vmatpush1.bf16.msra.mxu1 %v15291_v19  ;;  %13126 = vmatprep.subr.bf16.mxu0 %v15292_v47 }
 0xd4f   :  { %13190 = vmatprep.subr.bf16.mxu1 %v15293_v55 }
 0xd51   :  { %13128 = vmatpush1.bf16.msra.mxu0 %v15294_v7 }
 0xd52   :  { %13192 = vmatpush1.bf16.msra.mxu1 %v15295_v0  ;;  %13130 = vmatprep.subr.bf16.mxu0 %v15296_v60 }
 0xd53   :  { %13194 = vmatprep.subr.bf16.mxu1 %v15297_v11 }
 0xd55   :  { %13132 = vmatpush1.bf16.msra.mxu0 %v15298_v21 }
 0xd56   :  { %13196 = vmatpush1.bf16.msra.mxu1 %v15299_v32  ;;  %13134 = vmatprep.subr.bf16.mxu0 %v15300_v33 }
 0xd57   :  { %13198 = vmatprep.subr.bf16.mxu1 %v15301_v22 }
 0xd59   :  { %13136 = vmatpush1.bf16.msra.mxu0 %v15302_v49 }
 0xd5a   :  { %13200 = vmatpush1.bf16.msra.mxu1 %v15303_v13 }
 0xd5c   :  { %9720 = vmatmul.mubr.f32.vlgmr.msra.gmra.mrb[16].mxu0 %v15305_v48 }
 0xd5d   :  { %9791 = vmatmul.mubr.f32.vlgmr.msra.gmra.mrb[22].mxu1 %v15306_v1 }
 0xe2f   :  { %v9721_v42 = vpop.f32.mrb[16].mxu0 }
 0xe30   :  { %v9792_v53 = vpop.f32.mrb[22].mxu1  ;;  %v15199_v20 = vadd.f32 %v9802_v57, %v9721_v42  ;;  %v9723_v44 = vpop.f32.mrb[17].mxu0 }
 0xe31   :  { %v15201_v51 = vadd.f32 %v9810_v45, %v9792_v53  ;;  %v9794_v14 = vpop.f32.mrb[23].mxu1  ;;  %v9820_v27 = vadd.f32 %v9806_v25, %v9723_v44 }
 0xe32   :  { %v15203_v15 = vadd.f32 %v9814_v38, %v9794_v14 }
 0xe33   :  { %13873 = dma.done.wait [#allocation9 + $0x6], 8192 }
 0xe34   :  { %13874 = vsyncadd [#allocation9 + $0x6], 4294959104  ;;  %10095 = vmatprep.mubr.f32.mxu0 %v9820_v27  ;;  %v9828_v23 = vld [vmem:[#allocation8 + $0x8] sm:$0xff]  ;;  %v9827_v58 = vld [vmem:[#allocation8] sm:$0xff]  ;;  %vm10198_vm2 = vcmask 7168  }
 0xe35   :  { %v9830_v59 = vld [vmem:[#allocation8 + $0x18] sm:$0xff]  ;;  %13202 = vmatprep.subr.bf16.mxu0 %v9828_v23  ;;  %v9829_v31 = vld [vmem:[#allocation8 + $0x10] sm:$0xff]  ;;  %v9832_v52 = vld [vmem:[#allocation8 + $0x28] sm:$0xff] }
 0xe36   :  { %13204 = vmatpush1.bf16.msra.mxu0 %v9827_v58  ;;  %v9831_v34 = vld [vmem:[#allocation8 + $0x20] sm:$0xff]  ;;  %v9834_v54 = vld [vmem:[#allocation8 + $0x38] sm:$0xff]  ;;  %v9833_v4 = vld [vmem:[#allocation8 + $0x30] sm:$0xff] }
 0xe37   :  { %13206 = vmatprep.subr.bf16.mxu0 %v9830_v59  ;;  %v9836_v28 = vld [vmem:[#allocation8 + $0x48] sm:$0xff]  ;;  %v9835_v30 = vld [vmem:[#allocation8 + $0x40] sm:$0xff]  ;;  %v9838_v41 = vld [vmem:[#allocation8 + $0x58] sm:$0xff] }
 0xe38   :  { %v9837_v9 = vld [vmem:[#allocation8 + $0x50] sm:$0xff]  ;;  %v9840_v29 = vld [vmem:[#allocation8 + $0x68] sm:$0xff]  ;;  %v9839_v3 = vld [vmem:[#allocation8 + $0x60] sm:$0xff] }
 0xe39   :  { %v9842_v2 = vld [vmem:[#allocation8 + $0x78] sm:$0xff]  ;;  %v9841_v46 = vld [vmem:[#allocation8 + $0x70] sm:$0xff]  ;;  %v9844_v17 = vld [vmem:[#allocation8 + $0x88] sm:$0xff] }
 0xe3a   :  { %13208 = vmatpush1.bf16.msra.mxu0 %v9829_v31  ;;  %v9843_v10 = vld [vmem:[#allocation8 + $0x80] sm:$0xff]  ;;  %v9846_v24 = vld [vmem:[#allocation8 + $0x98] sm:$0xff]  ;;  %v9845_v36 = vld [vmem:[#allocation8 + $0x90] sm:$0xff] }
 0xe3b   :  { %13210 = vmatprep.subr.bf16.mxu0 %v9832_v52  ;;  %v9848_v39 = vld [vmem:[#allocation8 + $0xa8] sm:$0xff]  ;;  %v9847_v56 = vld [vmem:[#allocation8 + $0xa0] sm:$0xff]  ;;  %v9850_v8 = vld [vmem:[#allocation8 + $0xb8] sm:$0xff] }
 0xe3c   :  { %v9849_v5 = vld [vmem:[#allocation8 + $0xb0] sm:$0xff]  ;;  %v9852_v61 = vld [vmem:[#allocation8 + $0xc8] sm:$0xff]  ;;  %v9851_v26 = vld [vmem:[#allocation8 + $0xc0] sm:$0xff] }
 0xe3d   :  { %v9854_v35 = vld [vmem:[#allocation8 + $0xd8] sm:$0xff]  ;;  %v9853_v63 = vld [vmem:[#allocation8 + $0xd0] sm:$0xff]  ;;  %v9856_v16 = vld [vmem:[#allocation8 + $0xe8] sm:$0xff] }
 0xe3e   :  { %13212 = vmatpush1.bf16.msra.mxu0 %v9831_v34  ;;  %v9855_v40 = vld [vmem:[#allocation8 + $0xe0] sm:$0xff]  ;;  %v9858_v37 = vld [vmem:[#allocation8 + $0xf8] sm:$0xff]  ;;  %v9857_v19 = vld [vmem:[#allocation8 + $0xf0] sm:$0xff] }
 0xe3f   :  { %13214 = vmatprep.subr.bf16.mxu0 %v9834_v54  ;;  %v9860_v47 = vld [vmem:[#allocation8 + $0x108] sm:$0xff]  ;;  %v9859_v55 = vld [vmem:[#allocation8 + $0x100] sm:$0xff]  ;;  %v9862_v7 = vld [vmem:[#allocation8 + $0x118] sm:$0xff] }
 0xe40   :  { %v9861_v0 = vld [vmem:[#allocation8 + $0x110] sm:$0xff]  ;;  %v9864_v60 = vld [vmem:[#allocation8 + $0x128] sm:$0xff]  ;;  %v9863_v11 = vld [vmem:[#allocation8 + $0x120] sm:$0xff] }
 0xe41   :  { %v9866_v21 = vld [vmem:[#allocation8 + $0x138] sm:$0xff]  ;;  %v9865_v32 = vld [vmem:[#allocation8 + $0x130] sm:$0xff]  ;;  %v9868_v33 = vld [vmem:[#allocation8 + $0x148] sm:$0xff] }
 0xe42   :  { %13216 = vmatpush1.bf16.msra.mxu0 %v9833_v4  ;;  %v9867_v22 = vld [vmem:[#allocation8 + $0x140] sm:$0xff]  ;;  %v9870_v49 = vld [vmem:[#allocation8 + $0x158] sm:$0xff]  ;;  %v9869_v13 = vld [vmem:[#allocation8 + $0x150] sm:$0xff] }
 0xe43   :  { %13218 = vmatprep.subr.bf16.mxu0 %v9836_v28  ;;  %v9872_v12 = vld [vmem:[#allocation8 + $0x168] sm:$0xff]  ;;  %v9871_v48 = vld [vmem:[#allocation8 + $0x160] sm:$0xff]  ;;  %v9874_v1 = vld [vmem:[#allocation8 + $0x178] sm:$0xff] }
 0xe44   :  { %v9873_v18 = vld [vmem:[#allocation8 + $0x170] sm:$0xff]  ;;  %v9876_v57 = vld [vmem:[#allocation8 + $0x188] sm:$0xff]  ;;  %v9875_v62 = vld [vmem:[#allocation8 + $0x180] sm:$0xff] }
 0xe45   :  { %v9878_v45 = vld [vmem:[#allocation8 + $0x198] sm:$0xff]  ;;  %v9877_v25 = vld [vmem:[#allocation8 + $0x190] sm:$0xff]  ;;  %v9880_v50 = vld [vmem:[#allocation8 + $0x1a8] sm:$0xff] }
 0xe46   :  { %13220 = vmatpush1.bf16.msra.mxu0 %v9835_v30  ;;  %v9879_v38 = vld [vmem:[#allocation8 + $0x1a0] sm:$0xff]  ;;  %v9882_v42 = vld [vmem:[#allocation8 + $0x1b8] sm:$0xff]  ;;  %v9881_v53 = vld [vmem:[#allocation8 + $0x1b0] sm:$0xff] }
 0xe47   :  { %13222 = vmatprep.subr.bf16.mxu0 %v9838_v41  ;;  %v9883_v44 = vld [vmem:[#allocation8 + $0x1c0] sm:$0xff]  ;;  %v9886_v14 = vld [vmem:[#allocation8 + $0x1d8] sm:$0xff]  ;;  %v9885_v27 = vld [vmem:[#allocation8 + $0x1d0] sm:$0xff] }
 0xe48   :  { %v9887_v23 = vld [vmem:[#allocation8 + $0x1e0] sm:$0xff]  ;;  %v9890_v58 = vld [vmem:[#allocation8 + $0x1f8] sm:$0xff]  ;;  %v9889_v59 = vld [vmem:[#allocation8 + $0x1f0] sm:$0xff] }
 0xe49   :  { %v10019_v31 = vld [vmem:[#allocation28] sm:$0x3]  ;;  %v10173_v52 = vld [vmem:[#allocation30] sm:$0x3] }
 0xe4a   :  { %13224 = vmatpush1.bf16.msra.mxu0 %v9837_v9  ;;  %v10024_v34 = vrot.slane %v10019_v31, %v15307_v43  ;;  %v10028_v54 = vrot.slane %v10019_v31, %v15309_v6  ;;  %v10178_v4 = vrot.slane %v10173_v52, %v15307_v43  ;;  %v10182_v30 = vrot.slane %v10173_v52, %v15309_v6 }
 0xe4b   :  { %13226 = vmatprep.subr.bf16.mxu0 %v9840_v29 }
 0xe4e   :  { %13228 = vmatpush1.bf16.msra.mxu0 %v9839_v3 }
 0xe4f   :  { %13230 = vmatprep.subr.bf16.mxu0 %v9842_v2 }
 0xe52   :  { %13232 = vmatpush1.bf16.msra.mxu0 %v9841_v46 }
 0xe53   :  { %13234 = vmatprep.subr.bf16.mxu0 %v9844_v17  ;;  %v10281_v17 = vld [vmem:[#allocation10] ss:$0 sm:$0xff] }
 0xe56   :  { %13236 = vmatpush1.bf16.msra.mxu0 %v9843_v10 }
 0xe57   :  { %13238 = vmatprep.subr.bf16.mxu0 %v9846_v24 }
 0xe5a   :  { %13240 = vmatpush1.bf16.msra.mxu0 %v9845_v36 }
 0xe5b   :  { %13242 = vmatprep.subr.bf16.mxu0 %v9848_v39 }
 0xe5e   :  { %13244 = vmatpush1.bf16.msra.mxu0 %v9847_v56 }
 0xe5f   :  { %13246 = vmatprep.subr.bf16.mxu0 %v9850_v8 }
 0xe62   :  { %13248 = vmatpush1.bf16.msra.mxu0 %v9849_v5 }
 0xe63   :  { %13250 = vmatprep.subr.bf16.mxu0 %v9852_v61 }
 0xe66   :  { %13252 = vmatpush1.bf16.msra.mxu0 %v9851_v26 }
 0xe67   :  { %13254 = vmatprep.subr.bf16.mxu0 %v9854_v35 }
 0xe6a   :  { %13256 = vmatpush1.bf16.msra.mxu0 %v9853_v63 }
 0xe6b   :  { %13258 = vmatprep.subr.bf16.mxu0 %v9856_v16 }
 0xe6e   :  { %13260 = vmatpush1.bf16.msra.mxu0 %v9855_v40 }
 0xe6f   :  { %13262 = vmatprep.subr.bf16.mxu0 %v9858_v37 }
 0xe72   :  { %13264 = vmatpush1.bf16.msra.mxu0 %v9857_v19 }
 0xe73   :  { %13266 = vmatprep.subr.bf16.mxu0 %v9860_v47 }
 0xe75   :  { %10096 = vmatmul.mubr.f32.vlgmr.msra.gmra.mrb[18].mxu0 %v15199_v20  ;;  %v9884_v20 = vld [vmem:[#allocation8 + $0x1c8] sm:$0xff] }
 0xe76   :  { %13268 = vmatpush1.bf16.msra.mxu0 %v9859_v55  ;;  %10166 = vmatprep.mubr.f32.mxu0 %v15203_v15  ;;  %v9888_v15 = vld [vmem:[#allocation8 + $0x1e8] sm:$0xff] }
 0xe77   :  { %13270 = vmatprep.subr.bf16.mxu0 %v9862_v7 }
 0xe7a   :  { %13272 = vmatpush1.bf16.msra.mxu0 %v9861_v0 }
 0xe7b   :  { %13274 = vmatprep.subr.bf16.mxu0 %v9864_v60 }
 0xe7e   :  { %13276 = vmatpush1.bf16.msra.mxu0 %v9863_v11 }
 0xe7f   :  { %13278 = vmatprep.subr.bf16.mxu0 %v9866_v21 }
 0xe82   :  { %13280 = vmatpush1.bf16.msra.mxu0 %v9865_v32 }
 0xe83   :  { %13282 = vmatprep.subr.bf16.mxu0 %v9868_v33 }
 0xe86   :  { %13284 = vmatpush1.bf16.msra.mxu0 %v9867_v22 }
 0xe87   :  { %13286 = vmatprep.subr.bf16.mxu0 %v9870_v49 }
 0xe8a   :  { %13288 = vmatpush1.bf16.msra.mxu0 %v9869_v13 }
 0xe8b   :  { %13290 = vmatprep.subr.bf16.mxu0 %v9872_v12 }
 0xe8e   :  { %13292 = vmatpush1.bf16.msra.mxu0 %v9871_v48 }
 0xe8f   :  { %13294 = vmatprep.subr.bf16.mxu0 %v9874_v1 }
 0xe92   :  { %13296 = vmatpush1.bf16.msra.mxu0 %v9873_v18 }
 0xe93   :  { %13298 = vmatprep.subr.bf16.mxu0 %v9876_v57 }
 0xe96   :  { %13300 = vmatpush1.bf16.msra.mxu0 %v9875_v62 }
 0xe97   :  { %13302 = vmatprep.subr.bf16.mxu0 %v9878_v45 }
 0xe9a   :  { %13304 = vmatpush1.bf16.msra.mxu0 %v9877_v25 }
 0xe9b   :  { %13306 = vmatprep.subr.bf16.mxu0 %v9880_v50 }
 0xe9e   :  { %13308 = vmatpush1.bf16.msra.mxu0 %v9879_v38 }
 0xe9f   :  { %13310 = vmatprep.subr.bf16.mxu0 %v9882_v42 }
 0xea2   :  { %13312 = vmatpush1.bf16.msra.mxu0 %v9881_v53 }
 0xea3   :  { %13314 = vmatprep.subr.bf16.mxu0 %v9884_v20 }
 0xea6   :  { %13316 = vmatpush1.bf16.msra.mxu0 %v9883_v44 }
 0xea7   :  { %13318 = vmatprep.subr.bf16.mxu0 %v9886_v14 }
 0xeaa   :  { %13320 = vmatpush1.bf16.msra.mxu0 %v9885_v27 }
 0xeab   :  { %13322 = vmatprep.subr.bf16.mxu0 %v9888_v15 }
 0xeae   :  { %13324 = vmatpush1.bf16.msra.mxu0 %v9887_v23 }
 0xeaf   :  { %13326 = vmatprep.subr.bf16.mxu0 %v9890_v58 }
 0xeb2   :  { %13328 = vmatpush1.bf16.msra.mxu0 %v9889_v59 }
 0xeb5   :  { %10167 = vmatmul.mubr.f32.vlgmr.msra.gmra.mrb[18].mxu0 %v15201_v51 }
 0xf88   :  { %v10168_v28 = vpop.f32.mrb[18].mxu0 }
 0xf89   :  { %v13331_v41 = vadd.f32 %v10168_v28, %v10024_v34  ;;  %v10170_v9 = vpop.f32.mrb[19].mxu0 }
 0xf8a   :  { %v13332_v29 = vadd.f32 %v10170_v9, %v10028_v54 }
 0xf8b   :  { %v10185_v3 = vmul.f32 %v13331_v41, %v10178_v4 }
 0xf8c   :  { %v10186_v2 = vmul.f32 %v13332_v29, %v10182_v30 }
 0xf8e   :  { %v10187_v46 = vadd.f32 %v10186_v2, %v10185_v3 }
 0xf90   :  { %10188 = vadd.xlane.f32.xlu0 %v10187_v46 }
0x101d   :  { %v10189_v51 = vpop.xlane.xlu0 %10188 }
0x101e   :  { %v10197_v10 = vadd.f32 %v10281_v17, %v10189_v51 }
0x1020   :  { %10199 = vst.msk [vmem:[%s15236_s21] sm:$0xff] %vm10198_vm2, %v10197_v10 }
0x1021   :  { %10204 = vsyncpa [#allocation12], 1 }
0x1022   :  { %10205 = vsyncpa [#allocation14], 1 }
0x1023   :  { %10206 = vsyncpa [#allocation17], 1 }
0x1024   :  { %10207 = vsyncpa [#allocation20], 1 }
0x1025   :  { %10208 = vsyncpa [#allocation23], 1 }
0x1026   :  { %10209 = vsyncpa [#allocation26], 1 }
0x1027   :  { %10210 = vsyncpa [#allocation29], 1 }
0x1028   :  { %10211 = vsyncmov [#allocation9] }
0x102b   :  { %s10212_s23 = vpop.sfrf %10211 }
0x102c   :  { %p10282_p6 = scmp.ne.s32.totalorder %s10212_s23, 0 }
0x102e   :  { %10216 = shalt.err (%p10282_p6)  }
0x102f   :  { %10218 = vsyncmov [#allocation9 + $0x1] }
0x1032   :  { %s10219_s26 = vpop.sfrf %10218 }
0x1033   :  { %p10283_p7 = scmp.ne.s32.totalorder %s10219_s26, 0 }
0x1035   :  { %10223 = shalt.err (%p10283_p7)  }
0x1036   :  { %10225 = vsyncmov [#allocation9 + $0x2] }
0x1039   :  { %s10226_s9 = vpop.sfrf %10225 }
0x103a   :  { %p10284_p8 = scmp.ne.s32.totalorder %s10226_s9, 0 }
0x103c   :  { %10230 = shalt.err (%p10284_p8)  }
0x103d   :  { %10232 = vsyncmov [#allocation9 + $0x3] }
0x1040   :  { %s10233_s21 = vpop.sfrf %10232 }
0x1041   :  { %p10285_p9 = scmp.ne.s32.totalorder %s10233_s21, 0 }
0x1043   :  { %10237 = shalt.err (%p10285_p9)  }
0x1044   :  { %10239 = vsyncmov [#allocation9 + $0x4] }
0x1047   :  { %s10240_s8 = vpop.sfrf %10239 }
0x1048   :  { %p10286_p10 = scmp.ne.s32.totalorder %s10240_s8, 0 }
0x104a   :  { %10244 = shalt.err (%p10286_p10)  }
0x104b   :  { %10246 = vsyncmov [#allocation9 + $0x5] }
0x104e   :  { %s10247_s12 = vpop.sfrf %10246 }
0x104f   :  { %p10287_p11 = scmp.ne.s32.totalorder %s10247_s12, 0 }
0x1051   :  { %10251 = shalt.err (%p10287_p11)  }
0x1052   :  { %10253 = vsyncmov [#allocation9 + $0x6] }
0x1055   :  { %s10254_s30 = vpop.sfrf %10253 }
0x1056   :  { %p10288_p12 = scmp.ne.s32.totalorder %s10254_s30, 0 }
0x1058   :  { %10258 = shalt.err (%p10288_p12)  }

</bundles_post_ra>
